<compile_context>
chip_gen: v7x
topology: tpu7x:2x2x1
jax: 0.10.0
libtpu: 0.0.40
codegen_flags: <defaults>
</compile_context>

<pallas_src>
import functools

import jax
import jax.numpy as jnp
from jax import lax
from jax.experimental import pallas as pl
from jax.experimental.pallas import tpu as pltpu


# ----------------------------- activations ----------------------------------
def _hard_swish(x):
    return x * jnp.clip(x + 3.0, 0.0, 6.0) * (1.0 / 6.0)


def _hard_sigmoid(x):
    # matches hard_sigmod(): relu6(1.2*x + 3) / 6
    return jnp.clip(1.2 * x + 3.0, 0.0, 6.0) * (1.0 / 6.0)


def _apply_act(x, act):
    if act is None:
        return x
    if act == "relu":
        return jnp.maximum(x, 0.0)
    if act == "relu6":
        return jnp.clip(x, 0.0, 6.0)
    if act == "hard_swish":
        return _hard_swish(x)
    raise NotImplementedError(f"unsupported activation: {act}")


# ------------------------ fused ResidualUnit kernel --------------------------
def _residual_unit_kernel(
    x_ref,       # (B*in_c, HW)   block of B images, NCHW-native, lane-dense
    wexp_ref,    # (mid, in_c)    bf16, BN scale folded
    bexp_ref,    # (mid, 1)       f32
    wdw_ref,     # (K*K, mid, 1)  f32 per-tap per-channel depthwise weights
    mask_ref,    # (K*K, 1, HW)   f32 per-tap spatial zero-padding masks
    bdw_ref,     # (mid, 1)       f32
    wse1_ref,    # (se_mid, mid)  f32
    bse1_ref,    # (se_mid, 1)
    wse2_ref,    # (mid, se_mid)
    bse2_ref,    # (mid, 1)
    wlin_ref,    # (out_c, mid)   bf16, BN scale folded
    blin_ref,    # (out_c, 1)     f32
    *out_refs,   # out_ref (B*out_c, HW) [, y_ref (B*mid, HW) if emit_y]
    B, in_c, mid, out_c, H, W, K, act, use_se, add_residual, emit_y,
):
    HW = H * W
    KK = K * K
    pad = (K - 1) // 2
    center = pad * K + pad
    f32 = jnp.float32
    bf16 = jnp.bfloat16

    out_ref = out_refs[0]
    y_ref = out_refs[1] if emit_y else None

    # Small constants, hoisted once per grid step.
    w_exp = wexp_ref[...]
    b_exp = bexp_ref[...]
    b_dw = bdw_ref[...]
    w_se1 = wse1_ref[...]
    b_se1 = bse1_ref[...]
    w_se2 = wse2_ref[...]
    b_se2 = bse2_ref[...]
    w_lin = wlin_ref[...]
    b_lin = blin_ref[...]

    # Per-tap (mid, HW) weight planes with the "SAME" zero padding pre-baked
    # (no iota / jnp.where in the hot loop).  Built once per step from ~10 KB
    # of constants: (mid,1) per-channel weight x (1,HW) boundary mask.
    planes = [wdw_ref[k] * mask_ref[k] for k in range(KK)]

    # pltpu.roll follows the jnp.roll convention: roll(x, s)[..., j] == x[..., j-s].
    # We want t[., s] = y[., s + delta]  ->  shift = (-delta) mod HW.
    shifts = [(-(dh * W + dw)) % HW
              for dh in range(-pad, pad + 1) for dw in range(-pad, pad + 1)]

    for b in range(B):                         # static unroll: B images / step
        r_in = b * in_c

        # ---- expand_conv: 1x1 conv + BN + act (dense (mid,in_c) matmul) -----
        xb = x_ref[r_in:r_in + in_c, :]                             # (in_c, HW)
        y = jnp.dot(w_exp, xb.astype(bf16),
                    preferred_element_type=f32) + b_exp
        y = _apply_act(y, act)                                      # (mid, HW)
        if emit_y:
            y_ref[b * mid:(b + 1) * mid, :] = y.astype(y_ref.dtype)

        # ---- bottleneck_conv: depthwise KxK, stride 1, "SAME" padding -------
        # Every (dh, dw) offset is a single lane roll (XLU); padding zeros come
        # from the masked weight planes.  Accumulation stays f32 on the VPU.
        acc = y * planes[center]
        for k in range(KK):
            if k == center:
                continue
            t = pltpu.roll(y, shift=shifts[k], axis=1)
            acc = acc + t * planes[k]
        z = _apply_act(acc + b_dw, act)                             # (mid, HW)

        # ---- SE: pool -> fc -> relu -> fc -> hard_sigmoid -> scale ----------
        if use_se:
            pooled = jnp.sum(z, axis=1, keepdims=True) * (1.0 / HW)  # (mid, 1)
            s = jnp.dot(w_se1, pooled, preferred_element_type=f32) + b_se1
            s = jnp.maximum(s, 0.0)
            g = jnp.dot(w_se2, s, preferred_element_type=f32) + b_se2
            z = z * _hard_sigmoid(g)                                # (mid, HW)

        # ---- linear_conv: 1x1 conv + BN (no act) + fused shortcut add -------
        o = jnp.dot(w_lin, z.astype(bf16),
                    preferred_element_type=f32) + b_lin             # (out_c, HW)
        if add_residual:
            # Re-read the input rows here (bounded live range) instead of
            # keeping xb alive across the whole tap loop.
            o = o + x_ref[r_in:r_in + in_c, :]
        out_ref[b * out_c:(b + 1) * out_c, :] = o.astype(out_ref.dtype)


# ------------------------------ parameters ----------------------------------
def fold_bn(gamma, beta, mean, var, eps=1e-5):
    scale = gamma / jnp.sqrt(var + eps)
    bias = beta - mean * scale
    return scale, bias


def init_params(key, in_c, mid_c, out_c, K):
    ks = jax.random.split(key, 16)
    se_mid = mid_c // 4

    def bn(k, c):
        k1, k2, k3, k4 = jax.random.split(k, 4)
        gamma = jax.random.uniform(k1, (c,), jnp.float32, 0.5, 1.5)
        beta = jax.random.normal(k2, (c,), jnp.float32) * 0.1
        mean = jax.random.normal(k3, (c,), jnp.float32) * 0.1
        var = jax.random.uniform(k4, (c,), jnp.float32, 0.5, 1.5)
        return fold_bn(gamma, beta, mean, var)

    p = {}
    # expand_conv: 1x1 (in_c -> mid_c), no bias, + BN
    p["w_expand"] = jax.random.normal(ks[0], (in_c, mid_c), jnp.float32) * 0.1
    p["s_expand"], p["b_expand"] = bn(ks[1], mid_c)
    # bottleneck_conv: depthwise KxK (mid_c), no bias, + BN
    p["w_dw"] = jax.random.normal(ks[2], (K, K, mid_c), jnp.float32) * 0.1
    p["s_dw"], p["b_dw"] = bn(ks[3], mid_c)
    # SE module (1x1 convs WITH bias)
    p["w_se1"] = jax.random.normal(ks[4], (mid_c, se_mid), jnp.float32) * 0.1
    p["b_se1"] = jax.random.normal(ks[5], (se_mid,), jnp.float32) * 0.1
    p["w_se2"] = jax.random.normal(ks[6], (se_mid, mid_c), jnp.float32) * 0.1
    p["b_se2"] = jax.random.normal(ks[7], (mid_c,), jnp.float32) * 0.1
    # linear_conv: 1x1 (mid_c -> out_c), no bias, + BN, no act
    p["w_linear"] = jax.random.normal(ks[8], (mid_c, out_c), jnp.float32) * 0.1
    p["s_linear"], p["b_linear"] = bn(ks[9], out_c)
    return p


def _prepare_params(p, H, W):
    """Fold BN scales into the conv weights and pre-bake depthwise masks."""
    in_c, mid = p["w_expand"].shape
    out_c = p["w_linear"].shape[1]
    K = p["w_dw"].shape[0]
    pad = (K - 1) // 2
    f32 = jnp.float32
    HW = H * W

    # Dense 1x1 weights, BN scale folded, stored transposed (out, in) in bf16.
    # (Explicit bf16: the MXU uses bf16 multiplies at default precision anyway,
    # so this is free accuracy-wise and halves weight bytes.)
    w_exp_t = (p["w_expand"] * p["s_expand"][None, :]).T.astype(jnp.bfloat16)
    w_lin_t = (p["w_linear"] * p["s_linear"][None, :]).T.astype(jnp.bfloat16)

    # Per-tap depthwise per-channel weights (BN folded) + spatial zero-pad
    # masks over the flattened (h*W + w) lane index.
    s = jnp.arange(HW)
    hh, ww = s // W, s % W
    wcols, masks = [], []
    for dh in range(-pad, pad + 1):
        for dw in range(-pad, pad + 1):
            ok = ((hh + dh >= 0) & (hh + dh < H) &
                  (ww + dw >= 0) & (ww + dw < W))
            masks.append(ok.astype(f32).reshape(1, HW))
            wcols.append((p["w_dw"][dh + pad, dw + pad] *
                          p["s_dw"]).astype(f32).reshape(mid, 1))

    return dict(
        w_exp_t=w_exp_t,
        b_exp=p["b_expand"].astype(f32).reshape(mid, 1),
        w_dw_cols=jnp.stack(wcols),                 # (K*K, mid, 1)
        dw_masks=jnp.stack(masks),                  # (K*K, 1, HW)
        b_dw=p["b_dw"].astype(f32).reshape(mid, 1),
        w_se1_t=p["w_se1"].T.astype(f32),           # (se_mid, mid)
        b_se1=p["b_se1"].astype(f32).reshape(-1, 1),
        w_se2_t=p["w_se2"].T.astype(f32),           # (mid, se_mid)
        b_se2=p["b_se2"].astype(f32).reshape(-1, 1),
        w_lin_t=w_lin_t,
        b_lin=p["b_linear"].astype(f32).reshape(out_c, 1),
    )


def _pick_images_per_step(N, H):
    """Images per grid step: ~128 rows of spatial work, and >= 2 grid steps."""
    target = max(1, 128 // max(H, 1))
    divisors = [b for b in range(1, N + 1) if N % b == 0]
    cands = [b for b in divisors if b <= target] or [1]
    B = max(cands)
    if B == N and N >= 2:           # keep >= 2 steps so megacore can split
        smaller = [b for b in divisors if b < N]
        if smaller:
            B = max(smaller)
    return B


# ------------------------------ forward pass --------------------------------
def residual_unit_forward(x_nchw, p, *, act="hard_swish", use_se=True,
                          stride=1, return_list=False):
    """ResidualUnit.forward (inference-mode BN) via a single fused Pallas kernel."""
    if stride != 1:
        # TODO(synk): stride>1 depthwise path (no shortcut) is not implemented.
        raise NotImplementedError("only the stride=1 configuration is implemented")

    N, in_c, H, W = x_nchw.shape
    mid = p["w_expand"].shape[1]
    out_c = p["w_linear"].shape[1]
    K = p["w_dw"].shape[0]
    HW = H * W
    add_residual = (stride == 1) and (in_c == out_c)

    # NCHW-native, lane-dense layout: (N*C, H*W).  The reshapes are free, so
    # there are no layout transposes outside the kernel.
    assert HW % 128 == 0, "H*W must be a multiple of 128 (lane-dense spatial)"
    assert in_c % 8 == 0 and mid % 8 == 0 and out_c % 8 == 0, \
        "channel counts must be multiples of 8 (sublane-aligned image slices)"

    B = _pick_images_per_step(N, H)
    grid = (N // B,)

    prep = _prepare_params(p, H, W)
    se_mid = prep["w_se1_t"].shape[0]

    kernel = functools.partial(
        _residual_unit_kernel, B=B, in_c=in_c, mid=mid, out_c=out_c,
        H=H, W=W, K=K, act=act, use_se=use_se,
        add_residual=add_residual, emit_y=return_list)

    def _const_spec(a):
        nd = a.ndim
        return pl.BlockSpec(a.shape, lambda n, _nd=nd: (0,) * _nd)

    const_names = ["w_exp_t", "b_exp", "w_dw_cols", "dw_masks", "b_dw",
                   "w_se1_t", "b_se1", "w_se2_t", "b_se2", "w_lin_t", "b_lin"]
    const_args = [prep[n] for n in const_names]

    x_flat = x_nchw.reshape(N * in_c, HW).astype(jnp.float32)

    in_specs = [pl.BlockSpec((B * in_c, HW), lambda n: (n, 0))]
    in_specs += [_const_spec(a) for a in const_args]

    out_shape = [jax.ShapeDtypeStruct((N * out_c, HW), jnp.float32)]
    out_specs = [pl.BlockSpec((B * out_c, HW), lambda n: (n, 0))]
    if return_list:
        out_shape.append(jax.ShapeDtypeStruct((N * mid, HW), jnp.float32))
        out_specs.append(pl.BlockSpec((B * mid, HW), lambda n: (n, 0)))

    flops = 2 * N * HW * (in_c * mid + K * K * mid + mid * out_c)
    flops += 2 * N * (mid * se_mid + se_mid * mid)
    bytes_accessed = (int(x_flat.size) * 4 + N * out_c * HW * 4
                      + sum(int(a.size) * a.dtype.itemsize for a in const_args)
                      + (N * mid * HW * 4 if return_list else 0))

    results = pl.pallas_call(
        kernel,
        out_shape=tuple(out_shape) if return_list else out_shape[0],
        grid=grid,
        in_specs=in_specs,
        out_specs=tuple(out_specs) if return_list else out_specs[0],
        compiler_params=pltpu.CompilerParams(
            dimension_semantics=("parallel",)),
        cost_estimate=pl.CostEstimate(flops=flops, transcendentals=0,
                                      bytes_accessed=bytes_accessed),
    )(x_flat, *const_args)

    if return_list:
        out_flat, y_flat = results
        out = out_flat.reshape(N, out_c, H, W)
        y = y_flat.reshape(N, mid, H, W)
        return [y, out]
    return results.reshape(N, out_c, H, W)


# ------------------------- pure-JAX reference (check) ------------------------
def reference_forward(x_nchw, p, *, act="hard_swish", use_se=True, stride=1):
    x = jnp.transpose(x_nchw, (0, 2, 3, 1)).astype(jnp.float32)
    Cin = x.shape[-1]
    mid_c = p["w_expand"].shape[1]
    out_c = p["w_linear"].shape[1]
    dn = ("NHWC", "HWIO", "NHWC")

    y = lax.conv_general_dilated(x, p["w_expand"][None, None], (1, 1), "VALID",
                                 dimension_numbers=dn)
    y = y * p["s_expand"] + p["b_expand"]
    y = _apply_act(y, act)

    w_dw = p["w_dw"][:, :, None, :]   # (K, K, 1, mid_c), feature_group_count=mid_c
    z = lax.conv_general_dilated(y, w_dw, (stride, stride), "SAME",
                                 dimension_numbers=dn, feature_group_count=mid_c)
    z = z * p["s_dw"] + p["b_dw"]
    z = _apply_act(z, act)

    if use_se:
        pooled = jnp.mean(z, axis=(1, 2))                       # (N, mid_c)
        s = jnp.maximum(pooled @ p["w_se1"] + p["b_se1"], 0.0)
        g = _hard_sigmoid(s @ p["w_se2"] + p["b_se2"])
        z = z * g[:, None, None, :]

    o = lax.conv_general_dilated(z, p["w_linear"][None, None], (1, 1), "VALID",
                                 dimension_numbers=dn)
    o = o * p["s_linear"] + p["b_linear"]
    if stride == 1 and Cin == out_c:
        o = o + x
    return jnp.transpose(o, (0, 3, 1, 2))


# ---------------------------------- main -------------------------------------
if __name__ == "__main__":
    N, in_c, H, W = 16, 16, 16, 16
    mid_c, out_c, K, stride = 32, 16, 3, 1     # stride=1, in_c==out_c -> shortcut

    key = jax.random.PRNGKey(0)
    kx, kp = jax.random.split(key)
    x = jax.random.normal(kx, (N, in_c, H, W), jnp.float32)    # NCHW like PyTorch
    params = init_params(kp, in_c, mid_c, out_c, K)

    out = residual_unit_forward(x, params, act="hard_swish", use_se=True,
                                stride=stride)
    out = jax.block_until_ready(out)

    ref = jax.block_until_ready(reference_forward(x, params, act="hard_swish",
                                                  use_se=True, stride=stride))
    assert out.shape == (N, out_c, H, W)
    # Tolerance sized for TPU matmul precision (explicit bf16 multiplies / f32
    # accumulation) and BN-scale folding reassociation; genuine kernel bugs
    # produce errors orders of magnitude larger.
    assert jnp.allclose(out, ref, rtol=5e-3, atol=5e-3), "mismatch vs reference"

    print("KERNEL_OK")
</pallas_src>

<mosaic_0001>
module attributes {stable_mosaic.version = 11 : i64} {
  func.func @_residual_unit_kernel(%arg0: i32, %arg1: memref<128x256xf32, #tpu.memory_space<vmem>>, %arg2: memref<32x16xbf16, #tpu.memory_space<vmem>>, %arg3: memref<32x1xf32, #tpu.memory_space<vmem>>, %arg4: memref<9x32x1xf32, #tpu.memory_space<vmem>>, %arg5: memref<9x1x256xf32, #tpu.memory_space<vmem>>, %arg6: memref<32x1xf32, #tpu.memory_space<vmem>>, %arg7: memref<8x32xf32, #tpu.memory_space<vmem>>, %arg8: memref<8x1xf32, #tpu.memory_space<vmem>>, %arg9: memref<32x8xf32, #tpu.memory_space<vmem>>, %arg10: memref<32x1xf32, #tpu.memory_space<vmem>>, %arg11: memref<16x32xbf16, #tpu.memory_space<vmem>>, %arg12: memref<16x1xf32, #tpu.memory_space<vmem>>, %arg13: memref<128x256xf32, #tpu.memory_space<vmem>>) attributes {dimension_semantics = [#tpu.dimension_semantics<parallel>], iteration_bounds = array<i64: 2>, scalar_prefetch = 0 : i64, scratch_operands = 0 : i64, tpu.core_type = #tpu.core_type<tc>, window_params = [{transform_indices = @transform_0, window_bounds = array<i64: 128, 256>}, {pipeline_mode = #tpu.pipeline_mode<synchronous>, transform_indices = @transform_1, window_bounds = array<i64: 32, 16>}, {pipeline_mode = #tpu.pipeline_mode<synchronous>, transform_indices = @transform_2, window_bounds = array<i64: 32, 1>}, {pipeline_mode = #tpu.pipeline_mode<synchronous>, transform_indices = @transform_3, window_bounds = array<i64: 9, 32, 1>}, {pipeline_mode = #tpu.pipeline_mode<synchronous>, transform_indices = @transform_4, window_bounds = array<i64: 9, 1, 256>}, {pipeline_mode = #tpu.pipeline_mode<synchronous>, transform_indices = @transform_5, window_bounds = array<i64: 32, 1>}, {pipeline_mode = #tpu.pipeline_mode<synchronous>, transform_indices = @transform_6, window_bounds = array<i64: 8, 32>}, {pipeline_mode = #tpu.pipeline_mode<synchronous>, transform_indices = @transform_7, window_bounds = array<i64: 8, 1>}, {pipeline_mode = #tpu.pipeline_mode<synchronous>, transform_indices = @transform_8, window_bounds = array<i64: 32, 8>}, {pipeline_mode = #tpu.pipeline_mode<synchronous>, transform_indices = @transform_9, window_bounds = array<i64: 32, 1>}, {pipeline_mode = #tpu.pipeline_mode<synchronous>, transform_indices = @transform_10, window_bounds = array<i64: 16, 32>}, {pipeline_mode = #tpu.pipeline_mode<synchronous>, transform_indices = @transform_11, window_bounds = array<i64: 16, 1>}, {transform_indices = @transform_12, window_bounds = array<i64: 128, 256>}]} {
    %c0 = arith.constant 0 : index
    %c0_0 = arith.constant 0 : index
    %0 = vector.load %arg2[%c0, %c0_0] : memref<32x16xbf16, #tpu.memory_space<vmem>>, vector<32x16xbf16>
    %c0_1 = arith.constant 0 : index
    %c0_2 = arith.constant 0 : index
    %1 = vector.load %arg3[%c0_1, %c0_2] : memref<32x1xf32, #tpu.memory_space<vmem>>, vector<32x1xf32>
    %c0_3 = arith.constant 0 : index
    %c0_4 = arith.constant 0 : index
    %2 = vector.load %arg6[%c0_3, %c0_4] : memref<32x1xf32, #tpu.memory_space<vmem>>, vector<32x1xf32>
    %c0_5 = arith.constant 0 : index
    %c0_6 = arith.constant 0 : index
    %3 = vector.load %arg7[%c0_5, %c0_6] : memref<8x32xf32, #tpu.memory_space<vmem>>, vector<8x32xf32>
    %c0_7 = arith.constant 0 : index
    %c0_8 = arith.constant 0 : index
    %4 = vector.load %arg8[%c0_7, %c0_8] : memref<8x1xf32, #tpu.memory_space<vmem>>, vector<8x1xf32>
    %c0_9 = arith.constant 0 : index
    %c0_10 = arith.constant 0 : index
    %5 = vector.load %arg9[%c0_9, %c0_10] : memref<32x8xf32, #tpu.memory_space<vmem>>, vector<32x8xf32>
    %c0_11 = arith.constant 0 : index
    %c0_12 = arith.constant 0 : index
    %6 = vector.load %arg10[%c0_11, %c0_12] : memref<32x1xf32, #tpu.memory_space<vmem>>, vector<32x1xf32>
    %c0_13 = arith.constant 0 : index
    %c0_14 = arith.constant 0 : index
    %7 = vector.load %arg11[%c0_13, %c0_14] : memref<16x32xbf16, #tpu.memory_space<vmem>>, vector<16x32xbf16>
    %c0_15 = arith.constant 0 : index
    %c0_16 = arith.constant 0 : index
    %8 = vector.load %arg12[%c0_15, %c0_16] : memref<16x1xf32, #tpu.memory_space<vmem>>, vector<16x1xf32>
    %c0_17 = arith.constant 0 : index
    %c0_18 = arith.constant 0 : index
    %c0_19 = arith.constant 0 : index
    %9 = vector.load %arg4[%c0_17, %c0_18, %c0_19] : memref<9x32x1xf32, #tpu.memory_space<vmem>>, vector<1x32x1xf32>
    %10 = vector.shape_cast %9 : vector<1x32x1xf32> to vector<32x1xf32>
    %c0_20 = arith.constant 0 : index
    %c0_21 = arith.constant 0 : index
    %c0_22 = arith.constant 0 : index
    %11 = vector.load %arg5[%c0_20, %c0_21, %c0_22] : memref<9x1x256xf32, #tpu.memory_space<vmem>>, vector<1x1x256xf32>
    %12 = vector.shape_cast %11 : vector<1x1x256xf32> to vector<1x256xf32>
    %13 = vector.broadcast %10 : vector<32x1xf32> to vector<32x256xf32>
    %14 = vector.broadcast %12 : vector<1x256xf32> to vector<32x256xf32>
    %15 = arith.mulf %13, %14 : vector<32x256xf32>
    %c1 = arith.constant 1 : index
    %c0_23 = arith.constant 0 : index
    %c0_24 = arith.constant 0 : index
    %16 = vector.load %arg4[%c1, %c0_23, %c0_24] : memref<9x32x1xf32, #tpu.memory_space<vmem>>, vector<1x32x1xf32>
    %17 = vector.shape_cast %16 : vector<1x32x1xf32> to vector<32x1xf32>
    %c1_25 = arith.constant 1 : index
    %c0_26 = arith.constant 0 : index
    %c0_27 = arith.constant 0 : index
    %18 = vector.load %arg5[%c1_25, %c0_26, %c0_27] : memref<9x1x256xf32, #tpu.memory_space<vmem>>, vector<1x1x256xf32>
    %19 = vector.shape_cast %18 : vector<1x1x256xf32> to vector<1x256xf32>
    %20 = vector.broadcast %17 : vector<32x1xf32> to vector<32x256xf32>
    %21 = vector.broadcast %19 : vector<1x256xf32> to vector<32x256xf32>
    %22 = arith.mulf %20, %21 : vector<32x256xf32>
    %c2 = arith.constant 2 : index
    %c0_28 = arith.constant 0 : index
    %c0_29 = arith.constant 0 : index
    %23 = vector.load %arg4[%c2, %c0_28, %c0_29] : memref<9x32x1xf32, #tpu.memory_space<vmem>>, vector<1x32x1xf32>
    %24 = vector.shape_cast %23 : vector<1x32x1xf32> to vector<32x1xf32>
    %c2_30 = arith.constant 2 : index
    %c0_31 = arith.constant 0 : index
    %c0_32 = arith.constant 0 : index
    %25 = vector.load %arg5[%c2_30, %c0_31, %c0_32] : memref<9x1x256xf32, #tpu.memory_space<vmem>>, vector<1x1x256xf32>
    %26 = vector.shape_cast %25 : vector<1x1x256xf32> to vector<1x256xf32>
    %27 = vector.broadcast %24 : vector<32x1xf32> to vector<32x256xf32>
    %28 = vector.broadcast %26 : vector<1x256xf32> to vector<32x256xf32>
    %29 = arith.mulf %27, %28 : vector<32x256xf32>
    %c3 = arith.constant 3 : index
    %c0_33 = arith.constant 0 : index
    %c0_34 = arith.constant 0 : index
    %30 = vector.load %arg4[%c3, %c0_33, %c0_34] : memref<9x32x1xf32, #tpu.memory_space<vmem>>, vector<1x32x1xf32>
    %31 = vector.shape_cast %30 : vector<1x32x1xf32> to vector<32x1xf32>
    %c3_35 = arith.constant 3 : index
    %c0_36 = arith.constant 0 : index
    %c0_37 = arith.constant 0 : index
    %32 = vector.load %arg5[%c3_35, %c0_36, %c0_37] : memref<9x1x256xf32, #tpu.memory_space<vmem>>, vector<1x1x256xf32>
    %33 = vector.shape_cast %32 : vector<1x1x256xf32> to vector<1x256xf32>
    %34 = vector.broadcast %31 : vector<32x1xf32> to vector<32x256xf32>
    %35 = vector.broadcast %33 : vector<1x256xf32> to vector<32x256xf32>
    %36 = arith.mulf %34, %35 : vector<32x256xf32>
    %c4 = arith.constant 4 : index
    %c0_38 = arith.constant 0 : index
    %c0_39 = arith.constant 0 : index
    %37 = vector.load %arg4[%c4, %c0_38, %c0_39] : memref<9x32x1xf32, #tpu.memory_space<vmem>>, vector<1x32x1xf32>
    %38 = vector.shape_cast %37 : vector<1x32x1xf32> to vector<32x1xf32>
    %c4_40 = arith.constant 4 : index
    %c0_41 = arith.constant 0 : index
    %c0_42 = arith.constant 0 : index
    %39 = vector.load %arg5[%c4_40, %c0_41, %c0_42] : memref<9x1x256xf32, #tpu.memory_space<vmem>>, vector<1x1x256xf32>
    %40 = vector.shape_cast %39 : vector<1x1x256xf32> to vector<1x256xf32>
    %41 = vector.broadcast %38 : vector<32x1xf32> to vector<32x256xf32>
    %42 = vector.broadcast %40 : vector<1x256xf32> to vector<32x256xf32>
    %43 = arith.mulf %41, %42 : vector<32x256xf32>
    %c5 = arith.constant 5 : index
    %c0_43 = arith.constant 0 : index
    %c0_44 = arith.constant 0 : index
    %44 = vector.load %arg4[%c5, %c0_43, %c0_44] : memref<9x32x1xf32, #tpu.memory_space<vmem>>, vector<1x32x1xf32>
    %45 = vector.shape_cast %44 : vector<1x32x1xf32> to vector<32x1xf32>
    %c5_45 = arith.constant 5 : index
    %c0_46 = arith.constant 0 : index
    %c0_47 = arith.constant 0 : index
    %46 = vector.load %arg5[%c5_45, %c0_46, %c0_47] : memref<9x1x256xf32, #tpu.memory_space<vmem>>, vector<1x1x256xf32>
    %47 = vector.shape_cast %46 : vector<1x1x256xf32> to vector<1x256xf32>
    %48 = vector.broadcast %45 : vector<32x1xf32> to vector<32x256xf32>
    %49 = vector.broadcast %47 : vector<1x256xf32> to vector<32x256xf32>
    %50 = arith.mulf %48, %49 : vector<32x256xf32>
    %c6 = arith.constant 6 : index
    %c0_48 = arith.constant 0 : index
    %c0_49 = arith.constant 0 : index
    %51 = vector.load %arg4[%c6, %c0_48, %c0_49] : memref<9x32x1xf32, #tpu.memory_space<vmem>>, vector<1x32x1xf32>
    %52 = vector.shape_cast %51 : vector<1x32x1xf32> to vector<32x1xf32>
    %c6_50 = arith.constant 6 : index
    %c0_51 = arith.constant 0 : index
    %c0_52 = arith.constant 0 : index
    %53 = vector.load %arg5[%c6_50, %c0_51, %c0_52] : memref<9x1x256xf32, #tpu.memory_space<vmem>>, vector<1x1x256xf32>
    %54 = vector.shape_cast %53 : vector<1x1x256xf32> to vector<1x256xf32>
    %55 = vector.broadcast %52 : vector<32x1xf32> to vector<32x256xf32>
    %56 = vector.broadcast %54 : vector<1x256xf32> to vector<32x256xf32>
    %57 = arith.mulf %55, %56 : vector<32x256xf32>
    %c7 = arith.constant 7 : index
    %c0_53 = arith.constant 0 : index
    %c0_54 = arith.constant 0 : index
    %58 = vector.load %arg4[%c7, %c0_53, %c0_54] : memref<9x32x1xf32, #tpu.memory_space<vmem>>, vector<1x32x1xf32>
    %59 = vector.shape_cast %58 : vector<1x32x1xf32> to vector<32x1xf32>
    %c7_55 = arith.constant 7 : index
    %c0_56 = arith.constant 0 : index
    %c0_57 = arith.constant 0 : index
    %60 = vector.load %arg5[%c7_55, %c0_56, %c0_57] : memref<9x1x256xf32, #tpu.memory_space<vmem>>, vector<1x1x256xf32>
    %61 = vector.shape_cast %60 : vector<1x1x256xf32> to vector<1x256xf32>
    %62 = vector.broadcast %59 : vector<32x1xf32> to vector<32x256xf32>
    %63 = vector.broadcast %61 : vector<1x256xf32> to vector<32x256xf32>
    %64 = arith.mulf %62, %63 : vector<32x256xf32>
    %c8 = arith.constant 8 : index
    %c0_58 = arith.constant 0 : index
    %c0_59 = arith.constant 0 : index
    %65 = vector.load %arg4[%c8, %c0_58, %c0_59] : memref<9x32x1xf32, #tpu.memory_space<vmem>>, vector<1x32x1xf32>
    %66 = vector.shape_cast %65 : vector<1x32x1xf32> to vector<32x1xf32>
    %c8_60 = arith.constant 8 : index
    %c0_61 = arith.constant 0 : index
    %c0_62 = arith.constant 0 : index
    %67 = vector.load %arg5[%c8_60, %c0_61, %c0_62] : memref<9x1x256xf32, #tpu.memory_space<vmem>>, vector<1x1x256xf32>
    %68 = vector.shape_cast %67 : vector<1x1x256xf32> to vector<1x256xf32>
    %69 = vector.broadcast %66 : vector<32x1xf32> to vector<32x256xf32>
    %70 = vector.broadcast %68 : vector<1x256xf32> to vector<32x256xf32>
    %71 = arith.mulf %69, %70 : vector<32x256xf32>
    %c0_63 = arith.constant 0 : index
    %c0_64 = arith.constant 0 : index
    %72 = vector.load %arg1[%c0_63, %c0_64] : memref<128x256xf32, #tpu.memory_space<vmem>>, vector<16x256xf32>
    %73 = arith.truncf %72 : vector<16x256xf32> to vector<16x256xbf16>
    %cst = arith.constant dense<0.000000e+00> : vector<32x256xf32>
    %74 = tpu.matmul %0, %73, %cst {dimension_numbers = #tpu.dot_dimension_numbers<[1], [0], [0], [1], [0, 0, 1, 1], [], []>} : vector<32x16xbf16>, vector<16x256xbf16>, vector<32x256xf32> -> vector<32x256xf32>
    %75 = vector.broadcast %1 : vector<32x1xf32> to vector<32x256xf32>
    %76 = arith.addf %74, %75 : vector<32x256xf32>
    %cst_65 = arith.constant 3.000000e+00 : f32
    %77 = vector.broadcast %cst_65 : f32 to vector<32x256xf32>
    %78 = arith.addf %76, %77 : vector<32x256xf32>
    %cst_66 = arith.constant 0.000000e+00 : f32
    %cst_67 = arith.constant 6.000000e+00 : f32
    %79 = vector.broadcast %cst_66 : f32 to vector<32x256xf32>
    %80 = arith.maximumf %79, %78 : vector<32x256xf32>
    %81 = vector.broadcast %cst_67 : f32 to vector<32x256xf32>
    %82 = arith.minimumf %81, %80 : vector<32x256xf32>
    %83 = arith.mulf %76, %82 : vector<32x256xf32>
    %cst_68 = arith.constant 0.166666672 : f32
    %84 = vector.broadcast %cst_68 : f32 to vector<32x256xf32>
    %85 = arith.mulf %83, %84 : vector<32x256xf32>
    %86 = arith.mulf %85, %43 : vector<32x256xf32>
    %c17_i32 = arith.constant 17 : i32
    %87 = tpu.dynamic_rotate %85 by %c17_i32 dim 1 : vector<32x256xf32>, i32 -> vector<32x256xf32>
    %88 = arith.mulf %87, %15 : vector<32x256xf32>
    %89 = arith.addf %86, %88 : vector<32x256xf32>
    %c16_i32 = arith.constant 16 : i32
    %90 = tpu.dynamic_rotate %85 by %c16_i32 dim 1 : vector<32x256xf32>, i32 -> vector<32x256xf32>
    %91 = arith.mulf %90, %22 : vector<32x256xf32>
    %92 = arith.addf %89, %91 : vector<32x256xf32>
    %c15_i32 = arith.constant 15 : i32
    %93 = tpu.dynamic_rotate %85 by %c15_i32 dim 1 : vector<32x256xf32>, i32 -> vector<32x256xf32>
    %94 = arith.mulf %93, %29 : vector<32x256xf32>
    %95 = arith.addf %92, %94 : vector<32x256xf32>
    %c1_i32 = arith.constant 1 : i32
    %96 = tpu.dynamic_rotate %85 by %c1_i32 dim 1 : vector<32x256xf32>, i32 -> vector<32x256xf32>
    %97 = arith.mulf %96, %36 : vector<32x256xf32>
    %98 = arith.addf %95, %97 : vector<32x256xf32>
    %c255_i32 = arith.constant 255 : i32
    %99 = tpu.dynamic_rotate %85 by %c255_i32 dim 1 : vector<32x256xf32>, i32 -> vector<32x256xf32>
    %100 = arith.mulf %99, %50 : vector<32x256xf32>
    %101 = arith.addf %98, %100 : vector<32x256xf32>
    %c241_i32 = arith.constant 241 : i32
    %102 = tpu.dynamic_rotate %85 by %c241_i32 dim 1 : vector<32x256xf32>, i32 -> vector<32x256xf32>
    %103 = arith.mulf %102, %57 : vector<32x256xf32>
    %104 = arith.addf %101, %103 : vector<32x256xf32>
    %c240_i32 = arith.constant 240 : i32
    %105 = tpu.dynamic_rotate %85 by %c240_i32 dim 1 : vector<32x256xf32>, i32 -> vector<32x256xf32>
    %106 = arith.mulf %105, %64 : vector<32x256xf32>
    %107 = arith.addf %104, %106 : vector<32x256xf32>
    %c239_i32 = arith.constant 239 : i32
    %108 = tpu.dynamic_rotate %85 by %c239_i32 dim 1 : vector<32x256xf32>, i32 -> vector<32x256xf32>
    %109 = arith.mulf %108, %71 : vector<32x256xf32>
    %110 = arith.addf %107, %109 : vector<32x256xf32>
    %111 = vector.broadcast %2 : vector<32x1xf32> to vector<32x256xf32>
    %112 = arith.addf %110, %111 : vector<32x256xf32>
    %cst_69 = arith.constant 3.000000e+00 : f32
    %113 = vector.broadcast %cst_69 : f32 to vector<32x256xf32>
    %114 = arith.addf %112, %113 : vector<32x256xf32>
    %cst_70 = arith.constant 0.000000e+00 : f32
    %cst_71 = arith.constant 6.000000e+00 : f32
    %115 = vector.broadcast %cst_70 : f32 to vector<32x256xf32>
    %116 = arith.maximumf %115, %114 : vector<32x256xf32>
    %117 = vector.broadcast %cst_71 : f32 to vector<32x256xf32>
    %118 = arith.minimumf %117, %116 : vector<32x256xf32>
    %119 = arith.mulf %112, %118 : vector<32x256xf32>
    %cst_72 = arith.constant 0.166666672 : f32
    %120 = vector.broadcast %cst_72 : f32 to vector<32x256xf32>
    %121 = arith.mulf %119, %120 : vector<32x256xf32>
    %cst_73 = arith.constant dense<0.000000e+00> : vector<32xf32>
    %122 = vector.multi_reduction <add>, %121, %cst_73 [1] : vector<32x256xf32> to vector<32xf32>
    %123 = vector.shape_cast %122 : vector<32xf32> to vector<32x1xf32>
    %cst_74 = arith.constant 3.906250e-03 : f32
    %124 = vector.broadcast %cst_74 : f32 to vector<32x1xf32>
    %125 = arith.mulf %123, %124 : vector<32x1xf32>
    %cst_75 = arith.constant dense<0.000000e+00> : vector<8x1xf32>
    %126 = tpu.matmul %3, %125, %cst_75 {dimension_numbers = #tpu.dot_dimension_numbers<[1], [0], [0], [1], [0, 0, 1, 1], [], []>} : vector<8x32xf32>, vector<32x1xf32>, vector<8x1xf32> -> vector<8x1xf32>
    %127 = arith.addf %126, %4 : vector<8x1xf32>
    %cst_76 = arith.constant 0.000000e+00 : f32
    %128 = vector.broadcast %cst_76 : f32 to vector<8x1xf32>
    %129 = arith.maximumf %127, %128 : vector<8x1xf32>
    %cst_77 = arith.constant dense<0.000000e+00> : vector<32x1xf32>
    %130 = tpu.matmul %5, %129, %cst_77 {dimension_numbers = #tpu.dot_dimension_numbers<[1], [0], [0], [1], [0, 0, 1, 1], [], []>} : vector<32x8xf32>, vector<8x1xf32>, vector<32x1xf32> -> vector<32x1xf32>
    %131 = arith.addf %130, %6 : vector<32x1xf32>
    %cst_78 = arith.constant 1.200000e+00 : f32
    %132 = vector.broadcast %cst_78 : f32 to vector<32x1xf32>
    %133 = arith.mulf %132, %131 : vector<32x1xf32>
    %cst_79 = arith.constant 3.000000e+00 : f32
    %134 = vector.broadcast %cst_79 : f32 to vector<32x1xf32>
    %135 = arith.addf %133, %134 : vector<32x1xf32>
    %cst_80 = arith.constant 0.000000e+00 : f32
    %cst_81 = arith.constant 6.000000e+00 : f32
    %136 = vector.broadcast %cst_80 : f32 to vector<32x1xf32>
    %137 = arith.maximumf %136, %135 : vector<32x1xf32>
    %138 = vector.broadcast %cst_81 : f32 to vector<32x1xf32>
    %139 = arith.minimumf %138, %137 : vector<32x1xf32>
    %cst_82 = arith.constant 0.166666672 : f32
    %140 = vector.broadcast %cst_82 : f32 to vector<32x1xf32>
    %141 = arith.mulf %139, %140 : vector<32x1xf32>
    %142 = vector.broadcast %141 : vector<32x1xf32> to vector<32x256xf32>
    %143 = arith.mulf %121, %142 : vector<32x256xf32>
    %144 = arith.truncf %143 : vector<32x256xf32> to vector<32x256xbf16>
    %cst_83 = arith.constant dense<0.000000e+00> : vector<16x256xf32>
    %145 = tpu.matmul %7, %144, %cst_83 {dimension_numbers = #tpu.dot_dimension_numbers<[1], [0], [0], [1], [0, 0, 1, 1], [], []>} : vector<16x32xbf16>, vector<32x256xbf16>, vector<16x256xf32> -> vector<16x256xf32>
    %146 = vector.broadcast %8 : vector<16x1xf32> to vector<16x256xf32>
    %147 = arith.addf %145, %146 : vector<16x256xf32>
    %c0_84 = arith.constant 0 : index
    %c0_85 = arith.constant 0 : index
    %148 = vector.load %arg1[%c0_84, %c0_85] : memref<128x256xf32, #tpu.memory_space<vmem>>, vector<16x256xf32>
    %149 = arith.addf %147, %148 : vector<16x256xf32>
    %c0_86 = arith.constant 0 : index
    %c0_87 = arith.constant 0 : index
    %150 = vector.load %arg13[%c0_86, %c0_87] : memref<128x256xf32, #tpu.memory_space<vmem>>, vector<16x256xf32>
    tpu.vector_store %arg13[%c0_86, %c0_87], %149 {strides = array<i32>} : memref<128x256xf32, #tpu.memory_space<vmem>>, vector<16x256xf32>,
    %c16 = arith.constant 16 : index
    %c0_88 = arith.constant 0 : index
    %151 = vector.load %arg1[%c16, %c0_88] : memref<128x256xf32, #tpu.memory_space<vmem>>, vector<16x256xf32>
    %152 = arith.truncf %151 : vector<16x256xf32> to vector<16x256xbf16>
    %cst_89 = arith.constant dense<0.000000e+00> : vector<32x256xf32>
    %153 = tpu.matmul %0, %152, %cst_89 {dimension_numbers = #tpu.dot_dimension_numbers<[1], [0], [0], [1], [0, 0, 1, 1], [], []>} : vector<32x16xbf16>, vector<16x256xbf16>, vector<32x256xf32> -> vector<32x256xf32>
    %154 = vector.broadcast %1 : vector<32x1xf32> to vector<32x256xf32>
    %155 = arith.addf %153, %154 : vector<32x256xf32>
    %cst_90 = arith.constant 3.000000e+00 : f32
    %156 = vector.broadcast %cst_90 : f32 to vector<32x256xf32>
    %157 = arith.addf %155, %156 : vector<32x256xf32>
    %cst_91 = arith.constant 0.000000e+00 : f32
    %cst_92 = arith.constant 6.000000e+00 : f32
    %158 = vector.broadcast %cst_91 : f32 to vector<32x256xf32>
    %159 = arith.maximumf %158, %157 : vector<32x256xf32>
    %160 = vector.broadcast %cst_92 : f32 to vector<32x256xf32>
    %161 = arith.minimumf %160, %159 : vector<32x256xf32>
    %162 = arith.mulf %155, %161 : vector<32x256xf32>
    %cst_93 = arith.constant 0.166666672 : f32
    %163 = vector.broadcast %cst_93 : f32 to vector<32x256xf32>
    %164 = arith.mulf %162, %163 : vector<32x256xf32>
    %165 = arith.mulf %164, %43 : vector<32x256xf32>
    %c17_i32_94 = arith.constant 17 : i32
    %166 = tpu.dynamic_rotate %164 by %c17_i32_94 dim 1 : vector<32x256xf32>, i32 -> vector<32x256xf32>
    %167 = arith.mulf %166, %15 : vector<32x256xf32>
    %168 = arith.addf %165, %167 : vector<32x256xf32>
    %c16_i32_95 = arith.constant 16 : i32
    %169 = tpu.dynamic_rotate %164 by %c16_i32_95 dim 1 : vector<32x256xf32>, i32 -> vector<32x256xf32>
    %170 = arith.mulf %169, %22 : vector<32x256xf32>
    %171 = arith.addf %168, %170 : vector<32x256xf32>
    %c15_i32_96 = arith.constant 15 : i32
    %172 = tpu.dynamic_rotate %164 by %c15_i32_96 dim 1 : vector<32x256xf32>, i32 -> vector<32x256xf32>
    %173 = arith.mulf %172, %29 : vector<32x256xf32>
    %174 = arith.addf %171, %173 : vector<32x256xf32>
    %c1_i32_97 = arith.constant 1 : i32
    %175 = tpu.dynamic_rotate %164 by %c1_i32_97 dim 1 : vector<32x256xf32>, i32 -> vector<32x256xf32>
    %176 = arith.mulf %175, %36 : vector<32x256xf32>
    %177 = arith.addf %174, %176 : vector<32x256xf32>
    %c255_i32_98 = arith.constant 255 : i32
    %178 = tpu.dynamic_rotate %164 by %c255_i32_98 dim 1 : vector<32x256xf32>, i32 -> vector<32x256xf32>
    %179 = arith.mulf %178, %50 : vector<32x256xf32>
    %180 = arith.addf %177, %179 : vector<32x256xf32>
    %c241_i32_99 = arith.constant 241 : i32
    %181 = tpu.dynamic_rotate %164 by %c241_i32_99 dim 1 : vector<32x256xf32>, i32 -> vector<32x256xf32>
    %182 = arith.mulf %181, %57 : vector<32x256xf32>
    %183 = arith.addf %180, %182 : vector<32x256xf32>
    %c240_i32_100 = arith.constant 240 : i32
    %184 = tpu.dynamic_rotate %164 by %c240_i32_100 dim 1 : vector<32x256xf32>, i32 -> vector<32x256xf32>
    %185 = arith.mulf %184, %64 : vector<32x256xf32>
    %186 = arith.addf %183, %185 : vector<32x256xf32>
    %c239_i32_101 = arith.constant 239 : i32
    %187 = tpu.dynamic_rotate %164 by %c239_i32_101 dim 1 : vector<32x256xf32>, i32 -> vector<32x256xf32>
    %188 = arith.mulf %187, %71 : vector<32x256xf32>
    %189 = arith.addf %186, %188 : vector<32x256xf32>
    %190 = vector.broadcast %2 : vector<32x1xf32> to vector<32x256xf32>
    %191 = arith.addf %189, %190 : vector<32x256xf32>
    %cst_102 = arith.constant 3.000000e+00 : f32
    %192 = vector.broadcast %cst_102 : f32 to vector<32x256xf32>
    %193 = arith.addf %191, %192 : vector<32x256xf32>
    %cst_103 = arith.constant 0.000000e+00 : f32
    %cst_104 = arith.constant 6.000000e+00 : f32
    %194 = vector.broadcast %cst_103 : f32 to vector<32x256xf32>
    %195 = arith.maximumf %194, %193 : vector<32x256xf32>
    %196 = vector.broadcast %cst_104 : f32 to vector<32x256xf32>
    %197 = arith.minimumf %196, %195 : vector<32x256xf32>
    %198 = arith.mulf %191, %197 : vector<32x256xf32>
    %cst_105 = arith.constant 0.166666672 : f32
    %199 = vector.broadcast %cst_105 : f32 to vector<32x256xf32>
    %200 = arith.mulf %198, %199 : vector<32x256xf32>
    %cst_106 = arith.constant dense<0.000000e+00> : vector<32xf32>
    %201 = vector.multi_reduction <add>, %200, %cst_106 [1] : vector<32x256xf32> to vector<32xf32>
    %202 = vector.shape_cast %201 : vector<32xf32> to vector<32x1xf32>
    %cst_107 = arith.constant 3.906250e-03 : f32
    %203 = vector.broadcast %cst_107 : f32 to vector<32x1xf32>
    %204 = arith.mulf %202, %203 : vector<32x1xf32>
    %cst_108 = arith.constant dense<0.000000e+00> : vector<8x1xf32>
    %205 = tpu.matmul %3, %204, %cst_108 {dimension_numbers = #tpu.dot_dimension_numbers<[1], [0], [0], [1], [0, 0, 1, 1], [], []>} : vector<8x32xf32>, vector<32x1xf32>, vector<8x1xf32> -> vector<8x1xf32>
    %206 = arith.addf %205, %4 : vector<8x1xf32>
    %cst_109 = arith.constant 0.000000e+00 : f32
    %207 = vector.broadcast %cst_109 : f32 to vector<8x1xf32>
    %208 = arith.maximumf %206, %207 : vector<8x1xf32>
    %cst_110 = arith.constant dense<0.000000e+00> : vector<32x1xf32>
    %209 = tpu.matmul %5, %208, %cst_110 {dimension_numbers = #tpu.dot_dimension_numbers<[1], [0], [0], [1], [0, 0, 1, 1], [], []>} : vector<32x8xf32>, vector<8x1xf32>, vector<32x1xf32> -> vector<32x1xf32>
    %210 = arith.addf %209, %6 : vector<32x1xf32>
    %cst_111 = arith.constant 1.200000e+00 : f32
    %211 = vector.broadcast %cst_111 : f32 to vector<32x1xf32>
    %212 = arith.mulf %211, %210 : vector<32x1xf32>
    %cst_112 = arith.constant 3.000000e+00 : f32
    %213 = vector.broadcast %cst_112 : f32 to vector<32x1xf32>
    %214 = arith.addf %212, %213 : vector<32x1xf32>
    %cst_113 = arith.constant 0.000000e+00 : f32
    %cst_114 = arith.constant 6.000000e+00 : f32
    %215 = vector.broadcast %cst_113 : f32 to vector<32x1xf32>
    %216 = arith.maximumf %215, %214 : vector<32x1xf32>
    %217 = vector.broadcast %cst_114 : f32 to vector<32x1xf32>
    %218 = arith.minimumf %217, %216 : vector<32x1xf32>
    %cst_115 = arith.constant 0.166666672 : f32
    %219 = vector.broadcast %cst_115 : f32 to vector<32x1xf32>
    %220 = arith.mulf %218, %219 : vector<32x1xf32>
    %221 = vector.broadcast %220 : vector<32x1xf32> to vector<32x256xf32>
    %222 = arith.mulf %200, %221 : vector<32x256xf32>
    %223 = arith.truncf %222 : vector<32x256xf32> to vector<32x256xbf16>
    %cst_116 = arith.constant dense<0.000000e+00> : vector<16x256xf32>
    %224 = tpu.matmul %7, %223, %cst_116 {dimension_numbers = #tpu.dot_dimension_numbers<[1], [0], [0], [1], [0, 0, 1, 1], [], []>} : vector<16x32xbf16>, vector<32x256xbf16>, vector<16x256xf32> -> vector<16x256xf32>
    %225 = vector.broadcast %8 : vector<16x1xf32> to vector<16x256xf32>
    %226 = arith.addf %224, %225 : vector<16x256xf32>
    %c16_117 = arith.constant 16 : index
    %c0_118 = arith.constant 0 : index
    %227 = vector.load %arg1[%c16_117, %c0_118] : memref<128x256xf32, #tpu.memory_space<vmem>>, vector<16x256xf32>
    %228 = arith.addf %226, %227 : vector<16x256xf32>
    %c16_119 = arith.constant 16 : index
    %c0_120 = arith.constant 0 : index
    %229 = vector.load %arg13[%c16_119, %c0_120] : memref<128x256xf32, #tpu.memory_space<vmem>>, vector<16x256xf32>
    tpu.vector_store %arg13[%c16_119, %c0_120], %228 {strides = array<i32>} : memref<128x256xf32, #tpu.memory_space<vmem>>, vector<16x256xf32>,
    %c32 = arith.constant 32 : index
    %c0_121 = arith.constant 0 : index
    %230 = vector.load %arg1[%c32, %c0_121] : memref<128x256xf32, #tpu.memory_space<vmem>>, vector<16x256xf32>
    %231 = arith.truncf %230 : vector<16x256xf32> to vector<16x256xbf16>
    %cst_122 = arith.constant dense<0.000000e+00> : vector<32x256xf32>
    %232 = tpu.matmul %0, %231, %cst_122 {dimension_numbers = #tpu.dot_dimension_numbers<[1], [0], [0], [1], [0, 0, 1, 1], [], []>} : vector<32x16xbf16>, vector<16x256xbf16>, vector<32x256xf32> -> vector<32x256xf32>
    %233 = vector.broadcast %1 : vector<32x1xf32> to vector<32x256xf32>
    %234 = arith.addf %232, %233 : vector<32x256xf32>
    %cst_123 = arith.constant 3.000000e+00 : f32
    %235 = vector.broadcast %cst_123 : f32 to vector<32x256xf32>
    %236 = arith.addf %234, %235 : vector<32x256xf32>
    %cst_124 = arith.constant 0.000000e+00 : f32
    %cst_125 = arith.constant 6.000000e+00 : f32
    %237 = vector.broadcast %cst_124 : f32 to vector<32x256xf32>
    %238 = arith.maximumf %237, %236 : vector<32x256xf32>
    %239 = vector.broadcast %cst_125 : f32 to vector<32x256xf32>
    %240 = arith.minimumf %239, %238 : vector<32x256xf32>
    %241 = arith.mulf %234, %240 : vector<32x256xf32>
    %cst_126 = arith.constant 0.166666672 : f32
    %242 = vector.broadcast %cst_126 : f32 to vector<32x256xf32>
    %243 = arith.mulf %241, %242 : vector<32x256xf32>
    %244 = arith.mulf %243, %43 : vector<32x256xf32>
    %c17_i32_127 = arith.constant 17 : i32
    %245 = tpu.dynamic_rotate %243 by %c17_i32_127 dim 1 : vector<32x256xf32>, i32 -> vector<32x256xf32>
    %246 = arith.mulf %245, %15 : vector<32x256xf32>
    %247 = arith.addf %244, %246 : vector<32x256xf32>
    %c16_i32_128 = arith.constant 16 : i32
    %248 = tpu.dynamic_rotate %243 by %c16_i32_128 dim 1 : vector<32x256xf32>, i32 -> vector<32x256xf32>
    %249 = arith.mulf %248, %22 : vector<32x256xf32>
    %250 = arith.addf %247, %249 : vector<32x256xf32>
    %c15_i32_129 = arith.constant 15 : i32
    %251 = tpu.dynamic_rotate %243 by %c15_i32_129 dim 1 : vector<32x256xf32>, i32 -> vector<32x256xf32>
    %252 = arith.mulf %251, %29 : vector<32x256xf32>
    %253 = arith.addf %250, %252 : vector<32x256xf32>
    %c1_i32_130 = arith.constant 1 : i32
    %254 = tpu.dynamic_rotate %243 by %c1_i32_130 dim 1 : vector<32x256xf32>, i32 -> vector<32x256xf32>
    %255 = arith.mulf %254, %36 : vector<32x256xf32>
    %256 = arith.addf %253, %255 : vector<32x256xf32>
    %c255_i32_131 = arith.constant 255 : i32
    %257 = tpu.dynamic_rotate %243 by %c255_i32_131 dim 1 : vector<32x256xf32>, i32 -> vector<32x256xf32>
    %258 = arith.mulf %257, %50 : vector<32x256xf32>
    %259 = arith.addf %256, %258 : vector<32x256xf32>
    %c241_i32_132 = arith.constant 241 : i32
    %260 = tpu.dynamic_rotate %243 by %c241_i32_132 dim 1 : vector<32x256xf32>, i32 -> vector<32x256xf32>
    %261 = arith.mulf %260, %57 : vector<32x256xf32>
    %262 = arith.addf %259, %261 : vector<32x256xf32>
    %c240_i32_133 = arith.constant 240 : i32
    %263 = tpu.dynamic_rotate %243 by %c240_i32_133 dim 1 : vector<32x256xf32>, i32 -> vector<32x256xf32>
    %264 = arith.mulf %263, %64 : vector<32x256xf32>
    %265 = arith.addf %262, %264 : vector<32x256xf32>
    %c239_i32_134 = arith.constant 239 : i32
    %266 = tpu.dynamic_rotate %243 by %c239_i32_134 dim 1 : vector<32x256xf32>, i32 -> vector<32x256xf32>
    %267 = arith.mulf %266, %71 : vector<32x256xf32>
    %268 = arith.addf %265, %267 : vector<32x256xf32>
    %269 = vector.broadcast %2 : vector<32x1xf32> to vector<32x256xf32>
    %270 = arith.addf %268, %269 : vector<32x256xf32>
    %cst_135 = arith.constant 3.000000e+00 : f32
    %271 = vector.broadcast %cst_135 : f32 to vector<32x256xf32>
    %272 = arith.addf %270, %271 : vector<32x256xf32>
    %cst_136 = arith.constant 0.000000e+00 : f32
    %cst_137 = arith.constant 6.000000e+00 : f32
    %273 = vector.broadcast %cst_136 : f32 to vector<32x256xf32>
    %274 = arith.maximumf %273, %272 : vector<32x256xf32>
    %275 = vector.broadcast %cst_137 : f32 to vector<32x256xf32>
    %276 = arith.minimumf %275, %274 : vector<32x256xf32>
    %277 = arith.mulf %270, %276 : vector<32x256xf32>
    %cst_138 = arith.constant 0.166666672 : f32
    %278 = vector.broadcast %cst_138 : f32 to vector<32x256xf32>
    %279 = arith.mulf %277, %278 : vector<32x256xf32>
    %cst_139 = arith.constant dense<0.000000e+00> : vector<32xf32>
    %280 = vector.multi_reduction <add>, %279, %cst_139 [1] : vector<32x256xf32> to vector<32xf32>
    %281 = vector.shape_cast %280 : vector<32xf32> to vector<32x1xf32>
    %cst_140 = arith.constant 3.906250e-03 : f32
    %282 = vector.broadcast %cst_140 : f32 to vector<32x1xf32>
    %283 = arith.mulf %281, %282 : vector<32x1xf32>
    %cst_141 = arith.constant dense<0.000000e+00> : vector<8x1xf32>
    %284 = tpu.matmul %3, %283, %cst_141 {dimension_numbers = #tpu.dot_dimension_numbers<[1], [0], [0], [1], [0, 0, 1, 1], [], []>} : vector<8x32xf32>, vector<32x1xf32>, vector<8x1xf32> -> vector<8x1xf32>
    %285 = arith.addf %284, %4 : vector<8x1xf32>
    %cst_142 = arith.constant 0.000000e+00 : f32
    %286 = vector.broadcast %cst_142 : f32 to vector<8x1xf32>
    %287 = arith.maximumf %285, %286 : vector<8x1xf32>
    %cst_143 = arith.constant dense<0.000000e+00> : vector<32x1xf32>
    %288 = tpu.matmul %5, %287, %cst_143 {dimension_numbers = #tpu.dot_dimension_numbers<[1], [0], [0], [1], [0, 0, 1, 1], [], []>} : vector<32x8xf32>, vector<8x1xf32>, vector<32x1xf32> -> vector<32x1xf32>
    %289 = arith.addf %288, %6 : vector<32x1xf32>
    %cst_144 = arith.constant 1.200000e+00 : f32
    %290 = vector.broadcast %cst_144 : f32 to vector<32x1xf32>
    %291 = arith.mulf %290, %289 : vector<32x1xf32>
    %cst_145 = arith.constant 3.000000e+00 : f32
    %292 = vector.broadcast %cst_145 : f32 to vector<32x1xf32>
    %293 = arith.addf %291, %292 : vector<32x1xf32>
    %cst_146 = arith.constant 0.000000e+00 : f32
    %cst_147 = arith.constant 6.000000e+00 : f32
    %294 = vector.broadcast %cst_146 : f32 to vector<32x1xf32>
    %295 = arith.maximumf %294, %293 : vector<32x1xf32>
    %296 = vector.broadcast %cst_147 : f32 to vector<32x1xf32>
    %297 = arith.minimumf %296, %295 : vector<32x1xf32>
    %cst_148 = arith.constant 0.166666672 : f32
    %298 = vector.broadcast %cst_148 : f32 to vector<32x1xf32>
    %299 = arith.mulf %297, %298 : vector<32x1xf32>
    %300 = vector.broadcast %299 : vector<32x1xf32> to vector<32x256xf32>
    %301 = arith.mulf %279, %300 : vector<32x256xf32>
    %302 = arith.truncf %301 : vector<32x256xf32> to vector<32x256xbf16>
    %cst_149 = arith.constant dense<0.000000e+00> : vector<16x256xf32>
    %303 = tpu.matmul %7, %302, %cst_149 {dimension_numbers = #tpu.dot_dimension_numbers<[1], [0], [0], [1], [0, 0, 1, 1], [], []>} : vector<16x32xbf16>, vector<32x256xbf16>, vector<16x256xf32> -> vector<16x256xf32>
    %304 = vector.broadcast %8 : vector<16x1xf32> to vector<16x256xf32>
    %305 = arith.addf %303, %304 : vector<16x256xf32>
    %c32_150 = arith.constant 32 : index
    %c0_151 = arith.constant 0 : index
    %306 = vector.load %arg1[%c32_150, %c0_151] : memref<128x256xf32, #tpu.memory_space<vmem>>, vector<16x256xf32>
    %307 = arith.addf %305, %306 : vector<16x256xf32>
    %c32_152 = arith.constant 32 : index
    %c0_153 = arith.constant 0 : index
    %308 = vector.load %arg13[%c32_152, %c0_153] : memref<128x256xf32, #tpu.memory_space<vmem>>, vector<16x256xf32>
    tpu.vector_store %arg13[%c32_152, %c0_153], %307 {strides = array<i32>} : memref<128x256xf32, #tpu.memory_space<vmem>>, vector<16x256xf32>,
    %c48 = arith.constant 48 : index
    %c0_154 = arith.constant 0 : index
    %309 = vector.load %arg1[%c48, %c0_154] : memref<128x256xf32, #tpu.memory_space<vmem>>, vector<16x256xf32>
    %310 = arith.truncf %309 : vector<16x256xf32> to vector<16x256xbf16>
    %cst_155 = arith.constant dense<0.000000e+00> : vector<32x256xf32>
    %311 = tpu.matmul %0, %310, %cst_155 {dimension_numbers = #tpu.dot_dimension_numbers<[1], [0], [0], [1], [0, 0, 1, 1], [], []>} : vector<32x16xbf16>, vector<16x256xbf16>, vector<32x256xf32> -> vector<32x256xf32>
    %312 = vector.broadcast %1 : vector<32x1xf32> to vector<32x256xf32>
    %313 = arith.addf %311, %312 : vector<32x256xf32>
    %cst_156 = arith.constant 3.000000e+00 : f32
    %314 = vector.broadcast %cst_156 : f32 to vector<32x256xf32>
    %315 = arith.addf %313, %314 : vector<32x256xf32>
    %cst_157 = arith.constant 0.000000e+00 : f32
    %cst_158 = arith.constant 6.000000e+00 : f32
    %316 = vector.broadcast %cst_157 : f32 to vector<32x256xf32>
    %317 = arith.maximumf %316, %315 : vector<32x256xf32>
    %318 = vector.broadcast %cst_158 : f32 to vector<32x256xf32>
    %319 = arith.minimumf %318, %317 : vector<32x256xf32>
    %320 = arith.mulf %313, %319 : vector<32x256xf32>
    %cst_159 = arith.constant 0.166666672 : f32
    %321 = vector.broadcast %cst_159 : f32 to vector<32x256xf32>
    %322 = arith.mulf %320, %321 : vector<32x256xf32>
    %323 = arith.mulf %322, %43 : vector<32x256xf32>
    %c17_i32_160 = arith.constant 17 : i32
    %324 = tpu.dynamic_rotate %322 by %c17_i32_160 dim 1 : vector<32x256xf32>, i32 -> vector<32x256xf32>
    %325 = arith.mulf %324, %15 : vector<32x256xf32>
    %326 = arith.addf %323, %325 : vector<32x256xf32>
    %c16_i32_161 = arith.constant 16 : i32
    %327 = tpu.dynamic_rotate %322 by %c16_i32_161 dim 1 : vector<32x256xf32>, i32 -> vector<32x256xf32>
    %328 = arith.mulf %327, %22 : vector<32x256xf32>
    %329 = arith.addf %326, %328 : vector<32x256xf32>
    %c15_i32_162 = arith.constant 15 : i32
    %330 = tpu.dynamic_rotate %322 by %c15_i32_162 dim 1 : vector<32x256xf32>, i32 -> vector<32x256xf32>
    %331 = arith.mulf %330, %29 : vector<32x256xf32>
    %332 = arith.addf %329, %331 : vector<32x256xf32>
    %c1_i32_163 = arith.constant 1 : i32
    %333 = tpu.dynamic_rotate %322 by %c1_i32_163 dim 1 : vector<32x256xf32>, i32 -> vector<32x256xf32>
    %334 = arith.mulf %333, %36 : vector<32x256xf32>
    %335 = arith.addf %332, %334 : vector<32x256xf32>
    %c255_i32_164 = arith.constant 255 : i32
    %336 = tpu.dynamic_rotate %322 by %c255_i32_164 dim 1 : vector<32x256xf32>, i32 -> vector<32x256xf32>
    %337 = arith.mulf %336, %50 : vector<32x256xf32>
    %338 = arith.addf %335, %337 : vector<32x256xf32>
    %c241_i32_165 = arith.constant 241 : i32
    %339 = tpu.dynamic_rotate %322 by %c241_i32_165 dim 1 : vector<32x256xf32>, i32 -> vector<32x256xf32>
    %340 = arith.mulf %339, %57 : vector<32x256xf32>
    %341 = arith.addf %338, %340 : vector<32x256xf32>
    %c240_i32_166 = arith.constant 240 : i32
    %342 = tpu.dynamic_rotate %322 by %c240_i32_166 dim 1 : vector<32x256xf32>, i32 -> vector<32x256xf32>
    %343 = arith.mulf %342, %64 : vector<32x256xf32>
    %344 = arith.addf %341, %343 : vector<32x256xf32>
    %c239_i32_167 = arith.constant 239 : i32
    %345 = tpu.dynamic_rotate %322 by %c239_i32_167 dim 1 : vector<32x256xf32>, i32 -> vector<32x256xf32>
    %346 = arith.mulf %345, %71 : vector<32x256xf32>
    %347 = arith.addf %344, %346 : vector<32x256xf32>
    %348 = vector.broadcast %2 : vector<32x1xf32> to vector<32x256xf32>
    %349 = arith.addf %347, %348 : vector<32x256xf32>
    %cst_168 = arith.constant 3.000000e+00 : f32
    %350 = vector.broadcast %cst_168 : f32 to vector<32x256xf32>
    %351 = arith.addf %349, %350 : vector<32x256xf32>
    %cst_169 = arith.constant 0.000000e+00 : f32
    %cst_170 = arith.constant 6.000000e+00 : f32
    %352 = vector.broadcast %cst_169 : f32 to vector<32x256xf32>
    %353 = arith.maximumf %352, %351 : vector<32x256xf32>
    %354 = vector.broadcast %cst_170 : f32 to vector<32x256xf32>
    %355 = arith.minimumf %354, %353 : vector<32x256xf32>
    %356 = arith.mulf %349, %355 : vector<32x256xf32>
    %cst_171 = arith.constant 0.166666672 : f32
    %357 = vector.broadcast %cst_171 : f32 to vector<32x256xf32>
    %358 = arith.mulf %356, %357 : vector<32x256xf32>
    %cst_172 = arith.constant dense<0.000000e+00> : vector<32xf32>
    %359 = vector.multi_reduction <add>, %358, %cst_172 [1] : vector<32x256xf32> to vector<32xf32>
    %360 = vector.shape_cast %359 : vector<32xf32> to vector<32x1xf32>
    %cst_173 = arith.constant 3.906250e-03 : f32
    %361 = vector.broadcast %cst_173 : f32 to vector<32x1xf32>
    %362 = arith.mulf %360, %361 : vector<32x1xf32>
    %cst_174 = arith.constant dense<0.000000e+00> : vector<8x1xf32>
    %363 = tpu.matmul %3, %362, %cst_174 {dimension_numbers = #tpu.dot_dimension_numbers<[1], [0], [0], [1], [0, 0, 1, 1], [], []>} : vector<8x32xf32>, vector<32x1xf32>, vector<8x1xf32> -> vector<8x1xf32>
    %364 = arith.addf %363, %4 : vector<8x1xf32>
    %cst_175 = arith.constant 0.000000e+00 : f32
    %365 = vector.broadcast %cst_175 : f32 to vector<8x1xf32>
    %366 = arith.maximumf %364, %365 : vector<8x1xf32>
    %cst_176 = arith.constant dense<0.000000e+00> : vector<32x1xf32>
    %367 = tpu.matmul %5, %366, %cst_176 {dimension_numbers = #tpu.dot_dimension_numbers<[1], [0], [0], [1], [0, 0, 1, 1], [], []>} : vector<32x8xf32>, vector<8x1xf32>, vector<32x1xf32> -> vector<32x1xf32>
    %368 = arith.addf %367, %6 : vector<32x1xf32>
    %cst_177 = arith.constant 1.200000e+00 : f32
    %369 = vector.broadcast %cst_177 : f32 to vector<32x1xf32>
    %370 = arith.mulf %369, %368 : vector<32x1xf32>
    %cst_178 = arith.constant 3.000000e+00 : f32
    %371 = vector.broadcast %cst_178 : f32 to vector<32x1xf32>
    %372 = arith.addf %370, %371 : vector<32x1xf32>
    %cst_179 = arith.constant 0.000000e+00 : f32
    %cst_180 = arith.constant 6.000000e+00 : f32
    %373 = vector.broadcast %cst_179 : f32 to vector<32x1xf32>
    %374 = arith.maximumf %373, %372 : vector<32x1xf32>
    %375 = vector.broadcast %cst_180 : f32 to vector<32x1xf32>
    %376 = arith.minimumf %375, %374 : vector<32x1xf32>
    %cst_181 = arith.constant 0.166666672 : f32
    %377 = vector.broadcast %cst_181 : f32 to vector<32x1xf32>
    %378 = arith.mulf %376, %377 : vector<32x1xf32>
    %379 = vector.broadcast %378 : vector<32x1xf32> to vector<32x256xf32>
    %380 = arith.mulf %358, %379 : vector<32x256xf32>
    %381 = arith.truncf %380 : vector<32x256xf32> to vector<32x256xbf16>
    %cst_182 = arith.constant dense<0.000000e+00> : vector<16x256xf32>
    %382 = tpu.matmul %7, %381, %cst_182 {dimension_numbers = #tpu.dot_dimension_numbers<[1], [0], [0], [1], [0, 0, 1, 1], [], []>} : vector<16x32xbf16>, vector<32x256xbf16>, vector<16x256xf32> -> vector<16x256xf32>
    %383 = vector.broadcast %8 : vector<16x1xf32> to vector<16x256xf32>
    %384 = arith.addf %382, %383 : vector<16x256xf32>
    %c48_183 = arith.constant 48 : index
    %c0_184 = arith.constant 0 : index
    %385 = vector.load %arg1[%c48_183, %c0_184] : memref<128x256xf32, #tpu.memory_space<vmem>>, vector<16x256xf32>
    %386 = arith.addf %384, %385 : vector<16x256xf32>
    %c48_185 = arith.constant 48 : index
    %c0_186 = arith.constant 0 : index
    %387 = vector.load %arg13[%c48_185, %c0_186] : memref<128x256xf32, #tpu.memory_space<vmem>>, vector<16x256xf32>
    tpu.vector_store %arg13[%c48_185, %c0_186], %386 {strides = array<i32>} : memref<128x256xf32, #tpu.memory_space<vmem>>, vector<16x256xf32>,
    %c64 = arith.constant 64 : index
    %c0_187 = arith.constant 0 : index
    %388 = vector.load %arg1[%c64, %c0_187] : memref<128x256xf32, #tpu.memory_space<vmem>>, vector<16x256xf32>
    %389 = arith.truncf %388 : vector<16x256xf32> to vector<16x256xbf16>
    %cst_188 = arith.constant dense<0.000000e+00> : vector<32x256xf32>
    %390 = tpu.matmul %0, %389, %cst_188 {dimension_numbers = #tpu.dot_dimension_numbers<[1], [0], [0], [1], [0, 0, 1, 1], [], []>} : vector<32x16xbf16>, vector<16x256xbf16>, vector<32x256xf32> -> vector<32x256xf32>
    %391 = vector.broadcast %1 : vector<32x1xf32> to vector<32x256xf32>
    %392 = arith.addf %390, %391 : vector<32x256xf32>
    %cst_189 = arith.constant 3.000000e+00 : f32
    %393 = vector.broadcast %cst_189 : f32 to vector<32x256xf32>
    %394 = arith.addf %392, %393 : vector<32x256xf32>
    %cst_190 = arith.constant 0.000000e+00 : f32
    %cst_191 = arith.constant 6.000000e+00 : f32
    %395 = vector.broadcast %cst_190 : f32 to vector<32x256xf32>
    %396 = arith.maximumf %395, %394 : vector<32x256xf32>
    %397 = vector.broadcast %cst_191 : f32 to vector<32x256xf32>
    %398 = arith.minimumf %397, %396 : vector<32x256xf32>
    %399 = arith.mulf %392, %398 : vector<32x256xf32>
    %cst_192 = arith.constant 0.166666672 : f32
    %400 = vector.broadcast %cst_192 : f32 to vector<32x256xf32>
    %401 = arith.mulf %399, %400 : vector<32x256xf32>
    %402 = arith.mulf %401, %43 : vector<32x256xf32>
    %c17_i32_193 = arith.constant 17 : i32
    %403 = tpu.dynamic_rotate %401 by %c17_i32_193 dim 1 : vector<32x256xf32>, i32 -> vector<32x256xf32>
    %404 = arith.mulf %403, %15 : vector<32x256xf32>
    %405 = arith.addf %402, %404 : vector<32x256xf32>
    %c16_i32_194 = arith.constant 16 : i32
    %406 = tpu.dynamic_rotate %401 by %c16_i32_194 dim 1 : vector<32x256xf32>, i32 -> vector<32x256xf32>
    %407 = arith.mulf %406, %22 : vector<32x256xf32>
    %408 = arith.addf %405, %407 : vector<32x256xf32>
    %c15_i32_195 = arith.constant 15 : i32
    %409 = tpu.dynamic_rotate %401 by %c15_i32_195 dim 1 : vector<32x256xf32>, i32 -> vector<32x256xf32>
    %410 = arith.mulf %409, %29 : vector<32x256xf32>
    %411 = arith.addf %408, %410 : vector<32x256xf32>
    %c1_i32_196 = arith.constant 1 : i32
    %412 = tpu.dynamic_rotate %401 by %c1_i32_196 dim 1 : vector<32x256xf32>, i32 -> vector<32x256xf32>
    %413 = arith.mulf %412, %36 : vector<32x256xf32>
    %414 = arith.addf %411, %413 : vector<32x256xf32>
    %c255_i32_197 = arith.constant 255 : i32
    %415 = tpu.dynamic_rotate %401 by %c255_i32_197 dim 1 : vector<32x256xf32>, i32 -> vector<32x256xf32>
    %416 = arith.mulf %415, %50 : vector<32x256xf32>
    %417 = arith.addf %414, %416 : vector<32x256xf32>
    %c241_i32_198 = arith.constant 241 : i32
    %418 = tpu.dynamic_rotate %401 by %c241_i32_198 dim 1 : vector<32x256xf32>, i32 -> vector<32x256xf32>
    %419 = arith.mulf %418, %57 : vector<32x256xf32>
    %420 = arith.addf %417, %419 : vector<32x256xf32>
    %c240_i32_199 = arith.constant 240 : i32
    %421 = tpu.dynamic_rotate %401 by %c240_i32_199 dim 1 : vector<32x256xf32>, i32 -> vector<32x256xf32>
    %422 = arith.mulf %421, %64 : vector<32x256xf32>
    %423 = arith.addf %420, %422 : vector<32x256xf32>
    %c239_i32_200 = arith.constant 239 : i32
    %424 = tpu.dynamic_rotate %401 by %c239_i32_200 dim 1 : vector<32x256xf32>, i32 -> vector<32x256xf32>
    %425 = arith.mulf %424, %71 : vector<32x256xf32>
    %426 = arith.addf %423, %425 : vector<32x256xf32>
    %427 = vector.broadcast %2 : vector<32x1xf32> to vector<32x256xf32>
    %428 = arith.addf %426, %427 : vector<32x256xf32>
    %cst_201 = arith.constant 3.000000e+00 : f32
    %429 = vector.broadcast %cst_201 : f32 to vector<32x256xf32>
    %430 = arith.addf %428, %429 : vector<32x256xf32>
    %cst_202 = arith.constant 0.000000e+00 : f32
    %cst_203 = arith.constant 6.000000e+00 : f32
    %431 = vector.broadcast %cst_202 : f32 to vector<32x256xf32>
    %432 = arith.maximumf %431, %430 : vector<32x256xf32>
    %433 = vector.broadcast %cst_203 : f32 to vector<32x256xf32>
    %434 = arith.minimumf %433, %432 : vector<32x256xf32>
    %435 = arith.mulf %428, %434 : vector<32x256xf32>
    %cst_204 = arith.constant 0.166666672 : f32
    %436 = vector.broadcast %cst_204 : f32 to vector<32x256xf32>
    %437 = arith.mulf %435, %436 : vector<32x256xf32>
    %cst_205 = arith.constant dense<0.000000e+00> : vector<32xf32>
    %438 = vector.multi_reduction <add>, %437, %cst_205 [1] : vector<32x256xf32> to vector<32xf32>
    %439 = vector.shape_cast %438 : vector<32xf32> to vector<32x1xf32>
    %cst_206 = arith.constant 3.906250e-03 : f32
    %440 = vector.broadcast %cst_206 : f32 to vector<32x1xf32>
    %441 = arith.mulf %439, %440 : vector<32x1xf32>
    %cst_207 = arith.constant dense<0.000000e+00> : vector<8x1xf32>
    %442 = tpu.matmul %3, %441, %cst_207 {dimension_numbers = #tpu.dot_dimension_numbers<[1], [0], [0], [1], [0, 0, 1, 1], [], []>} : vector<8x32xf32>, vector<32x1xf32>, vector<8x1xf32> -> vector<8x1xf32>
    %443 = arith.addf %442, %4 : vector<8x1xf32>
    %cst_208 = arith.constant 0.000000e+00 : f32
    %444 = vector.broadcast %cst_208 : f32 to vector<8x1xf32>
    %445 = arith.maximumf %443, %444 : vector<8x1xf32>
    %cst_209 = arith.constant dense<0.000000e+00> : vector<32x1xf32>
    %446 = tpu.matmul %5, %445, %cst_209 {dimension_numbers = #tpu.dot_dimension_numbers<[1], [0], [0], [1], [0, 0, 1, 1], [], []>} : vector<32x8xf32>, vector<8x1xf32>, vector<32x1xf32> -> vector<32x1xf32>
    %447 = arith.addf %446, %6 : vector<32x1xf32>
    %cst_210 = arith.constant 1.200000e+00 : f32
    %448 = vector.broadcast %cst_210 : f32 to vector<32x1xf32>
    %449 = arith.mulf %448, %447 : vector<32x1xf32>
    %cst_211 = arith.constant 3.000000e+00 : f32
    %450 = vector.broadcast %cst_211 : f32 to vector<32x1xf32>
    %451 = arith.addf %449, %450 : vector<32x1xf32>
    %cst_212 = arith.constant 0.000000e+00 : f32
    %cst_213 = arith.constant 6.000000e+00 : f32
    %452 = vector.broadcast %cst_212 : f32 to vector<32x1xf32>
    %453 = arith.maximumf %452, %451 : vector<32x1xf32>
    %454 = vector.broadcast %cst_213 : f32 to vector<32x1xf32>
    %455 = arith.minimumf %454, %453 : vector<32x1xf32>
    %cst_214 = arith.constant 0.166666672 : f32
    %456 = vector.broadcast %cst_214 : f32 to vector<32x1xf32>
    %457 = arith.mulf %455, %456 : vector<32x1xf32>
    %458 = vector.broadcast %457 : vector<32x1xf32> to vector<32x256xf32>
    %459 = arith.mulf %437, %458 : vector<32x256xf32>
    %460 = arith.truncf %459 : vector<32x256xf32> to vector<32x256xbf16>
    %cst_215 = arith.constant dense<0.000000e+00> : vector<16x256xf32>
    %461 = tpu.matmul %7, %460, %cst_215 {dimension_numbers = #tpu.dot_dimension_numbers<[1], [0], [0], [1], [0, 0, 1, 1], [], []>} : vector<16x32xbf16>, vector<32x256xbf16>, vector<16x256xf32> -> vector<16x256xf32>
    %462 = vector.broadcast %8 : vector<16x1xf32> to vector<16x256xf32>
    %463 = arith.addf %461, %462 : vector<16x256xf32>
    %c64_216 = arith.constant 64 : index
    %c0_217 = arith.constant 0 : index
    %464 = vector.load %arg1[%c64_216, %c0_217] : memref<128x256xf32, #tpu.memory_space<vmem>>, vector<16x256xf32>
    %465 = arith.addf %463, %464 : vector<16x256xf32>
    %c64_218 = arith.constant 64 : index
    %c0_219 = arith.constant 0 : index
    %466 = vector.load %arg13[%c64_218, %c0_219] : memref<128x256xf32, #tpu.memory_space<vmem>>, vector<16x256xf32>
    tpu.vector_store %arg13[%c64_218, %c0_219], %465 {strides = array<i32>} : memref<128x256xf32, #tpu.memory_space<vmem>>, vector<16x256xf32>,
    %c80 = arith.constant 80 : index
    %c0_220 = arith.constant 0 : index
    %467 = vector.load %arg1[%c80, %c0_220] : memref<128x256xf32, #tpu.memory_space<vmem>>, vector<16x256xf32>
    %468 = arith.truncf %467 : vector<16x256xf32> to vector<16x256xbf16>
    %cst_221 = arith.constant dense<0.000000e+00> : vector<32x256xf32>
    %469 = tpu.matmul %0, %468, %cst_221 {dimension_numbers = #tpu.dot_dimension_numbers<[1], [0], [0], [1], [0, 0, 1, 1], [], []>} : vector<32x16xbf16>, vector<16x256xbf16>, vector<32x256xf32> -> vector<32x256xf32>
    %470 = vector.broadcast %1 : vector<32x1xf32> to vector<32x256xf32>
    %471 = arith.addf %469, %470 : vector<32x256xf32>
    %cst_222 = arith.constant 3.000000e+00 : f32
    %472 = vector.broadcast %cst_222 : f32 to vector<32x256xf32>
    %473 = arith.addf %471, %472 : vector<32x256xf32>
    %cst_223 = arith.constant 0.000000e+00 : f32
    %cst_224 = arith.constant 6.000000e+00 : f32
    %474 = vector.broadcast %cst_223 : f32 to vector<32x256xf32>
    %475 = arith.maximumf %474, %473 : vector<32x256xf32>
    %476 = vector.broadcast %cst_224 : f32 to vector<32x256xf32>
    %477 = arith.minimumf %476, %475 : vector<32x256xf32>
    %478 = arith.mulf %471, %477 : vector<32x256xf32>
    %cst_225 = arith.constant 0.166666672 : f32
    %479 = vector.broadcast %cst_225 : f32 to vector<32x256xf32>
    %480 = arith.mulf %478, %479 : vector<32x256xf32>
    %481 = arith.mulf %480, %43 : vector<32x256xf32>
    %c17_i32_226 = arith.constant 17 : i32
    %482 = tpu.dynamic_rotate %480 by %c17_i32_226 dim 1 : vector<32x256xf32>, i32 -> vector<32x256xf32>
    %483 = arith.mulf %482, %15 : vector<32x256xf32>
    %484 = arith.addf %481, %483 : vector<32x256xf32>
    %c16_i32_227 = arith.constant 16 : i32
    %485 = tpu.dynamic_rotate %480 by %c16_i32_227 dim 1 : vector<32x256xf32>, i32 -> vector<32x256xf32>
    %486 = arith.mulf %485, %22 : vector<32x256xf32>
    %487 = arith.addf %484, %486 : vector<32x256xf32>
    %c15_i32_228 = arith.constant 15 : i32
    %488 = tpu.dynamic_rotate %480 by %c15_i32_228 dim 1 : vector<32x256xf32>, i32 -> vector<32x256xf32>
    %489 = arith.mulf %488, %29 : vector<32x256xf32>
    %490 = arith.addf %487, %489 : vector<32x256xf32>
    %c1_i32_229 = arith.constant 1 : i32
    %491 = tpu.dynamic_rotate %480 by %c1_i32_229 dim 1 : vector<32x256xf32>, i32 -> vector<32x256xf32>
    %492 = arith.mulf %491, %36 : vector<32x256xf32>
    %493 = arith.addf %490, %492 : vector<32x256xf32>
    %c255_i32_230 = arith.constant 255 : i32
    %494 = tpu.dynamic_rotate %480 by %c255_i32_230 dim 1 : vector<32x256xf32>, i32 -> vector<32x256xf32>
    %495 = arith.mulf %494, %50 : vector<32x256xf32>
    %496 = arith.addf %493, %495 : vector<32x256xf32>
    %c241_i32_231 = arith.constant 241 : i32
    %497 = tpu.dynamic_rotate %480 by %c241_i32_231 dim 1 : vector<32x256xf32>, i32 -> vector<32x256xf32>
    %498 = arith.mulf %497, %57 : vector<32x256xf32>
    %499 = arith.addf %496, %498 : vector<32x256xf32>
    %c240_i32_232 = arith.constant 240 : i32
    %500 = tpu.dynamic_rotate %480 by %c240_i32_232 dim 1 : vector<32x256xf32>, i32 -> vector<32x256xf32>
    %501 = arith.mulf %500, %64 : vector<32x256xf32>
    %502 = arith.addf %499, %501 : vector<32x256xf32>
    %c239_i32_233 = arith.constant 239 : i32
    %503 = tpu.dynamic_rotate %480 by %c239_i32_233 dim 1 : vector<32x256xf32>, i32 -> vector<32x256xf32>
    %504 = arith.mulf %503, %71 : vector<32x256xf32>
    %505 = arith.addf %502, %504 : vector<32x256xf32>
    %506 = vector.broadcast %2 : vector<32x1xf32> to vector<32x256xf32>
    %507 = arith.addf %505, %506 : vector<32x256xf32>
    %cst_234 = arith.constant 3.000000e+00 : f32
    %508 = vector.broadcast %cst_234 : f32 to vector<32x256xf32>
    %509 = arith.addf %507, %508 : vector<32x256xf32>
    %cst_235 = arith.constant 0.000000e+00 : f32
    %cst_236 = arith.constant 6.000000e+00 : f32
    %510 = vector.broadcast %cst_235 : f32 to vector<32x256xf32>
    %511 = arith.maximumf %510, %509 : vector<32x256xf32>
    %512 = vector.broadcast %cst_236 : f32 to vector<32x256xf32>
    %513 = arith.minimumf %512, %511 : vector<32x256xf32>
    %514 = arith.mulf %507, %513 : vector<32x256xf32>
    %cst_237 = arith.constant 0.166666672 : f32
    %515 = vector.broadcast %cst_237 : f32 to vector<32x256xf32>
    %516 = arith.mulf %514, %515 : vector<32x256xf32>
    %cst_238 = arith.constant dense<0.000000e+00> : vector<32xf32>
    %517 = vector.multi_reduction <add>, %516, %cst_238 [1] : vector<32x256xf32> to vector<32xf32>
    %518 = vector.shape_cast %517 : vector<32xf32> to vector<32x1xf32>
    %cst_239 = arith.constant 3.906250e-03 : f32
    %519 = vector.broadcast %cst_239 : f32 to vector<32x1xf32>
    %520 = arith.mulf %518, %519 : vector<32x1xf32>
    %cst_240 = arith.constant dense<0.000000e+00> : vector<8x1xf32>
    %521 = tpu.matmul %3, %520, %cst_240 {dimension_numbers = #tpu.dot_dimension_numbers<[1], [0], [0], [1], [0, 0, 1, 1], [], []>} : vector<8x32xf32>, vector<32x1xf32>, vector<8x1xf32> -> vector<8x1xf32>
    %522 = arith.addf %521, %4 : vector<8x1xf32>
    %cst_241 = arith.constant 0.000000e+00 : f32
    %523 = vector.broadcast %cst_241 : f32 to vector<8x1xf32>
    %524 = arith.maximumf %522, %523 : vector<8x1xf32>
    %cst_242 = arith.constant dense<0.000000e+00> : vector<32x1xf32>
    %525 = tpu.matmul %5, %524, %cst_242 {dimension_numbers = #tpu.dot_dimension_numbers<[1], [0], [0], [1], [0, 0, 1, 1], [], []>} : vector<32x8xf32>, vector<8x1xf32>, vector<32x1xf32> -> vector<32x1xf32>
    %526 = arith.addf %525, %6 : vector<32x1xf32>
    %cst_243 = arith.constant 1.200000e+00 : f32
    %527 = vector.broadcast %cst_243 : f32 to vector<32x1xf32>
    %528 = arith.mulf %527, %526 : vector<32x1xf32>
    %cst_244 = arith.constant 3.000000e+00 : f32
    %529 = vector.broadcast %cst_244 : f32 to vector<32x1xf32>
    %530 = arith.addf %528, %529 : vector<32x1xf32>
    %cst_245 = arith.constant 0.000000e+00 : f32
    %cst_246 = arith.constant 6.000000e+00 : f32
    %531 = vector.broadcast %cst_245 : f32 to vector<32x1xf32>
    %532 = arith.maximumf %531, %530 : vector<32x1xf32>
    %533 = vector.broadcast %cst_246 : f32 to vector<32x1xf32>
    %534 = arith.minimumf %533, %532 : vector<32x1xf32>
    %cst_247 = arith.constant 0.166666672 : f32
    %535 = vector.broadcast %cst_247 : f32 to vector<32x1xf32>
    %536 = arith.mulf %534, %535 : vector<32x1xf32>
    %537 = vector.broadcast %536 : vector<32x1xf32> to vector<32x256xf32>
    %538 = arith.mulf %516, %537 : vector<32x256xf32>
    %539 = arith.truncf %538 : vector<32x256xf32> to vector<32x256xbf16>
    %cst_248 = arith.constant dense<0.000000e+00> : vector<16x256xf32>
    %540 = tpu.matmul %7, %539, %cst_248 {dimension_numbers = #tpu.dot_dimension_numbers<[1], [0], [0], [1], [0, 0, 1, 1], [], []>} : vector<16x32xbf16>, vector<32x256xbf16>, vector<16x256xf32> -> vector<16x256xf32>
    %541 = vector.broadcast %8 : vector<16x1xf32> to vector<16x256xf32>
    %542 = arith.addf %540, %541 : vector<16x256xf32>
    %c80_249 = arith.constant 80 : index
    %c0_250 = arith.constant 0 : index
    %543 = vector.load %arg1[%c80_249, %c0_250] : memref<128x256xf32, #tpu.memory_space<vmem>>, vector<16x256xf32>
    %544 = arith.addf %542, %543 : vector<16x256xf32>
    %c80_251 = arith.constant 80 : index
    %c0_252 = arith.constant 0 : index
    %545 = vector.load %arg13[%c80_251, %c0_252] : memref<128x256xf32, #tpu.memory_space<vmem>>, vector<16x256xf32>
    tpu.vector_store %arg13[%c80_251, %c0_252], %544 {strides = array<i32>} : memref<128x256xf32, #tpu.memory_space<vmem>>, vector<16x256xf32>,
    %c96 = arith.constant 96 : index
    %c0_253 = arith.constant 0 : index
    %546 = vector.load %arg1[%c96, %c0_253] : memref<128x256xf32, #tpu.memory_space<vmem>>, vector<16x256xf32>
    %547 = arith.truncf %546 : vector<16x256xf32> to vector<16x256xbf16>
    %cst_254 = arith.constant dense<0.000000e+00> : vector<32x256xf32>
    %548 = tpu.matmul %0, %547, %cst_254 {dimension_numbers = #tpu.dot_dimension_numbers<[1], [0], [0], [1], [0, 0, 1, 1], [], []>} : vector<32x16xbf16>, vector<16x256xbf16>, vector<32x256xf32> -> vector<32x256xf32>
    %549 = vector.broadcast %1 : vector<32x1xf32> to vector<32x256xf32>
    %550 = arith.addf %548, %549 : vector<32x256xf32>
    %cst_255 = arith.constant 3.000000e+00 : f32
    %551 = vector.broadcast %cst_255 : f32 to vector<32x256xf32>
    %552 = arith.addf %550, %551 : vector<32x256xf32>
    %cst_256 = arith.constant 0.000000e+00 : f32
    %cst_257 = arith.constant 6.000000e+00 : f32
    %553 = vector.broadcast %cst_256 : f32 to vector<32x256xf32>
    %554 = arith.maximumf %553, %552 : vector<32x256xf32>
    %555 = vector.broadcast %cst_257 : f32 to vector<32x256xf32>
    %556 = arith.minimumf %555, %554 : vector<32x256xf32>
    %557 = arith.mulf %550, %556 : vector<32x256xf32>
    %cst_258 = arith.constant 0.166666672 : f32
    %558 = vector.broadcast %cst_258 : f32 to vector<32x256xf32>
    %559 = arith.mulf %557, %558 : vector<32x256xf32>
    %560 = arith.mulf %559, %43 : vector<32x256xf32>
    %c17_i32_259 = arith.constant 17 : i32
    %561 = tpu.dynamic_rotate %559 by %c17_i32_259 dim 1 : vector<32x256xf32>, i32 -> vector<32x256xf32>
    %562 = arith.mulf %561, %15 : vector<32x256xf32>
    %563 = arith.addf %560, %562 : vector<32x256xf32>
    %c16_i32_260 = arith.constant 16 : i32
    %564 = tpu.dynamic_rotate %559 by %c16_i32_260 dim 1 : vector<32x256xf32>, i32 -> vector<32x256xf32>
    %565 = arith.mulf %564, %22 : vector<32x256xf32>
    %566 = arith.addf %563, %565 : vector<32x256xf32>
    %c15_i32_261 = arith.constant 15 : i32
    %567 = tpu.dynamic_rotate %559 by %c15_i32_261 dim 1 : vector<32x256xf32>, i32 -> vector<32x256xf32>
    %568 = arith.mulf %567, %29 : vector<32x256xf32>
    %569 = arith.addf %566, %568 : vector<32x256xf32>
    %c1_i32_262 = arith.constant 1 : i32
    %570 = tpu.dynamic_rotate %559 by %c1_i32_262 dim 1 : vector<32x256xf32>, i32 -> vector<32x256xf32>
    %571 = arith.mulf %570, %36 : vector<32x256xf32>
    %572 = arith.addf %569, %571 : vector<32x256xf32>
    %c255_i32_263 = arith.constant 255 : i32
    %573 = tpu.dynamic_rotate %559 by %c255_i32_263 dim 1 : vector<32x256xf32>, i32 -> vector<32x256xf32>
    %574 = arith.mulf %573, %50 : vector<32x256xf32>
    %575 = arith.addf %572, %574 : vector<32x256xf32>
    %c241_i32_264 = arith.constant 241 : i32
    %576 = tpu.dynamic_rotate %559 by %c241_i32_264 dim 1 : vector<32x256xf32>, i32 -> vector<32x256xf32>
    %577 = arith.mulf %576, %57 : vector<32x256xf32>
    %578 = arith.addf %575, %577 : vector<32x256xf32>
    %c240_i32_265 = arith.constant 240 : i32
    %579 = tpu.dynamic_rotate %559 by %c240_i32_265 dim 1 : vector<32x256xf32>, i32 -> vector<32x256xf32>
    %580 = arith.mulf %579, %64 : vector<32x256xf32>
    %581 = arith.addf %578, %580 : vector<32x256xf32>
    %c239_i32_266 = arith.constant 239 : i32
    %582 = tpu.dynamic_rotate %559 by %c239_i32_266 dim 1 : vector<32x256xf32>, i32 -> vector<32x256xf32>
    %583 = arith.mulf %582, %71 : vector<32x256xf32>
    %584 = arith.addf %581, %583 : vector<32x256xf32>
    %585 = vector.broadcast %2 : vector<32x1xf32> to vector<32x256xf32>
    %586 = arith.addf %584, %585 : vector<32x256xf32>
    %cst_267 = arith.constant 3.000000e+00 : f32
    %587 = vector.broadcast %cst_267 : f32 to vector<32x256xf32>
    %588 = arith.addf %586, %587 : vector<32x256xf32>
    %cst_268 = arith.constant 0.000000e+00 : f32
    %cst_269 = arith.constant 6.000000e+00 : f32
    %589 = vector.broadcast %cst_268 : f32 to vector<32x256xf32>
    %590 = arith.maximumf %589, %588 : vector<32x256xf32>
    %591 = vector.broadcast %cst_269 : f32 to vector<32x256xf32>
    %592 = arith.minimumf %591, %590 : vector<32x256xf32>
    %593 = arith.mulf %586, %592 : vector<32x256xf32>
    %cst_270 = arith.constant 0.166666672 : f32
    %594 = vector.broadcast %cst_270 : f32 to vector<32x256xf32>
    %595 = arith.mulf %593, %594 : vector<32x256xf32>
    %cst_271 = arith.constant dense<0.000000e+00> : vector<32xf32>
    %596 = vector.multi_reduction <add>, %595, %cst_271 [1] : vector<32x256xf32> to vector<32xf32>
    %597 = vector.shape_cast %596 : vector<32xf32> to vector<32x1xf32>
    %cst_272 = arith.constant 3.906250e-03 : f32
    %598 = vector.broadcast %cst_272 : f32 to vector<32x1xf32>
    %599 = arith.mulf %597, %598 : vector<32x1xf32>
    %cst_273 = arith.constant dense<0.000000e+00> : vector<8x1xf32>
    %600 = tpu.matmul %3, %599, %cst_273 {dimension_numbers = #tpu.dot_dimension_numbers<[1], [0], [0], [1], [0, 0, 1, 1], [], []>} : vector<8x32xf32>, vector<32x1xf32>, vector<8x1xf32> -> vector<8x1xf32>
    %601 = arith.addf %600, %4 : vector<8x1xf32>
    %cst_274 = arith.constant 0.000000e+00 : f32
    %602 = vector.broadcast %cst_274 : f32 to vector<8x1xf32>
    %603 = arith.maximumf %601, %602 : vector<8x1xf32>
    %cst_275 = arith.constant dense<0.000000e+00> : vector<32x1xf32>
    %604 = tpu.matmul %5, %603, %cst_275 {dimension_numbers = #tpu.dot_dimension_numbers<[1], [0], [0], [1], [0, 0, 1, 1], [], []>} : vector<32x8xf32>, vector<8x1xf32>, vector<32x1xf32> -> vector<32x1xf32>
    %605 = arith.addf %604, %6 : vector<32x1xf32>
    %cst_276 = arith.constant 1.200000e+00 : f32
    %606 = vector.broadcast %cst_276 : f32 to vector<32x1xf32>
    %607 = arith.mulf %606, %605 : vector<32x1xf32>
    %cst_277 = arith.constant 3.000000e+00 : f32
    %608 = vector.broadcast %cst_277 : f32 to vector<32x1xf32>
    %609 = arith.addf %607, %608 : vector<32x1xf32>
    %cst_278 = arith.constant 0.000000e+00 : f32
    %cst_279 = arith.constant 6.000000e+00 : f32
    %610 = vector.broadcast %cst_278 : f32 to vector<32x1xf32>
    %611 = arith.maximumf %610, %609 : vector<32x1xf32>
    %612 = vector.broadcast %cst_279 : f32 to vector<32x1xf32>
    %613 = arith.minimumf %612, %611 : vector<32x1xf32>
    %cst_280 = arith.constant 0.166666672 : f32
    %614 = vector.broadcast %cst_280 : f32 to vector<32x1xf32>
    %615 = arith.mulf %613, %614 : vector<32x1xf32>
    %616 = vector.broadcast %615 : vector<32x1xf32> to vector<32x256xf32>
    %617 = arith.mulf %595, %616 : vector<32x256xf32>
    %618 = arith.truncf %617 : vector<32x256xf32> to vector<32x256xbf16>
    %cst_281 = arith.constant dense<0.000000e+00> : vector<16x256xf32>
    %619 = tpu.matmul %7, %618, %cst_281 {dimension_numbers = #tpu.dot_dimension_numbers<[1], [0], [0], [1], [0, 0, 1, 1], [], []>} : vector<16x32xbf16>, vector<32x256xbf16>, vector<16x256xf32> -> vector<16x256xf32>
    %620 = vector.broadcast %8 : vector<16x1xf32> to vector<16x256xf32>
    %621 = arith.addf %619, %620 : vector<16x256xf32>
    %c96_282 = arith.constant 96 : index
    %c0_283 = arith.constant 0 : index
    %622 = vector.load %arg1[%c96_282, %c0_283] : memref<128x256xf32, #tpu.memory_space<vmem>>, vector<16x256xf32>
    %623 = arith.addf %621, %622 : vector<16x256xf32>
    %c96_284 = arith.constant 96 : index
    %c0_285 = arith.constant 0 : index
    %624 = vector.load %arg13[%c96_284, %c0_285] : memref<128x256xf32, #tpu.memory_space<vmem>>, vector<16x256xf32>
    tpu.vector_store %arg13[%c96_284, %c0_285], %623 {strides = array<i32>} : memref<128x256xf32, #tpu.memory_space<vmem>>, vector<16x256xf32>,
    %c112 = arith.constant 112 : index
    %c0_286 = arith.constant 0 : index
    %625 = vector.load %arg1[%c112, %c0_286] : memref<128x256xf32, #tpu.memory_space<vmem>>, vector<16x256xf32>
    %626 = arith.truncf %625 : vector<16x256xf32> to vector<16x256xbf16>
    %cst_287 = arith.constant dense<0.000000e+00> : vector<32x256xf32>
    %627 = tpu.matmul %0, %626, %cst_287 {dimension_numbers = #tpu.dot_dimension_numbers<[1], [0], [0], [1], [0, 0, 1, 1], [], []>} : vector<32x16xbf16>, vector<16x256xbf16>, vector<32x256xf32> -> vector<32x256xf32>
    %628 = vector.broadcast %1 : vector<32x1xf32> to vector<32x256xf32>
    %629 = arith.addf %627, %628 : vector<32x256xf32>
    %cst_288 = arith.constant 3.000000e+00 : f32
    %630 = vector.broadcast %cst_288 : f32 to vector<32x256xf32>
    %631 = arith.addf %629, %630 : vector<32x256xf32>
    %cst_289 = arith.constant 0.000000e+00 : f32
    %cst_290 = arith.constant 6.000000e+00 : f32
    %632 = vector.broadcast %cst_289 : f32 to vector<32x256xf32>
    %633 = arith.maximumf %632, %631 : vector<32x256xf32>
    %634 = vector.broadcast %cst_290 : f32 to vector<32x256xf32>
    %635 = arith.minimumf %634, %633 : vector<32x256xf32>
    %636 = arith.mulf %629, %635 : vector<32x256xf32>
    %cst_291 = arith.constant 0.166666672 : f32
    %637 = vector.broadcast %cst_291 : f32 to vector<32x256xf32>
    %638 = arith.mulf %636, %637 : vector<32x256xf32>
    %639 = arith.mulf %638, %43 : vector<32x256xf32>
    %c17_i32_292 = arith.constant 17 : i32
    %640 = tpu.dynamic_rotate %638 by %c17_i32_292 dim 1 : vector<32x256xf32>, i32 -> vector<32x256xf32>
    %641 = arith.mulf %640, %15 : vector<32x256xf32>
    %642 = arith.addf %639, %641 : vector<32x256xf32>
    %c16_i32_293 = arith.constant 16 : i32
    %643 = tpu.dynamic_rotate %638 by %c16_i32_293 dim 1 : vector<32x256xf32>, i32 -> vector<32x256xf32>
    %644 = arith.mulf %643, %22 : vector<32x256xf32>
    %645 = arith.addf %642, %644 : vector<32x256xf32>
    %c15_i32_294 = arith.constant 15 : i32
    %646 = tpu.dynamic_rotate %638 by %c15_i32_294 dim 1 : vector<32x256xf32>, i32 -> vector<32x256xf32>
    %647 = arith.mulf %646, %29 : vector<32x256xf32>
    %648 = arith.addf %645, %647 : vector<32x256xf32>
    %c1_i32_295 = arith.constant 1 : i32
    %649 = tpu.dynamic_rotate %638 by %c1_i32_295 dim 1 : vector<32x256xf32>, i32 -> vector<32x256xf32>
    %650 = arith.mulf %649, %36 : vector<32x256xf32>
    %651 = arith.addf %648, %650 : vector<32x256xf32>
    %c255_i32_296 = arith.constant 255 : i32
    %652 = tpu.dynamic_rotate %638 by %c255_i32_296 dim 1 : vector<32x256xf32>, i32 -> vector<32x256xf32>
    %653 = arith.mulf %652, %50 : vector<32x256xf32>
    %654 = arith.addf %651, %653 : vector<32x256xf32>
    %c241_i32_297 = arith.constant 241 : i32
    %655 = tpu.dynamic_rotate %638 by %c241_i32_297 dim 1 : vector<32x256xf32>, i32 -> vector<32x256xf32>
    %656 = arith.mulf %655, %57 : vector<32x256xf32>
    %657 = arith.addf %654, %656 : vector<32x256xf32>
    %c240_i32_298 = arith.constant 240 : i32
    %658 = tpu.dynamic_rotate %638 by %c240_i32_298 dim 1 : vector<32x256xf32>, i32 -> vector<32x256xf32>
    %659 = arith.mulf %658, %64 : vector<32x256xf32>
    %660 = arith.addf %657, %659 : vector<32x256xf32>
    %c239_i32_299 = arith.constant 239 : i32
    %661 = tpu.dynamic_rotate %638 by %c239_i32_299 dim 1 : vector<32x256xf32>, i32 -> vector<32x256xf32>
    %662 = arith.mulf %661, %71 : vector<32x256xf32>
    %663 = arith.addf %660, %662 : vector<32x256xf32>
    %664 = vector.broadcast %2 : vector<32x1xf32> to vector<32x256xf32>
    %665 = arith.addf %663, %664 : vector<32x256xf32>
    %cst_300 = arith.constant 3.000000e+00 : f32
    %666 = vector.broadcast %cst_300 : f32 to vector<32x256xf32>
    %667 = arith.addf %665, %666 : vector<32x256xf32>
    %cst_301 = arith.constant 0.000000e+00 : f32
    %cst_302 = arith.constant 6.000000e+00 : f32
    %668 = vector.broadcast %cst_301 : f32 to vector<32x256xf32>
    %669 = arith.maximumf %668, %667 : vector<32x256xf32>
    %670 = vector.broadcast %cst_302 : f32 to vector<32x256xf32>
    %671 = arith.minimumf %670, %669 : vector<32x256xf32>
    %672 = arith.mulf %665, %671 : vector<32x256xf32>
    %cst_303 = arith.constant 0.166666672 : f32
    %673 = vector.broadcast %cst_303 : f32 to vector<32x256xf32>
    %674 = arith.mulf %672, %673 : vector<32x256xf32>
    %cst_304 = arith.constant dense<0.000000e+00> : vector<32xf32>
    %675 = vector.multi_reduction <add>, %674, %cst_304 [1] : vector<32x256xf32> to vector<32xf32>
    %676 = vector.shape_cast %675 : vector<32xf32> to vector<32x1xf32>
    %cst_305 = arith.constant 3.906250e-03 : f32
    %677 = vector.broadcast %cst_305 : f32 to vector<32x1xf32>
    %678 = arith.mulf %676, %677 : vector<32x1xf32>
    %cst_306 = arith.constant dense<0.000000e+00> : vector<8x1xf32>
    %679 = tpu.matmul %3, %678, %cst_306 {dimension_numbers = #tpu.dot_dimension_numbers<[1], [0], [0], [1], [0, 0, 1, 1], [], []>} : vector<8x32xf32>, vector<32x1xf32>, vector<8x1xf32> -> vector<8x1xf32>
    %680 = arith.addf %679, %4 : vector<8x1xf32>
    %cst_307 = arith.constant 0.000000e+00 : f32
    %681 = vector.broadcast %cst_307 : f32 to vector<8x1xf32>
    %682 = arith.maximumf %680, %681 : vector<8x1xf32>
    %cst_308 = arith.constant dense<0.000000e+00> : vector<32x1xf32>
    %683 = tpu.matmul %5, %682, %cst_308 {dimension_numbers = #tpu.dot_dimension_numbers<[1], [0], [0], [1], [0, 0, 1, 1], [], []>} : vector<32x8xf32>, vector<8x1xf32>, vector<32x1xf32> -> vector<32x1xf32>
    %684 = arith.addf %683, %6 : vector<32x1xf32>
    %cst_309 = arith.constant 1.200000e+00 : f32
    %685 = vector.broadcast %cst_309 : f32 to vector<32x1xf32>
    %686 = arith.mulf %685, %684 : vector<32x1xf32>
    %cst_310 = arith.constant 3.000000e+00 : f32
    %687 = vector.broadcast %cst_310 : f32 to vector<32x1xf32>
    %688 = arith.addf %686, %687 : vector<32x1xf32>
    %cst_311 = arith.constant 0.000000e+00 : f32
    %cst_312 = arith.constant 6.000000e+00 : f32
    %689 = vector.broadcast %cst_311 : f32 to vector<32x1xf32>
    %690 = arith.maximumf %689, %688 : vector<32x1xf32>
    %691 = vector.broadcast %cst_312 : f32 to vector<32x1xf32>
    %692 = arith.minimumf %691, %690 : vector<32x1xf32>
    %cst_313 = arith.constant 0.166666672 : f32
    %693 = vector.broadcast %cst_313 : f32 to vector<32x1xf32>
    %694 = arith.mulf %692, %693 : vector<32x1xf32>
    %695 = vector.broadcast %694 : vector<32x1xf32> to vector<32x256xf32>
    %696 = arith.mulf %674, %695 : vector<32x256xf32>
    %697 = arith.truncf %696 : vector<32x256xf32> to vector<32x256xbf16>
    %cst_314 = arith.constant dense<0.000000e+00> : vector<16x256xf32>
    %698 = tpu.matmul %7, %697, %cst_314 {dimension_numbers = #tpu.dot_dimension_numbers<[1], [0], [0], [1], [0, 0, 1, 1], [], []>} : vector<16x32xbf16>, vector<32x256xbf16>, vector<16x256xf32> -> vector<16x256xf32>
    %699 = vector.broadcast %8 : vector<16x1xf32> to vector<16x256xf32>
    %700 = arith.addf %698, %699 : vector<16x256xf32>
    %c112_315 = arith.constant 112 : index
    %c0_316 = arith.constant 0 : index
    %701 = vector.load %arg1[%c112_315, %c0_316] : memref<128x256xf32, #tpu.memory_space<vmem>>, vector<16x256xf32>
    %702 = arith.addf %700, %701 : vector<16x256xf32>
    %c112_317 = arith.constant 112 : index
    %c0_318 = arith.constant 0 : index
    %703 = vector.load %arg13[%c112_317, %c0_318] : memref<128x256xf32, #tpu.memory_space<vmem>>, vector<16x256xf32>
    tpu.vector_store %arg13[%c112_317, %c0_318], %702 {strides = array<i32>} : memref<128x256xf32, #tpu.memory_space<vmem>>, vector<16x256xf32>,
    return
  }
  func.func @transform_0(%arg0: i32) -> (i32, i32) {
    %c0_i32 = arith.constant 0 : i32
    %c0_i32_0 = arith.constant 0 : i32
    return %arg0, %c0_i32 : i32, i32
  }
  func.func @transform_1(%arg0: i32) -> (i32, i32) {
    %c0_i32 = arith.constant 0 : i32
    %c0_i32_0 = arith.constant 0 : i32
    %c0_i32_1 = arith.constant 0 : i32
    return %c0_i32, %c0_i32_0 : i32, i32
  }
  func.func @transform_2(%arg0: i32) -> (i32, i32) {
    %c0_i32 = arith.constant 0 : i32
    %c0_i32_0 = arith.constant 0 : i32
    %c0_i32_1 = arith.constant 0 : i32
    return %c0_i32, %c0_i32_0 : i32, i32
  }
  func.func @transform_3(%arg0: i32) -> (i32, i32, i32) {
    %c0_i32 = arith.constant 0 : i32
    %c0_i32_0 = arith.constant 0 : i32
    %c0_i32_1 = arith.constant 0 : i32
    %c0_i32_2 = arith.constant 0 : i32
    return %c0_i32, %c0_i32_0, %c0_i32_1 : i32, i32, i32
  }
  func.func @transform_4(%arg0: i32) -> (i32, i32, i32) {
    %c0_i32 = arith.constant 0 : i32
    %c0_i32_0 = arith.constant 0 : i32
    %c0_i32_1 = arith.constant 0 : i32
    %c0_i32_2 = arith.constant 0 : i32
    return %c0_i32, %c0_i32_0, %c0_i32_1 : i32, i32, i32
  }
  func.func @transform_5(%arg0: i32) -> (i32, i32) {
    %c0_i32 = arith.constant 0 : i32
    %c0_i32_0 = arith.constant 0 : i32
    %c0_i32_1 = arith.constant 0 : i32
    return %c0_i32, %c0_i32_0 : i32, i32
  }
  func.func @transform_6(%arg0: i32) -> (i32, i32) {
    %c0_i32 = arith.constant 0 : i32
    %c0_i32_0 = arith.constant 0 : i32
    %c0_i32_1 = arith.constant 0 : i32
    return %c0_i32, %c0_i32_0 : i32, i32
  }
  func.func @transform_7(%arg0: i32) -> (i32, i32) {
    %c0_i32 = arith.constant 0 : i32
    %c0_i32_0 = arith.constant 0 : i32
    %c0_i32_1 = arith.constant 0 : i32
    return %c0_i32, %c0_i32_0 : i32, i32
  }
  func.func @transform_8(%arg0: i32) -> (i32, i32) {
    %c0_i32 = arith.constant 0 : i32
    %c0_i32_0 = arith.constant 0 : i32
    %c0_i32_1 = arith.constant 0 : i32
    return %c0_i32, %c0_i32_0 : i32, i32
  }
  func.func @transform_9(%arg0: i32) -> (i32, i32) {
    %c0_i32 = arith.constant 0 : i32
    %c0_i32_0 = arith.constant 0 : i32
    %c0_i32_1 = arith.constant 0 : i32
    return %c0_i32, %c0_i32_0 : i32, i32
  }
  func.func @transform_10(%arg0: i32) -> (i32, i32) {
    %c0_i32 = arith.constant 0 : i32
    %c0_i32_0 = arith.constant 0 : i32
    %c0_i32_1 = arith.constant 0 : i32
    return %c0_i32, %c0_i32_0 : i32, i32
  }
  func.func @transform_11(%arg0: i32) -> (i32, i32) {
    %c0_i32 = arith.constant 0 : i32
    %c0_i32_0 = arith.constant 0 : i32
    %c0_i32_1 = arith.constant 0 : i32
    return %c0_i32, %c0_i32_0 : i32, i32
  }
  func.func @transform_12(%arg0: i32) -> (i32, i32) {
    %c0_i32 = arith.constant 0 : i32
    %c0_i32_0 = arith.constant 0 : i32
    return %arg0, %c0_i32 : i32, i32
  }
}

</mosaic_0001>

<bundles_post_ra>
// kernel: tpu_custom_call.1
= control target key start
LH: loop header
LB: loop body
LE: loop exit
PB: predicated region body
PF: predicated region fallthrough
CT: control target
= control target key end

     0   :  { %s13183_s0 = inlined_call_operand.hbm [shape: f32[256,256], index: 0, kind: input, shape index: {}]   ;;  %s13184_s1 = inlined_call_operand.vmem [shape: bf16[32,16], index: 1, kind: input, shape index: {}]   ;;  %s13185_s2 = inlined_call_operand.vmem [shape: f32[32,1], index: 2, kind: input, shape index: {}]   ;;  %s13186_s3 = inlined_call_operand.vmem [shape: f32[9,32,1], index: 3, kind: input, shape index: {}]   ;;  %s13187_s4 = inlined_call_operand.vmem [shape: f32[9,1,256], index: 4, kind: input, shape index: {}]   ;;  %s13188_s5 = inlined_call_operand.vmem [shape: f32[32,1], index: 5, kind: input, shape index: {}]   ;;  %s13189_s6 = inlined_call_operand.vmem [shape: f32[8,32], index: 6, kind: input, shape index: {}]   ;;  %s13190_s7 = inlined_call_operand.vmem [shape: f32[8,1], index: 7, kind: input, shape index: {}]   ;;  %s13191_s8 = inlined_call_operand.vmem [shape: f32[32,8], index: 8, kind: input, shape index: {}]   ;;  %s13192_s9 = inlined_call_operand.vmem [shape: f32[32,1], index: 9, kind: input, shape index: {}]   ;;  %s13193_s10 = inlined_call_operand.vmem [shape: bf16[16,32], index: 10, kind: input, shape index: {}]   ;;  %s13194_s11 = inlined_call_operand.vmem [shape: f32[16,1], index: 11, kind: input, shape index: {}]   ;;  %s13195_s12 = inlined_call_operand.hbm [shape: f32[256,256], index: 12, kind: output, shape index: {}]  }
   0x1   :  { %13582 = sst [smem:[#allocation107_spill]] %s13183_s0 }
   0x2   :  { %13583 = sst [smem:[#allocation108_spill]] %s13185_s2 }
   0x3   :  { %13584 = sst [smem:[#allocation109_spill]] %s13186_s3 }
   0x4   :  { %13585 = sst [smem:[#allocation110_spill]] %s13187_s4 }
   0x5   :  { %17 = vsyncpa [#allocation3], 0 }
   0x6   :  { %19 = vsyncpa [#allocation3 + $0x1], 0 }
   0x7   :  { %20 = vsyncpa [#allocation4], 0 }
   0x8   :  { %22 = vsyncpa [#allocation4 + $0x1], 0  ;;  %s7835_s21 = smov 0   ;;  %s7837_s22 = smov 0  }
   0x9   :  { %s7839_s23 = smov 0   ;;  %s7841_s24 = smov 0  }
   0xa LB: > { %13586 = sst [smem:[#allocation8_spill]] %s7747_s23  ;;  %s7856_s25 = sadd.s32 4294967295, %s7751_s24   ;;  %s7751_s24 = sphi %s7841_s24, %s14404_s24   ;;  %s7747_s23 = sphi %s7839_s23, %s14406_s23   ;;  %s7743_s22 = sphi %s7837_s22, %s14408_s22   ;;  %s7739_s21 = sphi %s7835_s21, %s14407_s21  }
   0xb   : > { %s7064_s26 = sadd.s32 4294967294, %s7751_s24   ;;  %s7860_s27 = sadd.s32 1, %s7751_s24  }
   0xc   : > { %13587 = sst [smem:[#allocation9_spill]] %s7860_s27  ;;  %s35_s28 = sadd.s32 1, %s7747_s23 }
   0xd   : > { %s32_s29 = ssub.s32 %s7751_s24, %s7860_s27  ;;  %p42_p0 = scmp.ne.s32.totalorder %s7747_s23, %s7743_s22 }
   0xe   : > { %p33_p1 = scmp.eq.s32.totalorder %s32_s29, 0  ;;  %p43_p2 = scmp.eq.s32.totalorder %s7751_s24, 0 }
   0xf   : > { %p48_p3 = scmp.ne.s32.totalorder %s7743_s22, %s7739_s21  ;;  %p49_p4 = scmp.eq.s32.totalorder %s7856_s25, 0 }
  0x10   : > { %s7872_s30 = scalar_select %p33_p1, %s7747_s23, %s35_s28  }
  0x11   : > { %p7874_p5 = por %p43_p2, %p42_p0  ;;  %p7878_p6 = por %p49_p4, %p48_p3 }
  0x12   : > { %13588 = sst [smem:[#allocation10_spill]] %s7872_s30  ;;  %p303_p7 = scmp.eq.s32.totalorder %s7856_s25, 1 }
  0x13   : > { %p309_p8 = scmp.eq.s32.totalorder %s7064_s26, 1  ;;  %p7483_p10 = scmp.lt.s32.totalorder %s7751_s24, 2 }
  0x14   : > { %p7885_p11 = por %p303_p7, %p42_p0  ;;  %s362_s17 = sand.u32 1, %s7747_s23  }
  0x15   : > { %p7889_p12 = por %p309_p8, %p48_p3  ;;  %s7188_s18 = sshll.u32 %s7751_s24, 12 }
  0x16   : > { %s13591_s15 = scalar_select %p7885_p11, 1, 0 }
  0x17   : > { %s13592_s16 = scalar_select %p7889_p12, 1, 0 }
  0x18   : > { %s7067_s19 = sshll.u32 %s362_s17, 8  ;;  %s13593_s0 = sld [smem:[#allocation107_spill]] }
  0x19   : > { %s366_s26 = scalar_lea.vmem [#allocation2], %s7067_s19  ;;  %p7902_p13 = pnand %p7483_p10, %p7874_p5 }
  0x1a   : > { %s374_s30 = sshll.u32 %s366_s26, 4  ;;  %s7908_s23 = scalar_lea.sflag [#allocation3], %s362_s17  ;;  %s7906_s30 = int_to_ptr.vmem [resolvable:$true] %s374_s30 }
  0x1b   : > { %p7657_p1 = pneg %p7902_p13 }
  0x1e   : > { %s7898_s29 = scalar_lea.hbm %s13593_s0, %s7188_s18  ;;  %s7660_s19 = scalar_lea.hbm %s13593_s0, 8192 }
  0x1f   : > { %s7655_s20 = scalar_lea.hbm %s7898_s29, 4096  ;;  %p7661_p4 = scmp.lt.u32.totalorder %s7898_s29, %s13593_s0 }
  0x20   : > { %p7656_p0 = scmp.ne.s32.totalorder %s7898_s29, %s7655_s20  ;;  %p7662_p5 = scmp.lt.u32.totalorder %s7660_s19, %s7655_s20 }
  0x21   : > { %p7664_p8 = scmp.lt.u32.totalorder %s7655_s20, %s7898_s29 }
  0x22   : > { %p7658_p2 = pnand %p7657_p1, %p7656_p0  ;;  %p7663_p7 = por %p7662_p5, %p7661_p4 }
  0x24   : > { %p7659_p3 = pneg %p7658_p2  ;;  %p7665_p10 = por %p7664_p8, %p7663_p7 }
  0x26   : > { %p7666_p9 = pnand %p7665_p10, %p7659_p3 }
  0x28   : > { %7669 = shalt.err (!%p7666_p9)
}
  0x29   : > { %s7670_s17 = scalar_lea.vmem %s7906_s30, 4096  ;;  %s7753_s18 = smov [#allocation2]  }
  0x2a   : > { %p7671_p0 = scmp.ne.s32.totalorder %s7906_s30, %s7670_s17  ;;  %s7675_s13 = sshll.u32 %s7753_s18, 4  ;;  %s7676_s13 = int_to_ptr.vmem [resolvable:$false] %s7675_s13 }
  0x2b   : > { %s7677_s28 = scalar_lea.vmem %s7676_s13, 8192  ;;  %p7678_p11 = scmp.lt.s32.totalorder %s7906_s30, %s7676_s13 }
  0x2c   : > { %p7673_p2 = pnand %p7671_p0, %p7657_p1  ;;  %p7679_p4 = scmp.lt.s32.totalorder %s7677_s28, %s7670_s17 }
  0x2e   : > { %p7674_p12 = pneg %p7673_p2  ;;  %p7680_p5 = por %p7679_p4, %p7678_p11 }
  0x30   : > { %p7681_p7 = pnand %p7680_p5, %p7674_p12 }
  0x32   : > { %7684 = shalt.err (!%p7681_p7)
}
  0x33   : > { %s7754_s20 = smov 256   ;;  %s7755_s19 = smov 16  }
  0x34   : > { %7478 = dma.hbm_to_vmem [thread:$0]  (!%p7902_p13), %s7898_s29, 4096, %s7906_s30, %s7908_s23, %s7754_s20, %s7754_s20, %s7755_s19  }
  0x35   : > { %p7071_p9 = scmp.ge.s32.totalorder %s7751_s24, 1  ;;  %p382_p1 = scmp.lt.s32.totalorder %s7751_s24, 3 }
  0x37   : > { %p383_p3 = pnand %p7071_p9, %p382_p1 }
  0x39   : > { %386 = sbr.rel (%p383_p3) target bundleno = 7542 (0x1d76), region = 68 }
  0x40   : > { %s7939_s26 = sand.u32 1, %s7743_s22  }
  0x41   : > { %s13200_s17 = sshll.u32 %s7939_s26, 8  ;;  %s389_s18 = scalar_lea.sflag [#allocation3], %s7939_s26 }
  0x42   : > { %s7945_s13 = scalar_lea.vmem [#allocation2], %s13200_s17 }
  0x43   : > { %7730 = dma.done.wait (%p7878_p6), %s389_s18, 4096  }
  0x44   : > { %7732 = vsyncadd (%p7878_p6), %s389_s18, 4294963200  ;;  %v13201_v0 = vmov 0   ;;  %v875_v1 = vld [vmem:[%s7945_s13 + $0x8] sm:$0xff]  ;;  %v877_v2 = vld [vmem:[%s7945_s13 + $0x18] sm:$0xff]  ;;  %s13595_s2 = sld [smem:[#allocation108_spill]]  ;;  %vm910_vm0 = vcmask 130048  }
  0x45   : > { %7532 = vset.pattern.permute.xlu0 %v13201_v0  ;;  %949 = vmatprep.mubr.bf16.mxu0 %v13201_v0  ;;  %v874_v3 = vld [vmem:[%s7945_s13] sm:$0xff]  ;;  %v879_v4 = vpack.c.bf16 %v877_v2, %v875_v1  ;;  %v876_v5 = vld [vmem:[%s7945_s13 + $0x10] sm:$0xff]  ;;  %s13596_s3 = sld [smem:[#allocation109_spill]]  ;;  %v7535_v13 = vld [vmem:[%s13184_s1 + $0x8] sm:$0xff]   ;;  %s13228_s17 = smov 17   ;;  %vm7766_vm9 = vmmov 0  }
  0x46   : > { %7533 = vset.pattern.permute.xlu1 %v13201_v0  ;;  %v878_v7 = vpack.c.bf16 %v876_v5, %v874_v3  ;;  %v7534_v8 = vld [vmem:[%s13184_s1] sm:$0xff]   ;;  %v446_v50 = vld [vmem:[%s13188_s5 + $0x10] sm:$0xff]  ;;  %v445_v51 = vld [vmem:[%s13188_s5 + $0x8] sm:$0xff]  ;;  %s13230_s14 = smov 16   ;;  %s13226_s29 = smov 15   ;;  %vm1432_vm10 = vcmask 261120  }
  0x47   : > { %917 = vmatprep.subr.bf16.mxu0 %v879_v4  ;;  %v444_v48 = vld [vmem:[%s13188_s5] sm:$0xff]  ;;  %v447_v52 = vld [vmem:[%s13188_s5 + $0x18] sm:$0xff]  ;;  %s13224_s28 = smov 1   ;;  %s13221_s20 = smov 127   ;;  %vm1507_vm11 = vcmask 64512  }
  0x48   : > { %918 = vmatpush1.bf16.msra.mxu0 %v878_v7  ;;  %s13219_s19 = smov 113   ;;  %s13215_s18 = smov 112  }
  0x49   : > { %s13213_s23 = smov 111   ;;  %s13627_s4 = sld [smem:[#allocation110_spill]] }
  0x4a   : > { %v440_v6 = vld [vmem:[%s13595_s2] sm:$0xff]  ;;  %v441_v9 = vld [vmem:[%s13595_s2 + $0x8] sm:$0xff]  ;;  %v442_v11 = vld [vmem:[%s13595_s2 + $0x10] sm:$0xff]  ;;  %s13792_s27 = smov 112   ;;  %s13793_s30 = smov 111  }
  0x4b   : > { %882 = vperm.xlu0 %7532, %v440_v6   ;;  %7116 = vmatmul.mubr.msk.bf16.vlgmr.msra.gmra.mrb[0].mxu0 %vm910_vm0, %v7534_v8  ;;  %v462_v10 = vld [vmem:[%s13596_s3] sm:$0xff]  ;;  %v443_v12 = vld [vmem:[%s13595_s2 + $0x18] sm:$0xff]  ;;  %v463_v15 = vld [vmem:[%s13596_s3 + $0x8] sm:$0xff]  ;;  %p14401_p11 = scmp.ne.s32.totalorder %s13591_s15, 0 }
  0x4c   : > { %959 = vmatprep.mubr.bf16.mxu0 %v13201_v0  ;;  %892 = vperm.xlu1 %7533, %v442_v11   ;;  %v7089_v14 = vld [vmem:[%s13596_s3 + $0x80] sm:$0xff]  ;;  %v7090_v17 = vld [vmem:[%s13596_s3 + $0x88] sm:$0xff]  ;;  %v464_v18 = vld [vmem:[%s13596_s3 + $0x10] sm:$0xff] }
  0x4d   : > { %v7074_v16 = vld [vmem:[%s13596_s3 + $0x20] sm:$0xff]  ;;  %v7075_v19 = vld [vmem:[%s13596_s3 + $0x28] sm:$0xff]  ;;  %v465_v21 = vld [vmem:[%s13596_s3 + $0x18] sm:$0xff] }
  0x4e   : > { %v7079_v20 = vld [vmem:[%s13596_s3 + $0x40] sm:$0xff]  ;;  %v7091_v22 = vld [vmem:[%s13596_s3 + $0x90] sm:$0xff]  ;;  %v7080_v23 = vld [vmem:[%s13596_s3 + $0x48] sm:$0xff] }
  0x4f   : > { %887 = vperm.xlu0 %7532, %v441_v9   ;;  %v7076_v24 = vld [vmem:[%s13596_s3 + $0x30] sm:$0xff]  ;;  %v7092_v25 = vld [vmem:[%s13596_s3 + $0x98] sm:$0xff]  ;;  %v7084_v26 = vld [vmem:[%s13596_s3 + $0x60] sm:$0xff] }
  0x50   : > { %897 = vperm.xlu1 %7533, %v443_v12   ;;  %v7077_v27 = vld [vmem:[%s13596_s3 + $0x38] sm:$0xff]  ;;  %v7081_v28 = vld [vmem:[%s13596_s3 + $0x50] sm:$0xff]  ;;  %v7085_v29 = vld [vmem:[%s13596_s3 + $0x68] sm:$0xff] }
  0x51   : > { %v7094_v30 = vld [vmem:[%s13596_s3 + $0xa0] sm:$0xff]  ;;  %v7082_v31 = vld [vmem:[%s13596_s3 + $0x58] sm:$0xff]  ;;  %v7086_v32 = vld [vmem:[%s13596_s3 + $0x70] sm:$0xff] }
  0x52   : > { %v7095_v33 = vld [vmem:[%s13596_s3 + $0xa8] sm:$0xff]  ;;  %v7099_v34 = vld [vmem:[%s13596_s3 + $0xc0] sm:$0xff]  ;;  %v7087_v35 = vld [vmem:[%s13596_s3 + $0x78] sm:$0xff] }
  0x53   : > { %469 = vperm.xlu0 %7532, %v462_v10   ;;  %7117 = vmatmul.mubr.msk.bf16.gmra.mrb[4].mxu0 %vm910_vm0, %v7535_v13  ;;  %v7096_v36 = vld [vmem:[%s13596_s3 + $0xb0] sm:$0xff]  ;;  %v7100_v37 = vld [vmem:[%s13596_s3 + $0xc8] sm:$0xff]  ;;  %v7104_v38 = vld [vmem:[%s13596_s3 + $0xe0] sm:$0xff] }
  0x54   : > { %474 = vperm.xlu1 %7533, %v463_v15   ;;  %1707 = vmatprep.mubr.bf16.mxu0 %v13201_v0  ;;  %v7097_v39 = vld [vmem:[%s13596_s3 + $0xb8] sm:$0xff]  ;;  %v7101_v40 = vld [vmem:[%s13596_s3 + $0xd0] sm:$0xff]  ;;  %v7105_v41 = vld [vmem:[%s13596_s3 + $0xe8] sm:$0xff] }
  0x55   : > { %v7109_v42 = vld [vmem:[%s13596_s3 + $0x100] sm:$0xff]  ;;  %v7102_v43 = vld [vmem:[%s13596_s3 + $0xd8] sm:$0xff]  ;;  %v7106_v44 = vld [vmem:[%s13596_s3 + $0xf0] sm:$0xff] }
  0x56   : > { %v7110_v45 = vld [vmem:[%s13596_s3 + $0x108] sm:$0xff]  ;;  %v7111_v46 = vld [vmem:[%s13596_s3 + $0x110] sm:$0xff]  ;;  %v7107_v47 = vld [vmem:[%s13596_s3 + $0xf8] sm:$0xff] }
  0x57   : > { %653 = vperm.xlu0 %7532, %v7089_v14   ;;  %v7112_v49 = vld [vmem:[%s13596_s3 + $0x118] sm:$0xff]  ;;  %s14384_s3 = sshll.u32 %s7939_s26, 8 }
  0x58   : > { %658 = vperm.xlu1 %7533, %v7090_v17  }
  0x5b   : > { %515 = vperm.xlu0 %7532, %v7074_v16  }
  0x5c   : > { %520 = vperm.xlu1 %7533, %v7075_v19  }
  0x5f   : > { %479 = vperm.xlu0 %7532, %v464_v18  }
  0x60   : > { %484 = vperm.xlu1 %7533, %v465_v21  }
  0x63   : > { %561 = vperm.xlu0 %7532, %v7079_v20  }
  0x64   : > { %566 = vperm.xlu1 %7533, %v7080_v23  }
  0x67   : > { %663 = vperm.xlu0 %7532, %v7091_v22  }
  0x68   : > { %668 = vperm.xlu1 %7533, %v7092_v25  }
  0x6b   : > { %525 = vperm.xlu0 %7532, %v7076_v24  }
  0x6c   : > { %530 = vperm.xlu1 %7533, %v7077_v27  }
  0x6f   : > { %607 = vperm.xlu0 %7532, %v7084_v26  }
  0x70   : > { %612 = vperm.xlu1 %7533, %v7085_v29  }
  0x73   : > { %571 = vperm.xlu0 %7532, %v7081_v28  }
  0x74   : > { %576 = vperm.xlu1 %7533, %v7082_v31  }
  0x77   : > { %699 = vperm.xlu0 %7532, %v7094_v30  }
  0x78   : > { %704 = vperm.xlu1 %7533, %v7095_v33  }
  0x7b   : > { %617 = vperm.xlu0 %7532, %v7086_v32  }
  0x7c   : > { %622 = vperm.xlu1 %7533, %v7087_v35  }
  0x7f   : > { %745 = vperm.xlu0 %7532, %v7099_v34  }
  0x80   : > { %750 = vperm.xlu1 %7533, %v7100_v37  }
  0x83   : > { %709 = vperm.xlu0 %7532, %v7096_v36  }
  0x84   : > { %714 = vperm.xlu1 %7533, %v7097_v39  }
  0x87   : > { %791 = vperm.xlu0 %7532, %v7104_v38  }
  0x88   : > { %796 = vperm.xlu1 %7533, %v7105_v41  }
  0x8b   : > { %755 = vperm.xlu0 %7532, %v7101_v40  }
  0x8c   : > { %760 = vperm.xlu1 %7533, %v7102_v43  }
  0x8f   : > { %837 = vperm.xlu0 %7532, %v7109_v42  }
  0x90   : > { %842 = vperm.xlu1 %7533, %v7110_v45  }
  0x93   : > { %801 = vperm.xlu0 %7532, %v7106_v44  }
  0x94   : > { %806 = vperm.xlu1 %7533, %v7107_v47  }
  0x97   : > { %847 = vperm.xlu0 %7532, %v7111_v46  }
  0x98   : > { %852 = vperm.xlu1 %7533, %v7112_v49  }
  0x9b   : > { %1350 = vperm.xlu0 %7532, %v444_v48  }
  0x9c   : > { %1355 = vperm.xlu1 %7533, %v445_v51  }
  0x9f   : > { %1360 = vperm.xlu0 %7532, %v446_v50  }
  0xa0   : > { %1365 = vperm.xlu1 %7533, %v447_v52  }
  0xca   : > { %v8100_v53 = vpop.permute.xlu0 %882 }
  0xcb   : > { %13597 = vst [vmem:[#allocation11_spill] sm:$0xff] %v8100_v53  ;;  %v8102_v54 = vpop.permute.xlu1 %892 }
  0xcc   : > { %13598 = vst [vmem:[#allocation12_spill] sm:$0xff] %v8102_v54 }
  0xce   : > { %v8105_v58 = vpop.permute.xlu0 %887 }
  0xcf   : > { %13599 = vst [vmem:[#allocation13_spill] sm:$0xff] %v8105_v58  ;;  %v8108_v63 = vpop.permute.xlu1 %897 }
  0xd0   : > { %13600 = vst [vmem:[#allocation14_spill] sm:$0xff] %v8108_v63 }
  0xd2   : > { %v8112_v6 = vpop.permute.xlu0 %469 }
  0xd3   : > { %v8118_v11 = vpop.permute.xlu1 %474 }
  0xd6   : > { %v8128_v16 = vpop.permute.xlu0 %653 }
  0xd7   : > { %v8132_v17 = vpop.permute.xlu1 %658 }
  0xda   : > { %v8138_v18 = vpop.permute.xlu0 %515 }
  0xdb   : > { %v8142_v19 = vpop.permute.xlu1 %520 }
  0xde   : > { %v8150_v22 = vpop.permute.xlu0 %479 }
  0xdf   : > { %13601 = vst [vmem:[#allocation15_spill] sm:$0xff] %v8150_v22  ;;  %v8154_v24 = vpop.permute.xlu1 %484 }
  0xe0   : > { %13602 = vst [vmem:[#allocation16_spill] sm:$0xff] %v8154_v24 }
  0xe2   : > { %v8160_v27 = vpop.permute.xlu0 %561 }
  0xe3   : > { %v8164_v29 = vpop.permute.xlu1 %566 }
  0xe6   : > { %v8170_v32 = vpop.permute.xlu0 %663 }
  0xe7   : > { %13603 = vst [vmem:[#allocation17_spill] sm:$0xff] %v8170_v32  ;;  %v8174_v34 = vpop.permute.xlu1 %668 }
  0xe8   : > { %13604 = vst [vmem:[#allocation18_spill] sm:$0xff] %v8174_v34 }
  0xea   : > { %v8182_v37 = vpop.permute.xlu0 %525 }
  0xeb   : > { %13605 = vst [vmem:[#allocation19_spill] sm:$0xff] %v8182_v37  ;;  %v8188_v39 = vpop.permute.xlu1 %530 }
  0xec   : > { %13606 = vst [vmem:[#allocation20_spill] sm:$0xff] %v8188_v39 }
  0xee   : > { %v8194_v40 = vpop.permute.xlu0 %607 }
  0xef   : > { %v8198_v41 = vpop.permute.xlu1 %612 }
  0xf2   : > { %v8206_v43 = vpop.permute.xlu0 %571 }
  0xf3   : > { %13607 = vst [vmem:[#allocation21_spill] sm:$0xff] %v8206_v43  ;;  %v8212_v45 = vpop.permute.xlu1 %576 }
  0xf4   : > { %13608 = vst [vmem:[#allocation22_spill] sm:$0xff] %v8212_v45 }
  0xf6   : > { %v8218_v48 = vpop.permute.xlu0 %699 }
  0xf7   : > { %v8222_v50 = vpop.permute.xlu1 %704 }
 0x11e   : > { %v951_v55 = vpop.f32.mrb[0].mxu0 }
 0x11f   : > { %v952_v56 = vadd.f32 %v951_v55, %v8100_v53  ;;  %v953_v57 = vpop.f32.mrb[1].mxu0  ;;  %v8228_v55 = vpop.permute.xlu0 %617 }
 0x120   : > { %v955_v59 = vpop.f32.mrb[2].mxu0  ;;  %v954_v20 = vadd.f32 %v953_v57, %v8100_v53  ;;  %13609 = vst [vmem:[#allocation23_spill] sm:$0xff] %v8228_v55  ;;  %v8232_v57 = vpop.permute.xlu1 %622 }
 0x121   : > { %v970_v60 = vadd.f32 3.0, %v952_v56  ;;  %v956_v61 = vadd.f32 %v955_v59, %v8105_v58  ;;  %v957_v62 = vpop.f32.mrb[3].mxu0  ;;  %13610 = vst [vmem:[#allocation24_spill] sm:$0xff] %v8232_v57 }
 0x122   : > { %v958_v21 = vadd.f32 %v957_v62, %v8105_v58  ;;  %v971_v23 = vadd.f32 3.0, %v954_v20 }
 0x123   : > { %v978_v1 = vmax.f32 %v970_v60, 0.0  ;;  %v972_v2 = vadd.f32 3.0, %v956_v61 }
 0x124   : > { %v973_v25 = vadd.f32 3.0, %v958_v21  ;;  %v979_v26 = vmax.f32 %v971_v23, 0.0 }
 0x125   : > { %v986_v3 = vmin.f32 %v978_v1, 6.0  ;;  %v980_v4 = vmax.f32 %v972_v2, 0.0  ;;  %v8244_v1 = vpop.permute.xlu1 %750 }
 0x126   : > { %v8110_v5 = vpop.f32.mrb[4].mxu0  ;;  %v981_v28 = vmax.f32 %v973_v25, 0.0  ;;  %v987_v30 = vmin.f32 %v979_v26, 6.0 }
 0x127   : > { %v994_v7 = vmul.f32 %v986_v3, %v952_v56  ;;  %v988_v8 = vmin.f32 %v980_v4, 6.0  ;;  %v8114_v9 = vpop.f32.mrb[5].mxu0  ;;  %v962_v42 = vadd.f32 %v8110_v5, %v8102_v54 }
 0x128   : > { %v8116_v10 = vpop.f32.mrb[6].mxu0  ;;  %v989_v31 = vmin.f32 %v981_v28, 6.0  ;;  %v995_v33 = vmul.f32 %v987_v30, %v954_v20 }
 0x129   : > { %v8120_v12 = vmul.f32 0.16666667, %v994_v7  ;;  %v996_v13 = vmul.f32 %v988_v8, %v956_v61  ;;  %v8122_v14 = vpop.f32.mrb[7].mxu0  ;;  %v966_v44 = vadd.f32 %v8116_v10, %v8108_v63  ;;  %v974_v46 = vadd.f32 3.0, %v962_v42  ;;  %v8238_v61 = vpop.permute.xlu0 %745 }
 0x12a   : > { %v997_v35 = vmul.f32 %v989_v31, %v958_v21  ;;  %v8178_v36 = vmul.f32 0.16666667, %v995_v33  ;;  %v8256_v4 = vpop.permute.xlu1 %714  ;;  %v964_v7 = vadd.f32 %v8114_v9, %v8102_v54  ;;  %v968_v10 = vadd.f32 %v8122_v14, %v8108_v63 }
 0x12b   : > { %v8124_v15 = vmul.f32 0.16666667, %v996_v13  ;;  %1018 = vrot.lane.b32.xlu0 %v8120_v12, %s13228_s17  ;;  %v976_v47 = vadd.f32 3.0, %v966_v44  ;;  %v982_v49 = vmax.f32 %v974_v46, 0.0  ;;  %13614 = vst [vmem:[#allocation28_spill] sm:$0xff] %v8256_v4 }
 0x12c   : > { %v8184_v38 = vmul.f32 0.16666667, %v997_v35  ;;  %v975_v13 = vadd.f32 3.0, %v964_v7  ;;  %v977_v21 = vadd.f32 3.0, %v968_v10  ;;  %v7103_v4 = vld [vmem:[%s13627_s4 + $0xc] sm:$0x3] }
 0x12d   : > { %1020 = vrot.lane.b32.xlu1 %v8124_v15, %s13228_s17  ;;  %v984_v51 = vmax.f32 %v976_v47, 0.0  ;;  %v990_v52 = vmin.f32 %v982_v49, 6.0  ;;  %v8252_v3 = vpop.permute.xlu0 %709 }
 0x12e   : > { %13613 = vst [vmem:[#allocation27_spill] sm:$0xff] %v8252_v3  ;;  %v8268_v8 = vpop.permute.xlu1 %796  ;;  %v983_v9 = vmax.f32 %v975_v13, 0.0  ;;  %v985_v14 = vmax.f32 %v977_v21, 0.0 }
 0x12f   : > { %1061 = vrot.lane.b32.xlu0 %v8120_v12, %s13230_s14  ;;  %v992_v56 = vmin.f32 %v984_v51, 6.0  ;;  %v998_v59 = vmul.f32 %v990_v52, %v962_v42 }
 0x130   : > { %v991_v26 = vmin.f32 %v983_v9, 6.0  ;;  %v993_v30 = vmin.f32 %v985_v14, 6.0 }
 0x131   : > { %1063 = vrot.lane.b32.xlu1 %v8124_v15, %s13230_s14  ;;  %v1000_v60 = vmul.f32 %v992_v56, %v966_v44  ;;  %v8240_v62 = vmul.f32 0.16666667, %v998_v59  ;;  %v8262_v5 = vpop.permute.xlu0 %791 }
 0x132   : > { %v8280_v23 = vpop.permute.xlu1 %760  ;;  %v999_v31 = vmul.f32 %v991_v26, %v964_v7  ;;  %v1001_v35 = vmul.f32 %v993_v30, %v968_v10  ;;  %v488_v30 = vlaneseq }
 0x133   : > { %1102 = vrot.lane.b32.xlu0 %v8120_v12, %s13226_s29  ;;  %13611 = vst [vmem:[#allocation25_spill] sm:$0xff] %v8240_v62  ;;  %v8246_v2 = vmul.f32 0.16666667, %v1000_v60  ;;  %13616 = vst [vmem:[#allocation30_spill] sm:$0xff] %v8280_v23 }
 0x134   : > { %v8300_v42 = vmul.f32 0.16666667, %v999_v31  ;;  %v8306_v46 = vmul.f32 0.16666667, %v1001_v35  ;;  %v489_v0 = vshrl.u32 %v488_v30, 7 }
 0x135   : > { %1104 = vrot.lane.b32.xlu1 %v8124_v15, %s13226_s29  ;;  %13612 = vst [vmem:[#allocation26_spill] sm:$0xff] %v8246_v2  ;;  %v8276_v20 = vpop.permute.xlu0 %755 }
 0x136   : > { %13615 = vst [vmem:[#allocation29_spill] sm:$0xff] %v8276_v20  ;;  %v8290_v28 = vpop.permute.xlu1 %842  ;;  %13618 = vst [vmem:[#allocation32_spill] sm:$0xff] %v8300_v42  ;;  %v490_v58 = vsub.s32 0, %v489_v0  ;;  %v494_v53 = vsub.s32 1, %v489_v0  ;;  %v7083_v0 = vld [vmem:[%s13627_s4 + $0x4] sm:$0x3] }
 0x137   : > { %1143 = vrot.lane.b32.xlu0 %v8120_v12, %s13224_s28  ;;  %13620 = vst [vmem:[#allocation34_spill] sm:$0xff] %v8306_v46  ;;  %v7108_v20 = vld [vmem:[%s13627_s4 + $0xe] sm:$0x3] }
 0x138   : > { %v8421_v45 = vrot.slane %v7083_v0, %v494_v53  ;;  %v8441_v32 = vrot.slane %v7108_v20, %v490_v58  ;;  %v8443_v24 = vrot.slane %v7108_v20, %v494_v53 }
 0x139   : > { %1145 = vrot.lane.b32.xlu1 %v8124_v15, %s13224_s28  ;;  %v8286_v25 = vpop.permute.xlu0 %837 }
 0x13a   : > { %v8302_v44 = vpop.permute.xlu1 %806  ;;  %13637 = vst [vmem:[#allocation50_spill] sm:$0xff] %v8421_v45  ;;  %13645 = vst [vmem:[#allocation58_spill] sm:$0xff] %v8441_v32 }
 0x13b   : > { %1184 = vrot.lane.b32.xlu0 %v8120_v12, %s13221_s20  ;;  %13619 = vst [vmem:[#allocation33_spill] sm:$0xff] %v8302_v44  ;;  %13646 = vst [vmem:[#allocation59_spill] sm:$0xff] %v8443_v24 }
 0x13d   : > { %1186 = vrot.lane.b32.xlu1 %v8124_v15, %s13221_s20  ;;  %v8296_v33 = vpop.permute.xlu0 %801 }
 0x13e   : > { %13617 = vst [vmem:[#allocation31_spill] sm:$0xff] %v8296_v33  ;;  %v8314_v49 = vpop.permute.xlu1 %852 }
 0x13f   : > { %1225 = vrot.lane.b32.xlu0 %v8120_v12, %s13219_s19  ;;  %13622 = vst [vmem:[#allocation36_spill] sm:$0xff] %v8314_v49 }
 0x141   : > { %1227 = vrot.lane.b32.xlu1 %v8124_v15, %s13219_s19  ;;  %v8310_v47 = vpop.permute.xlu0 %847 }
 0x142   : > { %13621 = vst [vmem:[#allocation35_spill] sm:$0xff] %v8310_v47  ;;  %v8324_v52 = vpop.permute.xlu1 %1355 }
 0x143   : > { %1266 = vrot.lane.b32.xlu0 %v8120_v12, %s13215_s18  ;;  %13624 = vst [vmem:[#allocation38_spill] sm:$0xff] %v8324_v52 }
 0x145   : > { %1268 = vrot.lane.b32.xlu1 %v8124_v15, %s13215_s18  ;;  %v8320_v51 = vpop.permute.xlu0 %1350 }
 0x146   : > { %13623 = vst [vmem:[#allocation37_spill] sm:$0xff] %v8320_v51  ;;  %v8334_v59 = vpop.permute.xlu1 %1365 }
 0x147   : > { %1307 = vrot.lane.b32.xlu0 %v8120_v12, %s13213_s23  ;;  %13626 = vst [vmem:[#allocation40_spill] sm:$0xff] %v8334_v59  ;;  %v8376_v59 = vand.u32 127, %v488_v30  ;;  %v7088_v30 = vld [vmem:[%s13627_s4 + $0x6] sm:$0x3] }
 0x148   : > { %v8428_v39 = vrot.slane %v7088_v30, %v490_v58  ;;  %v8430_v43 = vrot.slane %v7088_v30, %v494_v53 }
 0x149   : > { %1309 = vrot.lane.b32.xlu1 %v8124_v15, %s13213_s23  ;;  %v8330_v56 = vpop.permute.xlu0 %1360  ;;  %vm1036_vm1 = vcmp.lt.s32.totalorder %v8376_v59, 17  ;;  %vm1077_vm2 = vcmp.lt.s32.totalorder %v8376_v59, 16  ;;  %vm1118_vm3 = vcmp.lt.s32.totalorder %v8376_v59, 15  ;;  %vm1159_vm4 = vcmp.lt.s32.totalorder %v8376_v59, 1 }
 0x14a   : > { %13625 = vst [vmem:[#allocation39_spill] sm:$0xff] %v8330_v56  ;;  %v466_v56 = vld [vmem:[%s13627_s4] sm:$0x3]  ;;  %13639 = vst [vmem:[#allocation52_spill] sm:$0xff] %v8428_v39  ;;  %vm1200_vm5 = vcmp.lt.s32.totalorder %v8376_v59, 127  ;;  %vm1241_vm6 = vcmp.lt.s32.totalorder %v8376_v59, 113 }
 0x14b   : > { %1026 = vrot.lane.b32.xlu0 %v8178_v36, %s13228_s17  ;;  %v8400_v44 = vrot.slane %v466_v56, %v490_v58  ;;  %v8402_v47 = vrot.slane %v466_v56, %v494_v53  ;;  %v8419_v56 = vrot.slane %v7083_v0, %v490_v58  ;;  %13640 = vst [vmem:[#allocation53_spill] sm:$0xff] %v8430_v43  ;;  %vm1282_vm7 = vcmp.lt.s32.totalorder %v8376_v59, 112 }
 0x14c   : > { %v8439_v0 = vrot.slane %v7103_v4, %v494_v53  ;;  %vm1323_vm8 = vcmp.lt.s32.totalorder %v8376_v59, 111 }
 0x14d   : > { %1028 = vrot.lane.b32.xlu1 %v8184_v38, %s13228_s17  ;;  %13630 = vst [vmem:[#allocation43_spill] sm:$0xff] %v8400_v44  ;;  %13631 = vst [vmem:[#allocation44_spill] sm:$0xff] %v8402_v47  ;;  %v8449_v30 = vmul.f32 %v8400_v44, %v8112_v6 }
 0x14e   : > { %13636 = vst [vmem:[#allocation49_spill] sm:$0xff] %v8419_v56  ;;  %13644 = vst [vmem:[#allocation57_spill] sm:$0xff] %v8439_v0 }
 0x14f   : > { %1069 = vrot.lane.b32.xlu0 %v8178_v36, %s13230_s14  ;;  %13648 = vst [vmem:[#allocation61_spill] sm:$0xff] %v8449_v30 }
 0x151   : > { %1071 = vrot.lane.b32.xlu1 %v8184_v38, %s13230_s14 }
 0x153   : > { %1110 = vrot.lane.b32.xlu0 %v8178_v36, %s13226_s29 }
 0x155   : > { %1112 = vrot.lane.b32.xlu1 %v8184_v38, %s13226_s29 }
 0x157   : > { %1151 = vrot.lane.b32.xlu0 %v8178_v36, %s13224_s28 }
 0x159   : > { %1153 = vrot.lane.b32.xlu1 %v8184_v38, %s13224_s28 }
 0x15b   : > { %1192 = vrot.lane.b32.xlu0 %v8178_v36, %s13221_s20 }
 0x15d   : > { %1194 = vrot.lane.b32.xlu1 %v8184_v38, %s13221_s20 }
 0x15f   : > { %1233 = vrot.lane.b32.xlu0 %v8178_v36, %s13219_s19 }
 0x161   : > { %1235 = vrot.lane.b32.xlu1 %v8184_v38, %s13219_s19 }
 0x163   : > { %1274 = vrot.lane.b32.xlu0 %v8178_v36, %s13215_s18 }
 0x165   : > { %1276 = vrot.lane.b32.xlu1 %v8184_v38, %s13215_s18 }
 0x167   : > { %1315 = vrot.lane.b32.xlu0 %v8178_v36, %s13213_s23 }
 0x169   : > { %1317 = vrot.lane.b32.xlu1 %v8184_v38, %s13213_s23 }
 0x16b   : > { %1022 = vrot.lane.b32.xlu0 %v8240_v62, %s13228_s17 }
 0x16d   : > { %1024 = vrot.lane.b32.xlu1 %v8246_v2, %s13228_s17 }
 0x16f   : > { %1065 = vrot.lane.b32.xlu0 %v8240_v62, %s13230_s14 }
 0x171   : > { %1067 = vrot.lane.b32.xlu1 %v8246_v2, %s13230_s14 }
 0x173   : > { %1106 = vrot.lane.b32.xlu0 %v8240_v62, %s13226_s29 }
 0x175   : > { %1108 = vrot.lane.b32.xlu1 %v8246_v2, %s13226_s29 }
 0x177   : > { %1147 = vrot.lane.b32.xlu0 %v8240_v62, %s13224_s28 }
 0x179   : > { %1149 = vrot.lane.b32.xlu1 %v8246_v2, %s13224_s28 }
 0x17b   : > { %1188 = vrot.lane.b32.xlu0 %v8240_v62, %s13221_s20 }
 0x17d   : > { %1190 = vrot.lane.b32.xlu1 %v8246_v2, %s13221_s20 }
 0x17f   : > { %1229 = vrot.lane.b32.xlu0 %v8240_v62, %s13219_s19 }
 0x181   : > { %1231 = vrot.lane.b32.xlu1 %v8246_v2, %s13219_s19 }
 0x183   : > { %1270 = vrot.lane.b32.xlu0 %v8240_v62, %s13215_s18 }
 0x185   : > { %1272 = vrot.lane.b32.xlu1 %v8246_v2, %s13215_s18 }
 0x187   : > { %1311 = vrot.lane.b32.xlu0 %v8240_v62, %s13213_s23  ;;  %v7098_v62 = vld [vmem:[%s13627_s4 + $0xa] sm:$0x3] }
 0x188   : > { %v8432_v34 = vrot.slane %v7098_v62, %v490_v58  ;;  %v8434_v37 = vrot.slane %v7098_v62, %v494_v53  ;;  %v8453_v62 = vmul.f32 %v8402_v47, %v8112_v6  ;;  %v8473_v6 = vmul.f32 %v8402_v47, %v8118_v11 }
 0x189   : > { %1313 = vrot.lane.b32.xlu1 %v8246_v2, %s13213_s23  ;;  %v8498_v47 = vmul.f32 %v8421_v45, %v8160_v27 }
 0x18a   : > { %13641 = vst [vmem:[#allocation54_spill] sm:$0xff] %v8432_v34  ;;  %13642 = vst [vmem:[#allocation55_spill] sm:$0xff] %v8434_v37 }
 0x18b   : > { %1030 = vrot.lane.b32.xlu0 %v8300_v42, %s13228_s17  ;;  %13649 = vst [vmem:[#allocation62_spill] sm:$0xff] %v8453_v62  ;;  %13653 = vst [vmem:[#allocation66_spill] sm:$0xff] %v8473_v6 }
 0x18c   : > { %13659 = vst [vmem:[#allocation72_spill] sm:$0xff] %v8498_v47 }
 0x18d   : > { %1032 = vrot.lane.b32.xlu1 %v8306_v46, %s13228_s17  ;;  %s13786_s17 = smov 16  }
 0x18f   : > { %1073 = vrot.lane.b32.xlu0 %v8300_v42, %s13230_s14 }
 0x191   : > { %1075 = vrot.lane.b32.xlu1 %v8306_v46, %s13230_s14  ;;  %s13787_s14 = smov 17  }
 0x193   : > { %1114 = vrot.lane.b32.xlu0 %v8300_v42, %s13226_s29 }
 0x195   : > { %1116 = vrot.lane.b32.xlu1 %v8306_v46, %s13226_s29 }
 0x197   : > { %1155 = vrot.lane.b32.xlu0 %v8300_v42, %s13224_s28 }
 0x199   : > { %1157 = vrot.lane.b32.xlu1 %v8306_v46, %s13224_s28 }
 0x19b   : > { %1196 = vrot.lane.b32.xlu0 %v8300_v42, %s13221_s20 }
 0x19d   : > { %1198 = vrot.lane.b32.xlu1 %v8306_v46, %s13221_s20  ;;  %v8340_v60 = vpop.permute.xlu0 %1018  ;;  %s13788_s20 = smov 15  }
 0x19f   : > { %v8342_v7 = vpop.permute.xlu1 %1020  ;;  %1237 = vrot.lane.b32.xlu0 %v8300_v42, %s13219_s19 }
 0x1a1   : > { %1239 = vrot.lane.b32.xlu1 %v8306_v46, %s13219_s19  ;;  %v8348_v10 = vpop.permute.xlu0 %1061  ;;  %s13789_s19 = smov 1  }
 0x1a3   : > { %v8350_v13 = vpop.permute.xlu1 %1063  ;;  %1278 = vrot.lane.b32.xlu0 %v8300_v42, %s13215_s18 }
 0x1a5   : > { %1280 = vrot.lane.b32.xlu1 %v8306_v46, %s13215_s18  ;;  %v8356_v21 = vpop.permute.xlu0 %1102  ;;  %s13790_s18 = smov 127  }
 0x1a7   : > { %v8358_v9 = vpop.permute.xlu1 %1104  ;;  %1319 = vrot.lane.b32.xlu0 %v8300_v42, %s13213_s23  ;;  %v7078_v42 = vld [vmem:[%s13627_s4 + $0x2] sm:$0x3] }
 0x1a8   : > { %v8415_v57 = vrot.slane %v7078_v42, %v490_v58  ;;  %v8417_v3 = vrot.slane %v7078_v42, %v494_v53  ;;  %v8437_v42 = vrot.slane %v7103_v4, %v490_v58 }
 0x1a9   : > { %1321 = vrot.lane.b32.xlu1 %v8306_v46, %s13213_s23  ;;  %v8364_v14 = vpop.permute.xlu0 %1143  ;;  %v7093_v46 = vld [vmem:[%s13627_s4 + $0x8] sm:$0x3]  ;;  %s13791_s23 = smov 113  }
 0x1aa   : > { %v8404_v33 = vrot.slane %v7093_v46, %v490_v58  ;;  %v8406_v23 = vrot.slane %v7093_v46, %v494_v53  ;;  %13634 = vst [vmem:[#allocation47_spill] sm:$0xff] %v8415_v57  ;;  %13635 = vst [vmem:[#allocation48_spill] sm:$0xff] %v8417_v3  ;;  %v7113_v46 = vld [vmem:[%s13627_s4 + $0x10] sm:$0x3]  ;;  %s13027_s4 = scalar_lea.vmem [#allocation5], %s14384_s3 }
 0x1ab   : > { %v8366_v26 = vpop.permute.xlu1 %1145  ;;  %13643 = vst [vmem:[#allocation56_spill] sm:$0xff] %v8437_v42  ;;  %v8455_v52 = vrot.slane %v7113_v46, %v490_v58  ;;  %v8457_v51 = vrot.slane %v7113_v46, %v494_v53  ;;  %v8478_v53 = vmul.f32 %v8415_v57, %v8138_v18  ;;  %v8482_v46 = vmul.f32 %v8417_v3, %v8138_v18  ;;  %s6991_s0 = sshll.u32 %s13027_s4, 4  ;;  %s13136_s0 = int_to_ptr.vmem [resolvable:$true] %s6991_s0 }
 0x1ac   : > { %13632 = vst [vmem:[#allocation45_spill] sm:$0xff] %v8404_v33  ;;  %13633 = vst [vmem:[#allocation46_spill] sm:$0xff] %v8406_v23  ;;  %v8461_v4 = vmul.f32 %v8404_v33, %v8128_v16  ;;  %v8465_v20 = vmul.f32 %v8406_v23, %v8128_v16  ;;  %v8486_v16 = vmul.f32 %v8404_v33, %v8132_v17  ;;  %s7685_s28 = scalar_lea.vmem %s13136_s0, 4096 }
 0x1ad   : > { %v8368_v31 = vpop.permute.xlu0 %1184  ;;  %13654 = vst [vmem:[#allocation67_spill] sm:$0xff] %v8478_v53  ;;  %13655 = vst [vmem:[#allocation68_spill] sm:$0xff] %v8482_v46  ;;  %v8502_v18 = vmul.f32 %v8415_v57, %v8142_v19  ;;  %v8506_v33 = vmul.f32 %v8417_v3, %v8142_v19  ;;  %v8522_v57 = vmul.f32 %v8421_v45, %v8164_v29  ;;  %p7686_p6 = scmp.ne.s32.totalorder %s13136_s0, %s7685_s28 }
 0x1ae   : > { %13650 = vst [vmem:[#allocation63_spill] sm:$0xff] %v8461_v4  ;;  %13651 = vst [vmem:[#allocation64_spill] sm:$0xff] %v8465_v20  ;;  %v8527_v19 = vmul.f32 %v8432_v34, %v8218_v48  ;;  %v8531_v3 = vmul.f32 %v8434_v37, %v8218_v48  ;;  %v8543_v45 = vmul.f32 %v8437_v42, %v8238_v61 }
 0x1af   : > { %v8370_v35 = vpop.permute.xlu1 %1186  ;;  %13656 = vst [vmem:[#allocation69_spill] sm:$0xff] %v8486_v16  ;;  %13660 = vst [vmem:[#allocation73_spill] sm:$0xff] %v8502_v18  ;;  %v8551_v48 = vmul.f32 %v8432_v34, %v8222_v50  ;;  %p7687_p12 = pnand %p7686_p6, %p14401_p11 }
 0x1b0   : > { %13661 = vst [vmem:[#allocation74_spill] sm:$0xff] %v8506_v33  ;;  %13665 = vst [vmem:[#allocation78_spill] sm:$0xff] %v8522_v57 }
 0x1b1   : > { %v8372_v63 = vpop.permute.xlu0 %1225  ;;  %13666 = vst [vmem:[#allocation79_spill] sm:$0xff] %v8527_v19  ;;  %13667 = vst [vmem:[#allocation80_spill] sm:$0xff] %v8531_v3  ;;  %p7688_p13 = pneg %p7687_p12 }
 0x1b2   : > { %13670 = vst [vmem:[#allocation83_spill] sm:$0xff] %v8543_v45  ;;  %13672 = vst [vmem:[#allocation85_spill] sm:$0xff] %v8551_v48 }
 0x1b3   : > { %v8374_v54 = vpop.permute.xlu1 %1227 }
 0x1b5   : > { %v8384_v2 = vpop.permute.xlu0 %1266 }
 0x1b6   : > { %13628 = vst [vmem:[#allocation41_spill] sm:$0xff] %v8384_v2 }
 0x1b7   : > { %v8398_v49 = vpop.permute.xlu1 %1268 }
 0x1b8   : > { %13629 = vst [vmem:[#allocation42_spill] sm:$0xff] %v8398_v49  ;;  %v8547_v49 = vmul.f32 %v8439_v0, %v8238_v61 }
 0x1b9   : > { %v8426_v55 = vpop.permute.xlu0 %1307 }
 0x1ba   : > { %13638 = vst [vmem:[#allocation51_spill] sm:$0xff] %v8426_v55  ;;  %13671 = vst [vmem:[#allocation84_spill] sm:$0xff] %v8547_v49 }
 0x1bb   : > { %v8445_v22 = vpop.permute.xlu1 %1309 }
 0x1bc   : > { %13647 = vst [vmem:[#allocation60_spill] sm:$0xff] %v8445_v22  ;;  %v8469_v22 = vmul.f32 %v8400_v44, %v8118_v11  ;;  %v8490_v44 = vmul.f32 %v8406_v23, %v8132_v17  ;;  %v8494_v11 = vmul.f32 %v8419_v56, %v8160_v27  ;;  %v8510_v17 = vmul.f32 %v8428_v39, %v8194_v40 }
 0x1bd   : > { %v1027_v58 = vpop.permute.xlu0 %1026  ;;  %v8514_v23 = vmul.f32 %v8430_v43, %v8194_v40  ;;  %v8518_v27 = vmul.f32 %v8419_v56, %v8164_v29  ;;  %v8535_v40 = vmul.f32 %v8428_v39, %v8198_v41  ;;  %v8539_v56 = vmul.f32 %v8430_v43, %v8198_v41 }
 0x1be   : > { %13652 = vst [vmem:[#allocation65_spill] sm:$0xff] %v8469_v22  ;;  %13657 = vst [vmem:[#allocation70_spill] sm:$0xff] %v8490_v44  ;;  %v8555_v39 = vmul.f32 %v8434_v37, %v8222_v50  ;;  %v8559_v41 = vmul.f32 %v8437_v42, %v8244_v1  ;;  %v8563_v43 = vmul.f32 %v8439_v0, %v8244_v1 }
 0x1bf   : > { %13658 = vst [vmem:[#allocation71_spill] sm:$0xff] %v8494_v11  ;;  %v1029_v55 = vpop.permute.xlu1 %1028  ;;  %13662 = vst [vmem:[#allocation75_spill] sm:$0xff] %v8510_v17  ;;  %v1037_v61 = vsel %vm1036_vm1, %v8340_v60, %v1027_v58  ;;  %v1041_v34 = vsel %vm1036_vm1, %v1027_v58, %v8340_v60  ;;  %v8573_v50 = vmul.f32 %v8441_v32, %v8262_v5 }
 0x1c0   : > { %13663 = vst [vmem:[#allocation76_spill] sm:$0xff] %v8514_v23  ;;  %13664 = vst [vmem:[#allocation77_spill] sm:$0xff] %v8518_v27  ;;  %v8577_v42 = vmul.f32 %v8443_v24, %v8262_v5  ;;  %v8581_v1 = vmul.f32 %v8441_v32, %v8268_v8  ;;  %v8585_v0 = vmul.f32 %v8443_v24, %v8268_v8 }
 0x1c1   : > { %13668 = vst [vmem:[#allocation81_spill] sm:$0xff] %v8535_v40  ;;  %13669 = vst [vmem:[#allocation82_spill] sm:$0xff] %v8539_v56  ;;  %v1070_v29 = vpop.permute.xlu0 %1069  ;;  %v8590_v60 = vmul.f32 %v8455_v52, %v8286_v25  ;;  %v8594_v58 = vmul.f32 %v8457_v51, %v8286_v25  ;;  %v1038_v5 = vsel %vm1036_vm1, %v8342_v7, %v1029_v55 }
 0x1c2   : > { %13673 = vst [vmem:[#allocation86_spill] sm:$0xff] %v8555_v39  ;;  %13674 = vst [vmem:[#allocation87_spill] sm:$0xff] %v8559_v41  ;;  %v1042_v32 = vsel %vm1036_vm1, %v1029_v55, %v8342_v7  ;;  %v1045_v24 = vmul.f32 %v1041_v34, %v8449_v30  ;;  %v1046_v37 = vmul.f32 %v1037_v61, %v8453_v62 }
 0x1c3   : > { %13675 = vst [vmem:[#allocation88_spill] sm:$0xff] %v8563_v43  ;;  %v1072_v2 = vpop.permute.xlu1 %1071  ;;  %13676 = vst [vmem:[#allocation89_spill] sm:$0xff] %v8573_v50  ;;  %v1082_v25 = vsel %vm1077_vm2, %v1070_v29, %v8348_v10  ;;  %v8617_v55 = vmul.f32 %v8457_v51, %v8290_v28  ;;  %v1011_v34 = vmul.f32 %v8178_v36, %v8465_v20 }
 0x1c4   : > { %13677 = vst [vmem:[#allocation90_spill] sm:$0xff] %v8577_v42  ;;  %13678 = vst [vmem:[#allocation91_spill] sm:$0xff] %v8581_v1  ;;  %v1010_v7 = vmul.f32 %v8120_v12, %v8461_v4  ;;  %v1047_v62 = vmul.f32 %v1042_v32, %v8469_v22  ;;  %v1086_v30 = vmul.f32 %v1082_v25, %v8478_v53 }
 0x1c5   : > { %13679 = vst [vmem:[#allocation92_spill] sm:$0xff] %v8585_v0  ;;  %13680 = vst [vmem:[#allocation93_spill] sm:$0xff] %v8590_v60  ;;  %v1111_v8 = vpop.permute.xlu0 %1110  ;;  %v1078_v60 = vsel %vm1077_vm2, %v8348_v10, %v1070_v29  ;;  %v1048_v10 = vmul.f32 %v1038_v5, %v8473_v6  ;;  %v1079_v29 = vsel %vm1077_vm2, %v8350_v13, %v1072_v2 }
 0x1c6   : > { %13681 = vst [vmem:[#allocation94_spill] sm:$0xff] %v8594_v58  ;;  %v8613_v58 = vmul.f32 %v8455_v52, %v8290_v28  ;;  %13683 = vst [vmem:[#allocation96_spill] sm:$0xff] %v8617_v55  ;;  %v1083_v28 = vsel %vm1077_vm2, %v1072_v2, %v8350_v13  ;;  %v1087_v36 = vmul.f32 %v1078_v60, %v8482_v46  ;;  %v13762_v46 = vld [vmem:[#allocation33_spill] sm:$0xff] }
 0x1c7   : > { %v1113_v61 = vpop.permute.xlu1 %1112  ;;  %v1119_v12 = vsel %vm1118_vm3, %v8356_v21, %v1111_v8  ;;  %v1123_v32 = vsel %vm1118_vm3, %v1111_v8, %v8356_v21  ;;  %v1053_v6 = vadd.f32 %v1045_v24, %v1010_v7  ;;  %v1054_v22 = vadd.f32 %v1046_v37, %v1011_v34 }
 0x1c8   : > { %13682 = vst [vmem:[#allocation95_spill] sm:$0xff] %v8613_v58  ;;  %v1013_v4 = vmul.f32 %v8184_v38, %v8490_v44  ;;  %v1012_v2 = vmul.f32 %v8124_v15, %v8486_v16  ;;  %v1088_v13 = vmul.f32 %v1083_v28, %v8502_v18  ;;  %v1089_v60 = vmul.f32 %v1079_v29, %v8506_v33  ;;  %v13735_v44 = vld [vmem:[#allocation27_spill] sm:$0xff] }
 0x1c9   : > { %v1152_v5 = vpop.permute.xlu0 %1151  ;;  %v1120_v25 = vsel %vm1118_vm3, %v8358_v9, %v1113_v61  ;;  %v1124_v24 = vsel %vm1118_vm3, %v1113_v61, %v8358_v9  ;;  %v1127_v38 = vmul.f32 %v1123_v32, %v8494_v11  ;;  %v1128_v21 = vmul.f32 %v1119_v12, %v8498_v47  ;;  %v13738_v16 = vld [vmem:[#allocation55_spill] sm:$0xff] }
 0x1ca   : > { %v1160_v15 = vsel %vm1159_vm4, %v8364_v14, %v1152_v5  ;;  %v1164_v8 = vsel %vm1159_vm4, %v1152_v5, %v8364_v14  ;;  %v1055_v34 = vadd.f32 %v1047_v62, %v1012_v2  ;;  %v1056_v7 = vadd.f32 %v1048_v10, %v1013_v4  ;;  %v13759_v11 = vld [vmem:[#allocation35_spill] sm:$0xff] }
 0x1cb   : > { %v1154_v37 = vpop.permute.xlu1 %1153  ;;  %v1094_v29 = vadd.f32 %v1086_v30, %v1053_v6  ;;  %v1095_v28 = vadd.f32 %v1087_v36, %v1054_v22  ;;  %v1129_v9 = vmul.f32 %v1124_v24, %v8518_v27  ;;  %v1130_v61 = vmul.f32 %v1120_v25, %v8522_v57  ;;  %v13728_v57 = vld [vmem:[#allocation52_spill] sm:$0xff]  ;;  %v13730_v27 = vld [vmem:[#allocation53_spill] sm:$0xff] }
 0x1cc   : > { %v1161_v12 = vsel %vm1159_vm4, %v8366_v26, %v1154_v37  ;;  %v1165_v32 = vsel %vm1159_vm4, %v1154_v37, %v8366_v26  ;;  %v1096_v14 = vadd.f32 %v1088_v13, %v1055_v34  ;;  %v1097_v62 = vadd.f32 %v1089_v60, %v1056_v7 }
 0x1cd   : > { %v1193_v33 = vpop.permute.xlu0 %1192  ;;  %v1168_v30 = vmul.f32 %v1164_v8, %v8510_v17  ;;  %v1169_v22 = vmul.f32 %v1160_v15, %v8514_v23  ;;  %v1135_v6 = vadd.f32 %v1127_v38, %v1094_v29  ;;  %v1136_v10 = vadd.f32 %v1128_v21, %v1095_v28  ;;  %v13754_v17 = vld [vmem:[#allocation31_spill] sm:$0xff] }
 0x1ce   : > { %v1201_v36 = vsel %vm1200_vm5, %v8368_v31, %v1193_v33  ;;  %v1205_v5 = vsel %vm1200_vm5, %v1193_v33, %v8368_v31  ;;  %v1170_v26 = vmul.f32 %v1165_v32, %v8535_v40  ;;  %v1171_v2 = vmul.f32 %v1161_v12, %v8539_v56 }
 0x1cf   : > { %v1195_v4 = vpop.permute.xlu1 %1194  ;;  %v1137_v24 = vadd.f32 %v1129_v9, %v1096_v14  ;;  %v1138_v37 = vadd.f32 %v1130_v61, %v1097_v62  ;;  %v1176_v31 = vadd.f32 %v1168_v30, %v1135_v6  ;;  %v1177_v21 = vadd.f32 %v1169_v22, %v1136_v10  ;;  %v13684_v30 = vld [vmem:[#allocation41_spill] sm:$0xff] }
 0x1d0   : > { %v1202_v13 = vsel %vm1200_vm5, %v8370_v35, %v1195_v4  ;;  %v1206_v60 = vsel %vm1200_vm5, %v1195_v4, %v8370_v35  ;;  %v1209_v15 = vmul.f32 %v1201_v36, %v8527_v19  ;;  %v1210_v8 = vmul.f32 %v1205_v5, %v8531_v3  ;;  %v13748_v3 = vld [vmem:[#allocation28_spill] sm:$0xff]  ;;  %v13751_v19 = vld [vmem:[#allocation30_spill] sm:$0xff] }
 0x1d1   : > { %v1234_v25 = vpop.permute.xlu0 %1233  ;;  %v1211_v35 = vmul.f32 %v1202_v13, %v8551_v48  ;;  %v1212_v7 = vmul.f32 %v1206_v60, %v8555_v39  ;;  %v1179_v9 = vadd.f32 %v1171_v2, %v1138_v37  ;;  %v13685_v13 = vld [vmem:[#allocation42_spill] sm:$0xff] }
 0x1d2   : > { %v1242_v38 = vsel %vm1241_vm6, %v8372_v63, %v1234_v25  ;;  %v1246_v33 = vsel %vm1241_vm6, %v1234_v25, %v8372_v63  ;;  %v1178_v63 = vadd.f32 %v1170_v26, %v1137_v24  ;;  %v1218_v6 = vadd.f32 %v1210_v8, %v1177_v21  ;;  %v13686_v8 = vld [vmem:[#allocation51_spill] sm:$0xff]  ;;  %v13722_v48 = vld [vmem:[#allocation50_spill] sm:$0xff] }
 0x1d3   : > { %v1236_v34 = vpop.permute.xlu1 %1235  ;;  %v1250_v61 = vmul.f32 %v1242_v38, %v8543_v45  ;;  %v1251_v12 = vmul.f32 %v1246_v33, %v8547_v49  ;;  %v1220_v2 = vadd.f32 %v1212_v7, %v1179_v9  ;;  %v13688_v9 = vld [vmem:[#allocation94_spill] sm:$0xff]  ;;  %v13746_v49 = vld [vmem:[#allocation57_spill] sm:$0xff] }
 0x1d4   : > { %v1243_v29 = vsel %vm1241_vm6, %v8374_v54, %v1236_v34  ;;  %v1247_v28 = vsel %vm1241_vm6, %v1236_v34, %v8374_v54  ;;  %v1217_v54 = vadd.f32 %v1209_v15, %v1176_v31  ;;  %v1219_v26 = vadd.f32 %v1211_v35, %v1178_v63 }
 0x1d5   : > { %v1275_v32 = vpop.permute.xlu0 %1274  ;;  %v1252_v14 = vmul.f32 %v1243_v29, %v8559_v41  ;;  %v1253_v62 = vmul.f32 %v1247_v28, %v8563_v43  ;;  %v1259_v37 = vadd.f32 %v1251_v12, %v1218_v6  ;;  %v13687_v28 = vld [vmem:[#allocation93_spill] sm:$0xff]  ;;  %v13330_v41 = vmov 0.0|0.0  }
 0x1d6   : > { %v1283_v22 = vsel %vm1282_vm7, %v13684_v30, %v1275_v32  ;;  %v1287_v4 = vsel %vm1282_vm7, %v1275_v32, %v13684_v30  ;;  %v1258_v24 = vadd.f32 %v1250_v61, %v1217_v54  ;;  %7423 = vmatprep.subr.bf16.mxu1 %v13330_v41 }
 0x1d7   : > { %v1291_v10 = vmul.f32 %v1283_v22, %v8573_v50  ;;  %v1292_v36 = vmul.f32 %v1287_v4, %v8577_v42  ;;  %v1277_v5 = vpop.permute.xlu1 %1276  ;;  %v1260_v21 = vadd.f32 %v1252_v14, %v1219_v26  ;;  %v1261_v15 = vadd.f32 %v1253_v62, %v1220_v2  ;;  %v13689_v22 = vld [vmem:[#allocation60_spill] sm:$0xff]  ;;  %v13743_v50 = vld [vmem:[#allocation29_spill] sm:$0xff] }
 0x1d8   : > { %v1284_v60 = vsel %vm1282_vm7, %v13685_v13, %v1277_v5  ;;  %v1288_v25 = vsel %vm1282_vm7, %v1277_v5, %v13685_v13  ;;  %v13690_v13 = vld [vmem:[#allocation37_spill] sm:$0xff]  ;;  %v8880_v45 = vmul.f32 %v13746_v49, %v13743_v50 }
 0x1d9   : > { %v1293_v38 = vmul.f32 %v1284_v60, %v8581_v1  ;;  %v1294_v33 = vmul.f32 %v1288_v25, %v8585_v0  ;;  %v1316_v31 = vpop.permute.xlu0 %1315  ;;  %v1299_v7 = vadd.f32 %v1291_v10, %v1258_v24  ;;  %v1300_v29 = vadd.f32 %v1292_v36, %v1259_v37  ;;  %v13716_v1 = vld [vmem:[#allocation18_spill] sm:$0xff] }
 0x1da   : > { %v1324_v34 = vsel %vm1323_vm8, %v13686_v8, %v1316_v31  ;;  %v1328_v35 = vsel %vm1323_vm8, %v1316_v31, %v13686_v8  ;;  %13747 = vst [vmem:[#allocation29_spill] sm:$0xff] %v8880_v45 }
 0x1db   : > { %v1332_v63 = vmul.f32 %v1324_v34, %v13687_v28  ;;  %v1333_v61 = vmul.f32 %v1328_v35, %v13688_v9  ;;  %v1318_v12 = vpop.permute.xlu1 %1317  ;;  %v1301_v32 = vadd.f32 %v1293_v38, %v1260_v21  ;;  %v1302_v30 = vadd.f32 %v1294_v33, %v1261_v15  ;;  %v13691_v33 = vld [vmem:[#allocation38_spill] sm:$0xff]  ;;  %v13740_v28 = vld [vmem:[#allocation24_spill] sm:$0xff] }
 0x1dc   : > { %v1325_v14 = vsel %vm1323_vm8, %v13689_v22, %v1318_v12  ;;  %v1329_v62 = vsel %vm1323_vm8, %v1318_v12, %v13689_v22  ;;  %v8864_v9 = vmul.f32 %v13738_v16, %v13735_v44 }
 0x1dd   : > { %v1340_v4 = vadd.f32 %v1332_v63, %v1299_v7  ;;  %v1341_v54 = vadd.f32 %v1333_v61, %v1300_v29  ;;  %v1334_v6 = vmul.f32 %v1325_v14, %v8613_v58  ;;  %v1335_v10 = vmul.f32 %v1329_v62, %v8617_v55  ;;  %v8737_v36 = vpop.permute.xlu0 %1022  ;;  %v13711_v55 = vld [vmem:[#allocation19_spill] sm:$0xff] }
 0x1de   : > { %13739 = vst [vmem:[#allocation27_spill] sm:$0xff] %v8864_v9 }
 0x1df   : > { %v1342_v5 = vadd.f32 %v1334_v6, %v1301_v32  ;;  %v1343_v26 = vadd.f32 %v1335_v10, %v1302_v30  ;;  %v8739_v2 = vpop.permute.xlu1 %1024  ;;  %v1368_v60 = vadd.f32 %v13690_v13, %v1340_v4  ;;  %v1369_v25 = vadd.f32 %v13690_v13, %v1341_v54  ;;  %v13732_v13 = vld [vmem:[#allocation22_spill] sm:$0xff] }
 0x1e1   : > { %v8743_v24 = vpop.permute.xlu0 %1065  ;;  %v1376_v37 = vadd.f32 3.0, %v1368_v60  ;;  %v1377_v38 = vadd.f32 3.0, %v1369_v25  ;;  %v1370_v31 = vadd.f32 %v13691_v33, %v1342_v5  ;;  %v1371_v21 = vadd.f32 %v13691_v33, %v1343_v26 }
 0x1e3   : > { %v8747_v15 = vpop.permute.xlu1 %1067  ;;  %v1384_v8 = vmax.f32 %v1376_v37, 0.0  ;;  %v1385_v34 = vmax.f32 %v1377_v38, 0.0  ;;  %v1378_v35 = vadd.f32 3.0, %v1370_v31  ;;  %v1379_v7 = vadd.f32 3.0, %v1371_v21 }
 0x1e5   : > { %v8749_v29 = vpop.permute.xlu0 %1106  ;;  %v1392_v63 = vmin.f32 %v1384_v8, 6.0  ;;  %v1393_v61 = vmin.f32 %v1385_v34, 6.0  ;;  %v1386_v12 = vmax.f32 %v1378_v35, 0.0  ;;  %v1387_v32 = vmax.f32 %v1379_v7, 0.0 }
 0x1e7   : > { %v8751_v30 = vpop.permute.xlu1 %1108  ;;  %v1400_v22 = vmul.f32 %v1392_v63, %v1368_v60  ;;  %v1401_v14 = vmul.f32 %v1393_v61, %v1369_v25  ;;  %v1394_v62 = vmin.f32 %v1386_v12, 6.0  ;;  %v1395_v4 = vmin.f32 %v1387_v32, 6.0  ;;  %v13698_v32 = vld [vmem:[#allocation15_spill] sm:$0xff] }
 0x1e9   : > { %v8753_v54 = vpop.permute.xlu0 %1147  ;;  %v8755_v6 = vmul.f32 0.16666667, %v1400_v22  ;;  %v8757_v10 = vmul.f32 0.16666667, %v1401_v14  ;;  %v1402_v5 = vmul.f32 %v1394_v62, %v1370_v31  ;;  %v1403_v26 = vmul.f32 %v1395_v4, %v1371_v21  ;;  %v13699_v22 = vld [vmem:[#allocation43_spill] sm:$0xff]  ;;  %v13701_v62 = vld [vmem:[#allocation44_spill] sm:$0xff] }
 0x1ea   : > { %v8787_v14 = vmul.f32 %v13699_v22, %v13698_v32  ;;  %v8791_v4 = vmul.f32 %v13701_v62, %v13698_v32  ;;  %v13712_v32 = vld [vmem:[#allocation47_spill] sm:$0xff] }
 0x1eb   : > { %13692 = vst [vmem:[#allocation41_spill] sm:$0xff] %v8755_v6  ;;  %13693 = vst [vmem:[#allocation42_spill] sm:$0xff] %v8757_v10  ;;  %v8759_v37 = vpop.permute.xlu1 %1149  ;;  %v1416_v38 = vadd.f32 %v8757_v10, %v8755_v6  ;;  %v8763_v8 = vmul.f32 0.16666667, %v1402_v5  ;;  %v8765_v34 = vmul.f32 0.16666667, %v1403_v26  ;;  %v8811_v58 = vmul.f32 %v13712_v32, %v13711_v55 }
 0x1ec   : > { %13700 = vst [vmem:[#allocation15_spill] sm:$0xff] %v8787_v14  ;;  %13702 = vst [vmem:[#allocation43_spill] sm:$0xff] %v8791_v4  ;;  %v13703_v5 = vld [vmem:[#allocation16_spill] sm:$0xff] }
 0x1ed   : > { %13694 = vst [vmem:[#allocation51_spill] sm:$0xff] %v8763_v8  ;;  %13695 = vst [vmem:[#allocation60_spill] sm:$0xff] %v8765_v34  ;;  %v8767_v60 = vpop.permute.xlu0 %1188  ;;  %1417 = vadd.xlane.f32.xlu0 %v1416_v38  ;;  %v1419_v25 = vadd.f32 %v8765_v34, %v8763_v8  ;;  %v8795_v26 = vmul.f32 %v13699_v22, %v13703_v5  ;;  %v13705_v38 = vld [vmem:[#allocation17_spill] sm:$0xff]  ;;  %v13708_v8 = vld [vmem:[#allocation46_spill] sm:$0xff]  ;;  %v8807_v6 = vmul.f32 %v13701_v62, %v13703_v5 }
 0x1ee   : > { %v8803_v10 = vmul.f32 %v13708_v8, %v13705_v38  ;;  %13713 = vst [vmem:[#allocation46_spill] sm:$0xff] %v8811_v58  ;;  %v13714_v22 = vld [vmem:[#allocation48_spill] sm:$0xff]  ;;  %v13719_v62 = vld [vmem:[#allocation21_spill] sm:$0xff] }
 0x1ef   : > { %v8771_v35 = vpop.permute.xlu1 %1190  ;;  %1420 = vadd.xlane.f32.xlu1 %v1419_v25  ;;  %13704 = vst [vmem:[#allocation44_spill] sm:$0xff] %v8795_v26  ;;  %v13706_v25 = vld [vmem:[#allocation45_spill] sm:$0xff]  ;;  %v8815_v0 = vmul.f32 %v13714_v22, %v13711_v55  ;;  %v8832_v56 = vmul.f32 %v13722_v48, %v13719_v62  ;;  %v13724_v55 = vld [vmem:[#allocation20_spill] sm:$0xff] }
 0x1f0   : > { %v8799_v34 = vmul.f32 %v13706_v25, %v13705_v38  ;;  %13709 = vst [vmem:[#allocation17_spill] sm:$0xff] %v8803_v10  ;;  %13710 = vst [vmem:[#allocation45_spill] sm:$0xff] %v8807_v6  ;;  %v8819_v43 = vmul.f32 %v13706_v25, %v13716_v1  ;;  %v8823_v38 = vmul.f32 %v13708_v8, %v13716_v1  ;;  %v13720_v5 = vld [vmem:[#allocation49_spill] sm:$0xff]  ;;  %v13727_v8 = vld [vmem:[#allocation23_spill] sm:$0xff] }
 0x1f1   : > { %v8773_v31 = vpop.permute.xlu0 %1229  ;;  %13715 = vst [vmem:[#allocation19_spill] sm:$0xff] %v8815_v0  ;;  %v8828_v39 = vmul.f32 %v13720_v5, %v13719_v62  ;;  %13723 = vst [vmem:[#allocation21_spill] sm:$0xff] %v8832_v56  ;;  %v8836_v40 = vmul.f32 %v13712_v32, %v13724_v55  ;;  %v8840_v25 = vmul.f32 %v13714_v22, %v13724_v55  ;;  %v13736_v22 = vld [vmem:[#allocation54_spill] sm:$0xff] }
 0x1f2   : > { %13707 = vst [vmem:[#allocation16_spill] sm:$0xff] %v8799_v34  ;;  %13717 = vst [vmem:[#allocation47_spill] sm:$0xff] %v8819_v43  ;;  %v8844_v41 = vmul.f32 %v13728_v57, %v13727_v8  ;;  %v8848_v18 = vmul.f32 %v13730_v27, %v13727_v8  ;;  %v8852_v62 = vmul.f32 %v13720_v5, %v13732_v13 }
 0x1f3   : > { %v8775_v21 = vpop.permute.xlu1 %1231  ;;  %13718 = vst [vmem:[#allocation48_spill] sm:$0xff] %v8823_v38  ;;  %13721 = vst [vmem:[#allocation18_spill] sm:$0xff] %v8828_v39  ;;  %v8856_v32 = vmul.f32 %v13722_v48, %v13732_v13  ;;  %v8860_v55 = vmul.f32 %v13736_v22, %v13735_v44  ;;  %v8868_v8 = vmul.f32 %v13728_v57, %v13740_v28  ;;  %v13744_v48 = vld [vmem:[#allocation56_spill] sm:$0xff] }
 0x1f4   : > { %13725 = vst [vmem:[#allocation49_spill] sm:$0xff] %v8836_v40  ;;  %13726 = vst [vmem:[#allocation50_spill] sm:$0xff] %v8840_v25  ;;  %v8872_v5 = vmul.f32 %v13730_v27, %v13740_v28  ;;  %v8876_v13 = vmul.f32 %v13744_v48, %v13743_v50  ;;  %v8884_v44 = vmul.f32 %v13736_v22, %v13748_v3 }
 0x1f5   : > { %v8777_v7 = vpop.permute.xlu0 %1270  ;;  %13729 = vst [vmem:[#allocation20_spill] sm:$0xff] %v8844_v41  ;;  %13731 = vst [vmem:[#allocation23_spill] sm:$0xff] %v8848_v18  ;;  %v8888_v57 = vmul.f32 %v13738_v16, %v13748_v3  ;;  %v8892_v27 = vmul.f32 %v13744_v48, %v13751_v19  ;;  %v8896_v28 = vmul.f32 %v13746_v49, %v13751_v19  ;;  %v13755_v3 = vld [vmem:[#allocation58_spill] sm:$0xff]  ;;  %v13757_v48 = vld [vmem:[#allocation59_spill] sm:$0xff] }
 0x1f6   : > { %13733 = vst [vmem:[#allocation52_spill] sm:$0xff] %v8852_v62  ;;  %13734 = vst [vmem:[#allocation53_spill] sm:$0xff] %v8856_v32  ;;  %v8906_v16 = vmul.f32 %v13755_v3, %v13754_v17  ;;  %v8910_v47 = vmul.f32 %v13757_v48, %v13754_v17  ;;  %v8914_v49 = vmul.f32 %v8455_v52, %v13759_v11 }
 0x1f7   : > { %v8779_v63 = vpop.permute.xlu1 %1272  ;;  %13737 = vst [vmem:[#allocation22_spill] sm:$0xff] %v8860_v55  ;;  %13741 = vst [vmem:[#allocation54_spill] sm:$0xff] %v8868_v8  ;;  %v8918_v19 = vmul.f32 %v8457_v51, %v13759_v11 }
 0x1f8   : > { %13742 = vst [vmem:[#allocation55_spill] sm:$0xff] %v8872_v5  ;;  %13745 = vst [vmem:[#allocation24_spill] sm:$0xff] %v8876_v13 }
 0x1f9   : > { %v8781_v61 = vpop.permute.xlu0 %1311  ;;  %13749 = vst [vmem:[#allocation56_spill] sm:$0xff] %v8884_v44  ;;  %13750 = vst [vmem:[#allocation57_spill] sm:$0xff] %v8888_v57 }
 0x1fa   : > { %13696 = vst [vmem:[#allocation97_spill] sm:$0xff] %v8781_v61  ;;  %13752 = vst [vmem:[#allocation28_spill] sm:$0xff] %v8892_v27 }
 0x1fb   : > { %v8783_v12 = vpop.permute.xlu1 %1313  ;;  %13753 = vst [vmem:[#allocation30_spill] sm:$0xff] %v8896_v28  ;;  %13756 = vst [vmem:[#allocation31_spill] sm:$0xff] %v8906_v16 }
 0x1fc   : > { %13697 = vst [vmem:[#allocation98_spill] sm:$0xff] %v8783_v12  ;;  %13758 = vst [vmem:[#allocation58_spill] sm:$0xff] %v8910_v47 }
 0x1fd   : > { %v1031_v33 = vpop.permute.xlu0 %1030  ;;  %13760 = vst [vmem:[#allocation59_spill] sm:$0xff] %v8914_v49  ;;  %13761 = vst [vmem:[#allocation35_spill] sm:$0xff] %v8918_v19 }
 0x1fe   : > { %v1039_v50 = vsel %vm1036_vm1, %v8737_v36, %v1031_v33  ;;  %v1043_v22 = vsel %vm1036_vm1, %v1031_v33, %v8737_v36  ;;  %v8922_v36 = vmul.f32 %v13755_v3, %v13762_v46  ;;  %v8926_v33 = vmul.f32 %v13757_v48, %v13762_v46  ;;  %v13765_v48 = vld [vmem:[#allocation36_spill] sm:$0xff] }
 0x1ff   : > { %v1033_v1 = vpop.permute.xlu1 %1032  ;;  %v1049_v11 = vmul.f32 %v1043_v22, %v8787_v14  ;;  %v1050_v12 = vmul.f32 %v1039_v50, %v8791_v4  ;;  %v8944_v19 = vmul.f32 %v8455_v52, %v13765_v48  ;;  %v13769_v50 = vld [vmem:[#allocation32_spill] sm:$0xff] }
 0x200   : > { %13763 = vst [vmem:[#allocation33_spill] sm:$0xff] %v8922_v36  ;;  %13764 = vst [vmem:[#allocation99_spill] sm:$0xff] %v8926_v33  ;;  %v1040_v17 = vsel %vm1036_vm1, %v8739_v2, %v1033_v1  ;;  %v1044_v53 = vsel %vm1036_vm1, %v1033_v1, %v8739_v2  ;;  %v8948_v2 = vmul.f32 %v8457_v51, %v13765_v48  ;;  %v13768_v1 = vld [vmem:[#allocation25_spill] sm:$0xff] }
 0x201   : > { %v1074_v42 = vpop.permute.xlu0 %1073  ;;  %13766 = vst [vmem:[#allocation36_spill] sm:$0xff] %v8944_v19  ;;  %v1014_v22 = vmul.f32 %v13768_v1, %v8799_v34  ;;  %v1015_v4 = vmul.f32 %v13769_v50, %v8803_v10  ;;  %v1051_v49 = vmul.f32 %v1044_v53, %v8795_v26  ;;  %v1052_v61 = vmul.f32 %v1040_v17, %v8807_v6  ;;  %v13770_v6 = vld [vmem:[#allocation26_spill] sm:$0xff] }
 0x202   : > { %v1080_v3 = vsel %vm1077_vm2, %v8743_v24, %v1074_v42  ;;  %v1084_v46 = vsel %vm1077_vm2, %v1074_v42, %v8743_v24  ;;  %13767 = vst [vmem:[#allocation100_spill] sm:$0xff] %v8948_v2  ;;  %v1016_v26 = vmul.f32 %v13770_v6, %v8819_v43 }
 0x203   : > { %v1076_v23 = vpop.permute.xlu1 %1075  ;;  %v1090_v42 = vmul.f32 %v1084_v46, %v8811_v58  ;;  %v1091_v24 = vmul.f32 %v1080_v3, %v8815_v0  ;;  %v1057_v1 = vadd.f32 %v1049_v11, %v1014_v22  ;;  %v1058_v50 = vadd.f32 %v1050_v12, %v1015_v4 }
 0x204   : > { %v1081_v52 = vsel %vm1077_vm2, %v8747_v15, %v1076_v23  ;;  %v1085_v51 = vsel %vm1077_vm2, %v1076_v23, %v8747_v15  ;;  %v13771_v23 = vld [vmem:[#allocation34_spill] sm:$0xff]  ;;  %v1059_v22 = vadd.f32 %v1051_v49, %v1016_v26 }
 0x205   : > { %v1115_v20 = vpop.permute.xlu0 %1114  ;;  %v1017_v15 = vmul.f32 %v13771_v23, %v8823_v38  ;;  %v1092_v46 = vmul.f32 %v1085_v51, %v8836_v40  ;;  %v1093_v3 = vmul.f32 %v1081_v52, %v8840_v25  ;;  %v1098_v51 = vadd.f32 %v1090_v42, %v1057_v1 }
 0x206   : > { %v1121_v48 = vsel %vm1118_vm3, %v8749_v29, %v1115_v20  ;;  %v1125_v53 = vsel %vm1118_vm3, %v1115_v20, %v8749_v29  ;;  %v1099_v23 = vadd.f32 %v1091_v24, %v1058_v50 }
 0x207   : > { %v1117_v14 = vpop.permute.xlu1 %1116  ;;  %v1131_v12 = vmul.f32 %v1125_v53, %v8828_v39  ;;  %v1132_v6 = vmul.f32 %v1121_v48, %v8832_v56  ;;  %v1060_v52 = vadd.f32 %v1052_v61, %v1017_v15  ;;  %v1100_v40 = vadd.f32 %v1092_v46, %v1059_v22 }
 0x208   : > { %v1122_v0 = vsel %vm1118_vm3, %v8751_v30, %v1117_v14  ;;  %v1126_v20 = vsel %vm1118_vm3, %v1117_v14, %v8751_v30 }
 0x209   : > { %v1156_v17 = vpop.permute.xlu0 %1155  ;;  %v1133_v30 = vmul.f32 %v1126_v20, %v8852_v62  ;;  %v1134_v14 = vmul.f32 %v1122_v0, %v8856_v32  ;;  %v1101_v38 = vadd.f32 %v1093_v3, %v1060_v52  ;;  %v1139_v49 = vadd.f32 %v1131_v12, %v1098_v51 }
 0x20a   : > { %v1162_v4 = vsel %vm1159_vm4, %v8753_v54, %v1156_v17  ;;  %v1166_v11 = vsel %vm1159_vm4, %v1156_v17, %v8753_v54  ;;  %v1140_v42 = vadd.f32 %v1132_v6, %v1099_v23 }
 0x20b   : > { %v1158_v29 = vpop.permute.xlu1 %1157  ;;  %v1172_v54 = vmul.f32 %v1166_v11, %v8844_v41  ;;  %v1173_v61 = vmul.f32 %v1162_v4, %v8848_v18  ;;  %v1141_v46 = vadd.f32 %v1133_v30, %v1100_v40  ;;  %v1142_v3 = vadd.f32 %v1134_v14, %v1101_v38 }
 0x20c   : > { %v1163_v48 = vsel %vm1159_vm4, %v8759_v37, %v1158_v29  ;;  %v1167_v53 = vsel %vm1159_vm4, %v1158_v29, %v8759_v37 }
 0x20d   : > { %v1197_v25 = vpop.permute.xlu0 %1196  ;;  %v1174_v17 = vmul.f32 %v1167_v53, %v8868_v8  ;;  %v1175_v37 = vmul.f32 %v1163_v48, %v8872_v5  ;;  %v1181_v29 = vadd.f32 %v1173_v61, %v1140_v42 }
 0x20e   : > { %v1203_v0 = vsel %vm1200_vm5, %v8767_v60, %v1197_v25  ;;  %v1207_v24 = vsel %vm1200_vm5, %v1197_v25, %v8767_v60  ;;  %v1180_v25 = vadd.f32 %v1172_v54, %v1139_v49 }
 0x20f   : > { %v1199_v26 = vpop.permute.xlu1 %1198  ;;  %v1213_v12 = vmul.f32 %v1203_v0, %v8860_v55  ;;  %v1214_v6 = vmul.f32 %v1207_v24, %v8864_v9  ;;  %v1183_v22 = vadd.f32 %v1175_v37, %v1142_v3 }
 0x210   : > { %v1204_v1 = vsel %vm1200_vm5, %v8771_v35, %v1199_v26  ;;  %v1208_v50 = vsel %vm1200_vm5, %v1199_v26, %v8771_v35 }
 0x211   : > { %v1238_v15 = vpop.permute.xlu0 %1237  ;;  %v1215_v35 = vmul.f32 %v1204_v1, %v8884_v44  ;;  %v1216_v40 = vmul.f32 %v1208_v50, %v8888_v57  ;;  %v1222_v54 = vadd.f32 %v1214_v6, %v1181_v29  ;;  %v13805_v44 = vld [vmem:[#allocation76_spill] sm:$0xff] }
 0x212   : > { %v1244_v20 = vsel %vm1241_vm6, %v8773_v31, %v1238_v15  ;;  %v1248_v60 = vsel %vm1241_vm6, %v1238_v15, %v8773_v31  ;;  %v1182_v31 = vadd.f32 %v1174_v17, %v1141_v46 }
 0x213   : > { %v1240_v4 = vpop.permute.xlu1 %1239  ;;  %v1254_v52 = vmul.f32 %v1244_v20, %v8876_v13  ;;  %v1255_v51 = vmul.f32 %v1248_v60, %v8880_v45  ;;  %v1224_v0 = vadd.f32 %v1216_v40, %v1183_v22  ;;  %v13772_v20 = vld [vmem:[#allocation97_spill] sm:$0xff] }
 0x214   : > { %v1245_v38 = vsel %vm1241_vm6, %v8775_v21, %v1240_v4  ;;  %v1249_v11 = vsel %vm1241_vm6, %v1240_v4, %v8775_v21  ;;  %v1221_v21 = vadd.f32 %v1213_v12, %v1180_v25  ;;  %v1223_v42 = vadd.f32 %v1215_v35, %v1182_v31  ;;  %v13774_v4 = vld [vmem:[#allocation35_spill] sm:$0xff]  ;;  %v13775_v31 = vld [vmem:[#allocation98_spill] sm:$0xff] }
 0x215   : > { %v1279_v23 = vpop.permute.xlu0 %1278  ;;  %v1256_v30 = vmul.f32 %v1245_v38, %v8892_v27  ;;  %v1257_v14 = vmul.f32 %v1249_v11, %v8896_v28  ;;  %v1263_v1 = vadd.f32 %v1255_v51, %v1222_v54  ;;  %v13800_v27 = vld [vmem:[#allocation67_spill] sm:$0xff] }
 0x216   : > { %v1285_v48 = vsel %vm1282_vm7, %v8777_v7, %v1279_v23  ;;  %v1289_v53 = vsel %vm1282_vm7, %v1279_v23, %v8777_v7  ;;  %v1262_v37 = vadd.f32 %v1254_v52, %v1221_v21  ;;  %v13776_v21 = vld [vmem:[#allocation39_spill] sm:$0xff] }
 0x217   : > { %v1295_v61 = vmul.f32 %v1285_v48, %v8906_v16  ;;  %v1296_v26 = vmul.f32 %v1289_v53, %v8910_v47  ;;  %v1281_v49 = vpop.permute.xlu1 %1280  ;;  %v1264_v46 = vadd.f32 %v1256_v30, %v1223_v42  ;;  %v1265_v3 = vadd.f32 %v1257_v14, %v1224_v0  ;;  %v13777_v42 = vld [vmem:[#allocation40_spill] sm:$0xff] }
 0x218   : > { %v1286_v24 = vsel %vm1282_vm7, %v8779_v63, %v1281_v49  ;;  %v1290_v17 = vsel %vm1282_vm7, %v1281_v49, %v8779_v63  ;;  %v13773_v63 = vld [vmem:[#allocation59_spill] sm:$0xff] }
 0x219   : > { %v1297_v7 = vmul.f32 %v1286_v24, %v8922_v36  ;;  %v1298_v50 = vmul.f32 %v1290_v17, %v8926_v33  ;;  %v1320_v15 = vpop.permute.xlu0 %1319  ;;  %v1303_v29 = vadd.f32 %v1295_v61, %v1262_v37  ;;  %v1304_v12 = vadd.f32 %v1296_v26, %v1263_v1  ;;  %v13799_v36 = vld [vmem:[#allocation63_spill] sm:$0xff] }
 0x21a   : > { %v1326_v60 = vsel %vm1323_vm8, %v13772_v20, %v1320_v15  ;;  %v1330_v25 = vsel %vm1323_vm8, %v1320_v15, %v13772_v20 }
 0x21b   : > { %v1336_v6 = vmul.f32 %v1326_v60, %v13773_v63  ;;  %v1337_v35 = vmul.f32 %v1330_v25, %v13774_v4  ;;  %v1322_v40 = vpop.permute.xlu1 %1321  ;;  %v1305_v38 = vadd.f32 %v1297_v7, %v1264_v46  ;;  %v1306_v11 = vadd.f32 %v1298_v50, %v1265_v3  ;;  %v13801_v63 = vld [vmem:[#allocation68_spill] sm:$0xff] }
 0x21c   : > { %v1327_v22 = vsel %vm1323_vm8, %v13775_v31, %v1322_v40  ;;  %v1331_v52 = vsel %vm1323_vm8, %v1322_v40, %v13775_v31 }
 0x21d   : > { %v1344_v51 = vadd.f32 %v1336_v6, %v1303_v29  ;;  %v1345_v23 = vadd.f32 %v1337_v35, %v1304_v12  ;;  %v1338_v30 = vmul.f32 %v1327_v22, %v8944_v19  ;;  %v1339_v14 = vmul.f32 %v1331_v52, %v8948_v2  ;;  %v13797_v2 = vld [vmem:[#allocation62_spill] sm:$0xff] }
 0x21e   : > { %v13387_v52 = vmov 0.0  }
 0x21f   : > { %v1346_v48 = vadd.f32 %v1338_v30, %v1305_v38  ;;  %v1347_v53 = vadd.f32 %v1339_v14, %v1306_v11  ;;  %v1372_v54 = vadd.f32 %v13776_v21, %v1344_v51  ;;  %v1373_v61 = vadd.f32 %v13776_v21, %v1345_v23  ;;  %7279 = vmatprep.mubr.msk.f32.mxu1 %vm7766_vm9, %v13387_v52 }
 0x221   : > { %v1380_v26 = vadd.f32 3.0, %v1372_v54  ;;  %v1381_v49 = vadd.f32 3.0, %v1373_v61  ;;  %v1374_v0 = vadd.f32 %v13777_v42, %v1346_v48  ;;  %v1375_v24 = vadd.f32 %v13777_v42, %v1347_v53 }
 0x222   : > { %v13782_v53 = vmov 0.0|0.0  }
 0x223   : > { %v1388_v17 = vmax.f32 %v1380_v26, 0.0  ;;  %v1389_v37 = vmax.f32 %v1381_v49, 0.0  ;;  %v1382_v1 = vadd.f32 3.0, %v1374_v0  ;;  %v1383_v7 = vadd.f32 3.0, %v1375_v24 }
 0x225   : > { %v1396_v50 = vmin.f32 %v1388_v17, 6.0  ;;  %v1397_v15 = vmin.f32 %v1389_v37, 6.0  ;;  %v1390_v46 = vmax.f32 %v1382_v1, 0.0  ;;  %v1391_v3 = vmax.f32 %v1383_v7, 0.0  ;;  %v450_v17 = vld [vmem:[%s13191_s8] sm:$0xff]  ;;  %v1727_v7 = vld [vmem:[%s7945_s13 + $0x28] sm:$0xff] }
 0x226   : > { %v449_v37 = vld [vmem:[%s13190_s7] sm:$0xff] }
 0x227   : > { %v1404_v20 = vmul.f32 %v1396_v50, %v1372_v54  ;;  %v1405_v60 = vmul.f32 %v1397_v15, %v1373_v61  ;;  %v1398_v25 = vmin.f32 %v1390_v46, 6.0  ;;  %v1399_v29 = vmin.f32 %v1391_v3, 6.0  ;;  %v1729_v50 = vld [vmem:[%s7945_s13 + $0x38] sm:$0xff]  ;;  %v1726_v3 = vld [vmem:[%s7945_s13 + $0x20] sm:$0xff] }
 0x229   : > { %v9070_v12 = vmul.f32 0.16666667, %v1404_v20  ;;  %v9072_v6 = vmul.f32 0.16666667, %v1405_v60  ;;  %v1406_v35 = vmul.f32 %v1398_v25, %v1374_v0  ;;  %v1407_v40 = vmul.f32 %v1399_v29, %v1375_v24  ;;  %v448_v24 = vld [vmem:[%s13189_s6] sm:$0xff]  ;;  %v1728_v20 = vld [vmem:[%s7945_s13 + $0x30] sm:$0xff] }
 0x22a   : > { %v1731_v25 = vpack.c.bf16 %v1729_v50, %v1727_v7  ;;  %v451_v29 = vld [vmem:[%s13191_s8 + $0x8] sm:$0xff] }
 0x22b   : > { %13778 = vst [vmem:[#allocation25_spill] sm:$0xff] %v9070_v12  ;;  %13779 = vst [vmem:[#allocation32_spill] sm:$0xff] %v9072_v6  ;;  %v1422_v38 = vadd.f32 %v9072_v6, %v9070_v12  ;;  %v9076_v11 = vmul.f32 0.16666667, %v1406_v35  ;;  %v9078_v31 = vmul.f32 0.16666667, %v1407_v40  ;;  %v1730_v35 = vpack.c.bf16 %v1728_v20, %v1726_v3 }
 0x22c   : > { %v452_v40 = vld [vmem:[%s13191_s8 + $0x10] sm:$0xff] }
 0x22d   : > { %13780 = vst [vmem:[#allocation26_spill] sm:$0xff] %v9076_v11  ;;  %13781 = vst [vmem:[#allocation34_spill] sm:$0xff] %v9078_v31  ;;  %1423 = vadd.xlane.f32.xlu0 %v1422_v38  ;;  %v1425_v22 = vadd.f32 %v9078_v31, %v9076_v11  ;;  %v453_v38 = vld [vmem:[%s13191_s8 + $0x18] sm:$0xff]  ;;  %v13796_v12 = vld [vmem:[#allocation61_spill] sm:$0xff] }
 0x231   : > { %1426 = vadd.xlane.f32.xlu0 %v1425_v22  ;;  %v13783_v22 = vmov 0  }
 0x27a   : > { %v1418_v51 = vpop.xlane.xlu0 %1417 }
 0x27b   : > { %v1428_v30 = vmul.f32 0.00390625, %v1418_v51  ;;  %v7537_v51 = vld [vmem:[%s13184_s1] sm:$0xff]  }
 0x27c   : > { %v1421_v23 = vpop.xlane.xlu1 %1420 }
 0x27d   : > { %v1429_v14 = vmul.f32 0.00390625, %v1421_v23  ;;  %v7538_v23 = vld [vmem:[%s13184_s1 + $0x8] sm:$0xff]  }
 0x27f   : > { %v7424_v48 = vpack.c.bf16 %v1429_v14, %v1428_v30 }
 0x281   : > { %7425 = vmatpush3.bf16.msra.mxu1 %v7424_v48 }
 0x282   : > { %7426 = vmatprep.subr.bf16.mxu1 %v13782_v53 }
 0x2ba   : > { %v1424_v54 = vpop.xlane.xlu0 %1423 }
 0x2bb   : > { %v1430_v26 = vmul.f32 0.00390625, %v1424_v54 }
 0x2be   : > { %v1427_v61 = vpop.xlane.xlu0 %1426 }
 0x2bf   : > { %v1431_v49 = vmul.f32 0.00390625, %v1427_v61 }
 0x2c1   : > { %v7427_v0 = vpack.c.bf16 %v1431_v49, %v1430_v26  ;;  %v13784_v26 = vld [vmem:[#allocation11_spill] sm:$0xff] }
 0x2c3   : > { %7428 = vmatpush3.bf16.msra.mxu1 %v7427_v0 }
 0x2c6   : > { %7280 = vmatmul.mubr.msk.f32.vlgmr.msra.gmra.mrb[0].mxu1 %vm1432_vm10, %v448_v24 }
 0x2c7   : > { %7284 = vmatprep.mubr.msk.f32.mxu1 %vm1507_vm11, %v450_v17 }
 0x399   : > { %v1502_v1 = vpop.f32.mrb[0].mxu1 }
 0x39a   : > { %v1503_v15 = vadd.f32 %v1502_v1, %v449_v37  ;;  %v7281_v46 = vpop.f32.mrb[1].mxu1  ;;  %v13785_v1 = vld [vmem:[#allocation13_spill] sm:$0xff] }
 0x39c   : > { %v1506_v60 = vmax.f32 %v1503_v15, 0.0 }
 0x39e   : > { %7282 = vmatprep.subr.mxu1 %v1506_v60 }
 0x39f   : > { %7283 = vmatpush3.msra.mxu1 %v1506_v60 }
 0x3a0   : > { %7285 = vmatmul.mubr.msk.f32.vlgmr.msra.gmra.mrb[2].mxu1 %vm1507_vm11, %v451_v29  ;;  %1732 = vmatprep.subr.bf16.mxu1 %v1731_v25 }
 0x3a1   : > { %7287 = vmatprep.mubr.msk.f32.mxu1 %vm1507_vm11, %v452_v40  ;;  %1733 = vmatpush1.bf16.msra.mxu1 %v1730_v35 }
 0x3a4   : > { %7288 = vmatmul.mubr.msk.f32.gmra.mrb[4].mxu1 %vm1507_vm11, %v453_v38 }
 0x3a5   : > { %1764 = vmatprep.mubr.bf16.mxu1 %v13783_v22 }
 0x3a8   : > { %7125 = vmatmul.mubr.msk.bf16.vlgmr.msra.gmra.mrb[8].mxu1 %vm910_vm0, %v7537_v51 }
 0x3a9   : > { %1774 = vmatprep.mubr.bf16.mxu1 %v13783_v22 }
 0x3b0   : > { %7126 = vmatmul.mubr.msk.bf16.gmra.mrb[12].mxu1 %vm910_vm0, %v7538_v23 }
 0x3b1   : > { %2457 = vmatprep.mubr.bf16.mxu1 %v13783_v22 }
 0x473   : > { %v9123_v30 = vpop.f32.mrb[2].mxu1 }
 0x474   : > { %v9125_v14 = vpop.f32.mrb[3].mxu1 }
 0x477   : > { %v9127_v48 = vpop.f32.mrb[4].mxu1 }
 0x478   : > { %v9129_v54 = vpop.f32.mrb[5].mxu1 }
 0x47b   : > { %v1766_v61 = vpop.f32.mrb[8].mxu1 }
 0x47c   : > { %v1767_v49 = vadd.f32 %v1766_v61, %v13784_v26  ;;  %v1768_v0 = vpop.f32.mrb[9].mxu1 }
 0x47d   : > { %v1769_v24 = vadd.f32 %v1768_v0, %v13784_v26  ;;  %v1770_v17 = vpop.f32.mrb[10].mxu1 }
 0x47e   : > { %v1785_v37 = vadd.f32 3.0, %v1767_v49  ;;  %v1771_v7 = vadd.f32 %v1770_v17, %v13785_v1  ;;  %v1772_v50 = vpop.f32.mrb[11].mxu1 }
 0x47f   : > { %v1786_v15 = vadd.f32 3.0, %v1769_v24 }
 0x480   : > { %v1793_v46 = vmax.f32 %v1785_v37, 0.0  ;;  %v1787_v3 = vadd.f32 3.0, %v1771_v7 }
 0x481   : > { %v1794_v20 = vmax.f32 %v1786_v15, 0.0 }
 0x482   : > { %v1801_v60 = vmin.f32 %v1793_v46, 6.0  ;;  %v1795_v25 = vmax.f32 %v1787_v3, 0.0 }
 0x483   : > { %v1802_v29 = vmin.f32 %v1794_v20, 6.0  ;;  %v1776_v35 = vpop.f32.mrb[12].mxu1  ;;  %v13794_v20 = vld [vmem:[#allocation12_spill] sm:$0xff] }
 0x484   : > { %v1809_v40 = vmul.f32 %v1801_v60, %v1767_v49  ;;  %v9134_v38 = vpop.f32.mrb[13].mxu1  ;;  %v1803_v0 = vmin.f32 %v1795_v25, 6.0  ;;  %v1777_v60 = vadd.f32 %v1776_v35, %v13794_v20 }
 0x485   : > { %v1780_v51 = vpop.f32.mrb[14].mxu1  ;;  %v1810_v61 = vmul.f32 %v1802_v29, %v1769_v24  ;;  %v1773_v24 = vadd.f32 %v1772_v50, %v13785_v1 }
 0x486   : > { %v9136_v23 = vmul.f32 0.16666667, %v1809_v40  ;;  %v9138_v52 = vpop.f32.mrb[15].mxu1  ;;  %v1811_v37 = vmul.f32 %v1803_v0, %v1771_v7  ;;  %v1789_v25 = vadd.f32 3.0, %v1777_v60  ;;  %v13795_v40 = vld [vmem:[#allocation14_spill] sm:$0xff] }
 0x487   : > { %v9144_v17 = vmul.f32 0.16666667, %v1810_v61  ;;  %v1788_v7 = vadd.f32 3.0, %v1773_v24  ;;  %v1781_v61 = vadd.f32 %v1780_v51, %v13795_v40 }
 0x488   : > { %1873 = vrot.lane.b32.xlu0 %v9136_v23, %s13786_s17  ;;  %1833 = vrot.lane.b32.xlu1 %v9136_v23, %s13787_s14  ;;  %v9150_v49 = vmul.f32 0.16666667, %v1811_v37  ;;  %v1797_v29 = vmax.f32 %v1789_v25, 0.0  ;;  %v1825_v28 = vmul.f32 %v9136_v23, %v13799_v36 }
 0x489   : > { %v1796_v15 = vmax.f32 %v1788_v7, 0.0  ;;  %v1791_v0 = vadd.f32 3.0, %v1781_v61 }
 0x48a   : > { %v1805_v35 = vmin.f32 %v1797_v29, 6.0  ;;  %v1783_v29 = vadd.f32 %v9138_v52, %v13795_v40 }
 0x48b   : > { %v1804_v50 = vmin.f32 %v1796_v15, 6.0 }
 0x48c   : > { %1913 = vrot.lane.b32.xlu0 %v9136_v23, %s13788_s20  ;;  %1841 = vrot.lane.b32.xlu1 %v9144_v17, %s13787_s14  ;;  %v1813_v37 = vmul.f32 %v1805_v35, %v1777_v60 }
 0x48d   : > { %v1812_v46 = vmul.f32 %v1804_v50, %v1773_v24  ;;  %v1799_v24 = vmax.f32 %v1791_v0, 0.0 }
 0x48e   : > { %v9209_v51 = vmul.f32 0.16666667, %v1813_v37 }
 0x48f   : > { %v9181_v3 = vmul.f32 0.16666667, %v1812_v46  ;;  %v1807_v7 = vmin.f32 %v1799_v24, 6.0  ;;  %v1779_v46 = vadd.f32 %v9134_v38, %v13794_v20 }
 0x490   : > { %1953 = vrot.lane.b32.xlu0 %v9136_v23, %s13789_s19  ;;  %1875 = vrot.lane.b32.xlu1 %v9150_v49, %s13786_s17 }
 0x491   : > { %v1815_v15 = vmul.f32 %v1807_v7, %v1781_v61  ;;  %v1790_v60 = vadd.f32 3.0, %v1779_v46  ;;  %v1792_v61 = vadd.f32 3.0, %v1783_v29 }
 0x493   : > { %v9219_v50 = vmul.f32 0.16666667, %v1815_v15  ;;  %v1798_v25 = vmax.f32 %v1790_v60, 0.0  ;;  %v1800_v0 = vmax.f32 %v1792_v61, 0.0  ;;  %v454_v15 = vld [vmem:[%s13192_s9] sm:$0xff]  ;;  %v456_v60 = vld [vmem:[%s13192_s9 + $0x10] sm:$0xff] }
 0x494   : > { %1993 = vrot.lane.b32.xlu0 %v9136_v23, %s13790_s18  ;;  %1915 = vrot.lane.b32.xlu1 %v9150_v49, %s13788_s20 }
 0x495   : > { %v1806_v38 = vmin.f32 %v1798_v25, 6.0  ;;  %v1808_v37 = vmin.f32 %v1800_v0, 6.0  ;;  %v457_v0 = vld [vmem:[%s13192_s9 + $0x18] sm:$0xff] }
 0x497   : > { %v1814_v35 = vmul.f32 %v1806_v38, %v1779_v46  ;;  %v1816_v24 = vmul.f32 %v1808_v37, %v1783_v29  ;;  %v1587_v46 = vadd.f32 %v9125_v14, %v454_v15  ;;  %v1597_v29 = vadd.f32 %v9129_v54, %v456_v60  ;;  %v455_v38 = vld [vmem:[%s13192_s9 + $0x8] sm:$0xff] }
 0x498   : > { %2033 = vrot.lane.b32.xlu0 %v9136_v23, %s13791_s23  ;;  %1955 = vrot.lane.b32.xlu1 %v9150_v49, %s13789_s19  ;;  %v1592_v14 = vadd.f32 %v9123_v30, %v455_v38 }
 0x499   : > { %v9249_v52 = vmul.f32 0.16666667, %v1814_v35  ;;  %v9259_v7 = vmul.f32 0.16666667, %v1816_v24  ;;  %v1605_v25 = vmul.f32 1.2, %v1587_v46  ;;  %v1602_v24 = vadd.f32 %v9127_v48, %v457_v0 }
 0x49a   : > { %v1607_v35 = vmul.f32 1.2, %v1597_v29  ;;  %v1606_v54 = vmul.f32 1.2, %v1592_v14 }
 0x49b   : > { %v1609_v61 = vadd.f32 3.0, %v1605_v25  ;;  %v1608_v29 = vmul.f32 1.2, %v1602_v24 }
 0x49c   : > { %2073 = vrot.lane.b32.xlu0 %v9136_v23, %s13792_s27  ;;  %1995 = vrot.lane.b32.xlu1 %v9150_v49, %s13790_s18  ;;  %v1611_v15 = vadd.f32 3.0, %v1607_v35  ;;  %v1610_v30 = vadd.f32 3.0, %v1606_v54 }
 0x49d   : > { %v1613_v37 = vmax.f32 %v1609_v61, 0.0  ;;  %v1612_v61 = vadd.f32 3.0, %v1608_v29 }
 0x49e   : > { %v1615_v38 = vmax.f32 %v1611_v15, 0.0  ;;  %v1614_v48 = vmax.f32 %v1610_v30, 0.0 }
 0x49f   : > { %v1617_v25 = vmin.f32 %v1613_v37, 6.0  ;;  %v1616_v37 = vmax.f32 %v1612_v61, 0.0 }
 0x4a0   : > { %2113 = vrot.lane.b32.xlu0 %v9136_v23, %s13793_s30  ;;  %2035 = vrot.lane.b32.xlu1 %v9150_v49, %s13791_s23  ;;  %v1619_v35 = vmin.f32 %v1615_v38, 6.0  ;;  %v1618_v54 = vmin.f32 %v1614_v48, 6.0 }
 0x4a1   : > { %v1621_v14 = vmul.f32 0.16666667, %v1617_v25  ;;  %v1620_v25 = vmin.f32 %v1616_v37, 6.0 }
 0x4a2   : > { %v1623_v24 = vmul.f32 0.16666667, %v1619_v35  ;;  %v1622_v30 = vmul.f32 0.16666667, %v1618_v54 }
 0x4a3   : > { %v1624_v22 = vmul.f32 0.16666667, %v1620_v25 }
 0x4a4   : > { %1881 = vrot.lane.b32.xlu0 %v9144_v17, %s13786_s17  ;;  %2075 = vrot.lane.b32.xlu1 %v9150_v49, %s13792_s27 }
 0x4a8   : > { %1921 = vrot.lane.b32.xlu0 %v9144_v17, %s13788_s20  ;;  %2115 = vrot.lane.b32.xlu1 %v9150_v49, %s13793_s30 }
 0x4ac   : > { %1961 = vrot.lane.b32.xlu0 %v9144_v17, %s13789_s19  ;;  %1843 = vrot.lane.b32.xlu1 %v9181_v3, %s13787_s14 }
 0x4b0   : > { %2001 = vrot.lane.b32.xlu0 %v9144_v17, %s13790_s18  ;;  %1883 = vrot.lane.b32.xlu1 %v9181_v3, %s13786_s17 }
 0x4b4   : > { %2041 = vrot.lane.b32.xlu0 %v9144_v17, %s13791_s23  ;;  %1923 = vrot.lane.b32.xlu1 %v9181_v3, %s13788_s20 }
 0x4b8   : > { %2081 = vrot.lane.b32.xlu0 %v9144_v17, %s13792_s27  ;;  %1963 = vrot.lane.b32.xlu1 %v9181_v3, %s13789_s19 }
 0x4bc   : > { %2121 = vrot.lane.b32.xlu0 %v9144_v17, %s13793_s30  ;;  %2003 = vrot.lane.b32.xlu1 %v9181_v3, %s13790_s18 }
 0x4c0   : > { %1835 = vrot.lane.b32.xlu0 %v9150_v49, %s13787_s14  ;;  %2043 = vrot.lane.b32.xlu1 %v9181_v3, %s13791_s23 }
 0x4c4   : > { %1837 = vrot.lane.b32.xlu0 %v9209_v51, %s13787_s14  ;;  %2083 = vrot.lane.b32.xlu1 %v9181_v3, %s13792_s27 }
 0x4c8   : > { %1877 = vrot.lane.b32.xlu0 %v9209_v51, %s13786_s17  ;;  %2123 = vrot.lane.b32.xlu1 %v9181_v3, %s13793_s30 }
 0x4cc   : > { %1917 = vrot.lane.b32.xlu0 %v9209_v51, %s13788_s20  ;;  %1839 = vrot.lane.b32.xlu1 %v9219_v50, %s13787_s14 }
 0x4d0   : > { %1957 = vrot.lane.b32.xlu0 %v9209_v51, %s13789_s19  ;;  %1879 = vrot.lane.b32.xlu1 %v9219_v50, %s13786_s17 }
 0x4d4   : > { %1997 = vrot.lane.b32.xlu0 %v9209_v51, %s13790_s18  ;;  %1919 = vrot.lane.b32.xlu1 %v9219_v50, %s13788_s20 }
 0x4d8   : > { %2037 = vrot.lane.b32.xlu0 %v9209_v51, %s13791_s23  ;;  %1959 = vrot.lane.b32.xlu1 %v9219_v50, %s13789_s19 }
 0x4dc   : > { %2077 = vrot.lane.b32.xlu0 %v9209_v51, %s13792_s27  ;;  %1999 = vrot.lane.b32.xlu1 %v9219_v50, %s13790_s18 }
 0x4e0   : > { %2117 = vrot.lane.b32.xlu0 %v9209_v51, %s13793_s30  ;;  %2039 = vrot.lane.b32.xlu1 %v9219_v50, %s13791_s23 }
 0x4e4   : > { %1845 = vrot.lane.b32.xlu0 %v9249_v52, %s13787_s14  ;;  %2079 = vrot.lane.b32.xlu1 %v9219_v50, %s13792_s27 }
 0x4e8   : > { %1885 = vrot.lane.b32.xlu0 %v9249_v52, %s13786_s17  ;;  %2119 = vrot.lane.b32.xlu1 %v9219_v50, %s13793_s30 }
 0x4ec   : > { %1925 = vrot.lane.b32.xlu0 %v9249_v52, %s13788_s20  ;;  %1847 = vrot.lane.b32.xlu1 %v9259_v7, %s13787_s14 }
 0x4f0   : > { %1965 = vrot.lane.b32.xlu0 %v9249_v52, %s13789_s19  ;;  %1887 = vrot.lane.b32.xlu1 %v9259_v7, %s13786_s17 }
 0x4f4   : > { %2005 = vrot.lane.b32.xlu0 %v9249_v52, %s13790_s18  ;;  %1927 = vrot.lane.b32.xlu1 %v9259_v7, %s13788_s20 }
 0x4f8   : > { %2045 = vrot.lane.b32.xlu0 %v9249_v52, %s13791_s23  ;;  %1967 = vrot.lane.b32.xlu1 %v9259_v7, %s13789_s19 }
 0x4fa   : > { %v1874_v46 = vpop.permute.xlu0 %1873  ;;  %v1834_v60 = vpop.permute.xlu1 %1833 }
 0x4fc   : > { %2085 = vrot.lane.b32.xlu0 %v9249_v52, %s13792_s27  ;;  %2007 = vrot.lane.b32.xlu1 %v9259_v7, %s13790_s18 }
 0x4fe   : > { %v1914_v40 = vpop.permute.xlu0 %1913  ;;  %v1842_v20 = vpop.permute.xlu1 %1841 }
 0x4ff   : > { %v1849_v54 = vsel %vm1036_vm1, %v1834_v60, %v1842_v20  ;;  %v1853_v37 = vsel %vm1036_vm1, %v1842_v20, %v1834_v60  ;;  %v13798_v20 = vld [vmem:[#allocation64_spill] sm:$0xff] }
 0x500   : > { %2125 = vrot.lane.b32.xlu0 %v9249_v52, %s13793_s30  ;;  %2047 = vrot.lane.b32.xlu1 %v9259_v7, %s13791_s23  ;;  %v1857_v42 = vmul.f32 %v1853_v37, %v13796_v12  ;;  %v1858_v19 = vmul.f32 %v1849_v54, %v13797_v2  ;;  %v1826_v60 = vmul.f32 %v9144_v17, %v13798_v20  ;;  %v13803_v17 = vld [vmem:[#allocation72_spill] sm:$0xff] }
 0x502   : > { %v1954_v0 = vpop.permute.xlu0 %1953  ;;  %v9301_v1 = vpop.permute.xlu1 %1875  ;;  %v1865_v12 = vadd.f32 %v1857_v42, %v1825_v28  ;;  %v13806_v42 = vld [vmem:[#allocation79_spill] sm:$0xff] }
 0x504   : > { %2087 = vrot.lane.b32.xlu1 %v9259_v7, %s13792_s27  ;;  %1627 = vperm.xlu0 %7532, %v1621_v14  }
 0x506   : > { %v1994_v15 = vpop.permute.xlu0 %1993  ;;  %v9305_v26 = vpop.permute.xlu1 %1915 }
 0x508   : > { %2127 = vrot.lane.b32.xlu1 %v9259_v7, %s13793_s30  ;;  %1637 = vperm.xlu0 %7532, %v1623_v24  }
 0x50a   : > { %v2034_v29 = vpop.permute.xlu0 %2033  ;;  %v9309_v38 = vpop.permute.xlu1 %1955 }
 0x50c   : > { %1632 = vperm.xlu1 %7533, %v1622_v30  }
 0x50e   : > { %v2074_v53 = vpop.permute.xlu0 %2073  ;;  %v9311_v31 = vpop.permute.xlu1 %1995 }
 0x510   : > { %1642 = vperm.xlu1 %7533, %v1624_v22  }
 0x512   : > { %v2114_v48 = vpop.permute.xlu0 %2113  ;;  %v9313_v14 = vpop.permute.xlu1 %2035 }
 0x516   : > { %v1882_v61 = vpop.permute.xlu0 %1881  ;;  %v9315_v35 = vpop.permute.xlu1 %2075 }
 0x517   : > { %v1889_v22 = vsel %vm1077_vm2, %v1874_v46, %v1882_v61  ;;  %v1893_v25 = vsel %vm1077_vm2, %v1882_v61, %v1874_v46 }
 0x518   : > { %v1897_v4 = vmul.f32 %v1893_v25, %v13800_v27  ;;  %v1898_v46 = vmul.f32 %v1889_v22, %v13801_v63  ;;  %v13804_v27 = vld [vmem:[#allocation75_spill] sm:$0xff] }
 0x51a   : > { %v1922_v11 = vpop.permute.xlu0 %1921  ;;  %v9317_v6 = vpop.permute.xlu1 %2115  ;;  %v1905_v25 = vadd.f32 %v1897_v4, %v1865_v12 }
 0x51b   : > { %v1929_v21 = vsel %vm1118_vm3, %v1914_v40, %v1922_v11  ;;  %v1933_v33 = vsel %vm1118_vm3, %v1922_v11, %v1914_v40  ;;  %v1866_v11 = vadd.f32 %v1858_v19, %v1826_v60  ;;  %v13802_v40 = vld [vmem:[#allocation71_spill] sm:$0xff]  ;;  %v13807_v60 = vld [vmem:[#allocation80_spill] sm:$0xff] }
 0x51c   : > { %v1937_v57 = vmul.f32 %v1933_v33, %v13802_v40  ;;  %v1938_v20 = vmul.f32 %v1929_v21, %v13803_v17 }
 0x51d   : > { %v1906_v63 = vadd.f32 %v1898_v46, %v1866_v11  ;;  %v13808_v46 = vld [vmem:[#allocation83_spill] sm:$0xff] }
 0x51e   : > { %v1962_v24 = vpop.permute.xlu0 %1961  ;;  %v9323_v30 = vpop.permute.xlu1 %1843  ;;  %v1945_v33 = vadd.f32 %v1937_v57, %v1905_v25 }
 0x51f   : > { %v1969_v54 = vsel %vm1159_vm4, %v1954_v0, %v1962_v24  ;;  %v1973_v2 = vsel %vm1159_vm4, %v1962_v24, %v1954_v0  ;;  %v1946_v21 = vadd.f32 %v1938_v20, %v1906_v63 }
 0x520   : > { %v1977_v36 = vmul.f32 %v1973_v2, %v13804_v27  ;;  %v1978_v5 = vmul.f32 %v1969_v54, %v13805_v44 }
 0x522   : > { %v2002_v61 = vpop.permute.xlu0 %2001  ;;  %v1884_v37 = vpop.permute.xlu1 %1883  ;;  %v1985_v4 = vadd.f32 %v1977_v36, %v1945_v33  ;;  %v1986_v12 = vadd.f32 %v1978_v5, %v1946_v21 }
 0x523   : > { %v2009_v23 = vsel %vm1200_vm5, %v1994_v15, %v2002_v61  ;;  %v2013_v22 = vsel %vm1200_vm5, %v2002_v61, %v1994_v15  ;;  %v13809_v61 = vld [vmem:[#allocation84_spill] sm:$0xff] }
 0x524   : > { %v2017_v24 = vmul.f32 %v2009_v23, %v13806_v42  ;;  %v2018_v15 = vmul.f32 %v2013_v22, %v13807_v60  ;;  %v13811_v23 = vld [vmem:[#allocation90_spill] sm:$0xff] }
 0x526   : > { %v2042_v8 = vpop.permute.xlu0 %2041  ;;  %v1924_v0 = vpop.permute.xlu1 %1923  ;;  %v2025_v57 = vadd.f32 %v2017_v24, %v1985_v4  ;;  %v2026_v63 = vadd.f32 %v2018_v15, %v1986_v12  ;;  %v13813_v24 = vld [vmem:[#allocation94_spill] sm:$0xff] }
 0x527   : > { %v2049_v28 = vsel %vm1241_vm6, %v2034_v29, %v2042_v8  ;;  %v2053_v19 = vsel %vm1241_vm6, %v2042_v8, %v2034_v29  ;;  %v13810_v29 = vld [vmem:[#allocation89_spill] sm:$0xff] }
 0x528   : > { %v2057_v2 = vmul.f32 %v2049_v28, %v13808_v46  ;;  %v2058_v54 = vmul.f32 %v2053_v19, %v13809_v61  ;;  %v13812_v46 = vld [vmem:[#allocation93_spill] sm:$0xff] }
 0x52a   : > { %v2082_v11 = vpop.permute.xlu0 %2081  ;;  %v1964_v44 = vpop.permute.xlu1 %1963  ;;  %v2065_v36 = vadd.f32 %v2057_v2, %v2025_v57  ;;  %v2066_v5 = vadd.f32 %v2058_v54, %v2026_v63  ;;  %v1890_v2 = vsel %vm1077_vm2, %v9301_v1, %v1884_v37  ;;  %v1894_v54 = vsel %vm1077_vm2, %v1884_v37, %v9301_v1  ;;  %v13814_v57 = vld [vmem:[#allocation69_spill] sm:$0xff]  ;;  %v13815_v63 = vld [vmem:[#allocation70_spill] sm:$0xff] }
 0x52b   : > { %v2089_v27 = vsel %vm1282_vm7, %v2074_v53, %v2082_v11  ;;  %v2093_v8 = vsel %vm1282_vm7, %v2082_v11, %v2074_v53  ;;  %v1930_v1 = vsel %vm1118_vm3, %v9305_v26, %v1924_v0  ;;  %v1934_v37 = vsel %vm1118_vm3, %v1924_v0, %v9305_v26 }
 0x52c   : > { %v2097_v20 = vmul.f32 %v2089_v27, %v13810_v29  ;;  %v2098_v22 = vmul.f32 %v2093_v8, %v13811_v23  ;;  %v1974_v26 = vsel %vm1159_vm4, %v1964_v44, %v9309_v38  ;;  %v13823_v29 = vld [vmem:[#allocation81_spill] sm:$0xff] }
 0x52e   : > { %v2122_v25 = vpop.permute.xlu0 %2121  ;;  %v2004_v28 = vpop.permute.xlu1 %2003  ;;  %v2105_v21 = vadd.f32 %v2097_v20, %v2065_v36  ;;  %v2106_v61 = vadd.f32 %v2098_v22, %v2066_v5  ;;  %v1828_v20 = vmul.f32 %v9181_v3, %v13815_v63  ;;  %v13816_v22 = vld [vmem:[#allocation65_spill] sm:$0xff]  ;;  %v13817_v5 = vld [vmem:[#allocation66_spill] sm:$0xff] }
 0x52f   : > { %v2129_v19 = vsel %vm1323_vm8, %v2114_v48, %v2122_v25  ;;  %v2133_v33 = vsel %vm1323_vm8, %v2122_v25, %v2114_v48 }
 0x530   : > { %v2137_v53 = vmul.f32 %v2129_v19, %v13812_v46  ;;  %v2138_v15 = vmul.f32 %v2133_v33, %v13813_v24  ;;  %v13818_v19 = vld [vmem:[#allocation37_spill] sm:$0xff]  ;;  %v1970_v24 = vsel %vm1159_vm4, %v9309_v38, %v1964_v44  ;;  %v1979_v44 = vmul.f32 %v1974_v26, %v13823_v29  ;;  %v13824_v38 = vld [vmem:[#allocation82_spill] sm:$0xff] }
 0x531   : > { %v1980_v60 = vmul.f32 %v1970_v24, %v13824_v38  ;;  %v13826_v26 = vld [vmem:[#allocation86_spill] sm:$0xff] }
 0x532   : > { %v2145_v4 = vadd.f32 %v2137_v53, %v2105_v21  ;;  %v2146_v27 = vadd.f32 %v2138_v15, %v2106_v61  ;;  %v1836_v12 = vpop.permute.xlu0 %1835  ;;  %v2044_v11 = vpop.permute.xlu1 %2043  ;;  %v1827_v61 = vmul.f32 %v9150_v49, %v13814_v57  ;;  %v13819_v49 = vld [vmem:[#allocation73_spill] sm:$0xff]  ;;  %v13820_v53 = vld [vmem:[#allocation74_spill] sm:$0xff] }
 0x533   : > { %v1850_v48 = vsel %vm1036_vm1, %v1836_v12, %v9323_v30  ;;  %v1854_v8 = vsel %vm1036_vm1, %v9323_v30, %v1836_v12  ;;  %v1899_v21 = vmul.f32 %v1894_v54, %v13819_v49  ;;  %v1900_v3 = vmul.f32 %v1890_v2, %v13820_v53  ;;  %v13822_v54 = vld [vmem:[#allocation78_spill] sm:$0xff] }
 0x534   : > { %v1859_v36 = vmul.f32 %v1854_v8, %v13816_v22  ;;  %v1860_v25 = vmul.f32 %v1850_v48, %v13817_v5  ;;  %v2153_v30 = vadd.f32 %v2145_v4, %v13818_v19  ;;  %v2154_v33 = vadd.f32 %v2146_v27, %v13818_v19  ;;  %v13821_v27 = vld [vmem:[#allocation77_spill] sm:$0xff] }
 0x535   : > { %v1939_v19 = vmul.f32 %v1934_v37, %v13821_v27  ;;  %v1940_v46 = vmul.f32 %v1930_v1, %v13822_v54 }
 0x536   : > { %v1867_v15 = vadd.f32 %v1859_v36, %v1827_v61  ;;  %v1868_v12 = vadd.f32 %v1860_v25, %v1828_v20  ;;  %v9401_v8 = vpop.permute.xlu0 %1837  ;;  %v2084_v48 = vpop.permute.xlu1 %2083  ;;  %v2161_v0 = vadd.f32 3.0, %v2153_v30  ;;  %v2162_v4 = vadd.f32 3.0, %v2154_v33 }
 0x537   : > { %v2010_v20 = vsel %vm1200_vm5, %v9311_v31, %v2004_v28  ;;  %v2014_v36 = vsel %vm1200_vm5, %v2004_v28, %v9311_v31 }
 0x538   : > { %v1907_v2 = vadd.f32 %v1899_v21, %v1867_v15  ;;  %v1908_v61 = vadd.f32 %v1900_v3, %v1868_v12  ;;  %v2169_v25 = vmax.f32 %v2161_v0, 0.0  ;;  %v2170_v23 = vmax.f32 %v2162_v4, 0.0  ;;  %v13825_v15 = vld [vmem:[#allocation85_spill] sm:$0xff] }
 0x539   : > { %v2050_v21 = vsel %vm1241_vm6, %v9313_v14, %v2044_v11  ;;  %v2054_v3 = vsel %vm1241_vm6, %v2044_v11, %v9313_v14  ;;  %v2019_v12 = vmul.f32 %v2010_v20, %v13825_v15  ;;  %v2020_v0 = vmul.f32 %v2014_v36, %v13826_v26  ;;  %v13827_v11 = vld [vmem:[#allocation87_spill] sm:$0xff] }
 0x53a   : > { %v1947_v42 = vadd.f32 %v1939_v19, %v1907_v2  ;;  %v1948_v37 = vadd.f32 %v1940_v46, %v1908_v61  ;;  %v9419_v27 = vpop.permute.xlu0 %1877  ;;  %v2124_v1 = vpop.permute.xlu1 %2123  ;;  %v2177_v31 = vmin.f32 %v2169_v25, 6.0  ;;  %v2178_v28 = vmin.f32 %v2170_v23, 6.0  ;;  %v13828_v25 = vld [vmem:[#allocation88_spill] sm:$0xff] }
 0x53b   : > { %v2090_v46 = vsel %vm1282_vm7, %v9315_v35, %v2084_v48  ;;  %v2094_v4 = vsel %vm1282_vm7, %v2084_v48, %v9315_v35  ;;  %v2059_v23 = vmul.f32 %v2050_v21, %v13827_v11  ;;  %v2060_v20 = vmul.f32 %v2054_v3, %v13828_v25  ;;  %v13832_v21 = vld [vmem:[#allocation92_spill] sm:$0xff] }
 0x53c   : > { %v1987_v24 = vadd.f32 %v1979_v44, %v1947_v42  ;;  %v1988_v19 = vadd.f32 %v1980_v60, %v1948_v37  ;;  %v2185_v2 = vmul.f32 %v2177_v31, %v2153_v30  ;;  %v2186_v61 = vmul.f32 %v2178_v28, %v2154_v33  ;;  %v13831_v44 = vld [vmem:[#allocation91_spill] sm:$0xff] }
 0x53d   : > { %v2130_v42 = vsel %vm1323_vm8, %v9317_v6, %v2124_v1  ;;  %v2134_v60 = vsel %vm1323_vm8, %v2124_v1, %v9317_v6  ;;  %v2099_v37 = vmul.f32 %v2090_v46, %v13831_v44  ;;  %v2100_v3 = vmul.f32 %v2094_v4, %v13832_v21  ;;  %v13835_v46 = vld [vmem:[#allocation38_spill] sm:$0xff] }
 0x53e   : > { %v2027_v38 = vadd.f32 %v2019_v12, %v1987_v24  ;;  %v2028_v14 = vadd.f32 %v2020_v0, %v1988_v19  ;;  %v1918_v15 = vpop.permute.xlu0 %1917  ;;  %v9437_v36 = vpop.permute.xlu1 %1839  ;;  %v9445_v35 = vmul.f32 0.16666667, %v2185_v2  ;;  %v9447_v30 = vmul.f32 0.16666667, %v2186_v61  ;;  %v13833_v0 = vld [vmem:[#allocation95_spill] sm:$0xff]  ;;  %v13834_v19 = vld [vmem:[#allocation96_spill] sm:$0xff] }
 0x53f   : > { %v2139_v24 = vmul.f32 %v2130_v42, %v13833_v0  ;;  %v2140_v25 = vmul.f32 %v2134_v60, %v13834_v19  ;;  %v1829_v44 = vmul.f32 %v9209_v51, %v8799_v34  ;;  %v13844_v34 = vld [vmem:[#allocation49_spill] sm:$0xff] }
 0x540   : > { %13829 = vst [vmem:[#allocation97_spill] sm:$0xff] %v9445_v35  ;;  %13830 = vst [vmem:[#allocation98_spill] sm:$0xff] %v9447_v30  ;;  %v2067_v33 = vadd.f32 %v2059_v23, %v2027_v38  ;;  %v2068_v48 = vadd.f32 %v2060_v20, %v2028_v14  ;;  %v2201_v31 = vadd.f32 %v9447_v30, %v9445_v35 }
 0x542   : > { %v2107_v28 = vadd.f32 %v2099_v37, %v2067_v33  ;;  %v2108_v12 = vadd.f32 %v2100_v3, %v2068_v48  ;;  %v1958_v6 = vpop.permute.xlu0 %1957  ;;  %v1880_v1 = vpop.permute.xlu1 %1879  ;;  %2202 = vadd.xlane.f32.xlu0 %v2201_v31 }
 0x544   : > { %v2147_v2 = vadd.f32 %v2139_v24, %v2107_v28  ;;  %v2148_v61 = vadd.f32 %v2140_v25, %v2108_v12 }
 0x546   : > { %v9455_v38 = vpop.permute.xlu0 %1997  ;;  %v9457_v14 = vpop.permute.xlu1 %1919  ;;  %v2155_v4 = vadd.f32 %v2147_v2, %v13835_v46  ;;  %v2156_v23 = vadd.f32 %v2148_v61, %v13835_v46 }
 0x548   : > { %v2163_v20 = vadd.f32 3.0, %v2155_v4  ;;  %v2164_v33 = vadd.f32 3.0, %v2156_v23 }
 0x54a   : > { %v9461_v48 = vpop.permute.xlu0 %2037  ;;  %v9463_v42 = vpop.permute.xlu1 %1959  ;;  %v2171_v60 = vmax.f32 %v2163_v20, 0.0  ;;  %v2172_v37 = vmax.f32 %v2164_v33, 0.0 }
 0x54c   : > { %v2179_v3 = vmin.f32 %v2171_v60, 6.0  ;;  %v2180_v31 = vmin.f32 %v2172_v37, 6.0 }
 0x54e   : > { %v9465_v28 = vpop.permute.xlu0 %2077  ;;  %v9467_v25 = vpop.permute.xlu1 %1999  ;;  %v2187_v12 = vmul.f32 %v2179_v3, %v2155_v4  ;;  %v2188_v24 = vmul.f32 %v2180_v31, %v2156_v23 }
 0x550   : > { %v9469_v30 = vmul.f32 0.16666667, %v2187_v12  ;;  %v9471_v2 = vmul.f32 0.16666667, %v2188_v24  ;;  %v13838_v12 = vld [vmem:[#allocation15_spill] sm:$0xff] }
 0x552   : > { %13836 = vst [vmem:[#allocation70_spill] sm:$0xff] %v9469_v30  ;;  %13837 = vst [vmem:[#allocation78_spill] sm:$0xff] %v9471_v2  ;;  %v9473_v61 = vpop.permute.xlu0 %2117  ;;  %v9475_v35 = vpop.permute.xlu1 %2039  ;;  %v2204_v20 = vadd.f32 %v9471_v2, %v9469_v30  ;;  %v13839_v2 = vld [vmem:[#allocation43_spill] sm:$0xff] }
 0x554   : > { %2205 = vadd.xlane.f32.xlu1 %v2204_v20 }
 0x556   : > { %v1846_v33 = vpop.permute.xlu0 %1845  ;;  %v9479_v60 = vpop.permute.xlu1 %2079 }
 0x557   : > { %v1851_v4 = vsel %vm1036_vm1, %v9401_v8, %v1846_v33  ;;  %v1855_v23 = vsel %vm1036_vm1, %v1846_v33, %v9401_v8  ;;  %v1830_v8 = vmul.f32 %v9249_v52, %v8803_v10 }
 0x558   : > { %v1861_v24 = vmul.f32 %v1855_v23, %v13838_v12  ;;  %v1862_v20 = vmul.f32 %v1851_v4, %v13839_v2  ;;  %v13840_v2 = vld [vmem:[#allocation19_spill] sm:$0xff] }
 0x55a   : > { %v1886_v37 = vpop.permute.xlu0 %1885  ;;  %v9481_v46 = vpop.permute.xlu1 %2119  ;;  %v1870_v52 = vadd.f32 %v1862_v20, %v1830_v8  ;;  %v13842_v20 = vld [vmem:[#allocation44_spill] sm:$0xff] }
 0x55b   : > { %v1891_v30 = vsel %vm1077_vm2, %v9419_v27, %v1886_v37  ;;  %v1895_v19 = vsel %vm1077_vm2, %v1886_v37, %v9419_v27  ;;  %v1869_v37 = vadd.f32 %v1861_v24, %v1829_v44  ;;  %v1831_v44 = vmul.f32 %v9219_v50, %v8819_v43 }
 0x55c   : > { %v1901_v23 = vmul.f32 %v1895_v19, %v8811_v58  ;;  %v1902_v12 = vmul.f32 %v1891_v30, %v13840_v2 }
 0x55e   : > { %v1926_v3 = vpop.permute.xlu0 %1925  ;;  %v1848_v31 = vpop.permute.xlu1 %1847 }
 0x55f   : > { %v1931_v33 = vsel %vm1118_vm3, %v1918_v15, %v1926_v3  ;;  %v1935_v4 = vsel %vm1118_vm3, %v1926_v3, %v1918_v15  ;;  %v1852_v27 = vsel %vm1036_vm1, %v9437_v36, %v1848_v31  ;;  %v1856_v51 = vsel %vm1036_vm1, %v1848_v31, %v9437_v36  ;;  %v13841_v31 = vld [vmem:[#allocation48_spill] sm:$0xff] }
 0x560   : > { %v1941_v19 = vmul.f32 %v1935_v4, %v8828_v39  ;;  %v1942_v30 = vmul.f32 %v1931_v33, %v8832_v56  ;;  %v1832_v24 = vmul.f32 %v9259_v7, %v13841_v31  ;;  %v1909_v4 = vadd.f32 %v1901_v23, %v1869_v37 }
 0x561   : > { %v1910_v33 = vadd.f32 %v1902_v12, %v1870_v52 }
 0x562   : > { %v1966_v0 = vpop.permute.xlu0 %1965  ;;  %v1888_v21 = vpop.permute.xlu1 %1887 }
 0x563   : > { %v1971_v10 = vsel %vm1159_vm4, %v1958_v6, %v1966_v0  ;;  %v1975_v15 = vsel %vm1159_vm4, %v1966_v0, %v1958_v6  ;;  %v1892_v3 = vsel %vm1077_vm2, %v1880_v1, %v1888_v21  ;;  %v1896_v2 = vsel %vm1077_vm2, %v1888_v21, %v1880_v1  ;;  %v13843_v6 = vld [vmem:[#allocation45_spill] sm:$0xff]  ;;  %v13845_v1 = vld [vmem:[#allocation50_spill] sm:$0xff] }
 0x564   : > { %v1863_v0 = vmul.f32 %v1856_v51, %v13842_v20  ;;  %v1864_v8 = vmul.f32 %v1852_v27, %v13843_v6  ;;  %v1981_v56 = vmul.f32 %v1975_v15, %v8844_v41  ;;  %v1982_v39 = vmul.f32 %v1971_v10, %v8848_v18 }
 0x565   : > { %v1903_v21 = vmul.f32 %v1896_v2, %v13844_v34  ;;  %v1904_v11 = vmul.f32 %v1892_v3, %v13845_v1  ;;  %v1949_v51 = vadd.f32 %v1941_v19, %v1909_v4  ;;  %v1950_v27 = vadd.f32 %v1942_v30, %v1910_v33 }
 0x566   : > { %v2006_v58 = vpop.permute.xlu0 %2005  ;;  %v1928_v36 = vpop.permute.xlu1 %1927  ;;  %v1871_v37 = vadd.f32 %v1863_v0, %v1831_v44  ;;  %v1872_v52 = vadd.f32 %v1864_v8, %v1832_v24 }
 0x567   : > { %v2011_v50 = vsel %vm1200_vm5, %v9455_v38, %v2006_v58  ;;  %v2015_v7 = vsel %vm1200_vm5, %v2006_v58, %v9455_v38  ;;  %v1932_v12 = vsel %vm1118_vm3, %v9457_v14, %v1928_v36  ;;  %v1936_v10 = vsel %vm1118_vm3, %v1928_v36, %v9457_v14 }
 0x568   : > { %v1989_v38 = vadd.f32 %v1981_v56, %v1949_v51  ;;  %v1990_v19 = vadd.f32 %v1982_v39, %v1950_v27  ;;  %v2021_v30 = vmul.f32 %v2011_v50, %v8860_v55  ;;  %v2022_v3 = vmul.f32 %v2015_v7, %v8864_v9  ;;  %v13885_v55 = vld [vmem:[#allocation64_spill] sm:$0xff] }
 0x569   : > { %v1911_v4 = vadd.f32 %v1903_v21, %v1871_v37  ;;  %v1912_v14 = vadd.f32 %v1904_v11, %v1872_v52  ;;  %v1943_v36 = vmul.f32 %v1936_v10, %v8852_v62  ;;  %v1944_v44 = vmul.f32 %v1932_v12, %v8856_v32  ;;  %v13847_v37 = vld [vmem:[#allocation55_spill] sm:$0xff] }
 0x56a   : > { %v2046_v2 = vpop.permute.xlu0 %2045  ;;  %v1968_v23 = vpop.permute.xlu1 %1967  ;;  %v2029_v7 = vadd.f32 %v2021_v30, %v1989_v38 }
 0x56b   : > { %v2051_v15 = vsel %vm1241_vm6, %v9461_v48, %v2046_v2  ;;  %v2055_v58 = vsel %vm1241_vm6, %v2046_v2, %v9461_v48  ;;  %v1972_v48 = vsel %vm1159_vm4, %v9463_v42, %v1968_v23  ;;  %v1976_v39 = vsel %vm1159_vm4, %v1968_v23, %v9463_v42  ;;  %v13846_v2 = vld [vmem:[#allocation54_spill] sm:$0xff] }
 0x56c   : > { %v2061_v24 = vmul.f32 %v2051_v15, %v8876_v13  ;;  %v2062_v0 = vmul.f32 %v2055_v58, %v8880_v45  ;;  %v2030_v42 = vadd.f32 %v2022_v3, %v1990_v19  ;;  %v1951_v12 = vadd.f32 %v1943_v36, %v1911_v4  ;;  %v13848_v58 = vld [vmem:[#allocation56_spill] sm:$0xff]  ;;  %v13849_v45 = vld [vmem:[#allocation57_spill] sm:$0xff]  ;;  %v13850_v36 = vld [vmem:[#allocation59_spill] sm:$0xff] }
 0x56d   : > { %v1952_v10 = vadd.f32 %v1944_v44, %v1912_v14  ;;  %v1983_v23 = vmul.f32 %v1976_v39, %v13846_v2 }
 0x56e   : > { %v2086_v56 = vpop.permute.xlu0 %2085  ;;  %v2008_v8 = vpop.permute.xlu1 %2007  ;;  %v2069_v52 = vadd.f32 %v2061_v24, %v2029_v7  ;;  %v2070_v15 = vadd.f32 %v2062_v0, %v2030_v42  ;;  %v13851_v24 = vld [vmem:[#allocation35_spill] sm:$0xff] }
 0x56f   : > { %v2091_v11 = vsel %vm1282_vm7, %v9465_v28, %v2086_v56  ;;  %v2095_v33 = vsel %vm1282_vm7, %v2086_v56, %v9465_v28  ;;  %v2012_v21 = vsel %vm1200_vm5, %v9467_v25, %v2008_v8  ;;  %v2016_v50 = vsel %vm1200_vm5, %v2008_v8, %v9467_v25  ;;  %v13852_v8 = vld [vmem:[#allocation28_spill] sm:$0xff] }
 0x570   : > { %v2101_v51 = vmul.f32 %v2091_v11, %v8906_v16  ;;  %v2102_v27 = vmul.f32 %v2095_v33, %v8910_v47  ;;  %v1984_v28 = vmul.f32 %v1972_v48, %v13847_v37  ;;  %v2023_v56 = vmul.f32 %v2012_v21, %v13848_v58  ;;  %v13853_v33 = vld [vmem:[#allocation30_spill] sm:$0xff]  ;;  %v13883_v47 = vld [vmem:[#allocation61_spill] sm:$0xff] }
 0x571   : > { %v2024_v13 = vmul.f32 %v2016_v50, %v13849_v45  ;;  %v1991_v48 = vadd.f32 %v1983_v23, %v1951_v12 }
 0x572   : > { %v2126_v9 = vpop.permute.xlu0 %2125  ;;  %v2048_v25 = vpop.permute.xlu1 %2047  ;;  %v2109_v4 = vadd.f32 %v2101_v51, %v2069_v52  ;;  %v2110_v14 = vadd.f32 %v2102_v27, %v2070_v15  ;;  %v1992_v39 = vadd.f32 %v1984_v28, %v1952_v10  ;;  %v13854_v27 = vld [vmem:[#allocation33_spill] sm:$0xff]  ;;  %v13855_v10 = vld [vmem:[#allocation99_spill] sm:$0xff] }
 0x573   : > { %v2131_v38 = vsel %vm1323_vm8, %v9473_v61, %v2126_v9  ;;  %v2135_v19 = vsel %vm1323_vm8, %v2126_v9, %v9473_v61  ;;  %v2052_v30 = vsel %vm1241_vm6, %v9475_v35, %v2048_v25  ;;  %v2056_v3 = vsel %vm1241_vm6, %v2048_v25, %v9475_v35  ;;  %v13856_v28 = vld [vmem:[#allocation39_spill] sm:$0xff] }
 0x574   : > { %v2141_v44 = vmul.f32 %v2131_v38, %v13850_v36  ;;  %v2142_v0 = vmul.f32 %v2135_v19, %v13851_v24  ;;  %v2063_v11 = vmul.f32 %v2052_v30, %v13852_v8  ;;  %v2064_v9 = vmul.f32 %v2056_v3, %v13853_v33  ;;  %v13884_v33 = vld [vmem:[#allocation62_spill] sm:$0xff] }
 0x575   : > { %v2031_v7 = vadd.f32 %v2023_v56, %v1991_v48  ;;  %v2032_v42 = vadd.f32 %v2024_v13, %v1992_v39 }
 0x576   : > { %v2149_v61 = vadd.f32 %v2141_v44, %v2109_v4  ;;  %v2150_v21 = vadd.f32 %v2142_v0, %v2110_v14  ;;  %v2088_v50 = vpop.permute.xlu1 %2087  ;;  %v13857_v14 = vld [vmem:[#allocation36_spill] sm:$0xff] }
 0x577   : > { %v2092_v35 = vsel %vm1282_vm7, %v9479_v60, %v2088_v50  ;;  %v2096_v51 = vsel %vm1282_vm7, %v2088_v50, %v9479_v60  ;;  %v2071_v25 = vadd.f32 %v2063_v11, %v2031_v7  ;;  %v2072_v38 = vadd.f32 %v2064_v9, %v2032_v42  ;;  %v13858_v0 = vld [vmem:[#allocation100_spill] sm:$0xff] }
 0x578   : > { %v2103_v12 = vmul.f32 %v2092_v35, %v13854_v27  ;;  %v2104_v23 = vmul.f32 %v2096_v51, %v13855_v10  ;;  %v2157_v52 = vadd.f32 %v2149_v61, %v13856_v28  ;;  %v2158_v15 = vadd.f32 %v2150_v21, %v13856_v28  ;;  %v13859_v35 = vld [vmem:[#allocation40_spill] sm:$0xff] }
 0x57a   : > { %v2128_v56 = vpop.permute.xlu1 %2127  ;;  %v2165_v13 = vadd.f32 3.0, %v2157_v52  ;;  %v2166_v19 = vadd.f32 3.0, %v2158_v15  ;;  %v2111_v30 = vadd.f32 %v2103_v12, %v2071_v25  ;;  %v2112_v3 = vadd.f32 %v2104_v23, %v2072_v38 }
 0x57b   : > { %v2132_v4 = vsel %vm1323_vm8, %v9481_v46, %v2128_v56  ;;  %v2136_v60 = vsel %vm1323_vm8, %v2128_v56, %v9481_v46 }
 0x57c   : > { %v2143_v44 = vmul.f32 %v2132_v4, %v13857_v14  ;;  %v2144_v48 = vmul.f32 %v2136_v60, %v13858_v0  ;;  %v2173_v39 = vmax.f32 %v2165_v13, 0.0  ;;  %v2174_v11 = vmax.f32 %v2166_v19, 0.0 }
 0x57e   : > { %v2151_v9 = vadd.f32 %v2143_v44, %v2111_v30  ;;  %v2152_v61 = vadd.f32 %v2144_v48, %v2112_v3  ;;  %v2181_v21 = vmin.f32 %v2173_v39, 6.0  ;;  %v2182_v50 = vmin.f32 %v2174_v11, 6.0  ;;  %v13864_v39 = vld [vmem:[#allocation41_spill] sm:$0xff] }
 0x580   : > { %v2189_v7 = vmul.f32 %v2181_v21, %v2157_v52  ;;  %v2190_v42 = vmul.f32 %v2182_v50, %v2158_v15  ;;  %v2159_v51 = vadd.f32 %v2151_v9, %v13859_v35  ;;  %v2160_v12 = vadd.f32 %v2152_v61, %v13859_v35  ;;  %v13865_v9 = vld [vmem:[#allocation42_spill] sm:$0xff]  ;;  %v13866_v21 = vld [vmem:[#allocation51_spill] sm:$0xff] }
 0x582   : > { %v9617_v23 = vmul.f32 0.16666667, %v2189_v7  ;;  %v9619_v25 = vmul.f32 0.16666667, %v2190_v42  ;;  %v2167_v46 = vadd.f32 3.0, %v2159_v51  ;;  %v2168_v38 = vadd.f32 3.0, %v2160_v12 }
 0x583   : > { %v1628_v3 = vpop.permute.xlu0 %1627  ;;  %v13867_v7 = vld [vmem:[#allocation60_spill] sm:$0xff] }
 0x584   : > { %13860 = vst [vmem:[#allocation81_spill] sm:$0xff] %v9617_v23  ;;  %13861 = vst [vmem:[#allocation86_spill] sm:$0xff] %v9619_v25  ;;  %v2207_v56 = vadd.f32 %v9619_v25, %v9617_v23  ;;  %v2175_v13 = vmax.f32 %v2167_v46, 0.0  ;;  %v2176_v19 = vmax.f32 %v2168_v38, 0.0  ;;  %v1645_v11 = vmul.f32 %v1628_v3, %v13864_v39  ;;  %v13871_v39 = vld [vmem:[#allocation34_spill] sm:$0xff] }
 0x585   : > { %v1646_v61 = vmul.f32 %v1628_v3, %v13865_v9 }
 0x586   : > { %2208 = vadd.xlane.f32.xlu0 %v2207_v56  ;;  %v2183_v30 = vmin.f32 %v2175_v13, 6.0  ;;  %v2184_v52 = vmin.f32 %v2176_v19, 6.0  ;;  %v13868_v13 = vld [vmem:[#allocation25_spill] sm:$0xff] }
 0x587   : > { %v1638_v46 = vpop.permute.xlu0 %1637 }
 0x588   : > { %v2191_v15 = vmul.f32 %v2183_v30, %v2159_v51  ;;  %v2192_v4 = vmul.f32 %v2184_v52, %v2160_v12  ;;  %v1649_v19 = vmul.f32 %v1638_v46, %v13868_v13  ;;  %v13869_v30 = vld [vmem:[#allocation32_spill] sm:$0xff] }
 0x589   : > { %v1650_v52 = vmul.f32 %v1638_v46, %v13869_v30  ;;  %v7539_v30 = vld [vmem:[%s13189_s6] sm:$0xff] }
 0x58a   : > { %v9623_v60 = vmul.f32 0.16666667, %v2191_v15  ;;  %v9625_v48 = vmul.f32 0.16666667, %v2192_v4  ;;  %v13870_v15 = vld [vmem:[#allocation26_spill] sm:$0xff] }
 0x58b   : > { %v1633_v44 = vpop.permute.xlu1 %1632 }
 0x58c   : > { %13862 = vst [vmem:[#allocation101_spill] sm:$0xff] %v9623_v60  ;;  %13863 = vst [vmem:[#allocation102_spill] sm:$0xff] %v9625_v48  ;;  %v1647_v50 = vmul.f32 %v1633_v44, %v13866_v21  ;;  %v1648_v42 = vmul.f32 %v1633_v44, %v13867_v7  ;;  %v2210_v38 = vadd.f32 %v9625_v48, %v9623_v60  ;;  %v13873_v21 = vmov 0.0  }
 0x58e   : > { %v1653_v56 = vpack.c.bf16 %v1647_v50, %v1645_v11  ;;  %v1654_v51 = vpack.c.bf16 %v1648_v42, %v1646_v61  ;;  %2211 = vadd.xlane.f32.xlu1 %v2210_v38  ;;  %v7536_v11 = vld [vmem:[%s13193_s10] sm:$0xff]   ;;  %v13872_v61 = vmov 0.0|0.0  }
 0x58f   : > { %v1643_v12 = vpop.permute.xlu1 %1642 }
 0x590   : > { %v1651_v4 = vmul.f32 %v1643_v12, %v13870_v15  ;;  %v1652_v3 = vmul.f32 %v1643_v12, %v13871_v39  ;;  %1675 = vmatprep.subr.bf16.mxu0 %v1654_v51 }
 0x591   : > { %1676 = vmatpush1.bf16.msra.mxu0 %v1653_v56 }
 0x592   : > { %v1655_v9 = vpack.c.bf16 %v1651_v4, %v1649_v19  ;;  %v1656_v44 = vpack.c.bf16 %v1652_v3, %v1650_v52  ;;  %v7540_v52 = vld [vmem:[%s13191_s8] sm:$0xff] }
 0x594   : > { %1677 = vmatprep.subr.bf16.mxu0 %v1656_v44  ;;  %v2477_v44 = vld [vmem:[%s7945_s13 + $0x48] sm:$0xff] }
 0x595   : > { %1678 = vmatpush1.bf16.msra.mxu0 %v1655_v9 }
 0x596   : > { %7429 = vmatprep.subr.bf16.mxu0 %v13872_v61 }
 0x598   : > { %7124 = vmatmul.mubr.msk.bf16.vlgmr.msra.gmra.mrb[8].mxu0 %vm1432_vm10, %v7536_v11  ;;  %v2479_v11 = vld [vmem:[%s7945_s13 + $0x58] sm:$0xff] }
 0x599   : > { %7298 = vmatprep.mubr.msk.f32.mxu0 %vm7766_vm9, %v13873_v21 }
 0x5cf   : > { %v2203_v50 = vpop.xlane.xlu0 %2202 }
 0x5d0   : > { %v2213_v42 = vmul.f32 0.00390625, %v2203_v50  ;;  %v7541_v50 = vld [vmem:[%s13190_s7] sm:$0xff] }
 0x5e1   : > { %v2206_v7 = vpop.xlane.xlu1 %2205 }
 0x5e2   : > { %v2214_v46 = vmul.f32 0.00390625, %v2206_v7 }
 0x5e4   : > { %v7430_v38 = vpack.c.bf16 %v2214_v46, %v2213_v42  ;;  %v2476_v46 = vld [vmem:[%s7945_s13 + $0x40] sm:$0xff] }
 0x5e6   : > { %7431 = vmatpush3.bf16.msra.mxu0 %v7430_v38  ;;  %v2478_v38 = vld [vmem:[%s7945_s13 + $0x50] sm:$0xff] }
 0x5e7   : > { %7432 = vmatprep.subr.bf16.mxu0 %v13872_v61 }
 0x613   : > { %v2209_v56 = vpop.xlane.xlu0 %2208 }
 0x614   : > { %v2215_v12 = vmul.f32 0.00390625, %v2209_v56 }
 0x61b   : > { %v2212_v51 = vpop.xlane.xlu1 %2211 }
 0x61c   : > { %v2216_v13 = vmul.f32 0.00390625, %v2212_v51  ;;  %v2481_v51 = vpack.c.bf16 %v2479_v11, %v2477_v44  ;;  %v7546_v44 = vld [vmem:[%s13184_s1 + $0x8] sm:$0xff]  }
 0x61e   : > { %v7433_v19 = vpack.c.bf16 %v2216_v13, %v2215_v12  ;;  %v2480_v12 = vpack.c.bf16 %v2478_v38, %v2476_v46  ;;  %v7542_v13 = vld [vmem:[%s13191_s8 + $0x8] sm:$0xff]  ;;  %v13879_v38 = vld [vmem:[#allocation11_spill] sm:$0xff] }
 0x620   : > { %7434 = vmatpush3.bf16.msra.mxu0 %v7433_v19  ;;  %v7543_v19 = vld [vmem:[%s13191_s8 + $0x10] sm:$0xff] }
 0x623   : > { %7299 = vmatmul.mubr.msk.f32.vlgmr.msra.gmra.mrb[12].mxu0 %vm1432_vm10, %v7539_v30  ;;  %v7544_v30 = vld [vmem:[%s13191_s8 + $0x18] sm:$0xff] }
 0x624   : > { %7303 = vmatprep.mubr.msk.f32.mxu0 %vm1507_vm11, %v7540_v52  ;;  %v13878_v52 = vmov 0  }
 0x66b   : > { %v9653_v15 = vpop.f32.mrb[8].mxu0 }
 0x66c   : > { %13874 = vst [vmem:[#allocation41_spill] sm:$0xff] %v9653_v15  ;;  %v9655_v4 = vpop.f32.mrb[9].mxu0 }
 0x66d   : > { %13875 = vst [vmem:[#allocation42_spill] sm:$0xff] %v9655_v4  ;;  %v9657_v39 = vpop.f32.mrb[10].mxu0 }
 0x66e   : > { %13876 = vst [vmem:[#allocation51_spill] sm:$0xff] %v9657_v39  ;;  %v9659_v3 = vpop.f32.mrb[11].mxu0 }
 0x66f   : > { %13877 = vst [vmem:[#allocation60_spill] sm:$0xff] %v9659_v3 }
 0x6f6   : > { %v2283_v9 = vpop.f32.mrb[12].mxu0 }
 0x6f7   : > { %v2284_v7 = vadd.f32 %v7541_v50, %v2283_v9  ;;  %v7300_v42 = vpop.f32.mrb[13].mxu0  ;;  %v7545_v9 = vld [vmem:[%s13184_s1] sm:$0xff]  }
 0x6f9   : > { %v2287_v56 = vmax.f32 %v2284_v7, 0.0 }
 0x6fb   : > { %7301 = vmatprep.subr.mxu0 %v2287_v56 }
 0x6fc   : > { %7302 = vmatpush3.msra.mxu0 %v2287_v56 }
 0x6fd   : > { %7304 = vmatmul.mubr.msk.f32.vlgmr.msra.gmra.mrb[14].mxu0 %vm1507_vm11, %v7542_v13  ;;  %2482 = vmatprep.subr.bf16.mxu0 %v2481_v51 }
 0x6fe   : > { %7306 = vmatprep.mubr.msk.f32.mxu0 %vm1507_vm11, %v7543_v19  ;;  %2483 = vmatpush1.bf16.msra.mxu0 %v2480_v12  ;;  %v13880_v19 = vld [vmem:[#allocation13_spill] sm:$0xff] }
 0x701   : > { %7307 = vmatmul.mubr.msk.f32.gmra.mrb[16].mxu0 %vm1507_vm11, %v7544_v30 }
 0x702   : > { %2514 = vmatprep.mubr.bf16.mxu0 %v13878_v52 }
 0x705   : > { %7133 = vmatmul.mubr.msk.bf16.vlgmr.msra.gmra.mrb[20].mxu0 %vm910_vm0, %v7545_v9 }
 0x706   : > { %2524 = vmatprep.mubr.bf16.mxu0 %v13878_v52 }
 0x70d   : > { %7134 = vmatmul.mubr.msk.bf16.gmra.mrb[24].mxu0 %vm910_vm0, %v7546_v44 }
 0x70e   : > { %3207 = vmatprep.mubr.bf16.mxu0 %v13878_v52 }
 0x7d0   : > { %v9691_v11 = vpop.f32.mrb[14].mxu0 }
 0x7d1   : > { %v9693_v50 = vpop.f32.mrb[15].mxu0 }
 0x7d4   : > { %v9695_v7 = vpop.f32.mrb[16].mxu0 }
 0x7d5   : > { %v9697_v42 = vpop.f32.mrb[17].mxu0 }
 0x7d8   : > { %v2516_v46 = vpop.f32.mrb[20].mxu0 }
 0x7d9   : > { %v2517_v56 = vadd.f32 %v2516_v46, %v13879_v38  ;;  %v2518_v51 = vpop.f32.mrb[21].mxu0 }
 0x7da   : > { %v2520_v12 = vpop.f32.mrb[22].mxu0 }
 0x7db   : > { %v2535_v13 = vadd.f32 3.0, %v2517_v56  ;;  %v2521_v30 = vadd.f32 %v2520_v12, %v13880_v19  ;;  %v2522_v9 = vpop.f32.mrb[23].mxu0 }
 0x7dd   : > { %v2543_v44 = vmax.f32 %v2535_v13, 0.0  ;;  %v2537_v4 = vadd.f32 3.0, %v2521_v30 }
 0x7df   : > { %v2551_v15 = vmin.f32 %v2543_v44, 6.0  ;;  %v2545_v3 = vmax.f32 %v2537_v4, 0.0  ;;  %v13881_v44 = vld [vmem:[#allocation12_spill] sm:$0xff] }
 0x7e0   : > { %v2526_v39 = vpop.f32.mrb[24].mxu0 }
 0x7e1   : > { %v2559_v52 = vmul.f32 %v2551_v15, %v2517_v56  ;;  %v2553_v21 = vmin.f32 %v2545_v3, 6.0  ;;  %v9701_v61 = vpop.f32.mrb[25].mxu0 }
 0x7e2   : > { %v2530_v48 = vpop.f32.mrb[26].mxu0 }
 0x7e3   : > { %v9703_v60 = vmul.f32 0.16666667, %v2559_v52  ;;  %v2561_v25 = vmul.f32 %v2553_v21, %v2521_v30  ;;  %v9705_v46 = vpop.f32.mrb[27].mxu0  ;;  %v2519_v21 = vadd.f32 %v2518_v51, %v13879_v38 }
 0x7e5   : > { %v9707_v23 = vmul.f32 0.16666667, %v2561_v25  ;;  %2583 = vrot.lane.b32.xlu0 %v9703_v60, %s13787_s14  ;;  %v2523_v25 = vadd.f32 %v2522_v9, %v13880_v19  ;;  %v2536_v15 = vadd.f32 3.0, %v2519_v21 }
 0x7e7   : > { %2585 = vrot.lane.b32.xlu1 %v9707_v23, %s13787_s14  ;;  %v2538_v4 = vadd.f32 3.0, %v2523_v25  ;;  %v2544_v3 = vmax.f32 %v2536_v15, 0.0 }
 0x7e9   : > { %2623 = vrot.lane.b32.xlu0 %v9703_v60, %s13786_s17  ;;  %v2546_v52 = vmax.f32 %v2538_v4, 0.0  ;;  %v2552_v56 = vmin.f32 %v2544_v3, 6.0 }
 0x7eb   : > { %2625 = vrot.lane.b32.xlu1 %v9707_v23, %s13786_s17  ;;  %v2554_v51 = vmin.f32 %v2546_v52, 6.0  ;;  %v2560_v12 = vmul.f32 %v2552_v56, %v2519_v21  ;;  %v2527_v21 = vadd.f32 %v2526_v39, %v13881_v44 }
 0x7ed   : > { %2663 = vrot.lane.b32.xlu0 %v9703_v60, %s13788_s20  ;;  %v2562_v13 = vmul.f32 %v2554_v51, %v2523_v25  ;;  %v9741_v30 = vmul.f32 0.16666667, %v2560_v12  ;;  %v13882_v25 = vld [vmem:[#allocation14_spill] sm:$0xff]  ;;  %v2539_v4 = vadd.f32 3.0, %v2527_v21 }
 0x7ee   : > { %v2531_v15 = vadd.f32 %v2530_v48, %v13882_v25 }
 0x7ef   : > { %2665 = vrot.lane.b32.xlu1 %v9707_v23, %s13788_s20  ;;  %v9745_v9 = vmul.f32 0.16666667, %v2562_v13  ;;  %v2547_v52 = vmax.f32 %v2539_v4, 0.0 }
 0x7f0   : > { %v2541_v3 = vadd.f32 3.0, %v2531_v15 }
 0x7f1   : > { %2703 = vrot.lane.b32.xlu0 %v9703_v60, %s13789_s19  ;;  %v2555_v48 = vmin.f32 %v2547_v52, 6.0 }
 0x7f2   : > { %v2549_v39 = vmax.f32 %v2541_v3, 0.0 }
 0x7f3   : > { %2705 = vrot.lane.b32.xlu1 %v9707_v23, %s13789_s19  ;;  %v2563_v51 = vmul.f32 %v2555_v48, %v2527_v21  ;;  %v2529_v21 = vadd.f32 %v9701_v61, %v13881_v44 }
 0x7f4   : > { %v2557_v56 = vmin.f32 %v2549_v39, 6.0 }
 0x7f5   : > { %2743 = vrot.lane.b32.xlu0 %v9703_v60, %s13790_s18  ;;  %v9779_v13 = vmul.f32 0.16666667, %v2563_v51  ;;  %v2540_v3 = vadd.f32 3.0, %v2529_v21 }
 0x7f6   : > { %v2565_v12 = vmul.f32 %v2557_v56, %v2531_v15  ;;  %v2533_v15 = vadd.f32 %v9705_v46, %v13882_v25 }
 0x7f7   : > { %2745 = vrot.lane.b32.xlu1 %v9707_v23, %s13790_s18  ;;  %v2548_v39 = vmax.f32 %v2540_v3, 0.0 }
 0x7f8   : > { %v9783_v4 = vmul.f32 0.16666667, %v2565_v12  ;;  %v2542_v52 = vadd.f32 3.0, %v2533_v15 }
 0x7f9   : > { %2783 = vrot.lane.b32.xlu0 %v9703_v60, %s13791_s23  ;;  %v2556_v46 = vmin.f32 %v2548_v39, 6.0 }
 0x7fa   : > { %v2550_v61 = vmax.f32 %v2542_v52, 0.0  ;;  %v7548_v52 = vld [vmem:[%s13192_s9 + $0x8] sm:$0xff] }
 0x7fb   : > { %2785 = vrot.lane.b32.xlu1 %v9707_v23, %s13791_s23  ;;  %v2564_v56 = vmul.f32 %v2556_v46, %v2529_v21  ;;  %v7547_v21 = vld [vmem:[%s13192_s9] sm:$0xff]  ;;  %v2360_v39 = vadd.f32 %v7548_v52, %v9691_v11  ;;  %v7549_v46 = vld [vmem:[%s13192_s9 + $0x10] sm:$0xff] }
 0x7fc   : > { %v2558_v48 = vmin.f32 %v2550_v61, 6.0 }
 0x7fd   : > { %2823 = vrot.lane.b32.xlu0 %v9703_v60, %s13792_s27  ;;  %v9819_v12 = vmul.f32 0.16666667, %v2564_v56  ;;  %v7550_v56 = vld [vmem:[%s13192_s9 + $0x18] sm:$0xff] }
 0x7fe   : > { %v2566_v51 = vmul.f32 %v2558_v48, %v2533_v15  ;;  %v2355_v15 = vadd.f32 %v7547_v21, %v9693_v50  ;;  %v2365_v48 = vadd.f32 %v7549_v46, %v9697_v42  ;;  %v2374_v50 = vmul.f32 1.2, %v2360_v39 }
 0x7ff   : > { %2825 = vrot.lane.b32.xlu1 %v9707_v23, %s13792_s27  ;;  %v2370_v11 = vadd.f32 %v7550_v56, %v9695_v7 }
 0x800   : > { %v9823_v3 = vmul.f32 0.16666667, %v2566_v51  ;;  %v2373_v61 = vmul.f32 1.2, %v2355_v15  ;;  %v2375_v21 = vmul.f32 1.2, %v2365_v48 }
 0x801   : > { %2863 = vrot.lane.b32.xlu0 %v9703_v60, %s13793_s30  ;;  %v2378_v42 = vadd.f32 3.0, %v2374_v50  ;;  %v2376_v52 = vmul.f32 1.2, %v2370_v11 }
 0x802   : > { %v2377_v51 = vadd.f32 3.0, %v2373_v61  ;;  %v2379_v25 = vadd.f32 3.0, %v2375_v21 }
 0x803   : > { %2865 = vrot.lane.b32.xlu1 %v9707_v23, %s13793_s30  ;;  %v2382_v56 = vmax.f32 %v2378_v42, 0.0  ;;  %v2380_v44 = vadd.f32 3.0, %v2376_v52 }
 0x804   : > { %v2381_v39 = vmax.f32 %v2377_v51, 0.0  ;;  %v2383_v19 = vmax.f32 %v2379_v25, 0.0 }
 0x805   : > { %2591 = vrot.lane.b32.xlu0 %v9741_v30, %s13787_s14  ;;  %v2386_v11 = vmin.f32 %v2382_v56, 6.0  ;;  %v2384_v38 = vmax.f32 %v2380_v44, 0.0 }
 0x806   : > { %v2385_v48 = vmin.f32 %v2381_v39, 6.0  ;;  %v2387_v35 = vmin.f32 %v2383_v19, 6.0 }
 0x807   : > { %2593 = vrot.lane.b32.xlu1 %v9745_v9, %s13787_s14  ;;  %v2390_v52 = vmul.f32 0.16666667, %v2386_v11  ;;  %v2388_v28 = vmin.f32 %v2384_v38, 6.0 }
 0x808   : > { %v2389_v21 = vmul.f32 0.16666667, %v2385_v48  ;;  %v2391_v25 = vmul.f32 0.16666667, %v2387_v35 }
 0x809   : > { %2631 = vrot.lane.b32.xlu0 %v9741_v30, %s13786_s17  ;;  %v2392_v56 = vmul.f32 0.16666667, %v2388_v28 }
 0x80b   : > { %2633 = vrot.lane.b32.xlu1 %v9745_v9, %s13786_s17 }
 0x80d   : > { %2671 = vrot.lane.b32.xlu0 %v9741_v30, %s13788_s20 }
 0x80f   : > { %2673 = vrot.lane.b32.xlu1 %v9745_v9, %s13788_s20 }
 0x811   : > { %2711 = vrot.lane.b32.xlu0 %v9741_v30, %s13789_s19 }
 0x813   : > { %2713 = vrot.lane.b32.xlu1 %v9745_v9, %s13789_s19 }
 0x815   : > { %2751 = vrot.lane.b32.xlu0 %v9741_v30, %s13790_s18 }
 0x817   : > { %2753 = vrot.lane.b32.xlu1 %v9745_v9, %s13790_s18 }
 0x819   : > { %2791 = vrot.lane.b32.xlu0 %v9741_v30, %s13791_s23 }
 0x81b   : > { %2793 = vrot.lane.b32.xlu1 %v9745_v9, %s13791_s23 }
 0x81d   : > { %2831 = vrot.lane.b32.xlu0 %v9741_v30, %s13792_s27 }
 0x81f   : > { %2833 = vrot.lane.b32.xlu1 %v9745_v9, %s13792_s27 }
 0x821   : > { %2871 = vrot.lane.b32.xlu0 %v9741_v30, %s13793_s30 }
 0x823   : > { %2873 = vrot.lane.b32.xlu1 %v9745_v9, %s13793_s30 }
 0x825   : > { %2587 = vrot.lane.b32.xlu0 %v9779_v13, %s13787_s14 }
 0x827   : > { %2589 = vrot.lane.b32.xlu1 %v9783_v4, %s13787_s14 }
 0x829   : > { %2627 = vrot.lane.b32.xlu0 %v9779_v13, %s13786_s17 }
 0x82b   : > { %2629 = vrot.lane.b32.xlu1 %v9783_v4, %s13786_s17 }
 0x82d   : > { %2667 = vrot.lane.b32.xlu0 %v9779_v13, %s13788_s20 }
 0x82f   : > { %2669 = vrot.lane.b32.xlu1 %v9783_v4, %s13788_s20 }
 0x831   : > { %2707 = vrot.lane.b32.xlu0 %v9779_v13, %s13789_s19 }
 0x833   : > { %2709 = vrot.lane.b32.xlu1 %v9783_v4, %s13789_s19 }
 0x835   : > { %2747 = vrot.lane.b32.xlu0 %v9779_v13, %s13790_s18 }
 0x837   : > { %2749 = vrot.lane.b32.xlu1 %v9783_v4, %s13790_s18 }
 0x839   : > { %2787 = vrot.lane.b32.xlu0 %v9779_v13, %s13791_s23 }
 0x83b   : > { %2789 = vrot.lane.b32.xlu1 %v9783_v4, %s13791_s23 }
 0x83d   : > { %2827 = vrot.lane.b32.xlu0 %v9779_v13, %s13792_s27 }
 0x83f   : > { %2829 = vrot.lane.b32.xlu1 %v9783_v4, %s13792_s27 }
 0x841   : > { %2867 = vrot.lane.b32.xlu0 %v9779_v13, %s13793_s30 }
 0x843   : > { %2869 = vrot.lane.b32.xlu1 %v9783_v4, %s13793_s30 }
 0x845   : > { %2595 = vrot.lane.b32.xlu0 %v9819_v12, %s13787_s14 }
 0x847   : > { %2597 = vrot.lane.b32.xlu1 %v9823_v3, %s13787_s14 }
 0x849   : > { %2635 = vrot.lane.b32.xlu0 %v9819_v12, %s13786_s17 }
 0x84b   : > { %2637 = vrot.lane.b32.xlu1 %v9823_v3, %s13786_s17 }
 0x84d   : > { %2675 = vrot.lane.b32.xlu0 %v9819_v12, %s13788_s20 }
 0x84f   : > { %2677 = vrot.lane.b32.xlu1 %v9823_v3, %s13788_s20 }
 0x851   : > { %2715 = vrot.lane.b32.xlu0 %v9819_v12, %s13789_s19 }
 0x853   : > { %2717 = vrot.lane.b32.xlu1 %v9823_v3, %s13789_s19 }
 0x855   : > { %2755 = vrot.lane.b32.xlu0 %v9819_v12, %s13790_s18 }
 0x857   : > { %2757 = vrot.lane.b32.xlu1 %v9823_v3, %s13790_s18  ;;  %v2584_v15 = vpop.permute.xlu0 %2583 }
 0x859   : > { %v2586_v46 = vpop.permute.xlu1 %2585  ;;  %2795 = vrot.lane.b32.xlu0 %v9819_v12, %s13791_s23 }
 0x85b   : > { %2797 = vrot.lane.b32.xlu1 %v9823_v3, %s13791_s23  ;;  %v2624_v7 = vpop.permute.xlu0 %2623 }
 0x85d   : > { %v2626_v61 = vpop.permute.xlu1 %2625  ;;  %2835 = vrot.lane.b32.xlu0 %v9819_v12, %s13792_s27 }
 0x85f   : > { %2837 = vrot.lane.b32.xlu1 %v9823_v3, %s13792_s27  ;;  %v2664_v50 = vpop.permute.xlu0 %2663 }
 0x861   : > { %v2666_v51 = vpop.permute.xlu1 %2665  ;;  %2875 = vrot.lane.b32.xlu0 %v9819_v12, %s13793_s30 }
 0x863   : > { %2877 = vrot.lane.b32.xlu1 %v9823_v3, %s13793_s30  ;;  %v2704_v42 = vpop.permute.xlu0 %2703 }
 0x865   : > { %v2706_v39 = vpop.permute.xlu1 %2705  ;;  %2395 = vperm.xlu0 %7532, %v2389_v21  }
 0x867   : > { %2400 = vperm.xlu1 %7533, %v2390_v52   ;;  %v9873_v0 = vpop.permute.xlu0 %2743 }
 0x869   : > { %v9875_v44 = vpop.permute.xlu1 %2745  ;;  %2405 = vperm.xlu0 %7532, %v2391_v25  }
 0x86b   : > { %2410 = vperm.xlu1 %7533, %v2392_v56   ;;  %v9877_v14 = vpop.permute.xlu0 %2783 }
 0x86d   : > { %v9879_v19 = vpop.permute.xlu1 %2785 }
 0x86f   : > { %v9881_v48 = vpop.permute.xlu0 %2823 }
 0x871   : > { %v9883_v24 = vpop.permute.xlu1 %2825 }
 0x873   : > { %v9885_v38 = vpop.permute.xlu0 %2863 }
 0x875   : > { %v9887_v11 = vpop.permute.xlu1 %2865 }
 0x877   : > { %v2592_v35 = vpop.permute.xlu0 %2591 }
 0x878   : > { %v2599_v28 = vsel %vm1036_vm1, %v2584_v15, %v2592_v35  ;;  %v2603_v25 = vsel %vm1036_vm1, %v2592_v35, %v2584_v15  ;;  %v2576_v15 = vmul.f32 %v9741_v30, %v13885_v55  ;;  %v13886_v35 = vld [vmem:[#allocation63_spill] sm:$0xff] }
 0x879   : > { %v2594_v21 = vpop.permute.xlu1 %2593  ;;  %v2607_v16 = vmul.f32 %v2603_v25, %v13883_v47  ;;  %v2608_v8 = vmul.f32 %v2599_v28, %v13884_v33  ;;  %v2575_v37 = vmul.f32 %v9703_v60, %v13886_v35  ;;  %v13887_v33 = vld [vmem:[#allocation67_spill] sm:$0xff] }
 0x87a   : > { %v2600_v36 = vsel %vm1036_vm1, %v2586_v46, %v2594_v21  ;;  %v2604_v10 = vsel %vm1036_vm1, %v2594_v21, %v2586_v46 }
 0x87b   : > { %v2632_v52 = vpop.permute.xlu0 %2631  ;;  %v2609_v46 = vmul.f32 %v2604_v10, %v13816_v22  ;;  %v2610_v21 = vmul.f32 %v2600_v36, %v13817_v5  ;;  %v2615_v10 = vadd.f32 %v2607_v16, %v2575_v37  ;;  %v2616_v22 = vadd.f32 %v2608_v8, %v2576_v15 }
 0x87c   : > { %v2639_v45 = vsel %vm1077_vm2, %v2624_v7, %v2632_v52  ;;  %v2643_v58 = vsel %vm1077_vm2, %v2632_v52, %v2624_v7  ;;  %v13888_v7 = vld [vmem:[#allocation68_spill] sm:$0xff]  ;;  %v2578_v36 = vmul.f32 %v9745_v9, %v13815_v63  ;;  %v2577_v5 = vmul.f32 %v9707_v23, %v13814_v57 }
 0x87d   : > { %v2634_v56 = vpop.permute.xlu1 %2633  ;;  %v2647_v47 = vmul.f32 %v2643_v58, %v13887_v33  ;;  %v2648_v52 = vmul.f32 %v2639_v45, %v13888_v7 }
 0x87e   : > { %v2640_v28 = vsel %vm1077_vm2, %v2626_v61, %v2634_v56  ;;  %v2644_v25 = vsel %vm1077_vm2, %v2634_v56, %v2626_v61  ;;  %v2617_v9 = vadd.f32 %v2609_v46, %v2577_v5 }
 0x87f   : > { %v2672_v27 = vpop.permute.xlu0 %2671  ;;  %v2649_v61 = vmul.f32 %v2644_v25, %v13819_v49  ;;  %v2650_v58 = vmul.f32 %v2640_v28, %v13820_v53  ;;  %v2655_v15 = vadd.f32 %v2647_v47, %v2615_v10  ;;  %v2656_v28 = vadd.f32 %v2648_v52, %v2616_v22  ;;  %v13889_v53 = vld [vmem:[#allocation77_spill] sm:$0xff] }
 0x880   : > { %v2679_v30 = vsel %vm1118_vm3, %v2664_v50, %v2672_v27  ;;  %v2683_v60 = vsel %vm1118_vm3, %v2672_v27, %v2664_v50  ;;  %v2618_v50 = vadd.f32 %v2610_v21, %v2578_v36 }
 0x881   : > { %v2674_v2 = vpop.permute.xlu1 %2673  ;;  %v2687_v16 = vmul.f32 %v2683_v60, %v13802_v40  ;;  %v2688_v37 = vmul.f32 %v2679_v30, %v13803_v17  ;;  %v2657_v60 = vadd.f32 %v2649_v61, %v2617_v9  ;;  %v13890_v40 = vld [vmem:[#allocation75_spill] sm:$0xff]  ;;  %v13894_v9 = vld [vmem:[#allocation80_spill] sm:$0xff] }
 0x882   : > { %v2680_v45 = vsel %vm1118_vm3, %v2666_v51, %v2674_v2  ;;  %v2684_v56 = vsel %vm1118_vm3, %v2674_v2, %v2666_v51  ;;  %v2658_v17 = vadd.f32 %v2650_v58, %v2618_v50 }
 0x883   : > { %v2712_v35 = vpop.permute.xlu0 %2711  ;;  %v2689_v49 = vmul.f32 %v2684_v56, %v13889_v53  ;;  %v2690_v2 = vmul.f32 %v2680_v45, %v13822_v54  ;;  %v2695_v47 = vadd.f32 %v2687_v16, %v2655_v15  ;;  %v2696_v22 = vadd.f32 %v2688_v37, %v2656_v28  ;;  %v13895_v28 = vld [vmem:[#allocation85_spill] sm:$0xff] }
 0x884   : > { %v2719_v8 = vsel %vm1159_vm4, %v2704_v42, %v2712_v35  ;;  %v2723_v23 = vsel %vm1159_vm4, %v2712_v35, %v2704_v42  ;;  %v13891_v42 = vld [vmem:[#allocation76_spill] sm:$0xff] }
 0x885   : > { %v2714_v27 = vpop.permute.xlu1 %2713  ;;  %v2727_v57 = vmul.f32 %v2723_v23, %v13890_v40  ;;  %v2728_v5 = vmul.f32 %v2719_v8, %v13891_v42  ;;  %v2697_v45 = vadd.f32 %v2689_v49, %v2657_v60  ;;  %v2698_v56 = vadd.f32 %v2690_v2, %v2658_v17  ;;  %v13893_v8 = vld [vmem:[#allocation79_spill] sm:$0xff] }
 0x886   : > { %v2720_v51 = vsel %vm1159_vm4, %v2706_v39, %v2714_v27  ;;  %v2724_v30 = vsel %vm1159_vm4, %v2714_v27, %v2706_v39  ;;  %v13892_v39 = vld [vmem:[#allocation82_spill] sm:$0xff]  ;;  %v13896_v2 = vld [vmem:[#allocation83_spill] sm:$0xff] }
 0x887   : > { %v2752_v25 = vpop.permute.xlu0 %2751  ;;  %v2729_v52 = vmul.f32 %v2724_v30, %v13823_v29  ;;  %v2730_v10 = vmul.f32 %v2720_v51, %v13892_v39  ;;  %v2735_v16 = vadd.f32 %v2727_v57, %v2695_v47  ;;  %v2736_v37 = vadd.f32 %v2728_v5, %v2696_v22  ;;  %v13897_v30 = vld [vmem:[#allocation84_spill] sm:$0xff] }
 0x888   : > { %v2759_v46 = vsel %vm1200_vm5, %v9873_v0, %v2752_v25  ;;  %v2763_v21 = vsel %vm1200_vm5, %v2752_v25, %v9873_v0  ;;  %v13899_v22 = vld [vmem:[#allocation88_spill] sm:$0xff] }
 0x889   : > { %v2754_v35 = vpop.permute.xlu1 %2753  ;;  %v2767_v23 = vmul.f32 %v2759_v46, %v13893_v8  ;;  %v2768_v50 = vmul.f32 %v2763_v21, %v13894_v9  ;;  %v2738_v57 = vadd.f32 %v2730_v10, %v2698_v56  ;;  %v13900_v10 = vld [vmem:[#allocation89_spill] sm:$0xff] }
 0x88a   : > { %v2760_v36 = vsel %vm1200_vm5, %v9875_v44, %v2754_v35  ;;  %v2764_v61 = vsel %vm1200_vm5, %v2754_v35, %v9875_v44  ;;  %v13898_v35 = vld [vmem:[#allocation87_spill] sm:$0xff] }
 0x88b   : > { %v2792_v58 = vpop.permute.xlu0 %2791  ;;  %v2769_v44 = vmul.f32 %v2760_v36, %v13895_v28  ;;  %v2770_v49 = vmul.f32 %v2764_v61, %v13826_v26 }
 0x88c   : > { %v2799_v27 = vsel %vm1241_vm6, %v9877_v14, %v2792_v58  ;;  %v2803_v0 = vsel %vm1241_vm6, %v2792_v58, %v9877_v14  ;;  %v2737_v14 = vadd.f32 %v2729_v52, %v2697_v45  ;;  %v2776_v52 = vadd.f32 %v2768_v50, %v2736_v37  ;;  %v13901_v58 = vld [vmem:[#allocation90_spill] sm:$0xff]  ;;  %v13903_v37 = vld [vmem:[#allocation92_spill] sm:$0xff] }
 0x88d   : > { %v2794_v15 = vpop.permute.xlu1 %2793  ;;  %v2807_v51 = vmul.f32 %v2799_v27, %v13896_v2  ;;  %v2808_v60 = vmul.f32 %v2803_v0, %v13897_v30  ;;  %v2778_v0 = vadd.f32 %v2770_v49, %v2738_v57 }
 0x88e   : > { %v2800_v17 = vsel %vm1241_vm6, %v9879_v19, %v2794_v15  ;;  %v2804_v25 = vsel %vm1241_vm6, %v2794_v15, %v9879_v19  ;;  %v2775_v19 = vadd.f32 %v2767_v23, %v2735_v16  ;;  %v2777_v27 = vadd.f32 %v2769_v44, %v2737_v14 }
 0x88f   : > { %v2832_v5 = vpop.permute.xlu0 %2831  ;;  %v2809_v47 = vmul.f32 %v2800_v17, %v13898_v35  ;;  %v2810_v46 = vmul.f32 %v2804_v25, %v13899_v22  ;;  %v2816_v22 = vadd.f32 %v2808_v60, %v2776_v52  ;;  %v13905_v60 = vld [vmem:[#allocation94_spill] sm:$0xff] }
 0x890   : > { %v2839_v21 = vsel %vm1282_vm7, %v9881_v48, %v2832_v5  ;;  %v2843_v36 = vsel %vm1282_vm7, %v2832_v5, %v9881_v48  ;;  %v2815_v25 = vadd.f32 %v2807_v51, %v2775_v19  ;;  %v13902_v48 = vld [vmem:[#allocation91_spill] sm:$0xff] }
 0x891   : > { %v2847_v61 = vmul.f32 %v2839_v21, %v13900_v10  ;;  %v2848_v45 = vmul.f32 %v2843_v36, %v13901_v58  ;;  %v2834_v56 = vpop.permute.xlu1 %2833  ;;  %v2817_v5 = vadd.f32 %v2809_v47, %v2777_v27  ;;  %v2818_v21 = vadd.f32 %v2810_v46, %v2778_v0  ;;  %v13916_v10 = vld [vmem:[#allocation16_spill] sm:$0xff] }
 0x892   : > { %v2840_v15 = vsel %vm1282_vm7, %v9883_v24, %v2834_v56  ;;  %v2844_v17 = vsel %vm1282_vm7, %v2834_v56, %v9883_v24  ;;  %v13904_v24 = vld [vmem:[#allocation93_spill] sm:$0xff] }
 0x893   : > { %v2849_v16 = vmul.f32 %v2840_v15, %v13902_v48  ;;  %v2850_v23 = vmul.f32 %v2844_v17, %v13903_v37  ;;  %v2872_v50 = vpop.permute.xlu0 %2871  ;;  %v2855_v14 = vadd.f32 %v2847_v61, %v2815_v25  ;;  %v2856_v57 = vadd.f32 %v2848_v45, %v2816_v22  ;;  %v13907_v22 = vld [vmem:[#allocation96_spill] sm:$0xff] }
 0x894   : > { %v2879_v44 = vsel %vm1323_vm8, %v9885_v38, %v2872_v50  ;;  %v2883_v49 = vsel %vm1323_vm8, %v2872_v50, %v9885_v38  ;;  %v13906_v38 = vld [vmem:[#allocation95_spill] sm:$0xff] }
 0x895   : > { %v2887_v51 = vmul.f32 %v2879_v44, %v13904_v24  ;;  %v2888_v36 = vmul.f32 %v2883_v49, %v13905_v60  ;;  %v2874_v19 = vpop.permute.xlu1 %2873  ;;  %v2857_v52 = vadd.f32 %v2849_v16, %v2817_v5  ;;  %v2858_v56 = vadd.f32 %v2850_v23, %v2818_v21  ;;  %v13908_v16 = vld [vmem:[#allocation37_spill] sm:$0xff]  ;;  %v13909_v60 = vld [vmem:[#allocation38_spill] sm:$0xff] }
 0x896   : > { %v2880_v47 = vsel %vm1323_vm8, %v9887_v11, %v2874_v19  ;;  %v2884_v46 = vsel %vm1323_vm8, %v2874_v19, %v9887_v11 }
 0x897   : > { %v2895_v27 = vadd.f32 %v2887_v51, %v2855_v14  ;;  %v2896_v0 = vadd.f32 %v2888_v36, %v2856_v57  ;;  %v2889_v61 = vmul.f32 %v2880_v47, %v13906_v38  ;;  %v2890_v45 = vmul.f32 %v2884_v46, %v13907_v22  ;;  %v2588_v15 = vpop.permute.xlu0 %2587 }
 0x899   : > { %v2897_v17 = vadd.f32 %v2889_v61, %v2857_v52  ;;  %v2898_v25 = vadd.f32 %v2890_v45, %v2858_v56  ;;  %v2590_v50 = vpop.permute.xlu1 %2589  ;;  %v2903_v23 = vadd.f32 %v2895_v27, %v13908_v16  ;;  %v2904_v5 = vadd.f32 %v2896_v0, %v13908_v16 }
 0x89b   : > { %v2628_v21 = vpop.permute.xlu0 %2627  ;;  %v2911_v44 = vadd.f32 3.0, %v2903_v23  ;;  %v2912_v49 = vadd.f32 3.0, %v2904_v5  ;;  %v2905_v24 = vadd.f32 %v2897_v17, %v13909_v60  ;;  %v2906_v11 = vadd.f32 %v2898_v25, %v13909_v60 }
 0x89d   : > { %v2630_v14 = vpop.permute.xlu1 %2629  ;;  %v2919_v57 = vmax.f32 %v2911_v44, 0.0  ;;  %v2920_v51 = vmax.f32 %v2912_v49, 0.0  ;;  %v2913_v36 = vadd.f32 3.0, %v2905_v24  ;;  %v2914_v19 = vadd.f32 3.0, %v2906_v11 }
 0x89f   : > { %v2668_v47 = vpop.permute.xlu0 %2667  ;;  %v2927_v52 = vmin.f32 %v2919_v57, 6.0  ;;  %v2928_v56 = vmin.f32 %v2920_v51, 6.0  ;;  %v2921_v46 = vmax.f32 %v2913_v36, 0.0  ;;  %v2922_v61 = vmax.f32 %v2914_v19, 0.0 }
 0x8a1   : > { %v2670_v27 = vpop.permute.xlu1 %2669  ;;  %v2935_v45 = vmul.f32 %v2927_v52, %v2903_v23  ;;  %v2936_v0 = vmul.f32 %v2928_v56, %v2904_v5  ;;  %v2929_v16 = vmin.f32 %v2921_v46, 6.0  ;;  %v2930_v22 = vmin.f32 %v2922_v61, 6.0 }
 0x8a3   : > { %v2708_v38 = vpop.permute.xlu0 %2707  ;;  %v10013_v37 = vmul.f32 0.16666667, %v2935_v45  ;;  %v10015_v17 = vmul.f32 0.16666667, %v2936_v0  ;;  %v2937_v25 = vmul.f32 %v2929_v16, %v2905_v24  ;;  %v2938_v44 = vmul.f32 %v2930_v22, %v2906_v11 }
 0x8a5   : > { %13910 = vst [vmem:[#allocation25_spill] sm:$0xff] %v10013_v37  ;;  %13911 = vst [vmem:[#allocation32_spill] sm:$0xff] %v10015_v17  ;;  %v2710_v49 = vpop.permute.xlu1 %2709  ;;  %v2951_v60 = vadd.f32 %v10015_v17, %v10013_v37  ;;  %v10019_v57 = vmul.f32 0.16666667, %v2937_v25  ;;  %v10021_v51 = vmul.f32 0.16666667, %v2938_v44 }
 0x8a6   : > { %v13915_v17 = vld [vmem:[#allocation43_spill] sm:$0xff] }
 0x8a7   : > { %13912 = vst [vmem:[#allocation26_spill] sm:$0xff] %v10019_v57  ;;  %13913 = vst [vmem:[#allocation34_spill] sm:$0xff] %v10021_v51  ;;  %v10023_v36 = vpop.permute.xlu0 %2747  ;;  %2952 = vadd.xlane.f32.xlu0 %v2951_v60  ;;  %v2954_v23 = vadd.f32 %v10021_v51, %v10019_v57  ;;  %v13914_v51 = vld [vmem:[#allocation15_spill] sm:$0xff] }
 0x8a9   : > { %v10027_v5 = vpop.permute.xlu1 %2749  ;;  %2955 = vadd.xlane.f32.xlu1 %v2954_v23 }
 0x8ab   : > { %v10029_v19 = vpop.permute.xlu0 %2787 }
 0x8ad   : > { %v10031_v24 = vpop.permute.xlu1 %2789 }
 0x8af   : > { %v10033_v22 = vpop.permute.xlu0 %2827 }
 0x8b1   : > { %v10035_v16 = vpop.permute.xlu1 %2829 }
 0x8b3   : > { %v10037_v11 = vpop.permute.xlu0 %2867 }
 0x8b5   : > { %v10039_v52 = vpop.permute.xlu1 %2869 }
 0x8b7   : > { %v2596_v56 = vpop.permute.xlu0 %2595 }
 0x8b8   : > { %v2601_v61 = vsel %vm1036_vm1, %v2588_v15, %v2596_v56  ;;  %v2605_v45 = vsel %vm1036_vm1, %v2596_v56, %v2588_v15  ;;  %v2579_v15 = vmul.f32 %v9779_v13, %v13916_v10  ;;  %v13917_v56 = vld [vmem:[#allocation17_spill] sm:$0xff] }
 0x8b9   : > { %v2598_v60 = vpop.permute.xlu1 %2597  ;;  %v2611_v57 = vmul.f32 %v2605_v45, %v13914_v51  ;;  %v2612_v37 = vmul.f32 %v2601_v61, %v13915_v17  ;;  %v2580_v35 = vmul.f32 %v9819_v12, %v13917_v56  ;;  %v13918_v17 = vld [vmem:[#allocation46_spill] sm:$0xff] }
 0x8ba   : > { %v2602_v25 = vsel %vm1036_vm1, %v2590_v50, %v2598_v60  ;;  %v2606_v44 = vsel %vm1036_vm1, %v2598_v60, %v2590_v50 }
 0x8bb   : > { %v2636_v46 = vpop.permute.xlu0 %2635  ;;  %v2613_v50 = vmul.f32 %v2606_v44, %v13842_v20  ;;  %v2614_v60 = vmul.f32 %v2602_v25, %v13843_v6  ;;  %v2619_v44 = vadd.f32 %v2611_v57, %v2579_v15  ;;  %v2620_v20 = vadd.f32 %v2612_v37, %v2580_v35  ;;  %v13921_v35 = vld [vmem:[#allocation21_spill] sm:$0xff] }
 0x8bc   : > { %v2641_v48 = vsel %vm1077_vm2, %v2628_v21, %v2636_v46  ;;  %v2645_v58 = vsel %vm1077_vm2, %v2636_v46, %v2628_v21  ;;  %v13919_v21 = vld [vmem:[#allocation19_spill] sm:$0xff]  ;;  %v2581_v25 = vmul.f32 %v9783_v4, %v8819_v43  ;;  %v2582_v6 = vmul.f32 %v9823_v3, %v13841_v31 }
 0x8bd   : > { %v2638_v0 = vpop.permute.xlu1 %2637  ;;  %v2651_v51 = vmul.f32 %v2645_v58, %v13918_v17  ;;  %v2652_v46 = vmul.f32 %v2641_v48, %v13919_v21 }
 0x8be   : > { %v2642_v61 = vsel %vm1077_vm2, %v2630_v14, %v2638_v0  ;;  %v2646_v45 = vsel %vm1077_vm2, %v2638_v0, %v2630_v14  ;;  %v2621_v15 = vadd.f32 %v2613_v50, %v2581_v25 }
 0x8bf   : > { %v2676_v23 = vpop.permute.xlu0 %2675  ;;  %v2653_v14 = vmul.f32 %v2646_v45, %v13844_v34  ;;  %v2654_v58 = vmul.f32 %v2642_v61, %v13845_v1  ;;  %v2622_v45 = vadd.f32 %v2614_v60, %v2582_v6  ;;  %v2659_v61 = vadd.f32 %v2651_v51, %v2619_v44  ;;  %v13922_v60 = vld [vmem:[#allocation54_spill] sm:$0xff] }
 0x8c0   : > { %v2681_v13 = vsel %vm1118_vm3, %v2668_v47, %v2676_v23  ;;  %v2685_v12 = vsel %vm1118_vm3, %v2676_v23, %v2668_v47  ;;  %v13920_v23 = vld [vmem:[#allocation18_spill] sm:$0xff]  ;;  %v2660_v1 = vadd.f32 %v2652_v46, %v2620_v20 }
 0x8c1   : > { %v2678_v30 = vpop.permute.xlu1 %2677  ;;  %v2691_v57 = vmul.f32 %v2685_v12, %v13920_v23  ;;  %v2692_v37 = vmul.f32 %v2681_v13, %v13921_v35  ;;  %v2661_v12 = vadd.f32 %v2653_v14, %v2621_v15  ;;  %v2662_v35 = vadd.f32 %v2654_v58, %v2622_v45  ;;  %v13926_v45 = vld [vmem:[#allocation56_spill] sm:$0xff] }
 0x8c2   : > { %v2682_v48 = vsel %vm1118_vm3, %v2670_v27, %v2678_v30  ;;  %v2686_v0 = vsel %vm1118_vm3, %v2678_v30, %v2670_v27 }
 0x8c3   : > { %v2716_v56 = vpop.permute.xlu0 %2715  ;;  %v2693_v31 = vmul.f32 %v2686_v0, %v8852_v62  ;;  %v2694_v30 = vmul.f32 %v2682_v48, %v8856_v32  ;;  %v2699_v51 = vadd.f32 %v2691_v57, %v2659_v61  ;;  %v2700_v20 = vadd.f32 %v2692_v37, %v2660_v1  ;;  %v13924_v57 = vld [vmem:[#allocation22_spill] sm:$0xff]  ;;  %v13927_v61 = vld [vmem:[#allocation57_spill] sm:$0xff] }
 0x8c4   : > { %v2721_v4 = vsel %vm1159_vm4, %v2708_v38, %v2716_v56  ;;  %v2725_v3 = vsel %vm1159_vm4, %v2716_v56, %v2708_v38 }
 0x8c5   : > { %v2718_v47 = vpop.permute.xlu1 %2717  ;;  %v2731_v23 = vmul.f32 %v2725_v3, %v8844_v41  ;;  %v2732_v38 = vmul.f32 %v2721_v4, %v8848_v18  ;;  %v2701_v58 = vadd.f32 %v2693_v31, %v2661_v12  ;;  %v2702_v48 = vadd.f32 %v2694_v30, %v2662_v35  ;;  %v13925_v4 = vld [vmem:[#allocation27_spill] sm:$0xff]  ;;  %v13929_v12 = vld [vmem:[#allocation29_spill] sm:$0xff] }
 0x8c6   : > { %v2722_v27 = vsel %vm1159_vm4, %v2710_v49, %v2718_v47  ;;  %v2726_v13 = vsel %vm1159_vm4, %v2718_v47, %v2710_v49  ;;  %v13923_v49 = vld [vmem:[#allocation55_spill] sm:$0xff]  ;;  %v13968_v41 = vld [vmem:[#allocation65_spill] sm:$0xff] }
 0x8c7   : > { %v2756_v34 = vpop.permute.xlu0 %2755  ;;  %v2733_v46 = vmul.f32 %v2726_v13, %v13922_v60  ;;  %v2734_v44 = vmul.f32 %v2722_v27, %v13923_v49  ;;  %v2740_v47 = vadd.f32 %v2732_v38, %v2700_v20  ;;  %v13928_v27 = vld [vmem:[#allocation24_spill] sm:$0xff] }
 0x8c8   : > { %v2761_v56 = vsel %vm1200_vm5, %v10023_v36, %v2756_v34  ;;  %v2765_v50 = vsel %vm1200_vm5, %v2756_v34, %v10023_v36  ;;  %v2739_v36 = vadd.f32 %v2731_v23, %v2699_v51  ;;  %v13930_v51 = vld [vmem:[#allocation28_spill] sm:$0xff] }
 0x8c9   : > { %v2758_v6 = vpop.permute.xlu1 %2757  ;;  %v2771_v37 = vmul.f32 %v2761_v56, %v13924_v57  ;;  %v2772_v3 = vmul.f32 %v2765_v50, %v13925_v4  ;;  %v2742_v23 = vadd.f32 %v2734_v44, %v2702_v48  ;;  %v13931_v56 = vld [vmem:[#allocation30_spill] sm:$0xff]  ;;  %v13932_v44 = vld [vmem:[#allocation31_spill] sm:$0xff] }
 0x8ca   : > { %v2762_v25 = vsel %vm1200_vm5, %v10027_v5, %v2758_v6  ;;  %v2766_v1 = vsel %vm1200_vm5, %v2758_v6, %v10027_v5 }
 0x8cb   : > { %v2796_v14 = vpop.permute.xlu0 %2795  ;;  %v2773_v5 = vmul.f32 %v2762_v25, %v13926_v45  ;;  %v2774_v31 = vmul.f32 %v2766_v1, %v13927_v61  ;;  %v13966_v45 = vld [vmem:[#allocation62_spill] sm:$0xff] }
 0x8cc   : > { %v2801_v0 = vsel %vm1241_vm6, %v10029_v19, %v2796_v14  ;;  %v2805_v34 = vsel %vm1241_vm6, %v2796_v14, %v10029_v19  ;;  %v2741_v19 = vadd.f32 %v2733_v46, %v2701_v58  ;;  %v2780_v46 = vadd.f32 %v2772_v3, %v2740_v47  ;;  %v13933_v58 = vld [vmem:[#allocation58_spill] sm:$0xff]  ;;  %v13935_v47 = vld [vmem:[#allocation99_spill] sm:$0xff] }
 0x8cd   : > { %v2798_v15 = vpop.permute.xlu1 %2797  ;;  %v2811_v13 = vmul.f32 %v2801_v0, %v13928_v27  ;;  %v2812_v38 = vmul.f32 %v2805_v34, %v13929_v12  ;;  %v13965_v27 = vld [vmem:[#allocation61_spill] sm:$0xff] }
 0x8ce   : > { %v2802_v35 = vsel %vm1241_vm6, %v10031_v24, %v2798_v15  ;;  %v2806_v30 = vsel %vm1241_vm6, %v2798_v15, %v10031_v24  ;;  %v2779_v24 = vadd.f32 %v2771_v37, %v2739_v36  ;;  %v2781_v34 = vadd.f32 %v2773_v5, %v2741_v19 }
 0x8cf   : > { %v2836_v6 = vpop.permute.xlu0 %2835  ;;  %v2813_v20 = vmul.f32 %v2802_v35, %v13930_v51  ;;  %v2814_v50 = vmul.f32 %v2806_v30, %v13931_v56  ;;  %v2782_v15 = vadd.f32 %v2774_v31, %v2742_v23  ;;  %v2820_v51 = vadd.f32 %v2812_v38, %v2780_v46  ;;  %v13937_v38 = vld [vmem:[#allocation35_spill] sm:$0xff] }
 0x8d0   : > { %v2841_v25 = vsel %vm1282_vm7, %v10033_v22, %v2836_v6  ;;  %v2845_v1 = vsel %vm1282_vm7, %v2836_v6, %v10033_v22  ;;  %v2819_v56 = vadd.f32 %v2811_v13, %v2779_v24  ;;  %v13934_v22 = vld [vmem:[#allocation33_spill] sm:$0xff] }
 0x8d1   : > { %v2851_v14 = vmul.f32 %v2841_v25, %v13932_v44  ;;  %v2852_v48 = vmul.f32 %v2845_v1, %v13933_v58  ;;  %v2838_v0 = vpop.permute.xlu1 %2837  ;;  %v2821_v6 = vadd.f32 %v2813_v20, %v2781_v34  ;;  %v2822_v25 = vadd.f32 %v2814_v50, %v2782_v15 }
 0x8d2   : > { %v2842_v35 = vsel %vm1282_vm7, %v10035_v16, %v2838_v0  ;;  %v2846_v30 = vsel %vm1282_vm7, %v2838_v0, %v10035_v16  ;;  %v13936_v16 = vld [vmem:[#allocation59_spill] sm:$0xff] }
 0x8d3   : > { %v2853_v36 = vmul.f32 %v2842_v35, %v13934_v22  ;;  %v2854_v37 = vmul.f32 %v2846_v30, %v13935_v47  ;;  %v2876_v3 = vpop.permute.xlu0 %2875  ;;  %v2859_v19 = vadd.f32 %v2851_v14, %v2819_v56  ;;  %v2860_v23 = vadd.f32 %v2852_v48, %v2820_v51  ;;  %v13939_v51 = vld [vmem:[#allocation100_spill] sm:$0xff]  ;;  %v13940_v30 = vld [vmem:[#allocation39_spill] sm:$0xff] }
 0x8d4   : > { %v2881_v5 = vsel %vm1323_vm8, %v10037_v11, %v2876_v3  ;;  %v2885_v31 = vsel %vm1323_vm8, %v2876_v3, %v10037_v11  ;;  %v13938_v11 = vld [vmem:[#allocation36_spill] sm:$0xff] }
 0x8d5   : > { %v2891_v13 = vmul.f32 %v2881_v5, %v13936_v16  ;;  %v2892_v1 = vmul.f32 %v2885_v31, %v13937_v38  ;;  %v2878_v24 = vpop.permute.xlu1 %2877  ;;  %v2861_v46 = vadd.f32 %v2853_v36, %v2821_v6  ;;  %v2862_v0 = vadd.f32 %v2854_v37, %v2822_v25  ;;  %v13941_v25 = vld [vmem:[#allocation40_spill] sm:$0xff] }
 0x8d6   : > { %v2882_v20 = vsel %vm1323_vm8, %v10039_v52, %v2878_v24  ;;  %v2886_v50 = vsel %vm1323_vm8, %v2878_v24, %v10039_v52 }
 0x8d7   : > { %v2899_v34 = vadd.f32 %v2891_v13, %v2859_v19  ;;  %v2900_v15 = vadd.f32 %v2892_v1, %v2860_v23  ;;  %v2893_v56 = vmul.f32 %v2882_v20, %v13938_v11  ;;  %v2894_v14 = vmul.f32 %v2886_v50, %v13939_v51 }
 0x8d9   : > { %v2901_v48 = vadd.f32 %v2893_v56, %v2861_v46  ;;  %v2902_v35 = vadd.f32 %v2894_v14, %v2862_v0  ;;  %v2907_v3 = vadd.f32 %v2899_v34, %v13940_v30  ;;  %v2908_v36 = vadd.f32 %v2900_v15, %v13940_v30 }
 0x8db   : > { %v2915_v37 = vadd.f32 3.0, %v2907_v3  ;;  %v2916_v6 = vadd.f32 3.0, %v2908_v36  ;;  %v2909_v5 = vadd.f32 %v2901_v48, %v13941_v25  ;;  %v2910_v31 = vadd.f32 %v2902_v35, %v13941_v25 }
 0x8dd   : > { %v2923_v38 = vmax.f32 %v2915_v37, 0.0  ;;  %v2924_v52 = vmax.f32 %v2916_v6, 0.0  ;;  %v2917_v19 = vadd.f32 3.0, %v2909_v5  ;;  %v2918_v23 = vadd.f32 3.0, %v2910_v31 }
 0x8df   : > { %v2931_v13 = vmin.f32 %v2923_v38, 6.0  ;;  %v2932_v1 = vmin.f32 %v2924_v52, 6.0  ;;  %v2925_v24 = vmax.f32 %v2917_v19, 0.0  ;;  %v2926_v20 = vmax.f32 %v2918_v23, 0.0  ;;  %v13946_v52 = vld [vmem:[#allocation97_spill] sm:$0xff]  ;;  %v13948_v23 = vld [vmem:[#allocation70_spill] sm:$0xff] }
 0x8e1   : > { %v2939_v46 = vmul.f32 %v2931_v13, %v2907_v3  ;;  %v2940_v0 = vmul.f32 %v2932_v1, %v2908_v36  ;;  %v2933_v50 = vmin.f32 %v2925_v24, 6.0  ;;  %v2934_v34 = vmin.f32 %v2926_v20, 6.0  ;;  %v13947_v36 = vld [vmem:[#allocation98_spill] sm:$0xff] }
 0x8e2   : > { %v13949_v1 = vld [vmem:[#allocation78_spill] sm:$0xff] }
 0x8e3   : > { %v10165_v56 = vmul.f32 0.16666667, %v2939_v46  ;;  %v10167_v15 = vmul.f32 0.16666667, %v2940_v0  ;;  %v2941_v14 = vmul.f32 %v2933_v50, %v2909_v5  ;;  %v2942_v48 = vmul.f32 %v2934_v34, %v2910_v31  ;;  %v13950_v50 = vld [vmem:[#allocation81_spill] sm:$0xff] }
 0x8e4   : > { %v2396_v30 = vpop.permute.xlu0 %2395 }
 0x8e5   : > { %13942 = vst [vmem:[#allocation77_spill] sm:$0xff] %v10165_v56  ;;  %13943 = vst [vmem:[#allocation75_spill] sm:$0xff] %v10167_v15  ;;  %v2957_v35 = vadd.f32 %v10167_v15, %v10165_v56  ;;  %v10171_v37 = vmul.f32 0.16666667, %v2941_v14  ;;  %v10173_v6 = vmul.f32 0.16666667, %v2942_v48  ;;  %v2413_v3 = vmul.f32 %v2396_v30, %v13946_v52 }
 0x8e6   : > { %v2401_v38 = vpop.permute.xlu1 %2400  ;;  %v2414_v19 = vmul.f32 %v2396_v30, %v13947_v36  ;;  %v13951_v14 = vld [vmem:[#allocation86_spill] sm:$0xff]  ;;  %v13952_v52 = vld [vmem:[#allocation101_spill] sm:$0xff] }
 0x8e7   : > { %13944 = vst [vmem:[#allocation76_spill] sm:$0xff] %v10171_v37  ;;  %13945 = vst [vmem:[#allocation82_spill] sm:$0xff] %v10173_v6  ;;  %v2415_v13 = vmul.f32 %v2401_v38, %v13948_v23  ;;  %v2416_v24 = vmul.f32 %v2401_v38, %v13949_v1  ;;  %2958 = vadd.xlane.f32.xlu0 %v2957_v35  ;;  %v2960_v31 = vadd.f32 %v10173_v6, %v10171_v37  ;;  %v13953_v30 = vld [vmem:[#allocation102_spill] sm:$0xff]  ;;  %v13954_v23 = vmov 0.0|0.0  }
 0x8e8   : > { %v2406_v5 = vpop.permute.xlu0 %2405 }
 0x8e9   : > { %v2421_v20 = vpack.c.bf16 %v2415_v13, %v2413_v3  ;;  %v2422_v46 = vpack.c.bf16 %v2416_v24, %v2414_v19  ;;  %2961 = vadd.xlane.f32.xlu1 %v2960_v31  ;;  %v2417_v34 = vmul.f32 %v2406_v5, %v13950_v50  ;;  %v2418_v48 = vmul.f32 %v2406_v5, %v13951_v14  ;;  %v7551_v3 = vld [vmem:[%s13193_s10] sm:$0xff]  }
 0x8ea   : > { %v2411_v0 = vpop.permute.xlu1 %2410  ;;  %v13955_v19 = vmov 0.0   ;;  %v7553_v14 = vld [vmem:[%s13191_s8] sm:$0xff] }
 0x8eb   : > { %v2419_v15 = vmul.f32 %v2411_v0, %v13952_v52  ;;  %v2420_v36 = vmul.f32 %v2411_v0, %v13953_v30  ;;  %2425 = vmatprep.subr.bf16.mxu1 %v2422_v46 }
 0x8ec   : > { %2426 = vmatpush1.bf16.msra.mxu1 %v2421_v20 }
 0x8ed   : > { %v2423_v38 = vpack.c.bf16 %v2419_v15, %v2417_v34  ;;  %v2424_v35 = vpack.c.bf16 %v2420_v36, %v2418_v48  ;;  %v7552_v34 = vld [vmem:[%s13189_s6] sm:$0xff] }
 0x8ef   : > { %2427 = vmatprep.subr.bf16.mxu1 %v2424_v35  ;;  %v3227_v35 = vld [vmem:[%s7945_s13 + $0x68] sm:$0xff] }
 0x8f0   : > { %2428 = vmatpush1.bf16.msra.mxu1 %v2423_v38 }
 0x8f1   : > { %7435 = vmatprep.subr.bf16.mxu1 %v13954_v23 }
 0x8f3   : > { %7132 = vmatmul.mubr.msk.bf16.vlgmr.msra.gmra.mrb[16].mxu1 %vm1432_vm10, %v7551_v3  ;;  %v3229_v3 = vld [vmem:[%s7945_s13 + $0x78] sm:$0xff] }
 0x8f4   : > { %7317 = vmatprep.mubr.msk.f32.mxu1 %vm7766_vm9, %v13955_v19 }
 0x934   : > { %v2953_v13 = vpop.xlane.xlu0 %2952 }
 0x935   : > { %v2963_v24 = vmul.f32 0.00390625, %v2953_v13  ;;  %v7554_v13 = vld [vmem:[%s13190_s7] sm:$0xff] }
 0x936   : > { %v2956_v1 = vpop.xlane.xlu1 %2955 }
 0x937   : > { %v2964_v5 = vmul.f32 0.00390625, %v2956_v1 }
 0x939   : > { %v7436_v31 = vpack.c.bf16 %v2964_v5, %v2963_v24  ;;  %v3226_v5 = vld [vmem:[%s7945_s13 + $0x60] sm:$0xff] }
 0x93b   : > { %7437 = vmatpush3.bf16.msra.mxu1 %v7436_v31  ;;  %v3228_v31 = vld [vmem:[%s7945_s13 + $0x70] sm:$0xff] }
 0x93c   : > { %7438 = vmatprep.subr.bf16.mxu1 %v13954_v23 }
 0x974   : > { %v2959_v15 = vpop.xlane.xlu0 %2958 }
 0x975   : > { %v2965_v46 = vmul.f32 0.00390625, %v2959_v15 }
 0x976   : > { %v2962_v20 = vpop.xlane.xlu1 %2961 }
 0x977   : > { %v2966_v0 = vmul.f32 0.00390625, %v2962_v20  ;;  %v3231_v20 = vpack.c.bf16 %v3229_v3, %v3227_v35  ;;  %v7559_v35 = vld [vmem:[%s13184_s1 + $0x8] sm:$0xff]  }
 0x979   : > { %v7439_v50 = vpack.c.bf16 %v2966_v0, %v2965_v46  ;;  %v3230_v46 = vpack.c.bf16 %v3228_v31, %v3226_v5  ;;  %v7555_v0 = vld [vmem:[%s13191_s8 + $0x8] sm:$0xff]  ;;  %v13961_v31 = vld [vmem:[#allocation11_spill] sm:$0xff] }
 0x97b   : > { %7440 = vmatpush3.bf16.msra.mxu1 %v7439_v50  ;;  %v7556_v50 = vld [vmem:[%s13191_s8 + $0x10] sm:$0xff] }
 0x97e   : > { %7318 = vmatmul.mubr.msk.f32.vlgmr.msra.gmra.mrb[6].mxu1 %vm1432_vm10, %v7552_v34  ;;  %v7557_v34 = vld [vmem:[%s13191_s8 + $0x18] sm:$0xff] }
 0x97f   : > { %7322 = vmatprep.mubr.msk.f32.mxu1 %vm1507_vm11, %v7553_v14  ;;  %v13960_v14 = vmov 0  }
 0x9c6   : > { %v10201_v48 = vpop.f32.mrb[16].mxu1 }
 0x9c7   : > { %13956 = vst [vmem:[#allocation79_spill] sm:$0xff] %v10201_v48  ;;  %v10203_v52 = vpop.f32.mrb[17].mxu1 }
 0x9c8   : > { %13957 = vst [vmem:[#allocation80_spill] sm:$0xff] %v10203_v52  ;;  %v10205_v30 = vpop.f32.mrb[18].mxu1 }
 0x9c9   : > { %13958 = vst [vmem:[#allocation85_spill] sm:$0xff] %v10205_v30  ;;  %v10207_v36 = vpop.f32.mrb[19].mxu1 }
 0x9ca   : > { %13959 = vst [vmem:[#allocation83_spill] sm:$0xff] %v10207_v36 }
 0xa51   : > { %v3033_v38 = vpop.f32.mrb[6].mxu1 }
 0xa52   : > { %v3034_v1 = vadd.f32 %v7554_v13, %v3033_v38  ;;  %v7319_v24 = vpop.f32.mrb[7].mxu1  ;;  %v7558_v38 = vld [vmem:[%s13184_s1] sm:$0xff]  }
 0xa54   : > { %v3037_v15 = vmax.f32 %v3034_v1, 0.0 }
 0xa56   : > { %7320 = vmatprep.subr.mxu1 %v3037_v15 }
 0xa57   : > { %7321 = vmatpush3.msra.mxu1 %v3037_v15 }
 0xa58   : > { %7323 = vmatmul.mubr.msk.f32.vlgmr.msra.gmra.mrb[20].mxu1 %vm1507_vm11, %v7555_v0  ;;  %3232 = vmatprep.subr.bf16.mxu1 %v3231_v20 }
 0xa59   : > { %7325 = vmatprep.mubr.msk.f32.mxu1 %vm1507_vm11, %v7556_v50  ;;  %3233 = vmatpush1.bf16.msra.mxu1 %v3230_v46  ;;  %v13962_v50 = vld [vmem:[#allocation13_spill] sm:$0xff] }
 0xa5c   : > { %7326 = vmatmul.mubr.msk.f32.gmra.mrb[22].mxu1 %vm1507_vm11, %v7557_v34 }
 0xa5d   : > { %3264 = vmatprep.mubr.bf16.mxu1 %v13960_v14 }
 0xa60   : > { %7141 = vmatmul.mubr.msk.bf16.vlgmr.msra.gmra.mrb[24].mxu1 %vm910_vm0, %v7558_v38 }
 0xa61   : > { %3274 = vmatprep.mubr.bf16.mxu1 %v13960_v14 }
 0xa68   : > { %7142 = vmatmul.mubr.msk.bf16.gmra.mrb[28].mxu1 %vm910_vm0, %v7559_v35 }
 0xa69   : > { %3957 = vmatprep.mubr.bf16.mxu1 %v13960_v14 }
 0xb2b   : > { %v10239_v3 = vpop.f32.mrb[20].mxu1 }
 0xb2c   : > { %v10241_v13 = vpop.f32.mrb[21].mxu1 }
 0xb2f   : > { %v10243_v1 = vpop.f32.mrb[22].mxu1 }
 0xb30   : > { %v10245_v24 = vpop.f32.mrb[23].mxu1 }
 0xb33   : > { %v3266_v5 = vpop.f32.mrb[24].mxu1 }
 0xb34   : > { %v3267_v15 = vadd.f32 %v3266_v5, %v13961_v31  ;;  %v3268_v20 = vpop.f32.mrb[25].mxu1 }
 0xb35   : > { %v3270_v46 = vpop.f32.mrb[26].mxu1 }
 0xb36   : > { %v3285_v0 = vadd.f32 3.0, %v3267_v15  ;;  %v3271_v34 = vadd.f32 %v3270_v46, %v13962_v50  ;;  %v3272_v38 = vpop.f32.mrb[27].mxu1 }
 0xb38   : > { %v3293_v35 = vmax.f32 %v3285_v0, 0.0  ;;  %v3287_v52 = vadd.f32 3.0, %v3271_v34 }
 0xb3a   : > { %v3301_v48 = vmin.f32 %v3293_v35, 6.0  ;;  %v3295_v36 = vmax.f32 %v3287_v52, 0.0  ;;  %v13963_v35 = vld [vmem:[#allocation12_spill] sm:$0xff] }
 0xb3b   : > { %v3276_v30 = vpop.f32.mrb[28].mxu1 }
 0xb3c   : > { %v3309_v14 = vmul.f32 %v3301_v48, %v3267_v15  ;;  %v3303_v19 = vmin.f32 %v3295_v36, 6.0  ;;  %v10249_v23 = vpop.f32.mrb[29].mxu1 }
 0xb3d   : > { %v3280_v6 = vpop.f32.mrb[30].mxu1 }
 0xb3e   : > { %v10251_v37 = vmul.f32 0.16666667, %v3309_v14  ;;  %v3311_v56 = vmul.f32 %v3303_v19, %v3271_v34  ;;  %v10253_v5 = vpop.f32.mrb[31].mxu1  ;;  %v3269_v19 = vadd.f32 %v3268_v20, %v13961_v31 }
 0xb40   : > { %v10255_v25 = vmul.f32 0.16666667, %v3311_v56  ;;  %3333 = vrot.lane.b32.xlu0 %v10251_v37, %s13787_s14  ;;  %v3273_v56 = vadd.f32 %v3272_v38, %v13962_v50  ;;  %v3286_v48 = vadd.f32 3.0, %v3269_v19 }
 0xb42   : > { %3335 = vrot.lane.b32.xlu1 %v10255_v25, %s13787_s14  ;;  %v3288_v52 = vadd.f32 3.0, %v3273_v56  ;;  %v3294_v36 = vmax.f32 %v3286_v48, 0.0 }
 0xb44   : > { %3373 = vrot.lane.b32.xlu0 %v10251_v37, %s13786_s17  ;;  %v3296_v14 = vmax.f32 %v3288_v52, 0.0  ;;  %v3302_v15 = vmin.f32 %v3294_v36, 6.0 }
 0xb46   : > { %3375 = vrot.lane.b32.xlu1 %v10255_v25, %s13786_s17  ;;  %v3304_v20 = vmin.f32 %v3296_v14, 6.0  ;;  %v3310_v46 = vmul.f32 %v3302_v15, %v3269_v19  ;;  %v3277_v19 = vadd.f32 %v3276_v30, %v13963_v35 }
 0xb48   : > { %3413 = vrot.lane.b32.xlu0 %v10251_v37, %s13788_s20  ;;  %v3312_v0 = vmul.f32 %v3304_v20, %v3273_v56  ;;  %v10289_v34 = vmul.f32 0.16666667, %v3310_v46  ;;  %v13964_v56 = vld [vmem:[#allocation14_spill] sm:$0xff]  ;;  %v3289_v52 = vadd.f32 3.0, %v3277_v19 }
 0xb49   : > { %v3281_v48 = vadd.f32 %v3280_v6, %v13964_v56 }
 0xb4a   : > { %3415 = vrot.lane.b32.xlu1 %v10255_v25, %s13788_s20  ;;  %v10293_v38 = vmul.f32 0.16666667, %v3312_v0  ;;  %v3297_v14 = vmax.f32 %v3289_v52, 0.0 }
 0xb4b   : > { %v3291_v36 = vadd.f32 3.0, %v3281_v48 }
 0xb4c   : > { %3453 = vrot.lane.b32.xlu0 %v10251_v37, %s13789_s19  ;;  %v3305_v6 = vmin.f32 %v3297_v14, 6.0 }
 0xb4d   : > { %v3299_v30 = vmax.f32 %v3291_v36, 0.0 }
 0xb4e   : > { %3455 = vrot.lane.b32.xlu1 %v10255_v25, %s13789_s19  ;;  %v3313_v20 = vmul.f32 %v3305_v6, %v3277_v19  ;;  %v3279_v19 = vadd.f32 %v10249_v23, %v13963_v35 }
 0xb4f   : > { %v3307_v15 = vmin.f32 %v3299_v30, 6.0 }
 0xb50   : > { %3493 = vrot.lane.b32.xlu0 %v10251_v37, %s13790_s18  ;;  %v10327_v0 = vmul.f32 0.16666667, %v3313_v20  ;;  %v3290_v36 = vadd.f32 3.0, %v3279_v19 }
 0xb51   : > { %v3315_v46 = vmul.f32 %v3307_v15, %v3281_v48  ;;  %v3283_v48 = vadd.f32 %v10253_v5, %v13964_v56 }
 0xb52   : > { %3495 = vrot.lane.b32.xlu1 %v10255_v25, %s13790_s18  ;;  %v3298_v30 = vmax.f32 %v3290_v36, 0.0 }
 0xb53   : > { %v10331_v52 = vmul.f32 0.16666667, %v3315_v46  ;;  %v3292_v14 = vadd.f32 3.0, %v3283_v48 }
 0xb54   : > { %3533 = vrot.lane.b32.xlu0 %v10251_v37, %s13791_s23  ;;  %v3306_v5 = vmin.f32 %v3298_v30, 6.0 }
 0xb55   : > { %v3300_v23 = vmax.f32 %v3292_v14, 0.0  ;;  %v7561_v14 = vld [vmem:[%s13192_s9 + $0x8] sm:$0xff] }
 0xb56   : > { %3535 = vrot.lane.b32.xlu1 %v10255_v25, %s13791_s23  ;;  %v3314_v15 = vmul.f32 %v3306_v5, %v3279_v19  ;;  %v7560_v19 = vld [vmem:[%s13192_s9] sm:$0xff]  ;;  %v3110_v30 = vadd.f32 %v7561_v14, %v10239_v3  ;;  %v7562_v5 = vld [vmem:[%s13192_s9 + $0x10] sm:$0xff] }
 0xb57   : > { %v3308_v6 = vmin.f32 %v3300_v23, 6.0 }
 0xb58   : > { %3573 = vrot.lane.b32.xlu0 %v10251_v37, %s13792_s27  ;;  %v10367_v46 = vmul.f32 0.16666667, %v3314_v15  ;;  %v7563_v15 = vld [vmem:[%s13192_s9 + $0x18] sm:$0xff] }
 0xb59   : > { %v3316_v20 = vmul.f32 %v3308_v6, %v3283_v48  ;;  %v3105_v48 = vadd.f32 %v7560_v19, %v10241_v13  ;;  %v3115_v6 = vadd.f32 %v7562_v5, %v10245_v24  ;;  %v3124_v13 = vmul.f32 1.2, %v3110_v30 }
 0xb5a   : > { %3575 = vrot.lane.b32.xlu1 %v10255_v25, %s13792_s27  ;;  %v3120_v3 = vadd.f32 %v7563_v15, %v10243_v1 }
 0xb5b   : > { %v10371_v36 = vmul.f32 0.16666667, %v3316_v20  ;;  %v3123_v23 = vmul.f32 1.2, %v3105_v48  ;;  %v3125_v19 = vmul.f32 1.2, %v3115_v6 }
 0xb5c   : > { %3613 = vrot.lane.b32.xlu0 %v10251_v37, %s13793_s30  ;;  %v3128_v24 = vadd.f32 3.0, %v3124_v13  ;;  %v3126_v14 = vmul.f32 1.2, %v3120_v3 }
 0xb5d   : > { %v3127_v20 = vadd.f32 3.0, %v3123_v23  ;;  %v3129_v56 = vadd.f32 3.0, %v3125_v19 }
 0xb5e   : > { %3615 = vrot.lane.b32.xlu1 %v10255_v25, %s13793_s30  ;;  %v3132_v15 = vmax.f32 %v3128_v24, 0.0  ;;  %v3130_v35 = vadd.f32 3.0, %v3126_v14 }
 0xb5f   : > { %v3131_v30 = vmax.f32 %v3127_v20, 0.0  ;;  %v3133_v50 = vmax.f32 %v3129_v56, 0.0 }
 0xb60   : > { %3341 = vrot.lane.b32.xlu0 %v10289_v34, %s13787_s14  ;;  %v3136_v3 = vmin.f32 %v3132_v15, 6.0  ;;  %v3134_v31 = vmax.f32 %v3130_v35, 0.0 }
 0xb61   : > { %v3135_v6 = vmin.f32 %v3131_v30, 6.0  ;;  %v3137_v51 = vmin.f32 %v3133_v50, 6.0 }
 0xb62   : > { %3343 = vrot.lane.b32.xlu1 %v10293_v38, %s13787_s14  ;;  %v3140_v14 = vmul.f32 0.16666667, %v3136_v3  ;;  %v3138_v11 = vmin.f32 %v3134_v31, 6.0 }
 0xb63   : > { %v3139_v19 = vmul.f32 0.16666667, %v3135_v6  ;;  %v3141_v56 = vmul.f32 0.16666667, %v3137_v51 }
 0xb64   : > { %3381 = vrot.lane.b32.xlu0 %v10289_v34, %s13786_s17  ;;  %v3142_v15 = vmul.f32 0.16666667, %v3138_v11 }
 0xb66   : > { %3383 = vrot.lane.b32.xlu1 %v10293_v38, %s13786_s17 }
 0xb68   : > { %3421 = vrot.lane.b32.xlu0 %v10289_v34, %s13788_s20 }
 0xb6a   : > { %3423 = vrot.lane.b32.xlu1 %v10293_v38, %s13788_s20 }
 0xb6c   : > { %3461 = vrot.lane.b32.xlu0 %v10289_v34, %s13789_s19 }
 0xb6e   : > { %3463 = vrot.lane.b32.xlu1 %v10293_v38, %s13789_s19 }
 0xb70   : > { %3501 = vrot.lane.b32.xlu0 %v10289_v34, %s13790_s18 }
 0xb72   : > { %3503 = vrot.lane.b32.xlu1 %v10293_v38, %s13790_s18 }
 0xb74   : > { %3541 = vrot.lane.b32.xlu0 %v10289_v34, %s13791_s23 }
 0xb76   : > { %3543 = vrot.lane.b32.xlu1 %v10293_v38, %s13791_s23 }
 0xb78   : > { %3581 = vrot.lane.b32.xlu0 %v10289_v34, %s13792_s27 }
 0xb7a   : > { %3583 = vrot.lane.b32.xlu1 %v10293_v38, %s13792_s27 }
 0xb7c   : > { %3621 = vrot.lane.b32.xlu0 %v10289_v34, %s13793_s30 }
 0xb7e   : > { %3623 = vrot.lane.b32.xlu1 %v10293_v38, %s13793_s30 }
 0xb80   : > { %3337 = vrot.lane.b32.xlu0 %v10327_v0, %s13787_s14 }
 0xb82   : > { %3339 = vrot.lane.b32.xlu1 %v10331_v52, %s13787_s14 }
 0xb84   : > { %3377 = vrot.lane.b32.xlu0 %v10327_v0, %s13786_s17 }
 0xb86   : > { %3379 = vrot.lane.b32.xlu1 %v10331_v52, %s13786_s17 }
 0xb88   : > { %3417 = vrot.lane.b32.xlu0 %v10327_v0, %s13788_s20 }
 0xb8a   : > { %3419 = vrot.lane.b32.xlu1 %v10331_v52, %s13788_s20 }
 0xb8c   : > { %3457 = vrot.lane.b32.xlu0 %v10327_v0, %s13789_s19 }
 0xb8e   : > { %3459 = vrot.lane.b32.xlu1 %v10331_v52, %s13789_s19 }
 0xb90   : > { %3497 = vrot.lane.b32.xlu0 %v10327_v0, %s13790_s18 }
 0xb92   : > { %3499 = vrot.lane.b32.xlu1 %v10331_v52, %s13790_s18 }
 0xb94   : > { %3537 = vrot.lane.b32.xlu0 %v10327_v0, %s13791_s23 }
 0xb96   : > { %3539 = vrot.lane.b32.xlu1 %v10331_v52, %s13791_s23 }
 0xb98   : > { %3577 = vrot.lane.b32.xlu0 %v10327_v0, %s13792_s27 }
 0xb9a   : > { %3579 = vrot.lane.b32.xlu1 %v10331_v52, %s13792_s27 }
 0xb9c   : > { %3617 = vrot.lane.b32.xlu0 %v10327_v0, %s13793_s30 }
 0xb9e   : > { %3619 = vrot.lane.b32.xlu1 %v10331_v52, %s13793_s30 }
 0xba0   : > { %3345 = vrot.lane.b32.xlu0 %v10367_v46, %s13787_s14 }
 0xba2   : > { %3347 = vrot.lane.b32.xlu1 %v10371_v36, %s13787_s14 }
 0xba4   : > { %3385 = vrot.lane.b32.xlu0 %v10367_v46, %s13786_s17 }
 0xba6   : > { %3387 = vrot.lane.b32.xlu1 %v10371_v36, %s13786_s17 }
 0xba8   : > { %3425 = vrot.lane.b32.xlu0 %v10367_v46, %s13788_s20 }
 0xbaa   : > { %3427 = vrot.lane.b32.xlu1 %v10371_v36, %s13788_s20 }
 0xbac   : > { %3465 = vrot.lane.b32.xlu0 %v10367_v46, %s13789_s19 }
 0xbae   : > { %3467 = vrot.lane.b32.xlu1 %v10371_v36, %s13789_s19 }
 0xbb0   : > { %3505 = vrot.lane.b32.xlu0 %v10367_v46, %s13790_s18 }
 0xbb2   : > { %3507 = vrot.lane.b32.xlu1 %v10371_v36, %s13790_s18  ;;  %v3334_v48 = vpop.permute.xlu0 %3333 }
 0xbb4   : > { %v3336_v5 = vpop.permute.xlu1 %3335  ;;  %3545 = vrot.lane.b32.xlu0 %v10367_v46, %s13791_s23 }
 0xbb6   : > { %3547 = vrot.lane.b32.xlu1 %v10371_v36, %s13791_s23  ;;  %v3374_v1 = vpop.permute.xlu0 %3373 }
 0xbb8   : > { %v3376_v23 = vpop.permute.xlu1 %3375  ;;  %3585 = vrot.lane.b32.xlu0 %v10367_v46, %s13792_s27 }
 0xbba   : > { %3587 = vrot.lane.b32.xlu1 %v10371_v36, %s13792_s27  ;;  %v3414_v13 = vpop.permute.xlu0 %3413 }
 0xbbc   : > { %v3416_v20 = vpop.permute.xlu1 %3415  ;;  %3625 = vrot.lane.b32.xlu0 %v10367_v46, %s13793_s30 }
 0xbbe   : > { %3627 = vrot.lane.b32.xlu1 %v10371_v36, %s13793_s30  ;;  %v3454_v24 = vpop.permute.xlu0 %3453 }
 0xbc0   : > { %v3456_v30 = vpop.permute.xlu1 %3455  ;;  %3145 = vperm.xlu0 %7532, %v3139_v19  }
 0xbc2   : > { %3150 = vperm.xlu1 %7533, %v3140_v14   ;;  %v10421_v16 = vpop.permute.xlu0 %3493 }
 0xbc4   : > { %v10423_v35 = vpop.permute.xlu1 %3495  ;;  %3155 = vperm.xlu0 %7532, %v3141_v56  }
 0xbc6   : > { %3160 = vperm.xlu1 %7533, %v3142_v15   ;;  %v10425_v47 = vpop.permute.xlu0 %3533 }
 0xbc8   : > { %v10427_v50 = vpop.permute.xlu1 %3535 }
 0xbca   : > { %v10429_v6 = vpop.permute.xlu0 %3573 }
 0xbcc   : > { %v10431_v22 = vpop.permute.xlu1 %3575 }
 0xbce   : > { %v10433_v31 = vpop.permute.xlu0 %3613 }
 0xbd0   : > { %v10435_v3 = vpop.permute.xlu1 %3615 }
 0xbd2   : > { %v3342_v51 = vpop.permute.xlu0 %3341 }
 0xbd3   : > { %v3349_v11 = vsel %vm1036_vm1, %v3334_v48, %v3342_v51  ;;  %v3353_v56 = vsel %vm1036_vm1, %v3342_v51, %v3334_v48  ;;  %v3326_v48 = vmul.f32 %v10289_v34, %v13885_v55  ;;  %v13967_v51 = vld [vmem:[#allocation63_spill] sm:$0xff] }
 0xbd4   : > { %v3344_v19 = vpop.permute.xlu1 %3343  ;;  %v3357_v61 = vmul.f32 %v3353_v56, %v13965_v27  ;;  %v3358_v4 = vmul.f32 %v3349_v11, %v13966_v45  ;;  %v3325_v60 = vmul.f32 %v10251_v37, %v13967_v51 }
 0xbd5   : > { %v3350_v58 = vsel %vm1036_vm1, %v3336_v5, %v3344_v19  ;;  %v3354_v44 = vsel %vm1036_vm1, %v3344_v19, %v3336_v5  ;;  %v13969_v19 = vld [vmem:[#allocation66_spill] sm:$0xff] }
 0xbd6   : > { %v3382_v14 = vpop.permute.xlu0 %3381  ;;  %v3359_v5 = vmul.f32 %v3354_v44, %v13968_v41  ;;  %v3360_v32 = vmul.f32 %v3350_v58, %v13969_v19  ;;  %v3365_v44 = vadd.f32 %v3357_v61, %v3325_v60  ;;  %v3366_v41 = vadd.f32 %v3358_v4, %v3326_v48  ;;  %v13970_v19 = vld [vmem:[#allocation69_spill] sm:$0xff]  ;;  %v13974_v4 = vld [vmem:[#allocation72_spill] sm:$0xff] }
 0xbd7   : > { %v3389_v57 = vsel %vm1077_vm2, %v3374_v1, %v3382_v14  ;;  %v3393_v49 = vsel %vm1077_vm2, %v3382_v14, %v3374_v1  ;;  %v3328_v58 = vmul.f32 %v10293_v38, %v13815_v63  ;;  %v3327_v51 = vmul.f32 %v10255_v25, %v13970_v19 }
 0xbd8   : > { %v3384_v15 = vpop.permute.xlu1 %3383  ;;  %v3397_v45 = vmul.f32 %v3393_v49, %v13887_v33  ;;  %v3398_v1 = vmul.f32 %v3389_v57, %v13888_v7  ;;  %v13972_v49 = vld [vmem:[#allocation74_spill] sm:$0xff] }
 0xbd9   : > { %v3390_v11 = vsel %vm1077_vm2, %v3376_v23, %v3384_v15  ;;  %v3394_v56 = vsel %vm1077_vm2, %v3384_v15, %v3376_v23  ;;  %v13971_v23 = vld [vmem:[#allocation73_spill] sm:$0xff]  ;;  %v3367_v48 = vadd.f32 %v3359_v5, %v3327_v51 }
 0xbda   : > { %v3422_v12 = vpop.permute.xlu0 %3421  ;;  %v3399_v15 = vmul.f32 %v3394_v56, %v13971_v23  ;;  %v3400_v33 = vmul.f32 %v3390_v11, %v13972_v49  ;;  %v3368_v56 = vadd.f32 %v3360_v32, %v3328_v58  ;;  %v3405_v11 = vadd.f32 %v3397_v45, %v3365_v44 }
 0xbdb   : > { %v3429_v34 = vsel %vm1118_vm3, %v3414_v13, %v3422_v12  ;;  %v3433_v37 = vsel %vm1118_vm3, %v3422_v12, %v3414_v13  ;;  %v13973_v13 = vld [vmem:[#allocation71_spill] sm:$0xff]  ;;  %v3406_v49 = vadd.f32 %v3398_v1, %v3366_v41 }
 0xbdc   : > { %v3424_v18 = vpop.permute.xlu1 %3423  ;;  %v3437_v60 = vmul.f32 %v3433_v37, %v13973_v13  ;;  %v3438_v61 = vmul.f32 %v3429_v34, %v13974_v4  ;;  %v3407_v37 = vadd.f32 %v3399_v15, %v3367_v48  ;;  %v3408_v4 = vadd.f32 %v3400_v33, %v3368_v56 }
 0xbdd   : > { %v3430_v57 = vsel %vm1118_vm3, %v3416_v20, %v3424_v18  ;;  %v3434_v7 = vsel %vm1118_vm3, %v3424_v18, %v3416_v20 }
 0xbde   : > { %v3462_v14 = vpop.permute.xlu0 %3461  ;;  %v3439_v19 = vmul.f32 %v3434_v7, %v13889_v53  ;;  %v3440_v18 = vmul.f32 %v3430_v57, %v13822_v54  ;;  %v3445_v45 = vadd.f32 %v3437_v60, %v3405_v11  ;;  %v3446_v41 = vadd.f32 %v3438_v61, %v3406_v49  ;;  %v13976_v11 = vld [vmem:[#allocation87_spill] sm:$0xff] }
 0xbdf   : > { %v3469_v38 = vsel %vm1159_vm4, %v3454_v24, %v3462_v14  ;;  %v3473_v25 = vsel %vm1159_vm4, %v3462_v14, %v3454_v24 }
 0xbe0   : > { %v3464_v12 = vpop.permute.xlu1 %3463  ;;  %v3477_v13 = vmul.f32 %v3473_v25, %v13890_v40  ;;  %v3478_v24 = vmul.f32 %v3469_v38, %v13891_v42  ;;  %v3447_v44 = vadd.f32 %v3439_v19, %v3407_v37  ;;  %v3448_v58 = vadd.f32 %v3440_v18, %v3408_v4  ;;  %v13975_v25 = vld [vmem:[#allocation84_spill] sm:$0xff] }
 0xbe1   : > { %v3470_v20 = vsel %vm1159_vm4, %v3456_v30, %v3464_v12  ;;  %v3474_v34 = vsel %vm1159_vm4, %v3464_v12, %v3456_v30 }
 0xbe2   : > { %v3502_v23 = vpop.permute.xlu0 %3501  ;;  %v3479_v5 = vmul.f32 %v3474_v34, %v13823_v29  ;;  %v3480_v30 = vmul.f32 %v3470_v20, %v13892_v39  ;;  %v3486_v49 = vadd.f32 %v3478_v24, %v3446_v41  ;;  %v13977_v20 = vld [vmem:[#allocation88_spill] sm:$0xff] }
 0xbe3   : > { %v3509_v7 = vsel %vm1200_vm5, %v10421_v16, %v3502_v23  ;;  %v3513_v51 = vsel %vm1200_vm5, %v3502_v23, %v10421_v16  ;;  %v3485_v23 = vadd.f32 %v3477_v13, %v3445_v45  ;;  %v13978_v45 = vld [vmem:[#allocation89_spill] sm:$0xff] }
 0xbe4   : > { %v3504_v32 = vpop.permute.xlu1 %3503  ;;  %v3517_v57 = vmul.f32 %v3509_v7, %v13893_v8  ;;  %v3518_v12 = vmul.f32 %v3513_v51, %v13894_v9  ;;  %v3488_v13 = vadd.f32 %v3480_v30, %v3448_v58  ;;  %v13979_v7 = vld [vmem:[#allocation90_spill] sm:$0xff] }
 0xbe5   : > { %v3510_v33 = vsel %vm1200_vm5, %v10423_v35, %v3504_v32  ;;  %v3514_v1 = vsel %vm1200_vm5, %v3504_v32, %v10423_v35 }
 0xbe6   : > { %v3542_v14 = vpop.permute.xlu0 %3541  ;;  %v3519_v35 = vmul.f32 %v3510_v33, %v13895_v28  ;;  %v3520_v19 = vmul.f32 %v3514_v1, %v13826_v26  ;;  %v3526_v32 = vadd.f32 %v3518_v12, %v3486_v49 }
 0xbe7   : > { %v3549_v15 = vsel %vm1241_vm6, %v10425_v47, %v3542_v14  ;;  %v3553_v16 = vsel %vm1241_vm6, %v3542_v14, %v10425_v47  ;;  %v3487_v47 = vadd.f32 %v3479_v5, %v3447_v44 }
 0xbe8   : > { %v3544_v60 = vpop.permute.xlu1 %3543  ;;  %v3557_v38 = vmul.f32 %v3549_v15, %v13896_v2  ;;  %v3558_v48 = vmul.f32 %v3553_v16, %v13975_v25  ;;  %v3528_v33 = vadd.f32 %v3520_v19, %v3488_v13  ;;  %v13981_v16 = vld [vmem:[#allocation92_spill] sm:$0xff] }
 0xbe9   : > { %v3550_v4 = vsel %vm1241_vm6, %v10427_v50, %v3544_v60  ;;  %v3554_v61 = vsel %vm1241_vm6, %v3544_v60, %v10427_v50  ;;  %v3525_v50 = vadd.f32 %v3517_v57, %v3485_v23  ;;  %v3527_v30 = vadd.f32 %v3519_v35, %v3487_v47  ;;  %v13983_v47 = vld [vmem:[#allocation94_spill] sm:$0xff] }
 0xbea   : > { %v3582_v56 = vpop.permute.xlu0 %3581  ;;  %v3559_v18 = vmul.f32 %v3550_v4, %v13976_v11  ;;  %v3560_v34 = vmul.f32 %v3554_v61, %v13977_v20  ;;  %v3566_v58 = vadd.f32 %v3558_v48, %v3526_v32  ;;  %v13985_v32 = vld [vmem:[#allocation96_spill] sm:$0xff] }
 0xbeb   : > { %v3589_v37 = vsel %vm1282_vm7, %v10429_v6, %v3582_v56  ;;  %v3593_v24 = vsel %vm1282_vm7, %v3582_v56, %v10429_v6  ;;  %v3565_v44 = vadd.f32 %v3557_v38, %v3525_v50  ;;  %v13980_v6 = vld [vmem:[#allocation91_spill] sm:$0xff] }
 0xbec   : > { %v3597_v41 = vmul.f32 %v3589_v37, %v13978_v45  ;;  %v3598_v51 = vmul.f32 %v3593_v24, %v13979_v7  ;;  %v3584_v5 = vpop.permute.xlu1 %3583  ;;  %v3567_v57 = vadd.f32 %v3559_v18, %v3527_v30  ;;  %v3568_v12 = vadd.f32 %v3560_v34, %v3528_v33 }
 0xbed   : > { %v3590_v1 = vsel %vm1282_vm7, %v10431_v22, %v3584_v5  ;;  %v3594_v14 = vsel %vm1282_vm7, %v3584_v5, %v10431_v22  ;;  %v13982_v22 = vld [vmem:[#allocation93_spill] sm:$0xff] }
 0xbee   : > { %v3599_v15 = vmul.f32 %v3590_v1, %v13980_v6  ;;  %v3600_v23 = vmul.f32 %v3594_v14, %v13981_v16  ;;  %v3622_v49 = vpop.permute.xlu0 %3621  ;;  %v3605_v19 = vadd.f32 %v3597_v41, %v3565_v44  ;;  %v3606_v4 = vadd.f32 %v3598_v51, %v3566_v58  ;;  %v13986_v1 = vld [vmem:[#allocation37_spill] sm:$0xff]  ;;  %v13995_v16 = vld [vmem:[#allocation44_spill] sm:$0xff] }
 0xbef   : > { %v3629_v60 = vsel %vm1323_vm8, %v10433_v31, %v3622_v49  ;;  %v3633_v35 = vsel %vm1323_vm8, %v3622_v49, %v10433_v31  ;;  %v13984_v31 = vld [vmem:[#allocation95_spill] sm:$0xff]  ;;  %v13987_v49 = vld [vmem:[#allocation38_spill] sm:$0xff] }
 0xbf0   : > { %v3637_v61 = vmul.f32 %v3629_v60, %v13982_v22  ;;  %v3638_v13 = vmul.f32 %v3633_v35, %v13983_v47  ;;  %v3624_v38 = vpop.permute.xlu1 %3623  ;;  %v3607_v48 = vadd.f32 %v3599_v15, %v3567_v57  ;;  %v3608_v56 = vadd.f32 %v3600_v23, %v3568_v12 }
 0xbf1   : > { %v3630_v18 = vsel %vm1323_vm8, %v10435_v3, %v3624_v38  ;;  %v3634_v34 = vsel %vm1323_vm8, %v3624_v38, %v10435_v3 }
 0xbf2   : > { %v3645_v37 = vadd.f32 %v3637_v61, %v3605_v19  ;;  %v3646_v24 = vadd.f32 %v3638_v13, %v3606_v4  ;;  %v3639_v50 = vmul.f32 %v3630_v18, %v13984_v31  ;;  %v3640_v41 = vmul.f32 %v3634_v34, %v13985_v32  ;;  %v3338_v51 = vpop.permute.xlu0 %3337 }
 0xbf4   : > { %v3647_v5 = vadd.f32 %v3639_v50, %v3607_v48  ;;  %v3648_v30 = vadd.f32 %v3640_v41, %v3608_v56  ;;  %v3340_v33 = vpop.permute.xlu1 %3339  ;;  %v3653_v14 = vadd.f32 %v3645_v37, %v13986_v1  ;;  %v3654_v44 = vadd.f32 %v3646_v24, %v13986_v1 }
 0xbf6   : > { %v3378_v58 = vpop.permute.xlu0 %3377  ;;  %v3661_v15 = vadd.f32 3.0, %v3653_v14  ;;  %v3662_v23 = vadd.f32 3.0, %v3654_v44  ;;  %v3655_v57 = vadd.f32 %v3647_v5, %v13987_v49  ;;  %v3656_v3 = vadd.f32 %v3648_v30, %v13987_v49 }
 0xbf8   : > { %v3380_v12 = vpop.permute.xlu1 %3379  ;;  %v3669_v60 = vmax.f32 %v3661_v15, 0.0  ;;  %v3670_v35 = vmax.f32 %v3662_v23, 0.0  ;;  %v3663_v19 = vadd.f32 3.0, %v3655_v57  ;;  %v3664_v4 = vadd.f32 3.0, %v3656_v3 }
 0xbfa   : > { %v3418_v61 = vpop.permute.xlu0 %3417  ;;  %v3677_v13 = vmin.f32 %v3669_v60, 6.0  ;;  %v3678_v38 = vmin.f32 %v3670_v35, 6.0  ;;  %v3671_v48 = vmax.f32 %v3663_v19, 0.0  ;;  %v3672_v56 = vmax.f32 %v3664_v4, 0.0 }
 0xbfc   : > { %v3420_v18 = vpop.permute.xlu1 %3419  ;;  %v3685_v34 = vmul.f32 %v3677_v13, %v3653_v14  ;;  %v3686_v37 = vmul.f32 %v3678_v38, %v3654_v44  ;;  %v3679_v24 = vmin.f32 %v3671_v48, 6.0  ;;  %v3680_v50 = vmin.f32 %v3672_v56, 6.0 }
 0xbfe   : > { %v3458_v41 = vpop.permute.xlu0 %3457  ;;  %v10561_v1 = vmul.f32 0.16666667, %v3685_v34  ;;  %v10563_v5 = vmul.f32 0.16666667, %v3686_v37  ;;  %v3687_v30 = vmul.f32 %v3679_v24, %v3655_v57  ;;  %v3688_v15 = vmul.f32 %v3680_v50, %v3656_v3 }
 0xc00   : > { %13988 = vst [vmem:[#allocation97_spill] sm:$0xff] %v10561_v1  ;;  %13989 = vst [vmem:[#allocation98_spill] sm:$0xff] %v10563_v5  ;;  %v3460_v23 = vpop.permute.xlu1 %3459  ;;  %v3701_v49 = vadd.f32 %v10563_v5, %v10561_v1  ;;  %v10567_v60 = vmul.f32 0.16666667, %v3687_v30  ;;  %v10569_v35 = vmul.f32 0.16666667, %v3688_v15 }
 0xc01   : > { %v13993_v5 = vld [vmem:[#allocation43_spill] sm:$0xff] }
 0xc02   : > { %13990 = vst [vmem:[#allocation70_spill] sm:$0xff] %v10567_v60  ;;  %13991 = vst [vmem:[#allocation78_spill] sm:$0xff] %v10569_v35  ;;  %v10571_v19 = vpop.permute.xlu0 %3497  ;;  %3702 = vadd.xlane.f32.xlu0 %v3701_v49  ;;  %v3704_v14 = vadd.f32 %v10569_v35, %v10567_v60  ;;  %v13992_v35 = vld [vmem:[#allocation15_spill] sm:$0xff] }
 0xc04   : > { %v10575_v44 = vpop.permute.xlu1 %3499  ;;  %3705 = vadd.xlane.f32.xlu1 %v3704_v14 }
 0xc06   : > { %v10577_v4 = vpop.permute.xlu0 %3537 }
 0xc08   : > { %v10579_v57 = vpop.permute.xlu1 %3539 }
 0xc0a   : > { %v10581_v3 = vpop.permute.xlu0 %3577 }
 0xc0c   : > { %v10583_v13 = vpop.permute.xlu1 %3579 }
 0xc0e   : > { %v10585_v38 = vpop.permute.xlu0 %3617 }
 0xc10   : > { %v10587_v48 = vpop.permute.xlu1 %3619 }
 0xc12   : > { %v3346_v56 = vpop.permute.xlu0 %3345 }
 0xc13   : > { %v3351_v37 = vsel %vm1036_vm1, %v3338_v51, %v3346_v56  ;;  %v3355_v24 = vsel %vm1036_vm1, %v3346_v56, %v3338_v51  ;;  %v3329_v51 = vmul.f32 %v10327_v0, %v13916_v10  ;;  %v13994_v56 = vld [vmem:[#allocation17_spill] sm:$0xff] }
 0xc14   : > { %v3348_v49 = vpop.permute.xlu1 %3347  ;;  %v3361_v60 = vmul.f32 %v3355_v24, %v13992_v35  ;;  %v3362_v1 = vmul.f32 %v3351_v37, %v13993_v5  ;;  %v3330_v47 = vmul.f32 %v10367_v46, %v13994_v56 }
 0xc15   : > { %v3352_v30 = vsel %vm1036_vm1, %v3340_v33, %v3348_v49  ;;  %v3356_v15 = vsel %vm1036_vm1, %v3348_v49, %v3340_v33  ;;  %v13996_v49 = vld [vmem:[#allocation45_spill] sm:$0xff] }
 0xc16   : > { %v3386_v34 = vpop.permute.xlu0 %3385  ;;  %v3363_v33 = vmul.f32 %v3356_v15, %v13995_v16  ;;  %v3364_v6 = vmul.f32 %v3352_v30, %v13996_v49  ;;  %v3369_v15 = vadd.f32 %v3361_v60, %v3329_v51  ;;  %v3370_v16 = vadd.f32 %v3362_v1, %v3330_v47  ;;  %v13997_v49 = vld [vmem:[#allocation48_spill] sm:$0xff]  ;;  %v14001_v47 = vld [vmem:[#allocation21_spill] sm:$0xff] }
 0xc17   : > { %v3391_v32 = vsel %vm1077_vm2, %v3378_v58, %v3386_v34  ;;  %v3395_v31 = vsel %vm1077_vm2, %v3386_v34, %v3378_v58  ;;  %v3331_v30 = vmul.f32 %v10331_v52, %v8819_v43  ;;  %v3332_v56 = vmul.f32 %v10371_v36, %v13997_v49  ;;  %v14002_v43 = vld [vmem:[#allocation53_spill] sm:$0xff] }
 0xc18   : > { %v3388_v50 = vpop.permute.xlu1 %3387  ;;  %v3401_v5 = vmul.f32 %v3395_v31, %v13918_v17  ;;  %v3402_v58 = vmul.f32 %v3391_v32, %v13919_v21  ;;  %v13999_v31 = vld [vmem:[#allocation50_spill] sm:$0xff] }
 0xc19   : > { %v3392_v37 = vsel %vm1077_vm2, %v3380_v12, %v3388_v50  ;;  %v3396_v24 = vsel %vm1077_vm2, %v3388_v50, %v3380_v12  ;;  %v13998_v12 = vld [vmem:[#allocation49_spill] sm:$0xff]  ;;  %v3371_v51 = vadd.f32 %v3363_v33, %v3331_v30 }
 0xc1a   : > { %v3426_v14 = vpop.permute.xlu0 %3425  ;;  %v3403_v50 = vmul.f32 %v3396_v24, %v13998_v12  ;;  %v3404_v17 = vmul.f32 %v3392_v37, %v13999_v31  ;;  %v3372_v24 = vadd.f32 %v3364_v6, %v3332_v56  ;;  %v3409_v37 = vadd.f32 %v3401_v5, %v3369_v15 }
 0xc1b   : > { %v3431_v0 = vsel %vm1118_vm3, %v3418_v61, %v3426_v14  ;;  %v3435_v46 = vsel %vm1118_vm3, %v3426_v14, %v3418_v61  ;;  %v14000_v14 = vld [vmem:[#allocation18_spill] sm:$0xff]  ;;  %v3410_v31 = vadd.f32 %v3402_v58, %v3370_v16 }
 0xc1c   : > { %v3428_v22 = vpop.permute.xlu1 %3427  ;;  %v3441_v60 = vmul.f32 %v3435_v46, %v14000_v14  ;;  %v3442_v1 = vmul.f32 %v3431_v0, %v14001_v47  ;;  %v3411_v46 = vadd.f32 %v3403_v50, %v3371_v51  ;;  %v3412_v47 = vadd.f32 %v3404_v17, %v3372_v24  ;;  %v14003_v14 = vld [vmem:[#allocation20_spill] sm:$0xff]  ;;  %v14005_v58 = vld [vmem:[#allocation54_spill] sm:$0xff] }
 0xc1d   : > { %v3432_v32 = vsel %vm1118_vm3, %v3420_v18, %v3428_v22  ;;  %v3436_v21 = vsel %vm1118_vm3, %v3428_v22, %v3420_v18 }
 0xc1e   : > { %v3466_v34 = vpop.permute.xlu0 %3465  ;;  %v3443_v49 = vmul.f32 %v3436_v21, %v8852_v62  ;;  %v3444_v22 = vmul.f32 %v3432_v32, %v14002_v43  ;;  %v3449_v5 = vadd.f32 %v3441_v60, %v3409_v37  ;;  %v3450_v16 = vadd.f32 %v3442_v1, %v3410_v31  ;;  %v14007_v1 = vld [vmem:[#allocation22_spill] sm:$0xff]  ;;  %v14009_v37 = vld [vmem:[#allocation56_spill] sm:$0xff] }
 0xc1f   : > { %v3471_v52 = vsel %vm1159_vm4, %v3458_v41, %v3466_v34  ;;  %v3475_v36 = vsel %vm1159_vm4, %v3466_v34, %v3458_v41  ;;  %v14004_v41 = vld [vmem:[#allocation23_spill] sm:$0xff] }
 0xc20   : > { %v3468_v61 = vpop.permute.xlu1 %3467  ;;  %v3481_v10 = vmul.f32 %v3475_v36, %v14003_v14  ;;  %v3482_v33 = vmul.f32 %v3471_v52, %v14004_v41  ;;  %v3451_v31 = vadd.f32 %v3443_v49, %v3411_v46  ;;  %v3452_v32 = vadd.f32 %v3444_v22, %v3412_v47  ;;  %v14008_v36 = vld [vmem:[#allocation27_spill] sm:$0xff]  ;;  %v14050_v14 = vld [vmem:[#allocation65_spill] sm:$0xff] }
 0xc21   : > { %v3472_v18 = vsel %vm1159_vm4, %v3460_v23, %v3468_v61  ;;  %v3476_v0 = vsel %vm1159_vm4, %v3468_v61, %v3460_v23  ;;  %v14006_v23 = vld [vmem:[#allocation55_spill] sm:$0xff] }
 0xc22   : > { %v3506_v12 = vpop.permute.xlu0 %3505  ;;  %v3483_v34 = vmul.f32 %v3476_v0, %v14005_v58  ;;  %v3484_v15 = vmul.f32 %v3472_v18, %v14006_v23  ;;  %v3490_v60 = vadd.f32 %v3482_v33, %v3450_v16  ;;  %v14010_v18 = vld [vmem:[#allocation57_spill] sm:$0xff]  ;;  %v14011_v0 = vld [vmem:[#allocation24_spill] sm:$0xff] }
 0xc23   : > { %v3511_v21 = vsel %vm1200_vm5, %v10571_v19, %v3506_v12  ;;  %v3515_v56 = vsel %vm1200_vm5, %v3506_v12, %v10571_v19  ;;  %v3489_v12 = vadd.f32 %v3481_v10, %v3449_v5  ;;  %v14012_v33 = vld [vmem:[#allocation29_spill] sm:$0xff]  ;;  %v14013_v16 = vld [vmem:[#allocation28_spill] sm:$0xff] }
 0xc24   : > { %v3508_v6 = vpop.permute.xlu1 %3507  ;;  %v3521_v52 = vmul.f32 %v3511_v21, %v14007_v1  ;;  %v3522_v51 = vmul.f32 %v3515_v56, %v14008_v36  ;;  %v3492_v10 = vadd.f32 %v3484_v15, %v3452_v32  ;;  %v14014_v56 = vld [vmem:[#allocation30_spill] sm:$0xff]  ;;  %v14015_v15 = vld [vmem:[#allocation31_spill] sm:$0xff] }
 0xc25   : > { %v3512_v17 = vsel %vm1200_vm5, %v10575_v44, %v3508_v6  ;;  %v3516_v30 = vsel %vm1200_vm5, %v3508_v6, %v10575_v44  ;;  %v14016_v32 = vld [vmem:[#allocation58_spill] sm:$0xff] }
 0xc26   : > { %v3546_v50 = vpop.permute.xlu0 %3545  ;;  %v3523_v44 = vmul.f32 %v3512_v17, %v14009_v37  ;;  %v3524_v49 = vmul.f32 %v3516_v30, %v14010_v18  ;;  %v14048_v37 = vld [vmem:[#allocation62_spill] sm:$0xff] }
 0xc27   : > { %v3551_v61 = vsel %vm1241_vm6, %v10577_v4, %v3546_v50  ;;  %v3555_v19 = vsel %vm1241_vm6, %v3546_v50, %v10577_v4  ;;  %v3491_v4 = vadd.f32 %v3483_v34, %v3451_v31  ;;  %v3530_v34 = vadd.f32 %v3522_v51, %v3490_v60  ;;  %v14018_v60 = vld [vmem:[#allocation99_spill] sm:$0xff] }
 0xc28   : > { %v3548_v24 = vpop.permute.xlu1 %3547  ;;  %v3561_v46 = vmul.f32 %v3551_v61, %v14011_v0  ;;  %v3562_v6 = vmul.f32 %v3555_v19, %v14012_v33  ;;  %v3532_v33 = vadd.f32 %v3524_v49, %v3492_v10 }
 0xc29   : > { %v3552_v47 = vsel %vm1241_vm6, %v10579_v57, %v3548_v24  ;;  %v3556_v22 = vsel %vm1241_vm6, %v3548_v24, %v10579_v57  ;;  %v3529_v57 = vadd.f32 %v3521_v52, %v3489_v12  ;;  %v3531_v24 = vadd.f32 %v3523_v44, %v3491_v4 }
 0xc2a   : > { %v3586_v5 = vpop.permute.xlu0 %3585  ;;  %v3563_v21 = vmul.f32 %v3552_v47, %v14013_v16  ;;  %v3564_v17 = vmul.f32 %v3556_v22, %v14014_v56  ;;  %v3570_v16 = vadd.f32 %v3562_v6, %v3530_v34  ;;  %v14020_v6 = vld [vmem:[#allocation35_spill] sm:$0xff] }
 0xc2b   : > { %v3591_v30 = vsel %vm1282_vm7, %v10581_v3, %v3586_v5  ;;  %v3595_v50 = vsel %vm1282_vm7, %v3586_v5, %v10581_v3  ;;  %v3569_v56 = vadd.f32 %v3561_v46, %v3529_v57  ;;  %v14017_v3 = vld [vmem:[#allocation33_spill] sm:$0xff] }
 0xc2c   : > { %v3601_v31 = vmul.f32 %v3591_v30, %v14015_v15  ;;  %v3602_v61 = vmul.f32 %v3595_v50, %v14016_v32  ;;  %v3588_v19 = vpop.permute.xlu1 %3587  ;;  %v3571_v5 = vadd.f32 %v3563_v21, %v3531_v24  ;;  %v3572_v30 = vadd.f32 %v3564_v17, %v3532_v33 }
 0xc2d   : > { %v3592_v47 = vsel %vm1282_vm7, %v10583_v13, %v3588_v19  ;;  %v3596_v22 = vsel %vm1282_vm7, %v3588_v19, %v10583_v13  ;;  %v14019_v13 = vld [vmem:[#allocation59_spill] sm:$0xff] }
 0xc2e   : > { %v3603_v12 = vmul.f32 %v3592_v47, %v14017_v3  ;;  %v3604_v52 = vmul.f32 %v3596_v22, %v14018_v60  ;;  %v3626_v51 = vpop.permute.xlu0 %3625  ;;  %v3609_v4 = vadd.f32 %v3601_v31, %v3569_v56  ;;  %v3610_v10 = vadd.f32 %v3602_v61, %v3570_v16  ;;  %v14022_v16 = vld [vmem:[#allocation100_spill] sm:$0xff]  ;;  %v14023_v22 = vld [vmem:[#allocation39_spill] sm:$0xff] }
 0xc2f   : > { %v3631_v44 = vsel %vm1323_vm8, %v10585_v38, %v3626_v51  ;;  %v3635_v49 = vsel %vm1323_vm8, %v3626_v51, %v10585_v38  ;;  %v14021_v38 = vld [vmem:[#allocation36_spill] sm:$0xff] }
 0xc30   : > { %v3641_v46 = vmul.f32 %v3631_v44, %v14019_v13  ;;  %v3642_v50 = vmul.f32 %v3635_v49, %v14020_v6  ;;  %v3628_v57 = vpop.permute.xlu1 %3627  ;;  %v3611_v34 = vadd.f32 %v3603_v12, %v3571_v5  ;;  %v3612_v19 = vadd.f32 %v3604_v52, %v3572_v30  ;;  %v14024_v30 = vld [vmem:[#allocation40_spill] sm:$0xff] }
 0xc31   : > { %v3632_v33 = vsel %vm1323_vm8, %v10587_v48, %v3628_v57  ;;  %v3636_v21 = vsel %vm1323_vm8, %v3628_v57, %v10587_v48 }
 0xc32   : > { %v3649_v17 = vadd.f32 %v3641_v46, %v3609_v4  ;;  %v3650_v24 = vadd.f32 %v3642_v50, %v3610_v10  ;;  %v3643_v56 = vmul.f32 %v3632_v33, %v14021_v38  ;;  %v3644_v31 = vmul.f32 %v3636_v21, %v14022_v16 }
 0xc34   : > { %v3651_v61 = vadd.f32 %v3643_v56, %v3611_v34  ;;  %v3652_v47 = vadd.f32 %v3644_v31, %v3612_v19  ;;  %v3657_v51 = vadd.f32 %v3649_v17, %v14023_v22  ;;  %v3658_v12 = vadd.f32 %v3650_v24, %v14023_v22 }
 0xc36   : > { %v3665_v52 = vadd.f32 3.0, %v3657_v51  ;;  %v3666_v5 = vadd.f32 3.0, %v3658_v12  ;;  %v3659_v44 = vadd.f32 %v3651_v61, %v14024_v30  ;;  %v3660_v49 = vadd.f32 %v3652_v47, %v14024_v30 }
 0xc38   : > { %v3673_v6 = vmax.f32 %v3665_v52, 0.0  ;;  %v3674_v48 = vmax.f32 %v3666_v5, 0.0  ;;  %v3667_v4 = vadd.f32 3.0, %v3659_v44  ;;  %v3668_v10 = vadd.f32 3.0, %v3660_v49 }
 0xc3a   : > { %v3681_v46 = vmin.f32 %v3673_v6, 6.0  ;;  %v3682_v50 = vmin.f32 %v3674_v48, 6.0  ;;  %v3675_v57 = vmax.f32 %v3667_v4, 0.0  ;;  %v3676_v33 = vmax.f32 %v3668_v10, 0.0  ;;  %v14029_v48 = vld [vmem:[#allocation25_spill] sm:$0xff]  ;;  %v14031_v10 = vld [vmem:[#allocation26_spill] sm:$0xff] }
 0xc3c   : > { %v3689_v34 = vmul.f32 %v3681_v46, %v3657_v51  ;;  %v3690_v19 = vmul.f32 %v3682_v50, %v3658_v12  ;;  %v3683_v21 = vmin.f32 %v3675_v57, 6.0  ;;  %v3684_v17 = vmin.f32 %v3676_v33, 6.0  ;;  %v14030_v12 = vld [vmem:[#allocation32_spill] sm:$0xff]  ;;  %v14032_v50 = vld [vmem:[#allocation34_spill] sm:$0xff] }
 0xc3e   : > { %v10713_v56 = vmul.f32 0.16666667, %v3689_v34  ;;  %v10715_v24 = vmul.f32 0.16666667, %v3690_v19  ;;  %v3691_v31 = vmul.f32 %v3683_v21, %v3659_v44  ;;  %v3692_v61 = vmul.f32 %v3684_v17, %v3660_v49  ;;  %v14033_v21 = vld [vmem:[#allocation77_spill] sm:$0xff] }
 0xc3f   : > { %v3146_v22 = vpop.permute.xlu0 %3145 }
 0xc40   : > { %14025 = vst [vmem:[#allocation81_spill] sm:$0xff] %v10713_v56  ;;  %14026 = vst [vmem:[#allocation86_spill] sm:$0xff] %v10715_v24  ;;  %v3707_v47 = vadd.f32 %v10715_v24, %v10713_v56  ;;  %v10719_v52 = vmul.f32 0.16666667, %v3691_v31  ;;  %v10721_v5 = vmul.f32 0.16666667, %v3692_v61  ;;  %v3163_v51 = vmul.f32 %v3146_v22, %v14029_v48 }
 0xc41   : > { %v3151_v6 = vpop.permute.xlu1 %3150  ;;  %v3164_v4 = vmul.f32 %v3146_v22, %v14030_v12  ;;  %v14034_v31 = vld [vmem:[#allocation75_spill] sm:$0xff]  ;;  %v14035_v48 = vld [vmem:[#allocation76_spill] sm:$0xff]  ;;  %v14036_v22 = vld [vmem:[#allocation82_spill] sm:$0xff] }
 0xc42   : > { %14027 = vst [vmem:[#allocation101_spill] sm:$0xff] %v10719_v52  ;;  %14028 = vst [vmem:[#allocation102_spill] sm:$0xff] %v10721_v5  ;;  %v3165_v46 = vmul.f32 %v3151_v6, %v14031_v10  ;;  %v3166_v57 = vmul.f32 %v3151_v6, %v14032_v50  ;;  %3708 = vadd.xlane.f32.xlu0 %v3707_v47  ;;  %v3710_v49 = vadd.f32 %v10721_v5, %v10719_v52  ;;  %v14037_v10 = vmov 0.0|0.0  }
 0xc43   : > { %v3156_v44 = vpop.permute.xlu0 %3155 }
 0xc44   : > { %v3171_v33 = vpack.c.bf16 %v3165_v46, %v3163_v51  ;;  %v3172_v34 = vpack.c.bf16 %v3166_v57, %v3164_v4  ;;  %3711 = vadd.xlane.f32.xlu1 %v3710_v49  ;;  %v3167_v17 = vmul.f32 %v3156_v44, %v14033_v21  ;;  %v3168_v61 = vmul.f32 %v3156_v44, %v14034_v31  ;;  %v7564_v51 = vld [vmem:[%s13193_s10] sm:$0xff]  }
 0xc45   : > { %v3161_v19 = vpop.permute.xlu1 %3160  ;;  %v14038_v4 = vmov 0.0   ;;  %v7566_v31 = vld [vmem:[%s13191_s8] sm:$0xff] }
 0xc46   : > { %v3169_v24 = vmul.f32 %v3161_v19, %v14035_v48  ;;  %v3170_v12 = vmul.f32 %v3161_v19, %v14036_v22  ;;  %3175 = vmatprep.subr.bf16.mxu0 %v3172_v34 }
 0xc47   : > { %3176 = vmatpush1.bf16.msra.mxu0 %v3171_v33 }
 0xc48   : > { %v3173_v6 = vpack.c.bf16 %v3169_v24, %v3167_v17  ;;  %v3174_v47 = vpack.c.bf16 %v3170_v12, %v3168_v61  ;;  %v7565_v17 = vld [vmem:[%s13189_s6] sm:$0xff] }
 0xc4a   : > { %3177 = vmatprep.subr.bf16.mxu0 %v3174_v47  ;;  %v3977_v47 = vld [vmem:[%s7945_s13 + $0x88] sm:$0xff] }
 0xc4b   : > { %3178 = vmatpush1.bf16.msra.mxu0 %v3173_v6 }
 0xc4c   : > { %7441 = vmatprep.subr.bf16.mxu0 %v14037_v10 }
 0xc4e   : > { %7140 = vmatmul.mubr.msk.bf16.vlgmr.msra.gmra.mrb[28].mxu0 %vm1432_vm10, %v7564_v51  ;;  %v3979_v51 = vld [vmem:[%s7945_s13 + $0x98] sm:$0xff] }
 0xc4f   : > { %7336 = vmatprep.mubr.msk.f32.mxu0 %vm7766_vm9, %v14038_v4 }
 0xc8f   : > { %v3703_v46 = vpop.xlane.xlu0 %3702 }
 0xc90   : > { %v3713_v57 = vmul.f32 0.00390625, %v3703_v46  ;;  %v7567_v46 = vld [vmem:[%s13190_s7] sm:$0xff] }
 0xc91   : > { %v3706_v50 = vpop.xlane.xlu1 %3705 }
 0xc92   : > { %v3714_v44 = vmul.f32 0.00390625, %v3706_v50 }
 0xc94   : > { %v7442_v49 = vpack.c.bf16 %v3714_v44, %v3713_v57  ;;  %v3976_v44 = vld [vmem:[%s7945_s13 + $0x80] sm:$0xff] }
 0xc96   : > { %7443 = vmatpush3.bf16.msra.mxu0 %v7442_v49  ;;  %v3978_v49 = vld [vmem:[%s7945_s13 + $0x90] sm:$0xff] }
 0xc97   : > { %7444 = vmatprep.subr.bf16.mxu0 %v14037_v10 }
 0xccf   : > { %v3709_v24 = vpop.xlane.xlu0 %3708 }
 0xcd0   : > { %v3715_v34 = vmul.f32 0.00390625, %v3709_v24 }
 0xcd1   : > { %v3712_v33 = vpop.xlane.xlu1 %3711 }
 0xcd2   : > { %v3716_v19 = vmul.f32 0.00390625, %v3712_v33  ;;  %v3981_v33 = vpack.c.bf16 %v3979_v51, %v3977_v47  ;;  %v7572_v47 = vld [vmem:[%s13184_s1 + $0x8] sm:$0xff]  }
 0xcd4   : > { %v7445_v21 = vpack.c.bf16 %v3716_v19, %v3715_v34  ;;  %v3980_v34 = vpack.c.bf16 %v3978_v49, %v3976_v44  ;;  %v7568_v19 = vld [vmem:[%s13191_s8 + $0x8] sm:$0xff]  ;;  %v14044_v49 = vld [vmem:[#allocation11_spill] sm:$0xff] }
 0xcd6   : > { %7446 = vmatpush3.bf16.msra.mxu0 %v7445_v21  ;;  %v7569_v21 = vld [vmem:[%s13191_s8 + $0x10] sm:$0xff] }
 0xcd9   : > { %7337 = vmatmul.mubr.msk.f32.vlgmr.msra.gmra.mrb[18].mxu0 %vm1432_vm10, %v7565_v17  ;;  %v7570_v17 = vld [vmem:[%s13191_s8 + $0x18] sm:$0xff] }
 0xcda   : > { %7341 = vmatprep.mubr.msk.f32.mxu0 %vm1507_vm11, %v7566_v31  ;;  %v14043_v31 = vmov 0  }
 0xd21   : > { %v10749_v61 = vpop.f32.mrb[28].mxu0 }
 0xd22   : > { %14039 = vst [vmem:[#allocation84_spill] sm:$0xff] %v10749_v61  ;;  %v10751_v48 = vpop.f32.mrb[29].mxu0 }
 0xd23   : > { %14040 = vst [vmem:[#allocation87_spill] sm:$0xff] %v10751_v48  ;;  %v10753_v22 = vpop.f32.mrb[30].mxu0 }
 0xd24   : > { %14041 = vst [vmem:[#allocation88_spill] sm:$0xff] %v10753_v22  ;;  %v10755_v12 = vpop.f32.mrb[31].mxu0 }
 0xd25   : > { %14042 = vst [vmem:[#allocation89_spill] sm:$0xff] %v10755_v12 }
 0xdac   : > { %v3783_v6 = vpop.f32.mrb[18].mxu0 }
 0xdad   : > { %v3784_v50 = vadd.f32 %v7567_v46, %v3783_v6  ;;  %v7338_v57 = vpop.f32.mrb[19].mxu0  ;;  %v7571_v6 = vld [vmem:[%s13184_s1] sm:$0xff]  }
 0xdaf   : > { %v3787_v24 = vmax.f32 %v3784_v50, 0.0 }
 0xdb1   : > { %7339 = vmatprep.subr.mxu0 %v3787_v24 }
 0xdb2   : > { %7340 = vmatpush3.msra.mxu0 %v3787_v24 }
 0xdb3   : > { %7342 = vmatmul.mubr.msk.f32.vlgmr.msra.gmra.mrb[32].mxu0 %vm1507_vm11, %v7568_v19  ;;  %3982 = vmatprep.subr.bf16.mxu0 %v3981_v33 }
 0xdb4   : > { %7344 = vmatprep.mubr.msk.f32.mxu0 %vm1507_vm11, %v7569_v21  ;;  %3983 = vmatpush1.bf16.msra.mxu0 %v3980_v34  ;;  %v14045_v21 = vld [vmem:[#allocation13_spill] sm:$0xff] }
 0xdb7   : > { %7345 = vmatmul.mubr.msk.f32.gmra.mrb[34].mxu0 %vm1507_vm11, %v7570_v17 }
 0xdb8   : > { %4014 = vmatprep.mubr.bf16.mxu0 %v14043_v31 }
 0xdbb   : > { %7149 = vmatmul.mubr.msk.bf16.vlgmr.msra.gmra.mrb[36].mxu0 %vm910_vm0, %v7571_v6 }
 0xdbc   : > { %4024 = vmatprep.mubr.bf16.mxu0 %v14043_v31 }
 0xdc3   : > { %7150 = vmatmul.mubr.msk.bf16.gmra.mrb[40].mxu0 %vm910_vm0, %v7572_v47 }
 0xdc4   : > { %4707 = vmatprep.mubr.bf16.mxu0 %v14043_v31 }
 0xe86   : > { %v10787_v51 = vpop.f32.mrb[32].mxu0 }
 0xe87   : > { %v10789_v46 = vpop.f32.mrb[33].mxu0 }
 0xe8a   : > { %v10791_v50 = vpop.f32.mrb[34].mxu0 }
 0xe8b   : > { %v10793_v57 = vpop.f32.mrb[35].mxu0 }
 0xe8e   : > { %v4016_v44 = vpop.f32.mrb[36].mxu0 }
 0xe8f   : > { %v4017_v24 = vadd.f32 %v4016_v44, %v14044_v49  ;;  %v4018_v33 = vpop.f32.mrb[37].mxu0 }
 0xe90   : > { %v4020_v34 = vpop.f32.mrb[38].mxu0 }
 0xe91   : > { %v4035_v19 = vadd.f32 3.0, %v4017_v24  ;;  %v4021_v17 = vadd.f32 %v4020_v34, %v14045_v21  ;;  %v4022_v6 = vpop.f32.mrb[39].mxu0 }
 0xe93   : > { %v4043_v47 = vmax.f32 %v4035_v19, 0.0  ;;  %v4037_v48 = vadd.f32 3.0, %v4021_v17 }
 0xe95   : > { %v4051_v61 = vmin.f32 %v4043_v47, 6.0  ;;  %v4045_v12 = vmax.f32 %v4037_v48, 0.0  ;;  %v14046_v47 = vld [vmem:[#allocation12_spill] sm:$0xff] }
 0xe96   : > { %v4026_v22 = vpop.f32.mrb[40].mxu0 }
 0xe97   : > { %v4059_v31 = vmul.f32 %v4051_v61, %v4017_v24  ;;  %v4053_v4 = vmin.f32 %v4045_v12, 6.0  ;;  %v10797_v10 = vpop.f32.mrb[41].mxu0 }
 0xe98   : > { %v4030_v5 = vpop.f32.mrb[42].mxu0 }
 0xe99   : > { %v10799_v52 = vmul.f32 0.16666667, %v4059_v31  ;;  %v4061_v56 = vmul.f32 %v4053_v4, %v4021_v17  ;;  %v10801_v44 = vpop.f32.mrb[43].mxu0  ;;  %v4019_v4 = vadd.f32 %v4018_v33, %v14044_v49 }
 0xe9b   : > { %v10803_v30 = vmul.f32 0.16666667, %v4061_v56  ;;  %4083 = vrot.lane.b32.xlu0 %v10799_v52, %s13787_s14  ;;  %v4023_v56 = vadd.f32 %v4022_v6, %v14045_v21  ;;  %v4036_v61 = vadd.f32 3.0, %v4019_v4 }
 0xe9d   : > { %4085 = vrot.lane.b32.xlu1 %v10803_v30, %s13787_s14  ;;  %v4038_v48 = vadd.f32 3.0, %v4023_v56  ;;  %v4044_v12 = vmax.f32 %v4036_v61, 0.0 }
 0xe9f   : > { %4123 = vrot.lane.b32.xlu0 %v10799_v52, %s13786_s17  ;;  %v4046_v31 = vmax.f32 %v4038_v48, 0.0  ;;  %v4052_v24 = vmin.f32 %v4044_v12, 6.0 }
 0xea1   : > { %4125 = vrot.lane.b32.xlu1 %v10803_v30, %s13786_s17  ;;  %v4054_v33 = vmin.f32 %v4046_v31, 6.0  ;;  %v4060_v34 = vmul.f32 %v4052_v24, %v4019_v4  ;;  %v4027_v4 = vadd.f32 %v4026_v22, %v14046_v47 }
 0xea3   : > { %4163 = vrot.lane.b32.xlu0 %v10799_v52, %s13788_s20  ;;  %v4062_v19 = vmul.f32 %v4054_v33, %v4023_v56  ;;  %v10837_v17 = vmul.f32 0.16666667, %v4060_v34  ;;  %v14047_v56 = vld [vmem:[#allocation14_spill] sm:$0xff]  ;;  %v4039_v48 = vadd.f32 3.0, %v4027_v4 }
 0xea4   : > { %v4031_v61 = vadd.f32 %v4030_v5, %v14047_v56 }
 0xea5   : > { %4165 = vrot.lane.b32.xlu1 %v10803_v30, %s13788_s20  ;;  %v10841_v6 = vmul.f32 0.16666667, %v4062_v19  ;;  %v4047_v31 = vmax.f32 %v4039_v48, 0.0 }
 0xea6   : > { %v4041_v12 = vadd.f32 3.0, %v4031_v61 }
 0xea7   : > { %4203 = vrot.lane.b32.xlu0 %v10799_v52, %s13789_s19  ;;  %v4055_v5 = vmin.f32 %v4047_v31, 6.0 }
 0xea8   : > { %v4049_v22 = vmax.f32 %v4041_v12, 0.0 }
 0xea9   : > { %4205 = vrot.lane.b32.xlu1 %v10803_v30, %s13789_s19  ;;  %v4063_v33 = vmul.f32 %v4055_v5, %v4027_v4  ;;  %v4029_v4 = vadd.f32 %v10797_v10, %v14046_v47 }
 0xeaa   : > { %v4057_v24 = vmin.f32 %v4049_v22, 6.0 }
 0xeab   : > { %4243 = vrot.lane.b32.xlu0 %v10799_v52, %s13790_s18  ;;  %v10875_v19 = vmul.f32 0.16666667, %v4063_v33  ;;  %v4040_v12 = vadd.f32 3.0, %v4029_v4 }
 0xeac   : > { %v4065_v34 = vmul.f32 %v4057_v24, %v4031_v61  ;;  %v4033_v61 = vadd.f32 %v10801_v44, %v14047_v56 }
 0xead   : > { %4245 = vrot.lane.b32.xlu1 %v10803_v30, %s13790_s18  ;;  %v4048_v22 = vmax.f32 %v4040_v12, 0.0 }
 0xeae   : > { %v10879_v48 = vmul.f32 0.16666667, %v4065_v34  ;;  %v4042_v31 = vadd.f32 3.0, %v4033_v61 }
 0xeaf   : > { %4283 = vrot.lane.b32.xlu0 %v10799_v52, %s13791_s23  ;;  %v4056_v44 = vmin.f32 %v4048_v22, 6.0 }
 0xeb0   : > { %v4050_v10 = vmax.f32 %v4042_v31, 0.0  ;;  %v7574_v31 = vld [vmem:[%s13192_s9 + $0x8] sm:$0xff] }
 0xeb1   : > { %4285 = vrot.lane.b32.xlu1 %v10803_v30, %s13791_s23  ;;  %v4064_v24 = vmul.f32 %v4056_v44, %v4029_v4  ;;  %v7573_v4 = vld [vmem:[%s13192_s9] sm:$0xff]  ;;  %v3860_v22 = vadd.f32 %v7574_v31, %v10787_v51  ;;  %v7575_v44 = vld [vmem:[%s13192_s9 + $0x10] sm:$0xff] }
 0xeb2   : > { %v4058_v5 = vmin.f32 %v4050_v10, 6.0 }
 0xeb3   : > { %4323 = vrot.lane.b32.xlu0 %v10799_v52, %s13792_s27  ;;  %v10915_v34 = vmul.f32 0.16666667, %v4064_v24  ;;  %v7576_v24 = vld [vmem:[%s13192_s9 + $0x18] sm:$0xff] }
 0xeb4   : > { %v4066_v33 = vmul.f32 %v4058_v5, %v4033_v61  ;;  %v3855_v61 = vadd.f32 %v7573_v4, %v10789_v46  ;;  %v3865_v5 = vadd.f32 %v7575_v44, %v10793_v57  ;;  %v3874_v46 = vmul.f32 1.2, %v3860_v22 }
 0xeb5   : > { %4325 = vrot.lane.b32.xlu1 %v10803_v30, %s13792_s27  ;;  %v3870_v51 = vadd.f32 %v7576_v24, %v10791_v50 }
 0xeb6   : > { %v10919_v12 = vmul.f32 0.16666667, %v4066_v33  ;;  %v3873_v10 = vmul.f32 1.2, %v3855_v61  ;;  %v3875_v4 = vmul.f32 1.2, %v3865_v5 }
 0xeb7   : > { %4363 = vrot.lane.b32.xlu0 %v10799_v52, %s13793_s30  ;;  %v3878_v57 = vadd.f32 3.0, %v3874_v46  ;;  %v3876_v31 = vmul.f32 1.2, %v3870_v51 }
 0xeb8   : > { %v3877_v33 = vadd.f32 3.0, %v3873_v10  ;;  %v3879_v56 = vadd.f32 3.0, %v3875_v4 }
 0xeb9   : > { %4365 = vrot.lane.b32.xlu1 %v10803_v30, %s13793_s30  ;;  %v3882_v24 = vmax.f32 %v3878_v57, 0.0  ;;  %v3880_v47 = vadd.f32 3.0, %v3876_v31 }
 0xeba   : > { %v3881_v22 = vmax.f32 %v3877_v33, 0.0  ;;  %v3883_v21 = vmax.f32 %v3879_v56, 0.0 }
 0xebb   : > { %4091 = vrot.lane.b32.xlu0 %v10837_v17, %s13787_s14  ;;  %v3886_v51 = vmin.f32 %v3882_v24, 6.0  ;;  %v3884_v49 = vmax.f32 %v3880_v47, 0.0 }
 0xebc   : > { %v3885_v5 = vmin.f32 %v3881_v22, 6.0  ;;  %v3887_v16 = vmin.f32 %v3883_v21, 6.0 }
 0xebd   : > { %4093 = vrot.lane.b32.xlu1 %v10841_v6, %s13787_s14  ;;  %v3890_v31 = vmul.f32 0.16666667, %v3886_v51  ;;  %v3888_v38 = vmin.f32 %v3884_v49, 6.0 }
 0xebe   : > { %v3889_v4 = vmul.f32 0.16666667, %v3885_v5  ;;  %v3891_v56 = vmul.f32 0.16666667, %v3887_v16 }
 0xebf   : > { %4131 = vrot.lane.b32.xlu0 %v10837_v17, %s13786_s17  ;;  %v3892_v24 = vmul.f32 0.16666667, %v3888_v38 }
 0xec1   : > { %4133 = vrot.lane.b32.xlu1 %v10841_v6, %s13786_s17 }
 0xec3   : > { %4171 = vrot.lane.b32.xlu0 %v10837_v17, %s13788_s20 }
 0xec5   : > { %4173 = vrot.lane.b32.xlu1 %v10841_v6, %s13788_s20 }
 0xec7   : > { %4211 = vrot.lane.b32.xlu0 %v10837_v17, %s13789_s19 }
 0xec9   : > { %4213 = vrot.lane.b32.xlu1 %v10841_v6, %s13789_s19 }
 0xecb   : > { %4251 = vrot.lane.b32.xlu0 %v10837_v17, %s13790_s18 }
 0xecd   : > { %4253 = vrot.lane.b32.xlu1 %v10841_v6, %s13790_s18 }
 0xecf   : > { %4291 = vrot.lane.b32.xlu0 %v10837_v17, %s13791_s23 }
 0xed1   : > { %4293 = vrot.lane.b32.xlu1 %v10841_v6, %s13791_s23 }
 0xed3   : > { %4331 = vrot.lane.b32.xlu0 %v10837_v17, %s13792_s27 }
 0xed5   : > { %4333 = vrot.lane.b32.xlu1 %v10841_v6, %s13792_s27 }
 0xed7   : > { %4371 = vrot.lane.b32.xlu0 %v10837_v17, %s13793_s30 }
 0xed9   : > { %4373 = vrot.lane.b32.xlu1 %v10841_v6, %s13793_s30 }
 0xedb   : > { %4087 = vrot.lane.b32.xlu0 %v10875_v19, %s13787_s14 }
 0xedd   : > { %4089 = vrot.lane.b32.xlu1 %v10879_v48, %s13787_s14 }
 0xedf   : > { %4127 = vrot.lane.b32.xlu0 %v10875_v19, %s13786_s17 }
 0xee1   : > { %4129 = vrot.lane.b32.xlu1 %v10879_v48, %s13786_s17 }
 0xee3   : > { %4167 = vrot.lane.b32.xlu0 %v10875_v19, %s13788_s20 }
 0xee5   : > { %4169 = vrot.lane.b32.xlu1 %v10879_v48, %s13788_s20 }
 0xee7   : > { %4207 = vrot.lane.b32.xlu0 %v10875_v19, %s13789_s19 }
 0xee9   : > { %4209 = vrot.lane.b32.xlu1 %v10879_v48, %s13789_s19 }
 0xeeb   : > { %4247 = vrot.lane.b32.xlu0 %v10875_v19, %s13790_s18 }
 0xeed   : > { %4249 = vrot.lane.b32.xlu1 %v10879_v48, %s13790_s18 }
 0xeef   : > { %4287 = vrot.lane.b32.xlu0 %v10875_v19, %s13791_s23 }
 0xef1   : > { %4289 = vrot.lane.b32.xlu1 %v10879_v48, %s13791_s23 }
 0xef3   : > { %4327 = vrot.lane.b32.xlu0 %v10875_v19, %s13792_s27 }
 0xef5   : > { %4329 = vrot.lane.b32.xlu1 %v10879_v48, %s13792_s27 }
 0xef7   : > { %4367 = vrot.lane.b32.xlu0 %v10875_v19, %s13793_s30 }
 0xef9   : > { %4369 = vrot.lane.b32.xlu1 %v10879_v48, %s13793_s30 }
 0xefb   : > { %4095 = vrot.lane.b32.xlu0 %v10915_v34, %s13787_s14 }
 0xefd   : > { %4097 = vrot.lane.b32.xlu1 %v10919_v12, %s13787_s14 }
 0xeff   : > { %4135 = vrot.lane.b32.xlu0 %v10915_v34, %s13786_s17 }
 0xf01   : > { %4137 = vrot.lane.b32.xlu1 %v10919_v12, %s13786_s17 }
 0xf03   : > { %4175 = vrot.lane.b32.xlu0 %v10915_v34, %s13788_s20 }
 0xf05   : > { %4177 = vrot.lane.b32.xlu1 %v10919_v12, %s13788_s20 }
 0xf07   : > { %4215 = vrot.lane.b32.xlu0 %v10915_v34, %s13789_s19 }
 0xf09   : > { %4217 = vrot.lane.b32.xlu1 %v10919_v12, %s13789_s19 }
 0xf0b   : > { %4255 = vrot.lane.b32.xlu0 %v10915_v34, %s13790_s18 }
 0xf0d   : > { %4257 = vrot.lane.b32.xlu1 %v10919_v12, %s13790_s18  ;;  %v4084_v61 = vpop.permute.xlu0 %4083 }
 0xf0f   : > { %v4086_v44 = vpop.permute.xlu1 %4085  ;;  %4295 = vrot.lane.b32.xlu0 %v10915_v34, %s13791_s23 }
 0xf11   : > { %4297 = vrot.lane.b32.xlu1 %v10919_v12, %s13791_s23  ;;  %v4124_v50 = vpop.permute.xlu0 %4123 }
 0xf13   : > { %v4126_v10 = vpop.permute.xlu1 %4125  ;;  %4335 = vrot.lane.b32.xlu0 %v10915_v34, %s13792_s27 }
 0xf15   : > { %4337 = vrot.lane.b32.xlu1 %v10919_v12, %s13792_s27  ;;  %v4164_v46 = vpop.permute.xlu0 %4163 }
 0xf17   : > { %v4166_v33 = vpop.permute.xlu1 %4165  ;;  %4375 = vrot.lane.b32.xlu0 %v10915_v34, %s13793_s30 }
 0xf19   : > { %4377 = vrot.lane.b32.xlu1 %v10919_v12, %s13793_s30  ;;  %v4204_v57 = vpop.permute.xlu0 %4203 }
 0xf1b   : > { %v4206_v22 = vpop.permute.xlu1 %4205  ;;  %3895 = vperm.xlu0 %7532, %v3889_v4  }
 0xf1d   : > { %3900 = vperm.xlu1 %7533, %v3890_v31   ;;  %v10969_v13 = vpop.permute.xlu0 %4243 }
 0xf1f   : > { %v10971_v47 = vpop.permute.xlu1 %4245  ;;  %3905 = vperm.xlu0 %7532, %v3891_v56  }
 0xf21   : > { %3910 = vperm.xlu1 %7533, %v3892_v24   ;;  %v10973_v60 = vpop.permute.xlu0 %4283 }
 0xf23   : > { %v10975_v21 = vpop.permute.xlu1 %4285 }
 0xf25   : > { %v10977_v5 = vpop.permute.xlu0 %4323 }
 0xf27   : > { %v10979_v3 = vpop.permute.xlu1 %4325 }
 0xf29   : > { %v10981_v49 = vpop.permute.xlu0 %4363 }
 0xf2b   : > { %v10983_v51 = vpop.permute.xlu1 %4365 }
 0xf2d   : > { %v4092_v16 = vpop.permute.xlu0 %4091 }
 0xf2e   : > { %v4099_v38 = vsel %vm1036_vm1, %v4084_v61, %v4092_v16  ;;  %v4103_v56 = vsel %vm1036_vm1, %v4092_v16, %v4084_v61  ;;  %v4076_v61 = vmul.f32 %v10837_v17, %v13885_v55  ;;  %v14049_v16 = vld [vmem:[#allocation63_spill] sm:$0xff] }
 0xf2f   : > { %v4094_v4 = vpop.permute.xlu1 %4093  ;;  %v4107_v18 = vmul.f32 %v4103_v56, %v13965_v27  ;;  %v4108_v36 = vmul.f32 %v4099_v38, %v14048_v37  ;;  %v4075_v58 = vmul.f32 %v10799_v52, %v14049_v16  ;;  %v14052_v37 = vld [vmem:[#allocation67_spill] sm:$0xff] }
 0xf30   : > { %v4100_v32 = vsel %vm1036_vm1, %v4086_v44, %v4094_v4  ;;  %v4104_v15 = vsel %vm1036_vm1, %v4094_v4, %v4086_v44  ;;  %v14051_v4 = vld [vmem:[#allocation66_spill] sm:$0xff] }
 0xf31   : > { %v4132_v31 = vpop.permute.xlu0 %4131  ;;  %v4109_v44 = vmul.f32 %v4104_v15, %v14050_v14  ;;  %v4110_v43 = vmul.f32 %v4100_v32, %v14051_v4  ;;  %v4115_v15 = vadd.f32 %v4107_v18, %v4075_v58  ;;  %v4116_v14 = vadd.f32 %v4108_v36, %v4076_v61  ;;  %v14054_v4 = vld [vmem:[#allocation69_spill] sm:$0xff]  ;;  %v14058_v36 = vld [vmem:[#allocation72_spill] sm:$0xff] }
 0xf32   : > { %v4139_v1 = vsel %vm1077_vm2, %v4124_v50, %v4132_v31  ;;  %v4143_v23 = vsel %vm1077_vm2, %v4132_v31, %v4124_v50  ;;  %v14053_v50 = vld [vmem:[#allocation68_spill] sm:$0xff]  ;;  %v4078_v32 = vmul.f32 %v10841_v6, %v13815_v63  ;;  %v4077_v55 = vmul.f32 %v10803_v30, %v14054_v4 }
 0xf33   : > { %v4134_v24 = vpop.permute.xlu1 %4133  ;;  %v4147_v27 = vmul.f32 %v4143_v23, %v14052_v37  ;;  %v4148_v31 = vmul.f32 %v4139_v1, %v14053_v50  ;;  %v14056_v23 = vld [vmem:[#allocation74_spill] sm:$0xff] }
 0xf34   : > { %v4140_v38 = vsel %vm1077_vm2, %v4126_v10, %v4134_v24  ;;  %v4144_v56 = vsel %vm1077_vm2, %v4134_v24, %v4126_v10  ;;  %v14055_v10 = vld [vmem:[#allocation73_spill] sm:$0xff]  ;;  %v4117_v61 = vadd.f32 %v4109_v44, %v4077_v55 }
 0xf35   : > { %v4172_v0 = vpop.permute.xlu0 %4171  ;;  %v4149_v24 = vmul.f32 %v4144_v56, %v14055_v10  ;;  %v4150_v37 = vmul.f32 %v4140_v38, %v14056_v23  ;;  %v4118_v56 = vadd.f32 %v4110_v43, %v4078_v32  ;;  %v4155_v38 = vadd.f32 %v4147_v27, %v4115_v15 }
 0xf36   : > { %v4179_v17 = vsel %vm1118_vm3, %v4164_v46, %v4172_v0  ;;  %v4183_v52 = vsel %vm1118_vm3, %v4172_v0, %v4164_v46  ;;  %v14057_v46 = vld [vmem:[#allocation71_spill] sm:$0xff]  ;;  %v4156_v23 = vadd.f32 %v4148_v31, %v4116_v14 }
 0xf37   : > { %v4174_v41 = vpop.permute.xlu1 %4173  ;;  %v4187_v58 = vmul.f32 %v4183_v52, %v14057_v46  ;;  %v4188_v18 = vmul.f32 %v4179_v17, %v14058_v36  ;;  %v4157_v52 = vadd.f32 %v4149_v24, %v4117_v61  ;;  %v4158_v36 = vadd.f32 %v4150_v37, %v4118_v56 }
 0xf38   : > { %v4180_v1 = vsel %vm1118_vm3, %v4166_v33, %v4174_v41  ;;  %v4184_v50 = vsel %vm1118_vm3, %v4174_v41, %v4166_v33 }
 0xf39   : > { %v4212_v16 = vpop.permute.xlu0 %4211  ;;  %v4189_v4 = vmul.f32 %v4184_v50, %v13889_v53  ;;  %v4190_v41 = vmul.f32 %v4180_v1, %v13822_v54  ;;  %v4195_v27 = vadd.f32 %v4187_v58, %v4155_v38  ;;  %v4196_v14 = vadd.f32 %v4188_v18, %v4156_v23 }
 0xf3a   : > { %v4219_v6 = vsel %vm1159_vm4, %v4204_v57, %v4212_v16  ;;  %v4223_v30 = vsel %vm1159_vm4, %v4212_v16, %v4204_v57 }
 0xf3b   : > { %v4214_v0 = vpop.permute.xlu1 %4213  ;;  %v4227_v46 = vmul.f32 %v4223_v30, %v13890_v40  ;;  %v4228_v55 = vmul.f32 %v4219_v6, %v13891_v42  ;;  %v4197_v15 = vadd.f32 %v4189_v4, %v4157_v52  ;;  %v4198_v32 = vadd.f32 %v4190_v41, %v4158_v36 }
 0xf3c   : > { %v4220_v33 = vsel %vm1159_vm4, %v4206_v22, %v4214_v0  ;;  %v4224_v17 = vsel %vm1159_vm4, %v4214_v0, %v4206_v22 }
 0xf3d   : > { %v4252_v10 = vpop.permute.xlu0 %4251  ;;  %v4229_v44 = vmul.f32 %v4224_v17, %v13823_v29  ;;  %v4230_v22 = vmul.f32 %v4220_v33, %v13892_v39  ;;  %v4236_v23 = vadd.f32 %v4228_v55, %v4196_v14 }
 0xf3e   : > { %v4259_v57 = vsel %vm1200_vm5, %v10969_v13, %v4252_v10  ;;  %v4263_v16 = vsel %vm1200_vm5, %v4252_v10, %v10969_v13  ;;  %v4235_v10 = vadd.f32 %v4227_v46, %v4195_v27 }
 0xf3f   : > { %v4254_v43 = vpop.permute.xlu1 %4253  ;;  %v4267_v1 = vmul.f32 %v4259_v57, %v13893_v8  ;;  %v4268_v0 = vmul.f32 %v4263_v16, %v13894_v9  ;;  %v4238_v46 = vadd.f32 %v4230_v22, %v4198_v32 }
 0xf40   : > { %v4260_v37 = vsel %vm1200_vm5, %v10971_v47, %v4254_v43  ;;  %v4264_v50 = vsel %vm1200_vm5, %v4254_v43, %v10971_v47 }
 0xf41   : > { %v4292_v31 = vpop.permute.xlu0 %4291  ;;  %v4269_v47 = vmul.f32 %v4260_v37, %v13895_v28  ;;  %v4270_v4 = vmul.f32 %v4264_v50, %v13826_v26  ;;  %v4276_v17 = vadd.f32 %v4268_v0, %v4236_v23  ;;  %v14060_v50 = vld [vmem:[#allocation92_spill] sm:$0xff] }
 0xf42   : > { %v4299_v24 = vsel %vm1241_vm6, %v10973_v60, %v4292_v31  ;;  %v4303_v13 = vsel %vm1241_vm6, %v4292_v31, %v10973_v60  ;;  %v4237_v60 = vadd.f32 %v4229_v44, %v4197_v15 }
 0xf43   : > { %v4294_v58 = vpop.permute.xlu1 %4293  ;;  %v4307_v6 = vmul.f32 %v4299_v24, %v13896_v2  ;;  %v4308_v30 = vmul.f32 %v4303_v13, %v13975_v25  ;;  %v4278_v14 = vadd.f32 %v4270_v4, %v4238_v46 }
 0xf44   : > { %v4300_v36 = vsel %vm1241_vm6, %v10975_v21, %v4294_v58  ;;  %v4304_v18 = vsel %vm1241_vm6, %v4294_v58, %v10975_v21  ;;  %v4275_v21 = vadd.f32 %v4267_v1, %v4235_v10  ;;  %v4277_v27 = vadd.f32 %v4269_v47, %v4237_v60  ;;  %v14062_v58 = vld [vmem:[#allocation94_spill] sm:$0xff] }
 0xf45   : > { %v4332_v61 = vpop.permute.xlu0 %4331  ;;  %v4309_v56 = vmul.f32 %v4300_v36, %v13976_v11  ;;  %v4310_v38 = vmul.f32 %v4304_v18, %v13977_v20  ;;  %v4316_v22 = vadd.f32 %v4308_v30, %v4276_v17 }
 0xf46   : > { %v4339_v41 = vsel %vm1282_vm7, %v10977_v5, %v4332_v61  ;;  %v4343_v33 = vsel %vm1282_vm7, %v4332_v61, %v10977_v5  ;;  %v4315_v44 = vadd.f32 %v4307_v6, %v4275_v21  ;;  %v14059_v5 = vld [vmem:[#allocation91_spill] sm:$0xff] }
 0xf47   : > { %v4347_v52 = vmul.f32 %v4339_v41, %v13978_v45  ;;  %v4348_v55 = vmul.f32 %v4343_v33, %v13979_v7  ;;  %v4334_v43 = vpop.permute.xlu1 %4333  ;;  %v4317_v32 = vadd.f32 %v4309_v56, %v4277_v27  ;;  %v4318_v24 = vadd.f32 %v4310_v38, %v4278_v14  ;;  %v14064_v56 = vld [vmem:[#allocation96_spill] sm:$0xff] }
 0xf48   : > { %v4340_v57 = vsel %vm1282_vm7, %v10979_v3, %v4334_v43  ;;  %v4344_v16 = vsel %vm1282_vm7, %v4334_v43, %v10979_v3  ;;  %v14061_v3 = vld [vmem:[#allocation93_spill] sm:$0xff] }
 0xf49   : > { %v4349_v37 = vmul.f32 %v4340_v57, %v14059_v5  ;;  %v4350_v31 = vmul.f32 %v4344_v16, %v14060_v50  ;;  %v4372_v15 = vpop.permute.xlu0 %4371  ;;  %v4355_v23 = vadd.f32 %v4347_v52, %v4315_v44  ;;  %v4356_v1 = vadd.f32 %v4348_v55, %v4316_v22  ;;  %v14065_v52 = vld [vmem:[#allocation37_spill] sm:$0xff]  ;;  %v14066_v16 = vld [vmem:[#allocation38_spill] sm:$0xff] }
 0xf4a   : > { %v4379_v13 = vsel %vm1323_vm8, %v10981_v49, %v4372_v15  ;;  %v4383_v10 = vsel %vm1323_vm8, %v4372_v15, %v10981_v49  ;;  %v14063_v49 = vld [vmem:[#allocation95_spill] sm:$0xff] }
 0xf4b   : > { %v4387_v0 = vmul.f32 %v4379_v13, %v14061_v3  ;;  %v4388_v47 = vmul.f32 %v4383_v10, %v14062_v58  ;;  %v4374_v4 = vpop.permute.xlu1 %4373  ;;  %v4357_v36 = vadd.f32 %v4349_v37, %v4317_v32  ;;  %v4358_v18 = vadd.f32 %v4350_v31, %v4318_v24 }
 0xf4c   : > { %v4380_v60 = vsel %vm1323_vm8, %v10983_v51, %v4374_v4  ;;  %v4384_v46 = vsel %vm1323_vm8, %v4374_v4, %v10983_v51 }
 0xf4d   : > { %v4395_v6 = vadd.f32 %v4387_v0, %v4355_v23  ;;  %v4396_v30 = vadd.f32 %v4388_v47, %v4356_v1  ;;  %v4389_v61 = vmul.f32 %v4380_v60, %v14063_v49  ;;  %v4390_v38 = vmul.f32 %v4384_v46, %v14064_v56  ;;  %v4088_v41 = vpop.permute.xlu0 %4087 }
 0xf4f   : > { %v4397_v33 = vadd.f32 %v4389_v61, %v4357_v36  ;;  %v4398_v21 = vadd.f32 %v4390_v38, %v4358_v18  ;;  %v4090_v17 = vpop.permute.xlu1 %4089  ;;  %v4403_v55 = vadd.f32 %v4395_v6, %v14065_v52  ;;  %v4404_v43 = vadd.f32 %v4396_v30, %v14065_v52  ;;  %v14074_v52 = vld [vmem:[#allocation44_spill] sm:$0xff] }
 0xf51   : > { %v4128_v27 = vpop.permute.xlu0 %4127  ;;  %v4411_v14 = vadd.f32 3.0, %v4403_v55  ;;  %v4412_v57 = vadd.f32 3.0, %v4404_v43  ;;  %v4405_v44 = vadd.f32 %v4397_v33, %v14066_v16  ;;  %v4406_v51 = vadd.f32 %v4398_v21, %v14066_v16 }
 0xf53   : > { %v4130_v22 = vpop.permute.xlu1 %4129  ;;  %v4419_v37 = vmax.f32 %v4411_v14, 0.0  ;;  %v4420_v31 = vmax.f32 %v4412_v57, 0.0  ;;  %v4413_v15 = vadd.f32 3.0, %v4405_v44  ;;  %v4414_v32 = vadd.f32 3.0, %v4406_v51 }
 0xf55   : > { %v4168_v24 = vpop.permute.xlu0 %4167  ;;  %v4427_v13 = vmin.f32 %v4419_v37, 6.0  ;;  %v4428_v10 = vmin.f32 %v4420_v31, 6.0  ;;  %v4421_v23 = vmax.f32 %v4413_v15, 0.0  ;;  %v4422_v1 = vmax.f32 %v4414_v32, 0.0 }
 0xf57   : > { %v4170_v0 = vpop.permute.xlu1 %4169  ;;  %v4435_v47 = vmul.f32 %v4427_v13, %v4403_v55  ;;  %v4436_v4 = vmul.f32 %v4428_v10, %v4404_v43  ;;  %v4429_v36 = vmin.f32 %v4421_v23, 6.0  ;;  %v4430_v18 = vmin.f32 %v4422_v1, 6.0 }
 0xf59   : > { %v4208_v60 = vpop.permute.xlu0 %4207  ;;  %v11109_v46 = vmul.f32 0.16666667, %v4435_v47  ;;  %v11111_v6 = vmul.f32 0.16666667, %v4436_v4  ;;  %v4437_v30 = vmul.f32 %v4429_v36, %v4405_v44  ;;  %v4438_v61 = vmul.f32 %v4430_v18, %v4406_v51 }
 0xf5b   : > { %14067 = vst [vmem:[#allocation90_spill] sm:$0xff] %v11109_v46  ;;  %14068 = vst [vmem:[#allocation25_spill] sm:$0xff] %v11111_v6  ;;  %v4210_v38 = vpop.permute.xlu1 %4209  ;;  %v4451_v33 = vadd.f32 %v11111_v6, %v11109_v46  ;;  %v11115_v21 = vmul.f32 0.16666667, %v4437_v30  ;;  %v11117_v14 = vmul.f32 0.16666667, %v4438_v61 }
 0xf5c   : > { %v14072_v6 = vld [vmem:[#allocation16_spill] sm:$0xff] }
 0xf5d   : > { %14069 = vst [vmem:[#allocation32_spill] sm:$0xff] %v11115_v21  ;;  %14070 = vst [vmem:[#allocation26_spill] sm:$0xff] %v11117_v14  ;;  %v11119_v57 = vpop.permute.xlu0 %4247  ;;  %4452 = vadd.xlane.f32.xlu0 %v4451_v33  ;;  %v4454_v55 = vadd.f32 %v11117_v14, %v11115_v21  ;;  %v14071_v33 = vld [vmem:[#allocation43_spill] sm:$0xff] }
 0xf5f   : > { %v11123_v43 = vpop.permute.xlu1 %4249  ;;  %4455 = vadd.xlane.f32.xlu1 %v4454_v55 }
 0xf61   : > { %v11125_v37 = vpop.permute.xlu0 %4287 }
 0xf63   : > { %v11127_v44 = vpop.permute.xlu1 %4289 }
 0xf65   : > { %v11129_v51 = vpop.permute.xlu0 %4327 }
 0xf67   : > { %v11131_v31 = vpop.permute.xlu1 %4329 }
 0xf69   : > { %v11133_v15 = vpop.permute.xlu0 %4367 }
 0xf6b   : > { %v11135_v32 = vpop.permute.xlu1 %4369 }
 0xf6d   : > { %v4096_v13 = vpop.permute.xlu0 %4095 }
 0xf6e   : > { %v4101_v1 = vsel %vm1036_vm1, %v4088_v41, %v4096_v13  ;;  %v4105_v47 = vsel %vm1036_vm1, %v4096_v13, %v4088_v41  ;;  %v4079_v41 = vmul.f32 %v10875_v19, %v14072_v6  ;;  %v14073_v13 = vld [vmem:[#allocation17_spill] sm:$0xff]  ;;  %v14079_v6 = vld [vmem:[#allocation48_spill] sm:$0xff] }
 0xf6f   : > { %v4098_v10 = vpop.permute.xlu1 %4097  ;;  %v4111_v61 = vmul.f32 %v4105_v47, %v13992_v35  ;;  %v4112_v55 = vmul.f32 %v4101_v1, %v14071_v33  ;;  %v4080_v46 = vmul.f32 %v10915_v34, %v14073_v13  ;;  %v14076_v33 = vld [vmem:[#allocation46_spill] sm:$0xff]  ;;  %v4082_v49 = vmul.f32 %v10919_v12, %v14079_v6 }
 0xf70   : > { %v4102_v36 = vsel %vm1036_vm1, %v4090_v17, %v4098_v10  ;;  %v4106_v18 = vsel %vm1036_vm1, %v4098_v10, %v4090_v17  ;;  %v14075_v10 = vld [vmem:[#allocation45_spill] sm:$0xff] }
 0xf71   : > { %v4136_v23 = vpop.permute.xlu0 %4135  ;;  %v4113_v17 = vmul.f32 %v4106_v18, %v14074_v52  ;;  %v4114_v56 = vmul.f32 %v4102_v36, %v14075_v10  ;;  %v4119_v18 = vadd.f32 %v4111_v61, %v4079_v41  ;;  %v4120_v52 = vadd.f32 %v4112_v55, %v4080_v46  ;;  %v14078_v36 = vld [vmem:[#allocation47_spill] sm:$0xff]  ;;  %v14083_v46 = vld [vmem:[#allocation21_spill] sm:$0xff] }
 0xf72   : > { %v4141_v14 = vsel %vm1077_vm2, %v4128_v27, %v4136_v23  ;;  %v4145_v21 = vsel %vm1077_vm2, %v4136_v23, %v4128_v27  ;;  %v14077_v27 = vld [vmem:[#allocation19_spill] sm:$0xff]  ;;  %v4081_v10 = vmul.f32 %v10879_v48, %v14078_v36  ;;  %v14084_v36 = vld [vmem:[#allocation53_spill] sm:$0xff] }
 0xf73   : > { %v4138_v4 = vpop.permute.xlu1 %4137  ;;  %v4151_v35 = vmul.f32 %v4145_v21, %v14076_v33  ;;  %v4152_v23 = vmul.f32 %v4141_v14, %v14077_v27  ;;  %v14081_v21 = vld [vmem:[#allocation50_spill] sm:$0xff] }
 0xf74   : > { %v4142_v1 = vsel %vm1077_vm2, %v4130_v22, %v4138_v4  ;;  %v4146_v47 = vsel %vm1077_vm2, %v4138_v4, %v4130_v22  ;;  %v14080_v22 = vld [vmem:[#allocation49_spill] sm:$0xff]  ;;  %v4121_v41 = vadd.f32 %v4113_v17, %v4081_v10  ;;  %v14087_v10 = vld [vmem:[#allocation54_spill] sm:$0xff] }
 0xf75   : > { %v4176_v30 = vpop.permute.xlu0 %4175  ;;  %v4153_v4 = vmul.f32 %v4146_v47, %v14080_v22  ;;  %v4154_v33 = vmul.f32 %v4142_v1, %v14081_v21  ;;  %v4122_v47 = vadd.f32 %v4114_v56, %v4082_v49  ;;  %v4159_v1 = vadd.f32 %v4151_v35, %v4119_v18 }
 0xf76   : > { %v4181_v19 = vsel %vm1118_vm3, %v4168_v24, %v4176_v30  ;;  %v4185_v34 = vsel %vm1118_vm3, %v4176_v30, %v4168_v24  ;;  %v14082_v30 = vld [vmem:[#allocation18_spill] sm:$0xff]  ;;  %v4160_v21 = vadd.f32 %v4152_v23, %v4120_v52 }
 0xf77   : > { %v4178_v16 = vpop.permute.xlu1 %4177  ;;  %v4191_v61 = vmul.f32 %v4185_v34, %v14082_v30  ;;  %v4192_v55 = vmul.f32 %v4181_v19, %v14083_v46  ;;  %v4161_v34 = vadd.f32 %v4153_v4, %v4121_v41  ;;  %v4162_v46 = vadd.f32 %v4154_v33, %v4122_v47  ;;  %v14085_v30 = vld [vmem:[#allocation20_spill] sm:$0xff] }
 0xf78   : > { %v4182_v14 = vsel %vm1118_vm3, %v4170_v0, %v4178_v16  ;;  %v4186_v27 = vsel %vm1118_vm3, %v4178_v16, %v4170_v0 }
 0xf79   : > { %v4216_v13 = vpop.permute.xlu0 %4215  ;;  %v4193_v6 = vmul.f32 %v4186_v27, %v8852_v62  ;;  %v4194_v16 = vmul.f32 %v4182_v14, %v14084_v36  ;;  %v4199_v35 = vadd.f32 %v4191_v61, %v4159_v1  ;;  %v4200_v56 = vadd.f32 %v4192_v55, %v4160_v21  ;;  %v14089_v55 = vld [vmem:[#allocation22_spill] sm:$0xff]  ;;  %v14091_v1 = vld [vmem:[#allocation56_spill] sm:$0xff]  ;;  %v14135_v62 = vld [vmem:[#allocation65_spill] sm:$0xff] }
 0xf7a   : > { %v4221_v48 = vsel %vm1159_vm4, %v4208_v60, %v4216_v13  ;;  %v4225_v12 = vsel %vm1159_vm4, %v4216_v13, %v4208_v60  ;;  %v14086_v60 = vld [vmem:[#allocation23_spill] sm:$0xff] }
 0xf7b   : > { %v4218_v24 = vpop.permute.xlu1 %4217  ;;  %v4231_v58 = vmul.f32 %v4225_v12, %v14085_v30  ;;  %v4232_v13 = vmul.f32 %v4221_v48, %v14086_v60  ;;  %v4201_v21 = vadd.f32 %v4193_v6, %v4161_v34  ;;  %v4202_v14 = vadd.f32 %v4194_v16, %v4162_v46  ;;  %v14090_v12 = vld [vmem:[#allocation27_spill] sm:$0xff]  ;;  %v14133_v60 = vld [vmem:[#allocation64_spill] sm:$0xff] }
 0xf7c   : > { %v4222_v0 = vsel %vm1159_vm4, %v4210_v38, %v4218_v24  ;;  %v4226_v19 = vsel %vm1159_vm4, %v4218_v24, %v4210_v38  ;;  %v14088_v38 = vld [vmem:[#allocation55_spill] sm:$0xff] }
 0xf7d   : > { %v4256_v22 = vpop.permute.xlu0 %4255  ;;  %v4233_v27 = vmul.f32 %v4226_v19, %v14087_v10  ;;  %v4234_v23 = vmul.f32 %v4222_v0, %v14088_v38  ;;  %v4240_v61 = vadd.f32 %v4232_v13, %v4200_v56  ;;  %v14092_v0 = vld [vmem:[#allocation57_spill] sm:$0xff]  ;;  %v14093_v19 = vld [vmem:[#allocation24_spill] sm:$0xff] }
 0xf7e   : > { %v4261_v52 = vsel %vm1200_vm5, %v11119_v57, %v4256_v22  ;;  %v4265_v17 = vsel %vm1200_vm5, %v4256_v22, %v11119_v57  ;;  %v4239_v22 = vadd.f32 %v4231_v58, %v4199_v35  ;;  %v14094_v13 = vld [vmem:[#allocation29_spill] sm:$0xff]  ;;  %v14095_v56 = vld [vmem:[#allocation28_spill] sm:$0xff] }
 0xf7f   : > { %v4258_v49 = vpop.permute.xlu1 %4257  ;;  %v4271_v48 = vmul.f32 %v4261_v52, %v14089_v55  ;;  %v4272_v41 = vmul.f32 %v4265_v17, %v14090_v12  ;;  %v4242_v58 = vadd.f32 %v4234_v23, %v4202_v14  ;;  %v14096_v17 = vld [vmem:[#allocation30_spill] sm:$0xff]  ;;  %v14097_v23 = vld [vmem:[#allocation31_spill] sm:$0xff] }
 0xf80   : > { %v4262_v33 = vsel %vm1200_vm5, %v11123_v43, %v4258_v49  ;;  %v4266_v18 = vsel %vm1200_vm5, %v4258_v49, %v11123_v43  ;;  %v14098_v14 = vld [vmem:[#allocation58_spill] sm:$0xff] }
 0xf81   : > { %v4296_v4 = vpop.permute.xlu0 %4295  ;;  %v4273_v43 = vmul.f32 %v4262_v33, %v14091_v1  ;;  %v4274_v6 = vmul.f32 %v4266_v18, %v14092_v0  ;;  %v14131_v0 = vld [vmem:[#allocation61_spill] sm:$0xff]  ;;  %v14132_v12 = vld [vmem:[#allocation62_spill] sm:$0xff] }
 0xf82   : > { %v4301_v24 = vsel %vm1241_vm6, %v11125_v37, %v4296_v4  ;;  %v4305_v57 = vsel %vm1241_vm6, %v4296_v4, %v11125_v37  ;;  %v4241_v37 = vadd.f32 %v4233_v27, %v4201_v21  ;;  %v4280_v27 = vadd.f32 %v4272_v41, %v4240_v61  ;;  %v14100_v61 = vld [vmem:[#allocation99_spill] sm:$0xff] }
 0xf83   : > { %v4298_v47 = vpop.permute.xlu1 %4297  ;;  %v4311_v34 = vmul.f32 %v4301_v24, %v14093_v19  ;;  %v4312_v49 = vmul.f32 %v4305_v57, %v14094_v13  ;;  %v4282_v13 = vadd.f32 %v4274_v6, %v4242_v58 }
 0xf84   : > { %v4302_v46 = vsel %vm1241_vm6, %v11127_v44, %v4298_v47  ;;  %v4306_v16 = vsel %vm1241_vm6, %v4298_v47, %v11127_v44  ;;  %v4279_v44 = vadd.f32 %v4271_v48, %v4239_v22  ;;  %v4281_v47 = vadd.f32 %v4273_v43, %v4241_v37 }
 0xf85   : > { %v4336_v35 = vpop.permute.xlu0 %4335  ;;  %v4313_v52 = vmul.f32 %v4302_v46, %v14095_v56  ;;  %v4314_v33 = vmul.f32 %v4306_v16, %v14096_v17  ;;  %v4320_v56 = vadd.f32 %v4312_v49, %v4280_v27  ;;  %v14102_v49 = vld [vmem:[#allocation35_spill] sm:$0xff] }
 0xf86   : > { %v4341_v18 = vsel %vm1282_vm7, %v11129_v51, %v4336_v35  ;;  %v4345_v4 = vsel %vm1282_vm7, %v4336_v35, %v11129_v51  ;;  %v4319_v17 = vadd.f32 %v4311_v34, %v4279_v44  ;;  %v14099_v51 = vld [vmem:[#allocation33_spill] sm:$0xff] }
 0xf87   : > { %v4351_v21 = vmul.f32 %v4341_v18, %v14097_v23  ;;  %v4352_v24 = vmul.f32 %v4345_v4, %v14098_v14  ;;  %v4338_v57 = vpop.permute.xlu1 %4337  ;;  %v4321_v35 = vadd.f32 %v4313_v52, %v4281_v47  ;;  %v4322_v18 = vadd.f32 %v4314_v33, %v4282_v13 }
 0xf88   : > { %v4342_v46 = vsel %vm1282_vm7, %v11131_v31, %v4338_v57  ;;  %v4346_v16 = vsel %vm1282_vm7, %v4338_v57, %v11131_v31  ;;  %v14101_v31 = vld [vmem:[#allocation59_spill] sm:$0xff] }
 0xf89   : > { %v4353_v22 = vmul.f32 %v4342_v46, %v14099_v51  ;;  %v4354_v48 = vmul.f32 %v4346_v16, %v14100_v61  ;;  %v4376_v41 = vpop.permute.xlu0 %4375  ;;  %v4359_v37 = vadd.f32 %v4351_v21, %v4319_v17  ;;  %v4360_v58 = vadd.f32 %v4352_v24, %v4320_v56  ;;  %v14104_v56 = vld [vmem:[#allocation100_spill] sm:$0xff]  ;;  %v14105_v16 = vld [vmem:[#allocation39_spill] sm:$0xff] }
 0xf8a   : > { %v4381_v43 = vsel %vm1323_vm8, %v11133_v15, %v4376_v41  ;;  %v4385_v6 = vsel %vm1323_vm8, %v4376_v41, %v11133_v15  ;;  %v14103_v15 = vld [vmem:[#allocation36_spill] sm:$0xff] }
 0xf8b   : > { %v4391_v34 = vmul.f32 %v4381_v43, %v14101_v31  ;;  %v4392_v4 = vmul.f32 %v4385_v6, %v14102_v49  ;;  %v4378_v44 = vpop.permute.xlu1 %4377  ;;  %v4361_v27 = vadd.f32 %v4353_v22, %v4321_v35  ;;  %v4362_v57 = vadd.f32 %v4354_v48, %v4322_v18  ;;  %v14106_v18 = vld [vmem:[#allocation40_spill] sm:$0xff] }
 0xf8c   : > { %v4382_v13 = vsel %vm1323_vm8, %v11135_v32, %v4378_v44  ;;  %v4386_v52 = vsel %vm1323_vm8, %v4378_v44, %v11135_v32 }
 0xf8d   : > { %v4399_v33 = vadd.f32 %v4391_v34, %v4359_v37  ;;  %v4400_v47 = vadd.f32 %v4392_v4, %v4360_v58  ;;  %v4393_v17 = vmul.f32 %v4382_v13, %v14103_v15  ;;  %v4394_v21 = vmul.f32 %v4386_v52, %v14104_v56 }
 0xf8f   : > { %v4401_v24 = vadd.f32 %v4393_v17, %v4361_v27  ;;  %v4402_v46 = vadd.f32 %v4394_v21, %v4362_v57  ;;  %v4407_v41 = vadd.f32 %v4399_v33, %v14105_v16  ;;  %v4408_v22 = vadd.f32 %v4400_v47, %v14105_v16 }
 0xf91   : > { %v4415_v48 = vadd.f32 3.0, %v4407_v41  ;;  %v4416_v35 = vadd.f32 3.0, %v4408_v22  ;;  %v4409_v43 = vadd.f32 %v4401_v24, %v14106_v18  ;;  %v4410_v6 = vadd.f32 %v4402_v46, %v14106_v18 }
 0xf93   : > { %v4423_v49 = vmax.f32 %v4415_v48, 0.0  ;;  %v4424_v32 = vmax.f32 %v4416_v35, 0.0  ;;  %v4417_v37 = vadd.f32 3.0, %v4409_v43  ;;  %v4418_v58 = vadd.f32 3.0, %v4410_v6 }
 0xf95   : > { %v4431_v34 = vmin.f32 %v4423_v49, 6.0  ;;  %v4432_v4 = vmin.f32 %v4424_v32, 6.0  ;;  %v4425_v44 = vmax.f32 %v4417_v37, 0.0  ;;  %v4426_v13 = vmax.f32 %v4418_v58, 0.0  ;;  %v14111_v32 = vld [vmem:[#allocation97_spill] sm:$0xff]  ;;  %v14113_v58 = vld [vmem:[#allocation70_spill] sm:$0xff] }
 0xf97   : > { %v4439_v27 = vmul.f32 %v4431_v34, %v4407_v41  ;;  %v4440_v57 = vmul.f32 %v4432_v4, %v4408_v22  ;;  %v4433_v52 = vmin.f32 %v4425_v44, 6.0  ;;  %v4434_v33 = vmin.f32 %v4426_v13, 6.0  ;;  %v14112_v22 = vld [vmem:[#allocation98_spill] sm:$0xff] }
 0xf98   : > { %v14114_v4 = vld [vmem:[#allocation78_spill] sm:$0xff] }
 0xf99   : > { %v11261_v17 = vmul.f32 0.16666667, %v4439_v27  ;;  %v11263_v47 = vmul.f32 0.16666667, %v4440_v57  ;;  %v4441_v21 = vmul.f32 %v4433_v52, %v4409_v43  ;;  %v4442_v24 = vmul.f32 %v4434_v33, %v4410_v6  ;;  %v14115_v52 = vld [vmem:[#allocation81_spill] sm:$0xff] }
 0xf9a   : > { %v3896_v16 = vpop.permute.xlu0 %3895 }
 0xf9b   : > { %14107 = vst [vmem:[#allocation34_spill] sm:$0xff] %v11261_v17  ;;  %14108 = vst [vmem:[#allocation77_spill] sm:$0xff] %v11263_v47  ;;  %v4457_v46 = vadd.f32 %v11263_v47, %v11261_v17  ;;  %v11267_v48 = vmul.f32 0.16666667, %v4441_v21  ;;  %v11269_v35 = vmul.f32 0.16666667, %v4442_v24  ;;  %v3913_v41 = vmul.f32 %v3896_v16, %v14111_v32 }
 0xf9c   : > { %v3901_v49 = vpop.permute.xlu1 %3900  ;;  %v3914_v37 = vmul.f32 %v3896_v16, %v14112_v22  ;;  %v14116_v21 = vld [vmem:[#allocation86_spill] sm:$0xff]  ;;  %v14117_v32 = vld [vmem:[#allocation101_spill] sm:$0xff] }
 0xf9d   : > { %14109 = vst [vmem:[#allocation75_spill] sm:$0xff] %v11267_v48  ;;  %14110 = vst [vmem:[#allocation76_spill] sm:$0xff] %v11269_v35  ;;  %v3915_v34 = vmul.f32 %v3901_v49, %v14113_v58  ;;  %v3916_v44 = vmul.f32 %v3901_v49, %v14114_v4  ;;  %4458 = vadd.xlane.f32.xlu0 %v4457_v46  ;;  %v4460_v6 = vadd.f32 %v11269_v35, %v11267_v48  ;;  %v14118_v16 = vld [vmem:[#allocation102_spill] sm:$0xff]  ;;  %v14119_v58 = vmov 0.0|0.0  }
 0xf9e   : > { %v3906_v43 = vpop.permute.xlu0 %3905 }
 0xf9f   : > { %v3921_v13 = vpack.c.bf16 %v3915_v34, %v3913_v41  ;;  %v3922_v27 = vpack.c.bf16 %v3916_v44, %v3914_v37  ;;  %4461 = vadd.xlane.f32.xlu1 %v4460_v6  ;;  %v3917_v33 = vmul.f32 %v3906_v43, %v14115_v52  ;;  %v3918_v24 = vmul.f32 %v3906_v43, %v14116_v21  ;;  %v7577_v41 = vld [vmem:[%s13193_s10] sm:$0xff]  }
 0xfa0   : > { %v3911_v57 = vpop.permute.xlu1 %3910  ;;  %v14120_v37 = vmov 0.0   ;;  %v7579_v21 = vld [vmem:[%s13191_s8] sm:$0xff] }
 0xfa1   : > { %v3919_v47 = vmul.f32 %v3911_v57, %v14117_v32  ;;  %v3920_v22 = vmul.f32 %v3911_v57, %v14118_v16  ;;  %3925 = vmatprep.subr.bf16.mxu1 %v3922_v27 }
 0xfa2   : > { %3926 = vmatpush1.bf16.msra.mxu1 %v3921_v13 }
 0xfa3   : > { %v3923_v49 = vpack.c.bf16 %v3919_v47, %v3917_v33  ;;  %v3924_v46 = vpack.c.bf16 %v3920_v22, %v3918_v24  ;;  %v7578_v33 = vld [vmem:[%s13189_s6] sm:$0xff] }
 0xfa5   : > { %3927 = vmatprep.subr.bf16.mxu1 %v3924_v46  ;;  %v4727_v46 = vld [vmem:[%s7945_s13 + $0xa8] sm:$0xff] }
 0xfa6   : > { %3928 = vmatpush1.bf16.msra.mxu1 %v3923_v49 }
 0xfa7   : > { %7447 = vmatprep.subr.bf16.mxu1 %v14119_v58 }
 0xfa9   : > { %7148 = vmatmul.mubr.msk.bf16.vlgmr.msra.gmra.mrb[32].mxu1 %vm1432_vm10, %v7577_v41  ;;  %v4729_v41 = vld [vmem:[%s7945_s13 + $0xb8] sm:$0xff] }
 0xfaa   : > { %7355 = vmatprep.mubr.msk.f32.mxu1 %vm7766_vm9, %v14120_v37 }
 0xfea   : > { %v4453_v34 = vpop.xlane.xlu0 %4452 }
 0xfeb   : > { %v4463_v44 = vmul.f32 0.00390625, %v4453_v34  ;;  %v7580_v34 = vld [vmem:[%s13190_s7] sm:$0xff] }
 0xfec   : > { %v4456_v4 = vpop.xlane.xlu1 %4455 }
 0xfed   : > { %v4464_v43 = vmul.f32 0.00390625, %v4456_v4 }
 0xfef   : > { %v7448_v6 = vpack.c.bf16 %v4464_v43, %v4463_v44  ;;  %v4726_v43 = vld [vmem:[%s7945_s13 + $0xa0] sm:$0xff] }
 0xff1   : > { %7449 = vmatpush3.bf16.msra.mxu1 %v7448_v6  ;;  %v4728_v6 = vld [vmem:[%s7945_s13 + $0xb0] sm:$0xff] }
 0xff2   : > { %7450 = vmatprep.subr.bf16.mxu1 %v14119_v58 }
0x102a   : > { %v4459_v47 = vpop.xlane.xlu0 %4458 }
0x102b   : > { %v4465_v27 = vmul.f32 0.00390625, %v4459_v47 }
0x102c   : > { %v4462_v13 = vpop.xlane.xlu1 %4461 }
0x102d   : > { %v4466_v57 = vmul.f32 0.00390625, %v4462_v13  ;;  %v4731_v13 = vpack.c.bf16 %v4729_v41, %v4727_v46  ;;  %v7585_v46 = vld [vmem:[%s13184_s1 + $0x8] sm:$0xff]  }
0x102f   : > { %v7451_v52 = vpack.c.bf16 %v4466_v57, %v4465_v27  ;;  %v4730_v27 = vpack.c.bf16 %v4728_v6, %v4726_v43  ;;  %v7581_v57 = vld [vmem:[%s13191_s8 + $0x8] sm:$0xff]  ;;  %v14126_v6 = vld [vmem:[#allocation11_spill] sm:$0xff] }
0x1031   : > { %7452 = vmatpush3.bf16.msra.mxu1 %v7451_v52  ;;  %v7582_v52 = vld [vmem:[%s13191_s8 + $0x10] sm:$0xff] }
0x1034   : > { %7356 = vmatmul.mubr.msk.f32.vlgmr.msra.gmra.mrb[36].mxu1 %vm1432_vm10, %v7578_v33  ;;  %v7583_v33 = vld [vmem:[%s13191_s8 + $0x18] sm:$0xff] }
0x1035   : > { %7360 = vmatprep.mubr.msk.f32.mxu1 %vm1507_vm11, %v7579_v21  ;;  %v14125_v21 = vmov 0  }
0x107c   : > { %v11297_v24 = vpop.f32.mrb[32].mxu1 }
0x107d   : > { %14121 = vst [vmem:[#allocation82_spill] sm:$0xff] %v11297_v24  ;;  %v11299_v32 = vpop.f32.mrb[33].mxu1 }
0x107e   : > { %14122 = vst [vmem:[#allocation91_spill] sm:$0xff] %v11299_v32  ;;  %v11301_v16 = vpop.f32.mrb[34].mxu1 }
0x107f   : > { %14123 = vst [vmem:[#allocation92_spill] sm:$0xff] %v11301_v16  ;;  %v11303_v22 = vpop.f32.mrb[35].mxu1 }
0x1080   : > { %14124 = vst [vmem:[#allocation93_spill] sm:$0xff] %v11303_v22 }
0x1107   : > { %v4533_v49 = vpop.f32.mrb[36].mxu1 }
0x1108   : > { %v4534_v4 = vadd.f32 %v7580_v34, %v4533_v49  ;;  %v7357_v44 = vpop.f32.mrb[37].mxu1  ;;  %v7584_v49 = vld [vmem:[%s13184_s1] sm:$0xff]  }
0x110a   : > { %v4537_v47 = vmax.f32 %v4534_v4, 0.0 }
0x110c   : > { %7358 = vmatprep.subr.mxu1 %v4537_v47 }
0x110d   : > { %7359 = vmatpush3.msra.mxu1 %v4537_v47 }
0x110e   : > { %7361 = vmatmul.mubr.msk.f32.vlgmr.msra.gmra.mrb[38].mxu1 %vm1507_vm11, %v7581_v57  ;;  %4732 = vmatprep.subr.bf16.mxu1 %v4731_v13 }
0x110f   : > { %7363 = vmatprep.mubr.msk.f32.mxu1 %vm1507_vm11, %v7582_v52  ;;  %4733 = vmatpush1.bf16.msra.mxu1 %v4730_v27  ;;  %v14127_v52 = vld [vmem:[#allocation13_spill] sm:$0xff] }
0x1112   : > { %7364 = vmatmul.mubr.msk.f32.gmra.mrb[40].mxu1 %vm1507_vm11, %v7583_v33 }
0x1113   : > { %4764 = vmatprep.mubr.bf16.mxu1 %v14125_v21 }
0x1116   : > { %7157 = vmatmul.mubr.msk.bf16.vlgmr.msra.gmra.mrb[44].mxu1 %vm910_vm0, %v7584_v49 }
0x1117   : > { %4774 = vmatprep.mubr.bf16.mxu1 %v14125_v21 }
0x111e   : > { %7158 = vmatmul.mubr.msk.bf16.gmra.mrb[48].mxu1 %vm910_vm0, %v7585_v46 }
0x111f   : > { %5457 = vmatprep.mubr.bf16.mxu1 %v14125_v21 }
0x11e1   : > { %v11335_v41 = vpop.f32.mrb[38].mxu1 }
0x11e2   : > { %v11337_v34 = vpop.f32.mrb[39].mxu1 }
0x11e5   : > { %v11339_v4 = vpop.f32.mrb[40].mxu1 }
0x11e6   : > { %v11341_v44 = vpop.f32.mrb[41].mxu1 }
0x11e9   : > { %v4766_v43 = vpop.f32.mrb[44].mxu1 }
0x11ea   : > { %v4767_v47 = vadd.f32 %v4766_v43, %v14126_v6  ;;  %v4768_v13 = vpop.f32.mrb[45].mxu1 }
0x11eb   : > { %v4770_v27 = vpop.f32.mrb[46].mxu1 }
0x11ec   : > { %v4785_v57 = vadd.f32 3.0, %v4767_v47  ;;  %v4771_v33 = vadd.f32 %v4770_v27, %v14127_v52  ;;  %v4772_v49 = vpop.f32.mrb[47].mxu1 }
0x11ee   : > { %v4793_v46 = vmax.f32 %v4785_v57, 0.0  ;;  %v4787_v32 = vadd.f32 3.0, %v4771_v33 }
0x11f0   : > { %v4801_v24 = vmin.f32 %v4793_v46, 6.0  ;;  %v4795_v22 = vmax.f32 %v4787_v32, 0.0  ;;  %v14128_v46 = vld [vmem:[#allocation12_spill] sm:$0xff] }
0x11f1   : > { %v4776_v16 = vpop.f32.mrb[48].mxu1 }
0x11f2   : > { %v4809_v21 = vmul.f32 %v4801_v24, %v4767_v47  ;;  %v4803_v37 = vmin.f32 %v4795_v22, 6.0  ;;  %v11345_v58 = vpop.f32.mrb[49].mxu1 }
0x11f3   : > { %v4780_v35 = vpop.f32.mrb[50].mxu1 }
0x11f4   : > { %v11347_v48 = vmul.f32 0.16666667, %v4809_v21  ;;  %v4811_v17 = vmul.f32 %v4803_v37, %v4771_v33  ;;  %v11349_v43 = vpop.f32.mrb[51].mxu1  ;;  %v4769_v37 = vadd.f32 %v4768_v13, %v14126_v6 }
0x11f6   : > { %v11351_v18 = vmul.f32 0.16666667, %v4811_v17  ;;  %4833 = vrot.lane.b32.xlu0 %v11347_v48, %s13787_s14  ;;  %v4773_v17 = vadd.f32 %v4772_v49, %v14127_v52  ;;  %v4786_v24 = vadd.f32 3.0, %v4769_v37 }
0x11f8   : > { %4835 = vrot.lane.b32.xlu1 %v11351_v18, %s13787_s14  ;;  %v4788_v32 = vadd.f32 3.0, %v4773_v17  ;;  %v4794_v22 = vmax.f32 %v4786_v24, 0.0 }
0x11fa   : > { %4873 = vrot.lane.b32.xlu0 %v11347_v48, %s13786_s17  ;;  %v4796_v21 = vmax.f32 %v4788_v32, 0.0  ;;  %v4802_v47 = vmin.f32 %v4794_v22, 6.0 }
0x11fc   : > { %4875 = vrot.lane.b32.xlu1 %v11351_v18, %s13786_s17  ;;  %v4804_v13 = vmin.f32 %v4796_v21, 6.0  ;;  %v4810_v27 = vmul.f32 %v4802_v47, %v4769_v37  ;;  %v4777_v37 = vadd.f32 %v4776_v16, %v14128_v46 }
0x11fe   : > { %4913 = vrot.lane.b32.xlu0 %v11347_v48, %s13788_s20  ;;  %v4812_v57 = vmul.f32 %v4804_v13, %v4773_v17  ;;  %v11385_v33 = vmul.f32 0.16666667, %v4810_v27  ;;  %v14129_v17 = vld [vmem:[#allocation14_spill] sm:$0xff]  ;;  %v4789_v32 = vadd.f32 3.0, %v4777_v37 }
0x11ff   : > { %v4781_v24 = vadd.f32 %v4780_v35, %v14129_v17 }
0x1200   : > { %4915 = vrot.lane.b32.xlu1 %v11351_v18, %s13788_s20  ;;  %v11389_v49 = vmul.f32 0.16666667, %v4812_v57  ;;  %v4797_v21 = vmax.f32 %v4789_v32, 0.0 }
0x1201   : > { %v4791_v22 = vadd.f32 3.0, %v4781_v24 }
0x1202   : > { %4953 = vrot.lane.b32.xlu0 %v11347_v48, %s13789_s19  ;;  %v4805_v35 = vmin.f32 %v4797_v21, 6.0 }
0x1203   : > { %v4799_v16 = vmax.f32 %v4791_v22, 0.0 }
0x1204   : > { %4955 = vrot.lane.b32.xlu1 %v11351_v18, %s13789_s19  ;;  %v4813_v13 = vmul.f32 %v4805_v35, %v4777_v37  ;;  %v4779_v37 = vadd.f32 %v11345_v58, %v14128_v46 }
0x1205   : > { %v4807_v47 = vmin.f32 %v4799_v16, 6.0 }
0x1206   : > { %4993 = vrot.lane.b32.xlu0 %v11347_v48, %s13790_s18  ;;  %v11423_v57 = vmul.f32 0.16666667, %v4813_v13  ;;  %v4790_v22 = vadd.f32 3.0, %v4779_v37 }
0x1207   : > { %v4815_v27 = vmul.f32 %v4807_v47, %v4781_v24  ;;  %v4783_v24 = vadd.f32 %v11349_v43, %v14129_v17 }
0x1208   : > { %4995 = vrot.lane.b32.xlu1 %v11351_v18, %s13790_s18  ;;  %v4798_v16 = vmax.f32 %v4790_v22, 0.0 }
0x1209   : > { %v11427_v32 = vmul.f32 0.16666667, %v4815_v27  ;;  %v4792_v21 = vadd.f32 3.0, %v4783_v24 }
0x120a   : > { %5033 = vrot.lane.b32.xlu0 %v11347_v48, %s13791_s23  ;;  %v4806_v43 = vmin.f32 %v4798_v16, 6.0 }
0x120b   : > { %v4800_v58 = vmax.f32 %v4792_v21, 0.0  ;;  %v7587_v21 = vld [vmem:[%s13192_s9 + $0x8] sm:$0xff] }
0x120c   : > { %5035 = vrot.lane.b32.xlu1 %v11351_v18, %s13791_s23  ;;  %v4814_v47 = vmul.f32 %v4806_v43, %v4779_v37  ;;  %v7586_v37 = vld [vmem:[%s13192_s9] sm:$0xff]  ;;  %v4610_v16 = vadd.f32 %v7587_v21, %v11335_v41  ;;  %v7588_v43 = vld [vmem:[%s13192_s9 + $0x10] sm:$0xff] }
0x120d   : > { %v4808_v35 = vmin.f32 %v4800_v58, 6.0 }
0x120e   : > { %5073 = vrot.lane.b32.xlu0 %v11347_v48, %s13792_s27  ;;  %v11463_v27 = vmul.f32 0.16666667, %v4814_v47  ;;  %v7589_v47 = vld [vmem:[%s13192_s9 + $0x18] sm:$0xff] }
0x120f   : > { %v4816_v13 = vmul.f32 %v4808_v35, %v4783_v24  ;;  %v4605_v24 = vadd.f32 %v7586_v37, %v11337_v34  ;;  %v4615_v35 = vadd.f32 %v7588_v43, %v11341_v44  ;;  %v4624_v34 = vmul.f32 1.2, %v4610_v16 }
0x1210   : > { %5075 = vrot.lane.b32.xlu1 %v11351_v18, %s13792_s27  ;;  %v4620_v41 = vadd.f32 %v7589_v47, %v11339_v4 }
0x1211   : > { %v11467_v22 = vmul.f32 0.16666667, %v4816_v13  ;;  %v4623_v58 = vmul.f32 1.2, %v4605_v24  ;;  %v4625_v37 = vmul.f32 1.2, %v4615_v35 }
0x1212   : > { %5113 = vrot.lane.b32.xlu0 %v11347_v48, %s13793_s30  ;;  %v4628_v44 = vadd.f32 3.0, %v4624_v34  ;;  %v4626_v21 = vmul.f32 1.2, %v4620_v41 }
0x1213   : > { %14130 = vst [vmem:[#allocation97_spill] sm:$0xff] %v11467_v22  ;;  %v4627_v13 = vadd.f32 3.0, %v4623_v58  ;;  %v4629_v17 = vadd.f32 3.0, %v4625_v37 }
0x1214   : > { %5115 = vrot.lane.b32.xlu1 %v11351_v18, %s13793_s30  ;;  %v4632_v47 = vmax.f32 %v4628_v44, 0.0  ;;  %v4630_v46 = vadd.f32 3.0, %v4626_v21 }
0x1215   : > { %v4631_v16 = vmax.f32 %v4627_v13, 0.0  ;;  %v4633_v52 = vmax.f32 %v4629_v17, 0.0 }
0x1216   : > { %4841 = vrot.lane.b32.xlu0 %v11385_v33, %s13787_s14  ;;  %v4636_v41 = vmin.f32 %v4632_v47, 6.0  ;;  %v4634_v6 = vmax.f32 %v4630_v46, 0.0 }
0x1217   : > { %v4635_v35 = vmin.f32 %v4631_v16, 6.0  ;;  %v4637_v56 = vmin.f32 %v4633_v52, 6.0 }
0x1218   : > { %4843 = vrot.lane.b32.xlu1 %v11389_v49, %s13787_s14  ;;  %v4640_v21 = vmul.f32 0.16666667, %v4636_v41  ;;  %v4638_v15 = vmin.f32 %v4634_v6, 6.0 }
0x1219   : > { %v4639_v37 = vmul.f32 0.16666667, %v4635_v35  ;;  %v4641_v17 = vmul.f32 0.16666667, %v4637_v56 }
0x121a   : > { %4881 = vrot.lane.b32.xlu0 %v11385_v33, %s13786_s17  ;;  %v4642_v47 = vmul.f32 0.16666667, %v4638_v15 }
0x121c   : > { %4883 = vrot.lane.b32.xlu1 %v11389_v49, %s13786_s17 }
0x121e   : > { %4921 = vrot.lane.b32.xlu0 %v11385_v33, %s13788_s20 }
0x1220   : > { %4923 = vrot.lane.b32.xlu1 %v11389_v49, %s13788_s20 }
0x1222   : > { %4961 = vrot.lane.b32.xlu0 %v11385_v33, %s13789_s19 }
0x1224   : > { %4963 = vrot.lane.b32.xlu1 %v11389_v49, %s13789_s19 }
0x1226   : > { %5001 = vrot.lane.b32.xlu0 %v11385_v33, %s13790_s18 }
0x1228   : > { %5003 = vrot.lane.b32.xlu1 %v11389_v49, %s13790_s18 }
0x122a   : > { %5041 = vrot.lane.b32.xlu0 %v11385_v33, %s13791_s23 }
0x122c   : > { %5043 = vrot.lane.b32.xlu1 %v11389_v49, %s13791_s23 }
0x122e   : > { %5081 = vrot.lane.b32.xlu0 %v11385_v33, %s13792_s27 }
0x1230   : > { %5083 = vrot.lane.b32.xlu1 %v11389_v49, %s13792_s27 }
0x1232   : > { %5121 = vrot.lane.b32.xlu0 %v11385_v33, %s13793_s30 }
0x1234   : > { %5123 = vrot.lane.b32.xlu1 %v11389_v49, %s13793_s30 }
0x1236   : > { %4837 = vrot.lane.b32.xlu0 %v11423_v57, %s13787_s14 }
0x1238   : > { %4839 = vrot.lane.b32.xlu1 %v11427_v32, %s13787_s14 }
0x123a   : > { %4877 = vrot.lane.b32.xlu0 %v11423_v57, %s13786_s17 }
0x123c   : > { %4879 = vrot.lane.b32.xlu1 %v11427_v32, %s13786_s17 }
0x123e   : > { %4917 = vrot.lane.b32.xlu0 %v11423_v57, %s13788_s20 }
0x1240   : > { %4919 = vrot.lane.b32.xlu1 %v11427_v32, %s13788_s20 }
0x1242   : > { %4957 = vrot.lane.b32.xlu0 %v11423_v57, %s13789_s19 }
0x1244   : > { %4959 = vrot.lane.b32.xlu1 %v11427_v32, %s13789_s19 }
0x1246   : > { %4997 = vrot.lane.b32.xlu0 %v11423_v57, %s13790_s18 }
0x1248   : > { %4999 = vrot.lane.b32.xlu1 %v11427_v32, %s13790_s18 }
0x124a   : > { %5037 = vrot.lane.b32.xlu0 %v11423_v57, %s13791_s23 }
0x124c   : > { %5039 = vrot.lane.b32.xlu1 %v11427_v32, %s13791_s23 }
0x124e   : > { %5077 = vrot.lane.b32.xlu0 %v11423_v57, %s13792_s27 }
0x1250   : > { %5079 = vrot.lane.b32.xlu1 %v11427_v32, %s13792_s27 }
0x1252   : > { %5117 = vrot.lane.b32.xlu0 %v11423_v57, %s13793_s30 }
0x1254   : > { %5119 = vrot.lane.b32.xlu1 %v11427_v32, %s13793_s30 }
0x1256   : > { %4845 = vrot.lane.b32.xlu0 %v11463_v27, %s13787_s14 }
0x1258   : > { %4847 = vrot.lane.b32.xlu1 %v11467_v22, %s13787_s14 }
0x125a   : > { %4885 = vrot.lane.b32.xlu0 %v11463_v27, %s13786_s17 }
0x125c   : > { %4887 = vrot.lane.b32.xlu1 %v11467_v22, %s13786_s17 }
0x125e   : > { %4925 = vrot.lane.b32.xlu0 %v11463_v27, %s13788_s20 }
0x1260   : > { %4927 = vrot.lane.b32.xlu1 %v11467_v22, %s13788_s20 }
0x1262   : > { %4965 = vrot.lane.b32.xlu0 %v11463_v27, %s13789_s19 }
0x1264   : > { %4967 = vrot.lane.b32.xlu1 %v11467_v22, %s13789_s19 }
0x1266   : > { %5005 = vrot.lane.b32.xlu0 %v11463_v27, %s13790_s18 }
0x1268   : > { %5007 = vrot.lane.b32.xlu1 %v11467_v22, %s13790_s18  ;;  %v4834_v24 = vpop.permute.xlu0 %4833 }
0x126a   : > { %v4836_v43 = vpop.permute.xlu1 %4835  ;;  %5045 = vrot.lane.b32.xlu0 %v11463_v27, %s13791_s23 }
0x126c   : > { %5047 = vrot.lane.b32.xlu1 %v11467_v22, %s13791_s23  ;;  %v4874_v4 = vpop.permute.xlu0 %4873 }
0x126e   : > { %v4876_v58 = vpop.permute.xlu1 %4875  ;;  %5085 = vrot.lane.b32.xlu0 %v11463_v27, %s13792_s27 }
0x1270   : > { %5087 = vrot.lane.b32.xlu1 %v11467_v22, %s13792_s27  ;;  %v4914_v34 = vpop.permute.xlu0 %4913 }
0x1272   : > { %v4916_v13 = vpop.permute.xlu1 %4915  ;;  %5125 = vrot.lane.b32.xlu0 %v11463_v27, %s13793_s30 }
0x1274   : > { %5127 = vrot.lane.b32.xlu1 %v11467_v22, %s13793_s30  ;;  %v4954_v44 = vpop.permute.xlu0 %4953 }
0x1276   : > { %v4956_v16 = vpop.permute.xlu1 %4955  ;;  %4645 = vperm.xlu0 %7532, %v4639_v37  }
0x1278   : > { %4650 = vperm.xlu1 %7533, %v4640_v21   ;;  %v11517_v31 = vpop.permute.xlu0 %4993 }
0x127a   : > { %v11519_v46 = vpop.permute.xlu1 %4995  ;;  %4655 = vperm.xlu0 %7532, %v4641_v17  }
0x127c   : > { %4660 = vperm.xlu1 %7533, %v4642_v47   ;;  %v11521_v61 = vpop.permute.xlu0 %5033 }
0x127e   : > { %v11523_v52 = vpop.permute.xlu1 %5035 }
0x1280   : > { %v11525_v35 = vpop.permute.xlu0 %5073 }
0x1282   : > { %v11527_v51 = vpop.permute.xlu1 %5075 }
0x1284   : > { %v11529_v6 = vpop.permute.xlu0 %5113 }
0x1286   : > { %v11531_v41 = vpop.permute.xlu1 %5115 }
0x1288   : > { %v4842_v56 = vpop.permute.xlu0 %4841 }
0x1289   : > { %v4849_v15 = vsel %vm1036_vm1, %v4834_v24, %v4842_v56  ;;  %v4853_v17 = vsel %vm1036_vm1, %v4842_v56, %v4834_v24  ;;  %v4826_v24 = vmul.f32 %v11385_v33, %v14133_v60  ;;  %v14134_v56 = vld [vmem:[#allocation63_spill] sm:$0xff] }
0x128a   : > { %v4844_v37 = vpop.permute.xlu1 %4843  ;;  %v4857_v1 = vmul.f32 %v4853_v17, %v14131_v0  ;;  %v4858_v55 = vmul.f32 %v4849_v15, %v14132_v12  ;;  %v4825_v30 = vmul.f32 %v11347_v48, %v14134_v56  ;;  %v14137_v12 = vld [vmem:[#allocation67_spill] sm:$0xff] }
0x128b   : > { %v4850_v14 = vsel %vm1036_vm1, %v4836_v43, %v4844_v37  ;;  %v4854_v23 = vsel %vm1036_vm1, %v4844_v37, %v4836_v43  ;;  %v14136_v37 = vld [vmem:[#allocation66_spill] sm:$0xff] }
0x128c   : > { %v4882_v21 = vpop.permute.xlu0 %4881  ;;  %v4859_v43 = vmul.f32 %v4854_v23, %v14135_v62  ;;  %v4860_v22 = vmul.f32 %v4850_v14, %v14136_v37  ;;  %v4865_v23 = vadd.f32 %v4857_v1, %v4825_v30  ;;  %v4866_v62 = vadd.f32 %v4858_v55, %v4826_v24  ;;  %v14139_v37 = vld [vmem:[#allocation69_spill] sm:$0xff]  ;;  %v14143_v55 = vld [vmem:[#allocation72_spill] sm:$0xff] }
0x128d   : > { %v4889_v38 = vsel %vm1077_vm2, %v4874_v4, %v4882_v21  ;;  %v4893_v10 = vsel %vm1077_vm2, %v4882_v21, %v4874_v4  ;;  %v14138_v4 = vld [vmem:[#allocation68_spill] sm:$0xff]  ;;  %v4828_v14 = vmul.f32 %v11389_v49, %v13815_v63  ;;  %v4827_v60 = vmul.f32 %v11351_v18, %v14139_v37 }
0x128e   : > { %v4884_v47 = vpop.permute.xlu1 %4883  ;;  %v4897_v0 = vmul.f32 %v4893_v10, %v14137_v12  ;;  %v4898_v21 = vmul.f32 %v4889_v38, %v14138_v4  ;;  %v14141_v10 = vld [vmem:[#allocation74_spill] sm:$0xff] }
0x128f   : > { %v4890_v15 = vsel %vm1077_vm2, %v4876_v58, %v4884_v47  ;;  %v4894_v17 = vsel %vm1077_vm2, %v4884_v47, %v4876_v58  ;;  %v14140_v58 = vld [vmem:[#allocation73_spill] sm:$0xff]  ;;  %v4867_v24 = vadd.f32 %v4859_v43, %v4827_v60 }
0x1290   : > { %v4922_v19 = vpop.permute.xlu0 %4921  ;;  %v4899_v47 = vmul.f32 %v4894_v17, %v14140_v58  ;;  %v4900_v12 = vmul.f32 %v4890_v15, %v14141_v10  ;;  %v4868_v17 = vadd.f32 %v4860_v22, %v4828_v14  ;;  %v4905_v15 = vadd.f32 %v4897_v0, %v4865_v23 }
0x1291   : > { %v4929_v33 = vsel %vm1118_vm3, %v4914_v34, %v4922_v19  ;;  %v4933_v48 = vsel %vm1118_vm3, %v4922_v19, %v4914_v34  ;;  %v14142_v34 = vld [vmem:[#allocation71_spill] sm:$0xff]  ;;  %v4906_v10 = vadd.f32 %v4898_v21, %v4866_v62 }
0x1292   : > { %v4924_v36 = vpop.permute.xlu1 %4923  ;;  %v4937_v30 = vmul.f32 %v4933_v48, %v14142_v34  ;;  %v4938_v1 = vmul.f32 %v4929_v33, %v14143_v55  ;;  %v4907_v48 = vadd.f32 %v4899_v47, %v4867_v24  ;;  %v4908_v55 = vadd.f32 %v4900_v12, %v4868_v17 }
0x1293   : > { %v4930_v38 = vsel %vm1118_vm3, %v4916_v13, %v4924_v36  ;;  %v4934_v4 = vsel %vm1118_vm3, %v4924_v36, %v4916_v13 }
0x1294   : > { %v4962_v56 = vpop.permute.xlu0 %4961  ;;  %v4939_v37 = vmul.f32 %v4934_v4, %v13889_v53  ;;  %v4940_v36 = vmul.f32 %v4930_v38, %v13822_v54  ;;  %v4945_v0 = vadd.f32 %v4937_v30, %v4905_v15  ;;  %v4946_v62 = vadd.f32 %v4938_v1, %v4906_v10 }
0x1295   : > { %v4969_v49 = vsel %vm1159_vm4, %v4954_v44, %v4962_v56  ;;  %v4973_v18 = vsel %vm1159_vm4, %v4962_v56, %v4954_v44 }
0x1296   : > { %v4964_v19 = vpop.permute.xlu1 %4963  ;;  %v4977_v34 = vmul.f32 %v4973_v18, %v13890_v40  ;;  %v4978_v60 = vmul.f32 %v4969_v49, %v13891_v42  ;;  %v4947_v23 = vadd.f32 %v4939_v37, %v4907_v48  ;;  %v4948_v14 = vadd.f32 %v4940_v36, %v4908_v55 }
0x1297   : > { %v4970_v13 = vsel %vm1159_vm4, %v4956_v16, %v4964_v19  ;;  %v4974_v33 = vsel %vm1159_vm4, %v4964_v19, %v4956_v16 }
0x1298   : > { %v5002_v58 = vpop.permute.xlu0 %5001  ;;  %v4979_v43 = vmul.f32 %v4974_v33, %v13823_v29  ;;  %v4980_v16 = vmul.f32 %v4970_v13, %v13892_v39  ;;  %v4986_v10 = vadd.f32 %v4978_v60, %v4946_v62 }
0x1299   : > { %v5009_v44 = vsel %vm1200_vm5, %v11517_v31, %v5002_v58  ;;  %v5013_v56 = vsel %vm1200_vm5, %v5002_v58, %v11517_v31  ;;  %v4985_v58 = vadd.f32 %v4977_v34, %v4945_v0 }
0x129a   : > { %v5004_v22 = vpop.permute.xlu1 %5003  ;;  %v5017_v38 = vmul.f32 %v5009_v44, %v13893_v8  ;;  %v5018_v19 = vmul.f32 %v5013_v56, %v13894_v9  ;;  %v4988_v34 = vadd.f32 %v4980_v16, %v4948_v14 }
0x129b   : > { %v5010_v12 = vsel %vm1200_vm5, %v11519_v46, %v5004_v22  ;;  %v5014_v4 = vsel %vm1200_vm5, %v5004_v22, %v11519_v46 }
0x129c   : > { %v5042_v21 = vpop.permute.xlu0 %5041  ;;  %v5019_v46 = vmul.f32 %v5010_v12, %v13895_v28  ;;  %v5020_v37 = vmul.f32 %v5014_v4, %v13826_v26  ;;  %v5026_v33 = vadd.f32 %v5018_v19, %v4986_v10  ;;  %v14144_v10 = vld [vmem:[#allocation94_spill] sm:$0xff] }
0x129d   : > { %v5049_v47 = vsel %vm1241_vm6, %v11521_v61, %v5042_v21  ;;  %v5053_v31 = vsel %vm1241_vm6, %v5042_v21, %v11521_v61  ;;  %v4987_v61 = vadd.f32 %v4979_v43, %v4947_v23 }
0x129e   : > { %v5044_v30 = vpop.permute.xlu1 %5043  ;;  %v5057_v49 = vmul.f32 %v5049_v47, %v13896_v2  ;;  %v5058_v18 = vmul.f32 %v5053_v31, %v13975_v25  ;;  %v5028_v62 = vadd.f32 %v5020_v37, %v4988_v34 }
0x129f   : > { %v5050_v55 = vsel %vm1241_vm6, %v11523_v52, %v5044_v30  ;;  %v5054_v1 = vsel %vm1241_vm6, %v5044_v30, %v11523_v52  ;;  %v5025_v52 = vadd.f32 %v5017_v38, %v4985_v58  ;;  %v5027_v0 = vadd.f32 %v5019_v46, %v4987_v61 }
0x12a0   : > { %v5082_v24 = vpop.permute.xlu0 %5081  ;;  %v5059_v17 = vmul.f32 %v5050_v55, %v13976_v11  ;;  %v5060_v15 = vmul.f32 %v5054_v1, %v13977_v20  ;;  %v5066_v16 = vadd.f32 %v5058_v18, %v5026_v33 }
0x12a1   : > { %v5089_v36 = vsel %vm1282_vm7, %v11525_v35, %v5082_v24  ;;  %v5093_v13 = vsel %vm1282_vm7, %v5082_v24, %v11525_v35  ;;  %v5065_v43 = vadd.f32 %v5057_v49, %v5025_v52  ;;  %v14146_v49 = vld [vmem:[#allocation96_spill] sm:$0xff] }
0x12a2   : > { %v5097_v48 = vmul.f32 %v5089_v36, %v13978_v45  ;;  %v5098_v60 = vmul.f32 %v5093_v13, %v13979_v7  ;;  %v5084_v22 = vpop.permute.xlu1 %5083  ;;  %v5067_v21 = vadd.f32 %v5059_v17, %v5027_v0  ;;  %v5068_v23 = vadd.f32 %v5060_v15, %v5028_v62  ;;  %v14147_v13 = vld [vmem:[#allocation37_spill] sm:$0xff]  ;;  %v14148_v0 = vld [vmem:[#allocation38_spill] sm:$0xff] }
0x12a3   : > { %v5090_v44 = vsel %vm1282_vm7, %v11527_v51, %v5084_v22  ;;  %v5094_v56 = vsel %vm1282_vm7, %v5084_v22, %v11527_v51 }
0x12a4   : > { %v5099_v35 = vmul.f32 %v5090_v44, %v14059_v5  ;;  %v5100_v12 = vmul.f32 %v5094_v56, %v14060_v50  ;;  %v5122_v4 = vpop.permute.xlu0 %5121  ;;  %v5105_v31 = vadd.f32 %v5097_v48, %v5065_v43  ;;  %v5106_v58 = vadd.f32 %v5098_v60, %v5066_v16 }
0x12a5   : > { %v5129_v14 = vsel %vm1323_vm8, %v11529_v6, %v5122_v4  ;;  %v5133_v47 = vsel %vm1323_vm8, %v5122_v4, %v11529_v6  ;;  %v14145_v6 = vld [vmem:[#allocation95_spill] sm:$0xff] }
0x12a6   : > { %v5137_v51 = vmul.f32 %v5129_v14, %v14061_v3  ;;  %v5138_v38 = vmul.f32 %v5133_v47, %v14144_v10  ;;  %v5124_v19 = vpop.permute.xlu1 %5123  ;;  %v5107_v30 = vadd.f32 %v5099_v35, %v5067_v21  ;;  %v5108_v46 = vadd.f32 %v5100_v12, %v5068_v23 }
0x12a7   : > { %v5130_v37 = vsel %vm1323_vm8, %v11531_v41, %v5124_v19  ;;  %v5134_v55 = vsel %vm1323_vm8, %v5124_v19, %v11531_v41 }
0x12a8   : > { %v5145_v1 = vadd.f32 %v5137_v51, %v5105_v31  ;;  %v5146_v61 = vadd.f32 %v5138_v38, %v5106_v58  ;;  %v5139_v34 = vmul.f32 %v5130_v37, %v14145_v6  ;;  %v5140_v18 = vmul.f32 %v5134_v55, %v14146_v49  ;;  %v4838_v24 = vpop.permute.xlu0 %4837  ;;  %v14169_v6 = vld [vmem:[#allocation53_spill] sm:$0xff] }
0x12aa   : > { %v5147_v17 = vadd.f32 %v5139_v34, %v5107_v30  ;;  %v5148_v15 = vadd.f32 %v5140_v18, %v5108_v46  ;;  %v4840_v36 = vpop.permute.xlu1 %4839  ;;  %v5153_v52 = vadd.f32 %v5145_v1, %v14147_v13  ;;  %v5154_v33 = vadd.f32 %v5146_v61, %v14147_v13  ;;  %v14163_v13 = vld [vmem:[#allocation97_spill] sm:$0xff] }
0x12ac   : > { %v4878_v48 = vpop.permute.xlu0 %4877  ;;  %v5161_v60 = vadd.f32 3.0, %v5153_v52  ;;  %v5162_v22 = vadd.f32 3.0, %v5154_v33  ;;  %v5155_v62 = vadd.f32 %v5147_v17, %v14148_v0  ;;  %v5156_v41 = vadd.f32 %v5148_v15, %v14148_v0 }
0x12ae   : > { %v4880_v44 = vpop.permute.xlu1 %4879  ;;  %v5169_v56 = vmax.f32 %v5161_v60, 0.0  ;;  %v5170_v43 = vmax.f32 %v5162_v22, 0.0  ;;  %v5163_v16 = vadd.f32 3.0, %v5155_v62  ;;  %v5164_v35 = vadd.f32 3.0, %v5156_v41 }
0x12b0   : > { %v4918_v12 = vpop.permute.xlu0 %4917  ;;  %v5177_v4 = vmin.f32 %v5169_v56, 6.0  ;;  %v5178_v21 = vmin.f32 %v5170_v43, 6.0  ;;  %v5171_v23 = vmax.f32 %v5163_v16, 0.0  ;;  %v5172_v14 = vmax.f32 %v5164_v35, 0.0 }
0x12b2   : > { %v4920_v47 = vpop.permute.xlu1 %4919  ;;  %v5185_v31 = vmul.f32 %v5177_v4, %v5153_v52  ;;  %v5186_v58 = vmul.f32 %v5178_v21, %v5154_v33  ;;  %v5179_v51 = vmin.f32 %v5171_v23, 6.0  ;;  %v5180_v38 = vmin.f32 %v5172_v14, 6.0 }
0x12b4   : > { %v4958_v19 = vpop.permute.xlu0 %4957  ;;  %v11657_v30 = vmul.f32 0.16666667, %v5185_v31  ;;  %v11659_v46 = vmul.f32 0.16666667, %v5186_v58  ;;  %v5187_v37 = vmul.f32 %v5179_v51, %v5155_v62  ;;  %v5188_v55 = vmul.f32 %v5180_v38, %v5156_v41  ;;  %v14153_v51 = vld [vmem:[#allocation15_spill] sm:$0xff] }
0x12b6   : > { %14149 = vst [vmem:[#allocation98_spill] sm:$0xff] %v11657_v30  ;;  %14150 = vst [vmem:[#allocation70_spill] sm:$0xff] %v11659_v46  ;;  %v4960_v1 = vpop.permute.xlu1 %4959  ;;  %v5201_v61 = vadd.f32 %v11659_v46, %v11657_v30  ;;  %v11663_v34 = vmul.f32 0.16666667, %v5187_v37  ;;  %v11665_v18 = vmul.f32 0.16666667, %v5188_v55 }
0x12b7   : > { %v14154_v37 = vld [vmem:[#allocation43_spill] sm:$0xff]  ;;  %v14157_v30 = vld [vmem:[#allocation44_spill] sm:$0xff] }
0x12b8   : > { %14151 = vst [vmem:[#allocation78_spill] sm:$0xff] %v11663_v34  ;;  %14152 = vst [vmem:[#allocation81_spill] sm:$0xff] %v11665_v18  ;;  %v11667_v17 = vpop.permute.xlu0 %4997  ;;  %5202 = vadd.xlane.f32.xlu0 %v5201_v61  ;;  %v5204_v15 = vadd.f32 %v11665_v18, %v11663_v34  ;;  %v14155_v18 = vld [vmem:[#allocation16_spill] sm:$0xff] }
0x12ba   : > { %v11671_v52 = vpop.permute.xlu1 %4999  ;;  %5205 = vadd.xlane.f32.xlu1 %v5204_v15 }
0x12bc   : > { %v11673_v33 = vpop.permute.xlu0 %5037 }
0x12be   : > { %v11675_v60 = vpop.permute.xlu1 %5039 }
0x12c0   : > { %v11677_v22 = vpop.permute.xlu0 %5077 }
0x12c2   : > { %v11679_v62 = vpop.permute.xlu1 %5079 }
0x12c4   : > { %v11681_v41 = vpop.permute.xlu0 %5117 }
0x12c6   : > { %v11683_v56 = vpop.permute.xlu1 %5119 }
0x12c8   : > { %v4846_v43 = vpop.permute.xlu0 %4845 }
0x12c9   : > { %v4851_v4 = vsel %vm1036_vm1, %v4838_v24, %v4846_v43  ;;  %v4855_v21 = vsel %vm1036_vm1, %v4846_v43, %v4838_v24  ;;  %v4829_v24 = vmul.f32 %v11423_v57, %v14155_v18  ;;  %v14156_v43 = vld [vmem:[#allocation17_spill] sm:$0xff]  ;;  %v14162_v18 = vld [vmem:[#allocation48_spill] sm:$0xff] }
0x12ca   : > { %v4848_v16 = vpop.permute.xlu1 %4847  ;;  %v4861_v38 = vmul.f32 %v4855_v21, %v14153_v51  ;;  %v4862_v55 = vmul.f32 %v4851_v4, %v14154_v37  ;;  %v4830_v34 = vmul.f32 %v11463_v27, %v14156_v43  ;;  %v14159_v37 = vld [vmem:[#allocation46_spill] sm:$0xff]  ;;  %v4832_v49 = vmul.f32 %v14163_v13, %v14162_v18  ;;  %v14168_v18 = vld [vmem:[#allocation52_spill] sm:$0xff] }
0x12cb   : > { %v4852_v14 = vsel %vm1036_vm1, %v4840_v36, %v4848_v16  ;;  %v4856_v31 = vsel %vm1036_vm1, %v4848_v16, %v4840_v36  ;;  %v14158_v16 = vld [vmem:[#allocation45_spill] sm:$0xff] }
0x12cc   : > { %v4886_v35 = vpop.permute.xlu0 %4885  ;;  %v4863_v36 = vmul.f32 %v4856_v31, %v14157_v30  ;;  %v4864_v0 = vmul.f32 %v4852_v14, %v14158_v16  ;;  %v4869_v31 = vadd.f32 %v4861_v38, %v4829_v24  ;;  %v4870_v30 = vadd.f32 %v4862_v55, %v4830_v34  ;;  %v14161_v14 = vld [vmem:[#allocation47_spill] sm:$0xff]  ;;  %v14167_v34 = vld [vmem:[#allocation21_spill] sm:$0xff] }
0x12cd   : > { %v4891_v61 = vsel %vm1077_vm2, %v4878_v48, %v4886_v35  ;;  %v4895_v15 = vsel %vm1077_vm2, %v4886_v35, %v4878_v48  ;;  %v14160_v48 = vld [vmem:[#allocation19_spill] sm:$0xff]  ;;  %v4831_v16 = vmul.f32 %v11427_v32, %v14161_v14 }
0x12ce   : > { %v4888_v23 = vpop.permute.xlu1 %4887  ;;  %v4901_v51 = vmul.f32 %v4895_v15, %v14159_v37  ;;  %v4902_v35 = vmul.f32 %v4891_v61, %v14160_v48  ;;  %v14165_v15 = vld [vmem:[#allocation50_spill] sm:$0xff] }
0x12cf   : > { %v4892_v4 = vsel %vm1077_vm2, %v4880_v44, %v4888_v23  ;;  %v4896_v21 = vsel %vm1077_vm2, %v4888_v23, %v4880_v44  ;;  %v14164_v44 = vld [vmem:[#allocation49_spill] sm:$0xff]  ;;  %v4871_v24 = vadd.f32 %v4863_v36, %v4831_v16  ;;  %v14172_v16 = vld [vmem:[#allocation54_spill] sm:$0xff] }
0x12d0   : > { %v4926_v58 = vpop.permute.xlu0 %4925  ;;  %v4903_v23 = vmul.f32 %v4896_v21, %v14164_v44  ;;  %v4904_v37 = vmul.f32 %v4892_v4, %v14165_v15  ;;  %v4872_v21 = vadd.f32 %v4864_v0, %v4832_v49  ;;  %v4909_v4 = vadd.f32 %v4901_v51, %v4869_v31 }
0x12d1   : > { %v4931_v57 = vsel %vm1118_vm3, %v4918_v12, %v4926_v58  ;;  %v4935_v27 = vsel %vm1118_vm3, %v4926_v58, %v4918_v12  ;;  %v14166_v58 = vld [vmem:[#allocation18_spill] sm:$0xff]  ;;  %v4910_v15 = vadd.f32 %v4902_v35, %v4870_v30 }
0x12d2   : > { %v4928_v46 = vpop.permute.xlu1 %4927  ;;  %v4941_v38 = vmul.f32 %v4935_v27, %v14166_v58  ;;  %v4942_v55 = vmul.f32 %v4931_v57, %v14167_v34  ;;  %v4911_v27 = vadd.f32 %v4903_v23, %v4871_v24  ;;  %v4912_v34 = vadd.f32 %v4904_v37, %v4872_v21  ;;  %v14170_v58 = vld [vmem:[#allocation20_spill] sm:$0xff] }
0x12d3   : > { %v4932_v61 = vsel %vm1118_vm3, %v4920_v47, %v4928_v46  ;;  %v4936_v48 = vsel %vm1118_vm3, %v4928_v46, %v4920_v47 }
0x12d4   : > { %v4966_v43 = vpop.permute.xlu0 %4965  ;;  %v4943_v14 = vmul.f32 %v4936_v48, %v14168_v18  ;;  %v4944_v47 = vmul.f32 %v4932_v61, %v14169_v6  ;;  %v4949_v0 = vadd.f32 %v4941_v38, %v4909_v4  ;;  %v4950_v30 = vadd.f32 %v4942_v55, %v4910_v15  ;;  %v14174_v55 = vld [vmem:[#allocation22_spill] sm:$0xff]  ;;  %v14176_v4 = vld [vmem:[#allocation56_spill] sm:$0xff]  ;;  %v14220_v18 = vld [vmem:[#allocation65_spill] sm:$0xff] }
0x12d5   : > { %v4971_v32 = vsel %vm1159_vm4, %v4958_v19, %v4966_v43  ;;  %v4975_v13 = vsel %vm1159_vm4, %v4966_v43, %v4958_v19  ;;  %v14171_v19 = vld [vmem:[#allocation23_spill] sm:$0xff] }
0x12d6   : > { %v4968_v12 = vpop.permute.xlu1 %4967  ;;  %v4981_v10 = vmul.f32 %v4975_v13, %v14170_v58  ;;  %v4982_v43 = vmul.f32 %v4971_v32, %v14171_v19  ;;  %v4951_v15 = vadd.f32 %v4943_v14, %v4911_v27  ;;  %v4952_v61 = vadd.f32 %v4944_v47, %v4912_v34  ;;  %v14175_v13 = vld [vmem:[#allocation27_spill] sm:$0xff]  ;;  %v14218_v19 = vld [vmem:[#allocation64_spill] sm:$0xff] }
0x12d7   : > { %v4972_v46 = vsel %vm1159_vm4, %v4960_v1, %v4968_v12  ;;  %v4976_v57 = vsel %vm1159_vm4, %v4968_v12, %v4960_v1  ;;  %v14173_v1 = vld [vmem:[#allocation55_spill] sm:$0xff] }
0x12d8   : > { %v5006_v44 = vpop.permute.xlu0 %5005  ;;  %v4983_v48 = vmul.f32 %v4976_v57, %v14172_v16  ;;  %v4984_v35 = vmul.f32 %v4972_v46, %v14173_v1  ;;  %v4990_v38 = vadd.f32 %v4982_v43, %v4950_v30  ;;  %v14177_v46 = vld [vmem:[#allocation57_spill] sm:$0xff]  ;;  %v14178_v57 = vld [vmem:[#allocation24_spill] sm:$0xff] }
0x12d9   : > { %v5011_v51 = vsel %vm1200_vm5, %v11667_v17, %v5006_v44  ;;  %v5015_v36 = vsel %vm1200_vm5, %v5006_v44, %v11667_v17  ;;  %v4989_v44 = vadd.f32 %v4981_v10, %v4949_v0  ;;  %v14179_v43 = vld [vmem:[#allocation29_spill] sm:$0xff]  ;;  %v14180_v30 = vld [vmem:[#allocation28_spill] sm:$0xff] }
0x12da   : > { %v5008_v49 = vpop.permute.xlu1 %5007  ;;  %v5021_v32 = vmul.f32 %v5011_v51, %v14174_v55  ;;  %v5022_v24 = vmul.f32 %v5015_v36, %v14175_v13  ;;  %v4992_v10 = vadd.f32 %v4984_v35, %v4952_v61  ;;  %v14181_v36 = vld [vmem:[#allocation30_spill] sm:$0xff]  ;;  %v14182_v35 = vld [vmem:[#allocation31_spill] sm:$0xff] }
0x12db   : > { %v5012_v37 = vsel %vm1200_vm5, %v11671_v52, %v5008_v49  ;;  %v5016_v31 = vsel %vm1200_vm5, %v5008_v49, %v11671_v52  ;;  %v14183_v61 = vld [vmem:[#allocation58_spill] sm:$0xff] }
0x12dc   : > { %v5046_v23 = vpop.permute.xlu0 %5045  ;;  %v5023_v52 = vmul.f32 %v5012_v37, %v14176_v4  ;;  %v5024_v14 = vmul.f32 %v5016_v31, %v14177_v46  ;;  %v14216_v46 = vld [vmem:[#allocation61_spill] sm:$0xff]  ;;  %v14217_v13 = vld [vmem:[#allocation62_spill] sm:$0xff] }
0x12dd   : > { %v5051_v12 = vsel %vm1241_vm6, %v11673_v33, %v5046_v23  ;;  %v5055_v17 = vsel %vm1241_vm6, %v5046_v23, %v11673_v33  ;;  %v4991_v33 = vadd.f32 %v4983_v48, %v4951_v15  ;;  %v5030_v48 = vadd.f32 %v5022_v24, %v4990_v38  ;;  %v14185_v38 = vld [vmem:[#allocation99_spill] sm:$0xff] }
0x12de   : > { %v5048_v21 = vpop.permute.xlu1 %5047  ;;  %v5061_v27 = vmul.f32 %v5051_v12, %v14178_v57  ;;  %v5062_v49 = vmul.f32 %v5055_v17, %v14179_v43  ;;  %v5032_v43 = vadd.f32 %v5024_v14, %v4992_v10 }
0x12df   : > { %v5052_v34 = vsel %vm1241_vm6, %v11675_v60, %v5048_v21  ;;  %v5056_v47 = vsel %vm1241_vm6, %v5048_v21, %v11675_v60  ;;  %v5029_v60 = vadd.f32 %v5021_v32, %v4989_v44  ;;  %v5031_v21 = vadd.f32 %v5023_v52, %v4991_v33 }
0x12e0   : > { %v5086_v0 = vpop.permute.xlu0 %5085  ;;  %v5063_v51 = vmul.f32 %v5052_v34, %v14180_v30  ;;  %v5064_v37 = vmul.f32 %v5056_v47, %v14181_v36  ;;  %v5070_v30 = vadd.f32 %v5062_v49, %v5030_v48  ;;  %v14187_v49 = vld [vmem:[#allocation35_spill] sm:$0xff] }
0x12e1   : > { %v5091_v31 = vsel %vm1282_vm7, %v11677_v22, %v5086_v0  ;;  %v5095_v23 = vsel %vm1282_vm7, %v5086_v0, %v11677_v22  ;;  %v5069_v36 = vadd.f32 %v5061_v27, %v5029_v60  ;;  %v14184_v22 = vld [vmem:[#allocation33_spill] sm:$0xff] }
0x12e2   : > { %v5101_v15 = vmul.f32 %v5091_v31, %v14182_v35  ;;  %v5102_v12 = vmul.f32 %v5095_v23, %v14183_v61  ;;  %v5088_v17 = vpop.permute.xlu1 %5087  ;;  %v5071_v0 = vadd.f32 %v5063_v51, %v5031_v21  ;;  %v5072_v31 = vadd.f32 %v5064_v37, %v5032_v43 }
0x12e3   : > { %v5092_v34 = vsel %vm1282_vm7, %v11679_v62, %v5088_v17  ;;  %v5096_v47 = vsel %vm1282_vm7, %v5088_v17, %v11679_v62  ;;  %v14186_v62 = vld [vmem:[#allocation59_spill] sm:$0xff] }
0x12e4   : > { %v5103_v44 = vmul.f32 %v5092_v34, %v14184_v22  ;;  %v5104_v32 = vmul.f32 %v5096_v47, %v14185_v38  ;;  %v5126_v24 = vpop.permute.xlu0 %5125  ;;  %v5109_v33 = vadd.f32 %v5101_v15, %v5069_v36  ;;  %v5110_v10 = vadd.f32 %v5102_v12, %v5070_v30  ;;  %v14189_v30 = vld [vmem:[#allocation100_spill] sm:$0xff]  ;;  %v14190_v47 = vld [vmem:[#allocation39_spill] sm:$0xff] }
0x12e5   : > { %v5131_v52 = vsel %vm1323_vm8, %v11681_v41, %v5126_v24  ;;  %v5135_v14 = vsel %vm1323_vm8, %v5126_v24, %v11681_v41  ;;  %v14188_v41 = vld [vmem:[#allocation36_spill] sm:$0xff] }
0x12e6   : > { %v5141_v27 = vmul.f32 %v5131_v52, %v14186_v62  ;;  %v5142_v23 = vmul.f32 %v5135_v14, %v14187_v49  ;;  %v5128_v60 = vpop.permute.xlu1 %5127  ;;  %v5111_v48 = vadd.f32 %v5103_v44, %v5071_v0  ;;  %v5112_v17 = vadd.f32 %v5104_v32, %v5072_v31  ;;  %v14191_v31 = vld [vmem:[#allocation40_spill] sm:$0xff] }
0x12e7   : > { %v5132_v43 = vsel %vm1323_vm8, %v11683_v56, %v5128_v60  ;;  %v5136_v51 = vsel %vm1323_vm8, %v5128_v60, %v11683_v56 }
0x12e8   : > { %v5149_v37 = vadd.f32 %v5141_v27, %v5109_v33  ;;  %v5150_v21 = vadd.f32 %v5142_v23, %v5110_v10  ;;  %v5143_v36 = vmul.f32 %v5132_v43, %v14188_v41  ;;  %v5144_v15 = vmul.f32 %v5136_v51, %v14189_v30 }
0x12ea   : > { %v5151_v12 = vadd.f32 %v5143_v36, %v5111_v48  ;;  %v5152_v34 = vadd.f32 %v5144_v15, %v5112_v17  ;;  %v5157_v24 = vadd.f32 %v5149_v37, %v14190_v47  ;;  %v5158_v44 = vadd.f32 %v5150_v21, %v14190_v47 }
0x12ec   : > { %v5165_v32 = vadd.f32 3.0, %v5157_v24  ;;  %v5166_v0 = vadd.f32 3.0, %v5158_v44  ;;  %v5159_v52 = vadd.f32 %v5151_v12, %v14191_v31  ;;  %v5160_v14 = vadd.f32 %v5152_v34, %v14191_v31 }
0x12ee   : > { %v5173_v49 = vmax.f32 %v5165_v32, 0.0  ;;  %v5174_v56 = vmax.f32 %v5166_v0, 0.0  ;;  %v5167_v33 = vadd.f32 3.0, %v5159_v52  ;;  %v5168_v10 = vadd.f32 3.0, %v5160_v14 }
0x12f0   : > { %v5181_v27 = vmin.f32 %v5173_v49, 6.0  ;;  %v5182_v23 = vmin.f32 %v5174_v56, 6.0  ;;  %v5175_v60 = vmax.f32 %v5167_v33, 0.0  ;;  %v5176_v43 = vmax.f32 %v5168_v10, 0.0  ;;  %v14196_v56 = vld [vmem:[#allocation90_spill] sm:$0xff]  ;;  %v14198_v10 = vld [vmem:[#allocation32_spill] sm:$0xff] }
0x12f2   : > { %v5189_v48 = vmul.f32 %v5181_v27, %v5157_v24  ;;  %v5190_v17 = vmul.f32 %v5182_v23, %v5158_v44  ;;  %v5183_v51 = vmin.f32 %v5175_v60, 6.0  ;;  %v5184_v37 = vmin.f32 %v5176_v43, 6.0  ;;  %v14197_v44 = vld [vmem:[#allocation25_spill] sm:$0xff]  ;;  %v14199_v23 = vld [vmem:[#allocation26_spill] sm:$0xff] }
0x12f4   : > { %v11809_v36 = vmul.f32 0.16666667, %v5189_v48  ;;  %v11811_v21 = vmul.f32 0.16666667, %v5190_v17  ;;  %v5191_v15 = vmul.f32 %v5183_v51, %v5159_v52  ;;  %v5192_v12 = vmul.f32 %v5184_v37, %v5160_v14  ;;  %v14200_v51 = vld [vmem:[#allocation34_spill] sm:$0xff] }
0x12f5   : > { %v4646_v47 = vpop.permute.xlu0 %4645 }
0x12f6   : > { %14192 = vst [vmem:[#allocation86_spill] sm:$0xff] %v11809_v36  ;;  %14193 = vst [vmem:[#allocation101_spill] sm:$0xff] %v11811_v21  ;;  %v5207_v34 = vadd.f32 %v11811_v21, %v11809_v36  ;;  %v11815_v32 = vmul.f32 0.16666667, %v5191_v15  ;;  %v11817_v0 = vmul.f32 0.16666667, %v5192_v12  ;;  %v4663_v24 = vmul.f32 %v4646_v47, %v14196_v56 }
0x12f7   : > { %v4651_v49 = vpop.permute.xlu1 %4650  ;;  %v4664_v33 = vmul.f32 %v4646_v47, %v14197_v44  ;;  %v14201_v15 = vld [vmem:[#allocation77_spill] sm:$0xff]  ;;  %v14202_v56 = vld [vmem:[#allocation75_spill] sm:$0xff]  ;;  %v14203_v47 = vld [vmem:[#allocation76_spill] sm:$0xff] }
0x12f8   : > { %14194 = vst [vmem:[#allocation102_spill] sm:$0xff] %v11815_v32  ;;  %14195 = vst [vmem:[#allocation97_spill] sm:$0xff] %v11817_v0  ;;  %v4665_v27 = vmul.f32 %v4651_v49, %v14198_v10  ;;  %v4666_v60 = vmul.f32 %v4651_v49, %v14199_v23  ;;  %5208 = vadd.xlane.f32.xlu0 %v5207_v34  ;;  %v5210_v14 = vadd.f32 %v11817_v0, %v11815_v32  ;;  %v14204_v10 = vmov 0.0|0.0  }
0x12f9   : > { %v4656_v52 = vpop.permute.xlu0 %4655 }
0x12fa   : > { %v4671_v43 = vpack.c.bf16 %v4665_v27, %v4663_v24  ;;  %v4672_v48 = vpack.c.bf16 %v4666_v60, %v4664_v33  ;;  %5211 = vadd.xlane.f32.xlu1 %v5210_v14  ;;  %v4667_v37 = vmul.f32 %v4656_v52, %v14200_v51  ;;  %v4668_v12 = vmul.f32 %v4656_v52, %v14201_v15  ;;  %v7590_v24 = vld [vmem:[%s13193_s10] sm:$0xff]  }
0x12fb   : > { %v4661_v17 = vpop.permute.xlu1 %4660  ;;  %v14205_v33 = vmov 0.0   ;;  %v7592_v15 = vld [vmem:[%s13191_s8] sm:$0xff] }
0x12fc   : > { %v4669_v21 = vmul.f32 %v4661_v17, %v14202_v56  ;;  %v4670_v44 = vmul.f32 %v4661_v17, %v14203_v47  ;;  %4675 = vmatprep.subr.bf16.mxu0 %v4672_v48 }
0x12fd   : > { %4676 = vmatpush1.bf16.msra.mxu0 %v4671_v43 }
0x12fe   : > { %v4673_v49 = vpack.c.bf16 %v4669_v21, %v4667_v37  ;;  %v4674_v34 = vpack.c.bf16 %v4670_v44, %v4668_v12  ;;  %v7591_v37 = vld [vmem:[%s13189_s6] sm:$0xff] }
0x1300   : > { %4677 = vmatprep.subr.bf16.mxu0 %v4674_v34  ;;  %v5477_v34 = vld [vmem:[%s7945_s13 + $0xc8] sm:$0xff] }
0x1301   : > { %4678 = vmatpush1.bf16.msra.mxu0 %v4673_v49 }
0x1302   : > { %7453 = vmatprep.subr.bf16.mxu0 %v14204_v10 }
0x1304   : > { %7156 = vmatmul.mubr.msk.bf16.vlgmr.msra.gmra.mrb[44].mxu0 %vm1432_vm10, %v7590_v24  ;;  %v5479_v24 = vld [vmem:[%s7945_s13 + $0xd8] sm:$0xff] }
0x1305   : > { %7374 = vmatprep.mubr.msk.f32.mxu0 %vm7766_vm9, %v14205_v33 }
0x1345   : > { %v5203_v27 = vpop.xlane.xlu0 %5202 }
0x1346   : > { %v5213_v60 = vmul.f32 0.00390625, %v5203_v27  ;;  %v7593_v27 = vld [vmem:[%s13190_s7] sm:$0xff] }
0x1347   : > { %v5206_v23 = vpop.xlane.xlu1 %5205 }
0x1348   : > { %v5214_v52 = vmul.f32 0.00390625, %v5206_v23 }
0x134a   : > { %v7454_v14 = vpack.c.bf16 %v5214_v52, %v5213_v60  ;;  %v5476_v52 = vld [vmem:[%s7945_s13 + $0xc0] sm:$0xff] }
0x134c   : > { %7455 = vmatpush3.bf16.msra.mxu0 %v7454_v14  ;;  %v5478_v14 = vld [vmem:[%s7945_s13 + $0xd0] sm:$0xff] }
0x134d   : > { %7456 = vmatprep.subr.bf16.mxu0 %v14204_v10 }
0x1385   : > { %v5209_v21 = vpop.xlane.xlu0 %5208 }
0x1386   : > { %v5215_v48 = vmul.f32 0.00390625, %v5209_v21 }
0x1387   : > { %v5212_v43 = vpop.xlane.xlu1 %5211 }
0x1388   : > { %v5216_v17 = vmul.f32 0.00390625, %v5212_v43  ;;  %v5481_v43 = vpack.c.bf16 %v5479_v24, %v5477_v34  ;;  %v7598_v34 = vld [vmem:[%s13184_s1 + $0x8] sm:$0xff]  }
0x138a   : > { %v7457_v51 = vpack.c.bf16 %v5216_v17, %v5215_v48  ;;  %v5480_v48 = vpack.c.bf16 %v5478_v14, %v5476_v52  ;;  %v7594_v17 = vld [vmem:[%s13191_s8 + $0x8] sm:$0xff]  ;;  %v14211_v14 = vld [vmem:[#allocation11_spill] sm:$0xff] }
0x138c   : > { %7458 = vmatpush3.bf16.msra.mxu0 %v7457_v51  ;;  %v7595_v51 = vld [vmem:[%s13191_s8 + $0x10] sm:$0xff] }
0x138f   : > { %7375 = vmatmul.mubr.msk.f32.vlgmr.msra.gmra.mrb[48].mxu0 %vm1432_vm10, %v7591_v37  ;;  %v7596_v37 = vld [vmem:[%s13191_s8 + $0x18] sm:$0xff] }
0x1390   : > { %7379 = vmatprep.mubr.msk.f32.mxu0 %vm1507_vm11, %v7592_v15  ;;  %v14210_v15 = vmov 0  }
0x13d7   : > { %v11845_v12 = vpop.f32.mrb[44].mxu0 }
0x13d8   : > { %14206 = vst [vmem:[#allocation90_spill] sm:$0xff] %v11845_v12  ;;  %v11847_v56 = vpop.f32.mrb[45].mxu0 }
0x13d9   : > { %14207 = vst [vmem:[#allocation25_spill] sm:$0xff] %v11847_v56  ;;  %v11849_v47 = vpop.f32.mrb[46].mxu0 }
0x13da   : > { %14208 = vst [vmem:[#allocation32_spill] sm:$0xff] %v11849_v47  ;;  %v11851_v44 = vpop.f32.mrb[47].mxu0 }
0x13db   : > { %14209 = vst [vmem:[#allocation26_spill] sm:$0xff] %v11851_v44 }
0x1462   : > { %v5283_v49 = vpop.f32.mrb[48].mxu0 }
0x1463   : > { %v5284_v23 = vadd.f32 %v7593_v27, %v5283_v49  ;;  %v7376_v60 = vpop.f32.mrb[49].mxu0  ;;  %v7597_v49 = vld [vmem:[%s13184_s1] sm:$0xff]  }
0x1465   : > { %v5287_v21 = vmax.f32 %v5284_v23, 0.0 }
0x1467   : > { %7377 = vmatprep.subr.mxu0 %v5287_v21 }
0x1468   : > { %7378 = vmatpush3.msra.mxu0 %v5287_v21 }
0x1469   : > { %7380 = vmatmul.mubr.msk.f32.vlgmr.msra.gmra.mrb[50].mxu0 %vm1507_vm11, %v7594_v17  ;;  %5482 = vmatprep.subr.bf16.mxu0 %v5481_v43 }
0x146a   : > { %7382 = vmatprep.mubr.msk.f32.mxu0 %vm1507_vm11, %v7595_v51  ;;  %5483 = vmatpush1.bf16.msra.mxu0 %v5480_v48  ;;  %v14212_v51 = vld [vmem:[#allocation13_spill] sm:$0xff] }
0x146d   : > { %7383 = vmatmul.mubr.msk.f32.gmra.mrb[52].mxu0 %vm1507_vm11, %v7596_v37 }
0x146e   : > { %5514 = vmatprep.mubr.bf16.mxu0 %v14210_v15 }
0x1471   : > { %7165 = vmatmul.mubr.msk.bf16.vlgmr.msra.gmra.mrb[56].mxu0 %vm910_vm0, %v7597_v49 }
0x1472   : > { %5524 = vmatprep.mubr.bf16.mxu0 %v14210_v15 }
0x1479   : > { %7166 = vmatmul.mubr.msk.bf16.gmra.mrb[60].mxu0 %vm910_vm0, %v7598_v34 }
0x147a   : > { %6207 = vmatprep.mubr.bf16.mxu0 %v14210_v15 }
0x153c   : > { %v11883_v24 = vpop.f32.mrb[50].mxu0 }
0x153d   : > { %v11885_v27 = vpop.f32.mrb[51].mxu0 }
0x1540   : > { %v11887_v23 = vpop.f32.mrb[52].mxu0 }
0x1541   : > { %v11889_v60 = vpop.f32.mrb[53].mxu0 }
0x1544   : > { %v5516_v52 = vpop.f32.mrb[56].mxu0 }
0x1545   : > { %v5517_v21 = vadd.f32 %v5516_v52, %v14211_v14  ;;  %v5518_v43 = vpop.f32.mrb[57].mxu0 }
0x1546   : > { %v5520_v48 = vpop.f32.mrb[58].mxu0 }
0x1547   : > { %v5535_v17 = vadd.f32 3.0, %v5517_v21  ;;  %v5521_v37 = vadd.f32 %v5520_v48, %v14212_v51  ;;  %v5522_v49 = vpop.f32.mrb[59].mxu0 }
0x1549   : > { %v5543_v34 = vmax.f32 %v5535_v17, 0.0  ;;  %v5537_v56 = vadd.f32 3.0, %v5521_v37 }
0x154b   : > { %v5551_v12 = vmin.f32 %v5543_v34, 6.0  ;;  %v5545_v44 = vmax.f32 %v5537_v56, 0.0  ;;  %v14213_v34 = vld [vmem:[#allocation12_spill] sm:$0xff] }
0x154c   : > { %v5526_v47 = vpop.f32.mrb[60].mxu0 }
0x154d   : > { %v5559_v15 = vmul.f32 %v5551_v12, %v5517_v21  ;;  %v5553_v33 = vmin.f32 %v5545_v44, 6.0  ;;  %v11893_v10 = vpop.f32.mrb[61].mxu0 }
0x154e   : > { %v5530_v0 = vpop.f32.mrb[62].mxu0 }
0x154f   : > { %v11895_v32 = vmul.f32 0.16666667, %v5559_v15  ;;  %v5561_v36 = vmul.f32 %v5553_v33, %v5521_v37  ;;  %v11897_v52 = vpop.f32.mrb[63].mxu0  ;;  %v5519_v33 = vadd.f32 %v5518_v43, %v14211_v14 }
0x1551   : > { %v11899_v31 = vmul.f32 0.16666667, %v5561_v36  ;;  %5583 = vrot.lane.b32.xlu0 %v11895_v32, %s13787_s14  ;;  %v5523_v36 = vadd.f32 %v5522_v49, %v14212_v51  ;;  %v5536_v12 = vadd.f32 3.0, %v5519_v33 }
0x1553   : > { %5585 = vrot.lane.b32.xlu1 %v11899_v31, %s13787_s14  ;;  %v5538_v56 = vadd.f32 3.0, %v5523_v36  ;;  %v5544_v44 = vmax.f32 %v5536_v12, 0.0 }
0x1555   : > { %5623 = vrot.lane.b32.xlu0 %v11895_v32, %s13786_s17  ;;  %v5546_v15 = vmax.f32 %v5538_v56, 0.0  ;;  %v5552_v21 = vmin.f32 %v5544_v44, 6.0 }
0x1557   : > { %5625 = vrot.lane.b32.xlu1 %v11899_v31, %s13786_s17  ;;  %v5554_v43 = vmin.f32 %v5546_v15, 6.0  ;;  %v5560_v48 = vmul.f32 %v5552_v21, %v5519_v33  ;;  %v5527_v33 = vadd.f32 %v5526_v47, %v14213_v34 }
0x1559   : > { %5663 = vrot.lane.b32.xlu0 %v11895_v32, %s13788_s20  ;;  %v5562_v17 = vmul.f32 %v5554_v43, %v5523_v36  ;;  %v11933_v37 = vmul.f32 0.16666667, %v5560_v48  ;;  %v14214_v36 = vld [vmem:[#allocation14_spill] sm:$0xff]  ;;  %v5539_v56 = vadd.f32 3.0, %v5527_v33 }
0x155a   : > { %v5531_v12 = vadd.f32 %v5530_v0, %v14214_v36 }
0x155b   : > { %5665 = vrot.lane.b32.xlu1 %v11899_v31, %s13788_s20  ;;  %v11937_v49 = vmul.f32 0.16666667, %v5562_v17  ;;  %v5547_v15 = vmax.f32 %v5539_v56, 0.0 }
0x155c   : > { %v5541_v44 = vadd.f32 3.0, %v5531_v12 }
0x155d   : > { %5703 = vrot.lane.b32.xlu0 %v11895_v32, %s13789_s19  ;;  %v5555_v0 = vmin.f32 %v5547_v15, 6.0 }
0x155e   : > { %v5549_v47 = vmax.f32 %v5541_v44, 0.0 }
0x155f   : > { %5705 = vrot.lane.b32.xlu1 %v11899_v31, %s13789_s19  ;;  %v5563_v43 = vmul.f32 %v5555_v0, %v5527_v33  ;;  %v5529_v33 = vadd.f32 %v11893_v10, %v14213_v34 }
0x1560   : > { %v5557_v21 = vmin.f32 %v5549_v47, 6.0 }
0x1561   : > { %5743 = vrot.lane.b32.xlu0 %v11895_v32, %s13790_s18  ;;  %v11971_v17 = vmul.f32 0.16666667, %v5563_v43  ;;  %v5540_v44 = vadd.f32 3.0, %v5529_v33 }
0x1562   : > { %v5565_v48 = vmul.f32 %v5557_v21, %v5531_v12  ;;  %v5533_v12 = vadd.f32 %v11897_v52, %v14214_v36 }
0x1563   : > { %5745 = vrot.lane.b32.xlu1 %v11899_v31, %s13790_s18  ;;  %v5548_v47 = vmax.f32 %v5540_v44, 0.0 }
0x1564   : > { %v11975_v56 = vmul.f32 0.16666667, %v5565_v48  ;;  %v5542_v15 = vadd.f32 3.0, %v5533_v12 }
0x1565   : > { %5783 = vrot.lane.b32.xlu0 %v11895_v32, %s13791_s23  ;;  %v5556_v52 = vmin.f32 %v5548_v47, 6.0 }
0x1566   : > { %v5550_v10 = vmax.f32 %v5542_v15, 0.0  ;;  %v7600_v15 = vld [vmem:[%s13192_s9 + $0x8] sm:$0xff] }
0x1567   : > { %5785 = vrot.lane.b32.xlu1 %v11899_v31, %s13791_s23  ;;  %v5564_v21 = vmul.f32 %v5556_v52, %v5529_v33  ;;  %v7599_v33 = vld [vmem:[%s13192_s9] sm:$0xff]  ;;  %v5360_v47 = vadd.f32 %v7600_v15, %v11883_v24  ;;  %v7601_v52 = vld [vmem:[%s13192_s9 + $0x10] sm:$0xff] }
0x1568   : > { %v5558_v0 = vmin.f32 %v5550_v10, 6.0 }
0x1569   : > { %5823 = vrot.lane.b32.xlu0 %v11895_v32, %s13792_s27  ;;  %v12011_v48 = vmul.f32 0.16666667, %v5564_v21  ;;  %v7602_v21 = vld [vmem:[%s13192_s9 + $0x18] sm:$0xff] }
0x156a   : > { %v5566_v43 = vmul.f32 %v5558_v0, %v5533_v12  ;;  %v5355_v12 = vadd.f32 %v7599_v33, %v11885_v27  ;;  %v5365_v0 = vadd.f32 %v7601_v52, %v11889_v60  ;;  %v5374_v27 = vmul.f32 1.2, %v5360_v47 }
0x156b   : > { %5825 = vrot.lane.b32.xlu1 %v11899_v31, %s13792_s27  ;;  %v5370_v24 = vadd.f32 %v7602_v21, %v11887_v23 }
0x156c   : > { %v12015_v44 = vmul.f32 0.16666667, %v5566_v43  ;;  %v5373_v10 = vmul.f32 1.2, %v5355_v12  ;;  %v5375_v33 = vmul.f32 1.2, %v5365_v0 }
0x156d   : > { %5863 = vrot.lane.b32.xlu0 %v11895_v32, %s13793_s30  ;;  %v5378_v60 = vadd.f32 3.0, %v5374_v27  ;;  %v5376_v15 = vmul.f32 1.2, %v5370_v24 }
0x156e   : > { %14215 = vst [vmem:[#allocation34_spill] sm:$0xff] %v12015_v44  ;;  %v5377_v43 = vadd.f32 3.0, %v5373_v10  ;;  %v5379_v36 = vadd.f32 3.0, %v5375_v33 }
0x156f   : > { %5865 = vrot.lane.b32.xlu1 %v11899_v31, %s13793_s30  ;;  %v5382_v21 = vmax.f32 %v5378_v60, 0.0  ;;  %v5380_v34 = vadd.f32 3.0, %v5376_v15 }
0x1570   : > { %v5381_v47 = vmax.f32 %v5377_v43, 0.0  ;;  %v5383_v51 = vmax.f32 %v5379_v36, 0.0 }
0x1571   : > { %5591 = vrot.lane.b32.xlu0 %v11933_v37, %s13787_s14  ;;  %v5386_v24 = vmin.f32 %v5382_v21, 6.0  ;;  %v5384_v14 = vmax.f32 %v5380_v34, 0.0 }
0x1572   : > { %v5385_v0 = vmin.f32 %v5381_v47, 6.0  ;;  %v5387_v30 = vmin.f32 %v5383_v51, 6.0 }
0x1573   : > { %5593 = vrot.lane.b32.xlu1 %v11937_v49, %s13787_s14  ;;  %v5390_v15 = vmul.f32 0.16666667, %v5386_v24  ;;  %v5388_v41 = vmin.f32 %v5384_v14, 6.0 }
0x1574   : > { %v5389_v33 = vmul.f32 0.16666667, %v5385_v0  ;;  %v5391_v36 = vmul.f32 0.16666667, %v5387_v30 }
0x1575   : > { %5631 = vrot.lane.b32.xlu0 %v11933_v37, %s13786_s17  ;;  %v5392_v21 = vmul.f32 0.16666667, %v5388_v41 }
0x1577   : > { %5633 = vrot.lane.b32.xlu1 %v11937_v49, %s13786_s17 }
0x1579   : > { %5671 = vrot.lane.b32.xlu0 %v11933_v37, %s13788_s20 }
0x157b   : > { %5673 = vrot.lane.b32.xlu1 %v11937_v49, %s13788_s20 }
0x157d   : > { %5711 = vrot.lane.b32.xlu0 %v11933_v37, %s13789_s19 }
0x157f   : > { %5713 = vrot.lane.b32.xlu1 %v11937_v49, %s13789_s19 }
0x1581   : > { %5751 = vrot.lane.b32.xlu0 %v11933_v37, %s13790_s18 }
0x1583   : > { %5753 = vrot.lane.b32.xlu1 %v11937_v49, %s13790_s18 }
0x1585   : > { %5791 = vrot.lane.b32.xlu0 %v11933_v37, %s13791_s23 }
0x1587   : > { %5793 = vrot.lane.b32.xlu1 %v11937_v49, %s13791_s23 }
0x1589   : > { %5831 = vrot.lane.b32.xlu0 %v11933_v37, %s13792_s27 }
0x158b   : > { %5833 = vrot.lane.b32.xlu1 %v11937_v49, %s13792_s27 }
0x158d   : > { %5871 = vrot.lane.b32.xlu0 %v11933_v37, %s13793_s30 }
0x158f   : > { %5873 = vrot.lane.b32.xlu1 %v11937_v49, %s13793_s30 }
0x1591   : > { %5587 = vrot.lane.b32.xlu0 %v11971_v17, %s13787_s14 }
0x1593   : > { %5589 = vrot.lane.b32.xlu1 %v11975_v56, %s13787_s14 }
0x1595   : > { %5627 = vrot.lane.b32.xlu0 %v11971_v17, %s13786_s17 }
0x1597   : > { %5629 = vrot.lane.b32.xlu1 %v11975_v56, %s13786_s17 }
0x1599   : > { %5667 = vrot.lane.b32.xlu0 %v11971_v17, %s13788_s20 }
0x159b   : > { %5669 = vrot.lane.b32.xlu1 %v11975_v56, %s13788_s20 }
0x159d   : > { %5707 = vrot.lane.b32.xlu0 %v11971_v17, %s13789_s19 }
0x159f   : > { %5709 = vrot.lane.b32.xlu1 %v11975_v56, %s13789_s19 }
0x15a1   : > { %5747 = vrot.lane.b32.xlu0 %v11971_v17, %s13790_s18 }
0x15a3   : > { %5749 = vrot.lane.b32.xlu1 %v11975_v56, %s13790_s18 }
0x15a5   : > { %5787 = vrot.lane.b32.xlu0 %v11971_v17, %s13791_s23 }
0x15a7   : > { %5789 = vrot.lane.b32.xlu1 %v11975_v56, %s13791_s23 }
0x15a9   : > { %5827 = vrot.lane.b32.xlu0 %v11971_v17, %s13792_s27 }
0x15ab   : > { %5829 = vrot.lane.b32.xlu1 %v11975_v56, %s13792_s27 }
0x15ad   : > { %5867 = vrot.lane.b32.xlu0 %v11971_v17, %s13793_s30 }
0x15af   : > { %5869 = vrot.lane.b32.xlu1 %v11975_v56, %s13793_s30 }
0x15b1   : > { %5595 = vrot.lane.b32.xlu0 %v12011_v48, %s13787_s14 }
0x15b3   : > { %5597 = vrot.lane.b32.xlu1 %v12015_v44, %s13787_s14 }
0x15b5   : > { %5635 = vrot.lane.b32.xlu0 %v12011_v48, %s13786_s17 }
0x15b7   : > { %5637 = vrot.lane.b32.xlu1 %v12015_v44, %s13786_s17 }
0x15b9   : > { %5675 = vrot.lane.b32.xlu0 %v12011_v48, %s13788_s20 }
0x15bb   : > { %5677 = vrot.lane.b32.xlu1 %v12015_v44, %s13788_s20 }
0x15bd   : > { %5715 = vrot.lane.b32.xlu0 %v12011_v48, %s13789_s19 }
0x15bf   : > { %5717 = vrot.lane.b32.xlu1 %v12015_v44, %s13789_s19 }
0x15c1   : > { %5755 = vrot.lane.b32.xlu0 %v12011_v48, %s13790_s18 }
0x15c3   : > { %5757 = vrot.lane.b32.xlu1 %v12015_v44, %s13790_s18  ;;  %v5584_v12 = vpop.permute.xlu0 %5583 }
0x15c5   : > { %v5586_v52 = vpop.permute.xlu1 %5585  ;;  %5795 = vrot.lane.b32.xlu0 %v12011_v48, %s13791_s23 }
0x15c7   : > { %5797 = vrot.lane.b32.xlu1 %v12015_v44, %s13791_s23  ;;  %v5624_v23 = vpop.permute.xlu0 %5623 }
0x15c9   : > { %v5626_v10 = vpop.permute.xlu1 %5625  ;;  %5835 = vrot.lane.b32.xlu0 %v12011_v48, %s13792_s27 }
0x15cb   : > { %5837 = vrot.lane.b32.xlu1 %v12015_v44, %s13792_s27  ;;  %v5664_v27 = vpop.permute.xlu0 %5663 }
0x15cd   : > { %v5666_v43 = vpop.permute.xlu1 %5665  ;;  %5875 = vrot.lane.b32.xlu0 %v12011_v48, %s13793_s30 }
0x15cf   : > { %5877 = vrot.lane.b32.xlu1 %v12015_v44, %s13793_s30  ;;  %v5704_v60 = vpop.permute.xlu0 %5703 }
0x15d1   : > { %v5706_v47 = vpop.permute.xlu1 %5705  ;;  %5395 = vperm.xlu0 %7532, %v5389_v33  }
0x15d3   : > { %5400 = vperm.xlu1 %7533, %v5390_v15   ;;  %v12065_v62 = vpop.permute.xlu0 %5743 }
0x15d5   : > { %v12067_v34 = vpop.permute.xlu1 %5745  ;;  %5405 = vperm.xlu0 %7532, %v5391_v36  }
0x15d7   : > { %5410 = vperm.xlu1 %7533, %v5392_v21   ;;  %v12069_v38 = vpop.permute.xlu0 %5783 }
0x15d9   : > { %v12071_v51 = vpop.permute.xlu1 %5785 }
0x15db   : > { %v12073_v0 = vpop.permute.xlu0 %5823 }
0x15dd   : > { %v12075_v22 = vpop.permute.xlu1 %5825 }
0x15df   : > { %v12077_v14 = vpop.permute.xlu0 %5863 }
0x15e1   : > { %v12079_v24 = vpop.permute.xlu1 %5865 }
0x15e3   : > { %v5592_v30 = vpop.permute.xlu0 %5591 }
0x15e4   : > { %v5599_v41 = vsel %vm1036_vm1, %v5584_v12, %v5592_v30  ;;  %v5603_v36 = vsel %vm1036_vm1, %v5592_v30, %v5584_v12  ;;  %v5576_v12 = vmul.f32 %v11933_v37, %v14218_v19  ;;  %v14219_v30 = vld [vmem:[#allocation63_spill] sm:$0xff] }
0x15e5   : > { %v5594_v33 = vpop.permute.xlu1 %5593  ;;  %v5607_v4 = vmul.f32 %v5603_v36, %v14216_v46  ;;  %v5608_v55 = vmul.f32 %v5599_v41, %v14217_v13  ;;  %v5575_v58 = vmul.f32 %v11895_v32, %v14219_v30  ;;  %v14222_v13 = vld [vmem:[#allocation67_spill] sm:$0xff] }
0x15e6   : > { %v5600_v61 = vsel %vm1036_vm1, %v5586_v52, %v5594_v33  ;;  %v5604_v35 = vsel %vm1036_vm1, %v5594_v33, %v5586_v52  ;;  %v14221_v33 = vld [vmem:[#allocation66_spill] sm:$0xff] }
0x15e7   : > { %v5632_v15 = vpop.permute.xlu0 %5631  ;;  %v5609_v52 = vmul.f32 %v5604_v35, %v14220_v18  ;;  %v5610_v44 = vmul.f32 %v5600_v61, %v14221_v33  ;;  %v5615_v35 = vadd.f32 %v5607_v4, %v5575_v58  ;;  %v5616_v18 = vadd.f32 %v5608_v55, %v5576_v12  ;;  %v14224_v33 = vld [vmem:[#allocation69_spill] sm:$0xff]  ;;  %v14228_v55 = vld [vmem:[#allocation72_spill] sm:$0xff] }
0x15e8   : > { %v5639_v1 = vsel %vm1077_vm2, %v5624_v23, %v5632_v15  ;;  %v5643_v16 = vsel %vm1077_vm2, %v5632_v15, %v5624_v23  ;;  %v14223_v23 = vld [vmem:[#allocation68_spill] sm:$0xff]  ;;  %v5578_v61 = vmul.f32 %v11937_v49, %v13815_v63  ;;  %v5577_v19 = vmul.f32 %v11899_v31, %v14224_v33 }
0x15e9   : > { %v5634_v21 = vpop.permute.xlu1 %5633  ;;  %v5647_v46 = vmul.f32 %v5643_v16, %v14222_v13  ;;  %v5648_v15 = vmul.f32 %v5639_v1, %v14223_v23  ;;  %v14226_v16 = vld [vmem:[#allocation74_spill] sm:$0xff] }
0x15ea   : > { %v5640_v41 = vsel %vm1077_vm2, %v5626_v10, %v5634_v21  ;;  %v5644_v36 = vsel %vm1077_vm2, %v5634_v21, %v5626_v10  ;;  %v14225_v10 = vld [vmem:[#allocation73_spill] sm:$0xff]  ;;  %v5617_v12 = vadd.f32 %v5609_v52, %v5577_v19 }
0x15eb   : > { %v5672_v57 = vpop.permute.xlu0 %5671  ;;  %v5649_v21 = vmul.f32 %v5644_v36, %v14225_v10  ;;  %v5650_v13 = vmul.f32 %v5640_v41, %v14226_v16  ;;  %v5618_v36 = vadd.f32 %v5610_v44, %v5578_v61  ;;  %v5655_v41 = vadd.f32 %v5647_v46, %v5615_v35 }
0x15ec   : > { %v5679_v37 = vsel %vm1118_vm3, %v5664_v27, %v5672_v57  ;;  %v5683_v32 = vsel %vm1118_vm3, %v5672_v57, %v5664_v27  ;;  %v14227_v27 = vld [vmem:[#allocation71_spill] sm:$0xff]  ;;  %v5656_v16 = vadd.f32 %v5648_v15, %v5616_v18 }
0x15ed   : > { %v5674_v6 = vpop.permute.xlu1 %5673  ;;  %v5687_v58 = vmul.f32 %v5683_v32, %v14227_v27  ;;  %v5688_v4 = vmul.f32 %v5679_v37, %v14228_v55  ;;  %v5657_v32 = vadd.f32 %v5649_v21, %v5617_v12  ;;  %v5658_v55 = vadd.f32 %v5650_v13, %v5618_v36 }
0x15ee   : > { %v5680_v1 = vsel %vm1118_vm3, %v5666_v43, %v5674_v6  ;;  %v5684_v23 = vsel %vm1118_vm3, %v5674_v6, %v5666_v43 }
0x15ef   : > { %v5712_v30 = vpop.permute.xlu0 %5711  ;;  %v5689_v33 = vmul.f32 %v5684_v23, %v13889_v53  ;;  %v5690_v6 = vmul.f32 %v5680_v1, %v13822_v54  ;;  %v5695_v46 = vadd.f32 %v5687_v58, %v5655_v41  ;;  %v5696_v18 = vadd.f32 %v5688_v4, %v5656_v16 }
0x15f0   : > { %v5719_v49 = vsel %vm1159_vm4, %v5704_v60, %v5712_v30  ;;  %v5723_v31 = vsel %vm1159_vm4, %v5712_v30, %v5704_v60 }
0x15f1   : > { %v5714_v57 = vpop.permute.xlu1 %5713  ;;  %v5727_v27 = vmul.f32 %v5723_v31, %v13890_v40  ;;  %v5728_v19 = vmul.f32 %v5719_v49, %v13891_v42  ;;  %v5697_v35 = vadd.f32 %v5689_v33, %v5657_v32  ;;  %v5698_v61 = vadd.f32 %v5690_v6, %v5658_v55 }
0x15f2   : > { %v5720_v43 = vsel %vm1159_vm4, %v5706_v47, %v5714_v57  ;;  %v5724_v37 = vsel %vm1159_vm4, %v5714_v57, %v5706_v47 }
0x15f3   : > { %v5752_v10 = vpop.permute.xlu0 %5751  ;;  %v5729_v52 = vmul.f32 %v5724_v37, %v13823_v29  ;;  %v5730_v47 = vmul.f32 %v5720_v43, %v13892_v39  ;;  %v5736_v16 = vadd.f32 %v5728_v19, %v5696_v18 }
0x15f4   : > { %v5759_v60 = vsel %vm1200_vm5, %v12065_v62, %v5752_v10  ;;  %v5763_v30 = vsel %vm1200_vm5, %v5752_v10, %v12065_v62  ;;  %v5735_v10 = vadd.f32 %v5727_v27, %v5695_v46 }
0x15f5   : > { %v5754_v44 = vpop.permute.xlu1 %5753  ;;  %v5767_v1 = vmul.f32 %v5759_v60, %v13893_v8  ;;  %v5768_v57 = vmul.f32 %v5763_v30, %v13894_v9  ;;  %v5738_v27 = vadd.f32 %v5730_v47, %v5698_v61 }
0x15f6   : > { %v5760_v13 = vsel %vm1200_vm5, %v12067_v34, %v5754_v44  ;;  %v5764_v23 = vsel %vm1200_vm5, %v5754_v44, %v12067_v34 }
0x15f7   : > { %v5792_v15 = vpop.permute.xlu0 %5791  ;;  %v5769_v34 = vmul.f32 %v5760_v13, %v13895_v28  ;;  %v5770_v33 = vmul.f32 %v5764_v23, %v13826_v26  ;;  %v5776_v37 = vadd.f32 %v5768_v57, %v5736_v16  ;;  %v14229_v16 = vld [vmem:[#allocation94_spill] sm:$0xff] }
0x15f8   : > { %v5799_v21 = vsel %vm1241_vm6, %v12069_v38, %v5792_v15  ;;  %v5803_v62 = vsel %vm1241_vm6, %v5792_v15, %v12069_v38  ;;  %v5737_v38 = vadd.f32 %v5729_v52, %v5697_v35 }
0x15f9   : > { %v5794_v58 = vpop.permute.xlu1 %5793  ;;  %v5807_v49 = vmul.f32 %v5799_v21, %v13896_v2  ;;  %v5808_v31 = vmul.f32 %v5803_v62, %v13975_v25  ;;  %v5778_v18 = vadd.f32 %v5770_v33, %v5738_v27 }
0x15fa   : > { %v5800_v55 = vsel %vm1241_vm6, %v12071_v51, %v5794_v58  ;;  %v5804_v4 = vsel %vm1241_vm6, %v5794_v58, %v12071_v51  ;;  %v5775_v51 = vadd.f32 %v5767_v1, %v5735_v10  ;;  %v5777_v46 = vadd.f32 %v5769_v34, %v5737_v38 }
0x15fb   : > { %v5832_v12 = vpop.permute.xlu0 %5831  ;;  %v5809_v36 = vmul.f32 %v5800_v55, %v13976_v11  ;;  %v5810_v41 = vmul.f32 %v5804_v4, %v13977_v20  ;;  %v5816_v47 = vadd.f32 %v5808_v31, %v5776_v37 }
0x15fc   : > { %v5839_v6 = vsel %vm1282_vm7, %v12073_v0, %v5832_v12  ;;  %v5843_v43 = vsel %vm1282_vm7, %v5832_v12, %v12073_v0  ;;  %v5815_v52 = vadd.f32 %v5807_v49, %v5775_v51  ;;  %v14231_v49 = vld [vmem:[#allocation96_spill] sm:$0xff] }
0x15fd   : > { %v5847_v32 = vmul.f32 %v5839_v6, %v13978_v45  ;;  %v5848_v19 = vmul.f32 %v5843_v43, %v13979_v7  ;;  %v5834_v44 = vpop.permute.xlu1 %5833  ;;  %v5817_v15 = vadd.f32 %v5809_v36, %v5777_v46  ;;  %v5818_v35 = vadd.f32 %v5810_v41, %v5778_v18  ;;  %v14232_v43 = vld [vmem:[#allocation37_spill] sm:$0xff]  ;;  %v14233_v46 = vld [vmem:[#allocation38_spill] sm:$0xff] }
0x15fe   : > { %v5840_v60 = vsel %vm1282_vm7, %v12075_v22, %v5834_v44  ;;  %v5844_v30 = vsel %vm1282_vm7, %v5834_v44, %v12075_v22 }
0x15ff   : > { %v5849_v0 = vmul.f32 %v5840_v60, %v14059_v5  ;;  %v5850_v13 = vmul.f32 %v5844_v30, %v14060_v50  ;;  %v5872_v23 = vpop.permute.xlu0 %5871  ;;  %v5855_v62 = vadd.f32 %v5847_v32, %v5815_v52  ;;  %v5856_v10 = vadd.f32 %v5848_v19, %v5816_v47 }
0x1600   : > { %v5879_v61 = vsel %vm1323_vm8, %v12077_v14, %v5872_v23  ;;  %v5883_v21 = vsel %vm1323_vm8, %v5872_v23, %v12077_v14  ;;  %v14230_v14 = vld [vmem:[#allocation95_spill] sm:$0xff] }
0x1601   : > { %v5887_v22 = vmul.f32 %v5879_v61, %v14061_v3  ;;  %v5888_v1 = vmul.f32 %v5883_v21, %v14229_v16  ;;  %v5874_v57 = vpop.permute.xlu1 %5873  ;;  %v5857_v58 = vadd.f32 %v5849_v0, %v5817_v15  ;;  %v5858_v34 = vadd.f32 %v5850_v13, %v5818_v35 }
0x1602   : > { %v5880_v33 = vsel %vm1323_vm8, %v12079_v24, %v5874_v57  ;;  %v5884_v55 = vsel %vm1323_vm8, %v5874_v57, %v12079_v24 }
0x1603   : > { %v5895_v4 = vadd.f32 %v5887_v22, %v5855_v62  ;;  %v5896_v38 = vadd.f32 %v5888_v1, %v5856_v10  ;;  %v5889_v27 = vmul.f32 %v5880_v33, %v14230_v14  ;;  %v5890_v31 = vmul.f32 %v5884_v55, %v14231_v49  ;;  %v5588_v12 = vpop.permute.xlu0 %5587  ;;  %v14254_v14 = vld [vmem:[#allocation53_spill] sm:$0xff] }
0x1605   : > { %v5897_v36 = vadd.f32 %v5889_v27, %v5857_v58  ;;  %v5898_v41 = vadd.f32 %v5890_v31, %v5858_v34  ;;  %v5590_v6 = vpop.permute.xlu1 %5589  ;;  %v5903_v51 = vadd.f32 %v5895_v4, %v14232_v43  ;;  %v5904_v37 = vadd.f32 %v5896_v38, %v14232_v43  ;;  %v14248_v43 = vld [vmem:[#allocation34_spill] sm:$0xff] }
0x1607   : > { %v5628_v32 = vpop.permute.xlu0 %5627  ;;  %v5911_v19 = vadd.f32 3.0, %v5903_v51  ;;  %v5912_v44 = vadd.f32 3.0, %v5904_v37  ;;  %v5905_v18 = vadd.f32 %v5897_v36, %v14233_v46  ;;  %v5906_v24 = vadd.f32 %v5898_v41, %v14233_v46 }
0x1609   : > { %v5630_v60 = vpop.permute.xlu1 %5629  ;;  %v5919_v30 = vmax.f32 %v5911_v19, 0.0  ;;  %v5920_v52 = vmax.f32 %v5912_v44, 0.0  ;;  %v5913_v47 = vadd.f32 3.0, %v5905_v18  ;;  %v5914_v0 = vadd.f32 3.0, %v5906_v24 }
0x160b   : > { %v5668_v13 = vpop.permute.xlu0 %5667  ;;  %v5927_v23 = vmin.f32 %v5919_v30, 6.0  ;;  %v5928_v15 = vmin.f32 %v5920_v52, 6.0  ;;  %v5921_v35 = vmax.f32 %v5913_v47, 0.0  ;;  %v5922_v61 = vmax.f32 %v5914_v0, 0.0 }
0x160d   : > { %v5670_v21 = vpop.permute.xlu1 %5669  ;;  %v5935_v62 = vmul.f32 %v5927_v23, %v5903_v51  ;;  %v5936_v10 = vmul.f32 %v5928_v15, %v5904_v37  ;;  %v5929_v22 = vmin.f32 %v5921_v35, 6.0  ;;  %v5930_v1 = vmin.f32 %v5922_v61, 6.0 }
0x160f   : > { %v5708_v57 = vpop.permute.xlu0 %5707  ;;  %v12205_v58 = vmul.f32 0.16666667, %v5935_v62  ;;  %v12207_v34 = vmul.f32 0.16666667, %v5936_v10  ;;  %v5937_v33 = vmul.f32 %v5929_v22, %v5905_v18  ;;  %v5938_v55 = vmul.f32 %v5930_v1, %v5906_v24  ;;  %v14238_v22 = vld [vmem:[#allocation15_spill] sm:$0xff] }
0x1611   : > { %14234 = vst [vmem:[#allocation77_spill] sm:$0xff] %v12205_v58  ;;  %14235 = vst [vmem:[#allocation75_spill] sm:$0xff] %v12207_v34  ;;  %v5710_v4 = vpop.permute.xlu1 %5709  ;;  %v5951_v38 = vadd.f32 %v12207_v34, %v12205_v58  ;;  %v12211_v27 = vmul.f32 0.16666667, %v5937_v33  ;;  %v12213_v31 = vmul.f32 0.16666667, %v5938_v55 }
0x1612   : > { %v14239_v33 = vld [vmem:[#allocation43_spill] sm:$0xff]  ;;  %v14242_v58 = vld [vmem:[#allocation44_spill] sm:$0xff] }
0x1613   : > { %14236 = vst [vmem:[#allocation76_spill] sm:$0xff] %v12211_v27  ;;  %14237 = vst [vmem:[#allocation103_spill] sm:$0xff] %v12213_v31  ;;  %v12215_v36 = vpop.permute.xlu0 %5747  ;;  %5952 = vadd.xlane.f32.xlu0 %v5951_v38  ;;  %v5954_v41 = vadd.f32 %v12213_v31, %v12211_v27  ;;  %v14240_v31 = vld [vmem:[#allocation16_spill] sm:$0xff] }
0x1615   : > { %v12219_v51 = vpop.permute.xlu1 %5749  ;;  %5955 = vadd.xlane.f32.xlu1 %v5954_v41 }
0x1617   : > { %v12221_v37 = vpop.permute.xlu0 %5787 }
0x1619   : > { %v12223_v19 = vpop.permute.xlu1 %5789 }
0x161b   : > { %v12225_v44 = vpop.permute.xlu0 %5827 }
0x161d   : > { %v12227_v18 = vpop.permute.xlu1 %5829 }
0x161f   : > { %v12229_v24 = vpop.permute.xlu0 %5867 }
0x1621   : > { %v12231_v30 = vpop.permute.xlu1 %5869 }
0x1623   : > { %v5596_v52 = vpop.permute.xlu0 %5595 }
0x1624   : > { %v5601_v23 = vsel %vm1036_vm1, %v5588_v12, %v5596_v52  ;;  %v5605_v15 = vsel %vm1036_vm1, %v5596_v52, %v5588_v12  ;;  %v5579_v12 = vmul.f32 %v11971_v17, %v14240_v31  ;;  %v14241_v52 = vld [vmem:[#allocation17_spill] sm:$0xff]  ;;  %v14247_v31 = vld [vmem:[#allocation48_spill] sm:$0xff] }
0x1625   : > { %v5598_v47 = vpop.permute.xlu1 %5597  ;;  %v5611_v1 = vmul.f32 %v5605_v15, %v14238_v22  ;;  %v5612_v55 = vmul.f32 %v5601_v23, %v14239_v33  ;;  %v5580_v27 = vmul.f32 %v12011_v48, %v14241_v52  ;;  %v14244_v33 = vld [vmem:[#allocation46_spill] sm:$0xff]  ;;  %v5582_v49 = vmul.f32 %v14248_v43, %v14247_v31  ;;  %v14253_v31 = vld [vmem:[#allocation52_spill] sm:$0xff] }
0x1626   : > { %v5602_v61 = vsel %vm1036_vm1, %v5590_v6, %v5598_v47  ;;  %v5606_v62 = vsel %vm1036_vm1, %v5598_v47, %v5590_v6  ;;  %v14243_v47 = vld [vmem:[#allocation45_spill] sm:$0xff] }
0x1627   : > { %v5636_v0 = vpop.permute.xlu0 %5635  ;;  %v5613_v6 = vmul.f32 %v5606_v62, %v14242_v58  ;;  %v5614_v46 = vmul.f32 %v5602_v61, %v14243_v47  ;;  %v5619_v62 = vadd.f32 %v5611_v1, %v5579_v12  ;;  %v5620_v58 = vadd.f32 %v5612_v55, %v5580_v27  ;;  %v14246_v61 = vld [vmem:[#allocation47_spill] sm:$0xff]  ;;  %v14252_v27 = vld [vmem:[#allocation21_spill] sm:$0xff] }
0x1628   : > { %v5641_v38 = vsel %vm1077_vm2, %v5628_v32, %v5636_v0  ;;  %v5645_v41 = vsel %vm1077_vm2, %v5636_v0, %v5628_v32  ;;  %v14245_v32 = vld [vmem:[#allocation19_spill] sm:$0xff]  ;;  %v5581_v47 = vmul.f32 %v11975_v56, %v14246_v61 }
0x1629   : > { %v5638_v35 = vpop.permute.xlu1 %5637  ;;  %v5651_v22 = vmul.f32 %v5645_v41, %v14244_v33  ;;  %v5652_v0 = vmul.f32 %v5641_v38, %v14245_v32  ;;  %v14250_v41 = vld [vmem:[#allocation50_spill] sm:$0xff] }
0x162a   : > { %v5642_v23 = vsel %vm1077_vm2, %v5630_v60, %v5638_v35  ;;  %v5646_v15 = vsel %vm1077_vm2, %v5638_v35, %v5630_v60  ;;  %v14249_v60 = vld [vmem:[#allocation49_spill] sm:$0xff]  ;;  %v5621_v12 = vadd.f32 %v5613_v6, %v5581_v47  ;;  %v14257_v47 = vld [vmem:[#allocation54_spill] sm:$0xff] }
0x162b   : > { %v5676_v10 = vpop.permute.xlu0 %5675  ;;  %v5653_v35 = vmul.f32 %v5646_v15, %v14249_v60  ;;  %v5654_v33 = vmul.f32 %v5642_v23, %v14250_v41  ;;  %v5622_v15 = vadd.f32 %v5614_v46, %v5582_v49  ;;  %v5659_v23 = vadd.f32 %v5651_v22, %v5619_v62 }
0x162c   : > { %v5681_v17 = vsel %vm1118_vm3, %v5668_v13, %v5676_v10  ;;  %v5685_v48 = vsel %vm1118_vm3, %v5676_v10, %v5668_v13  ;;  %v14251_v10 = vld [vmem:[#allocation18_spill] sm:$0xff]  ;;  %v5660_v41 = vadd.f32 %v5652_v0, %v5620_v58 }
0x162d   : > { %v5678_v34 = vpop.permute.xlu1 %5677  ;;  %v5691_v1 = vmul.f32 %v5685_v48, %v14251_v10  ;;  %v5692_v55 = vmul.f32 %v5681_v17, %v14252_v27  ;;  %v5661_v48 = vadd.f32 %v5653_v35, %v5621_v12  ;;  %v5662_v27 = vadd.f32 %v5654_v33, %v5622_v15  ;;  %v14255_v10 = vld [vmem:[#allocation20_spill] sm:$0xff] }
0x162e   : > { %v5682_v38 = vsel %vm1118_vm3, %v5670_v21, %v5678_v34  ;;  %v5686_v32 = vsel %vm1118_vm3, %v5678_v34, %v5670_v21 }
0x162f   : > { %v5716_v52 = vpop.permute.xlu0 %5715  ;;  %v5693_v61 = vmul.f32 %v5686_v32, %v14253_v31  ;;  %v5694_v21 = vmul.f32 %v5682_v38, %v14254_v14  ;;  %v5699_v46 = vadd.f32 %v5691_v1, %v5659_v23  ;;  %v5700_v58 = vadd.f32 %v5692_v55, %v5660_v41  ;;  %v14259_v55 = vld [vmem:[#allocation22_spill] sm:$0xff]  ;;  %v14261_v23 = vld [vmem:[#allocation56_spill] sm:$0xff]  ;;  %v14309_v31 = vld [vmem:[#allocation65_spill] sm:$0xff] }
0x1630   : > { %v5721_v56 = vsel %vm1159_vm4, %v5708_v57, %v5716_v52  ;;  %v5725_v43 = vsel %vm1159_vm4, %v5716_v52, %v5708_v57  ;;  %v14256_v57 = vld [vmem:[#allocation23_spill] sm:$0xff] }
0x1631   : > { %v5718_v13 = vpop.permute.xlu1 %5717  ;;  %v5731_v16 = vmul.f32 %v5725_v43, %v14255_v10  ;;  %v5732_v52 = vmul.f32 %v5721_v56, %v14256_v57  ;;  %v5701_v41 = vadd.f32 %v5693_v61, %v5661_v48  ;;  %v5702_v38 = vadd.f32 %v5694_v21, %v5662_v27  ;;  %v14260_v43 = vld [vmem:[#allocation27_spill] sm:$0xff]  ;;  %v14307_v57 = vld [vmem:[#allocation64_spill] sm:$0xff] }
0x1632   : > { %v5722_v34 = vsel %vm1159_vm4, %v5710_v4, %v5718_v13  ;;  %v5726_v17 = vsel %vm1159_vm4, %v5718_v13, %v5710_v4  ;;  %v14258_v4 = vld [vmem:[#allocation55_spill] sm:$0xff] }
0x1633   : > { %v5756_v60 = vpop.permute.xlu0 %5755  ;;  %v5733_v32 = vmul.f32 %v5726_v17, %v14257_v47  ;;  %v5734_v0 = vmul.f32 %v5722_v34, %v14258_v4  ;;  %v5740_v1 = vadd.f32 %v5732_v52, %v5700_v58  ;;  %v14262_v34 = vld [vmem:[#allocation57_spill] sm:$0xff]  ;;  %v14263_v17 = vld [vmem:[#allocation24_spill] sm:$0xff] }
0x1634   : > { %v5761_v22 = vsel %vm1200_vm5, %v12215_v36, %v5756_v60  ;;  %v5765_v6 = vsel %vm1200_vm5, %v5756_v60, %v12215_v36  ;;  %v5739_v60 = vadd.f32 %v5731_v16, %v5699_v46  ;;  %v14264_v52 = vld [vmem:[#allocation29_spill] sm:$0xff]  ;;  %v14265_v58 = vld [vmem:[#allocation28_spill] sm:$0xff] }
0x1635   : > { %v5758_v49 = vpop.permute.xlu1 %5757  ;;  %v5771_v56 = vmul.f32 %v5761_v22, %v14259_v55  ;;  %v5772_v12 = vmul.f32 %v5765_v6, %v14260_v43  ;;  %v5742_v16 = vadd.f32 %v5734_v0, %v5702_v38  ;;  %v14266_v6 = vld [vmem:[#allocation30_spill] sm:$0xff]  ;;  %v14267_v0 = vld [vmem:[#allocation31_spill] sm:$0xff] }
0x1636   : > { %v5762_v33 = vsel %vm1200_vm5, %v12219_v51, %v5758_v49  ;;  %v5766_v62 = vsel %vm1200_vm5, %v5758_v49, %v12219_v51  ;;  %v14268_v38 = vld [vmem:[#allocation58_spill] sm:$0xff] }
0x1637   : > { %v5796_v35 = vpop.permute.xlu0 %5795  ;;  %v5773_v51 = vmul.f32 %v5762_v33, %v14261_v23  ;;  %v5774_v61 = vmul.f32 %v5766_v62, %v14262_v34  ;;  %v14305_v34 = vld [vmem:[#allocation61_spill] sm:$0xff]  ;;  %v14306_v43 = vld [vmem:[#allocation62_spill] sm:$0xff] }
0x1638   : > { %v5801_v13 = vsel %vm1241_vm6, %v12221_v37, %v5796_v35  ;;  %v5805_v36 = vsel %vm1241_vm6, %v5796_v35, %v12221_v37  ;;  %v5741_v37 = vadd.f32 %v5733_v32, %v5701_v41  ;;  %v5780_v32 = vadd.f32 %v5772_v12, %v5740_v1  ;;  %v14270_v1 = vld [vmem:[#allocation99_spill] sm:$0xff] }
0x1639   : > { %v5798_v15 = vpop.permute.xlu1 %5797  ;;  %v5811_v48 = vmul.f32 %v5801_v13, %v14263_v17  ;;  %v5812_v49 = vmul.f32 %v5805_v36, %v14264_v52  ;;  %v5782_v52 = vadd.f32 %v5774_v61, %v5742_v16 }
0x163a   : > { %v5802_v27 = vsel %vm1241_vm6, %v12223_v19, %v5798_v15  ;;  %v5806_v21 = vsel %vm1241_vm6, %v5798_v15, %v12223_v19  ;;  %v5779_v19 = vadd.f32 %v5771_v56, %v5739_v60  ;;  %v5781_v15 = vadd.f32 %v5773_v51, %v5741_v37 }
0x163b   : > { %v5836_v46 = vpop.permute.xlu0 %5835  ;;  %v5813_v22 = vmul.f32 %v5802_v27, %v14265_v58  ;;  %v5814_v33 = vmul.f32 %v5806_v21, %v14266_v6  ;;  %v5820_v58 = vadd.f32 %v5812_v49, %v5780_v32  ;;  %v14272_v49 = vld [vmem:[#allocation35_spill] sm:$0xff] }
0x163c   : > { %v5841_v62 = vsel %vm1282_vm7, %v12225_v44, %v5836_v46  ;;  %v5845_v35 = vsel %vm1282_vm7, %v5836_v46, %v12225_v44  ;;  %v5819_v6 = vadd.f32 %v5811_v48, %v5779_v19  ;;  %v14269_v44 = vld [vmem:[#allocation33_spill] sm:$0xff] }
0x163d   : > { %v5851_v41 = vmul.f32 %v5841_v62, %v14267_v0  ;;  %v5852_v13 = vmul.f32 %v5845_v35, %v14268_v38  ;;  %v5838_v36 = vpop.permute.xlu1 %5837  ;;  %v5821_v46 = vadd.f32 %v5813_v22, %v5781_v15  ;;  %v5822_v62 = vadd.f32 %v5814_v33, %v5782_v52 }
0x163e   : > { %v5842_v27 = vsel %vm1282_vm7, %v12227_v18, %v5838_v36  ;;  %v5846_v21 = vsel %vm1282_vm7, %v5838_v36, %v12227_v18  ;;  %v14271_v18 = vld [vmem:[#allocation59_spill] sm:$0xff] }
0x163f   : > { %v5853_v60 = vmul.f32 %v5842_v27, %v14269_v44  ;;  %v5854_v56 = vmul.f32 %v5846_v21, %v14270_v1  ;;  %v5876_v12 = vpop.permute.xlu0 %5875  ;;  %v5859_v37 = vadd.f32 %v5851_v41, %v5819_v6  ;;  %v5860_v16 = vadd.f32 %v5852_v13, %v5820_v58  ;;  %v14274_v58 = vld [vmem:[#allocation100_spill] sm:$0xff]  ;;  %v14275_v13 = vld [vmem:[#allocation39_spill] sm:$0xff] }
0x1640   : > { %v5881_v51 = vsel %vm1323_vm8, %v12229_v24, %v5876_v12  ;;  %v5885_v61 = vsel %vm1323_vm8, %v5876_v12, %v12229_v24  ;;  %v14273_v24 = vld [vmem:[#allocation36_spill] sm:$0xff] }
0x1641   : > { %v5891_v48 = vmul.f32 %v5881_v51, %v14271_v18  ;;  %v5892_v35 = vmul.f32 %v5885_v61, %v14272_v49  ;;  %v5878_v19 = vpop.permute.xlu1 %5877  ;;  %v5861_v32 = vadd.f32 %v5853_v60, %v5821_v46  ;;  %v5862_v36 = vadd.f32 %v5854_v56, %v5822_v62  ;;  %v14276_v62 = vld [vmem:[#allocation40_spill] sm:$0xff] }
0x1642   : > { %v5882_v52 = vsel %vm1323_vm8, %v12231_v30, %v5878_v19  ;;  %v5886_v22 = vsel %vm1323_vm8, %v5878_v19, %v12231_v30 }
0x1643   : > { %v5899_v33 = vadd.f32 %v5891_v48, %v5859_v37  ;;  %v5900_v15 = vadd.f32 %v5892_v35, %v5860_v16  ;;  %v5893_v6 = vmul.f32 %v5882_v52, %v14273_v24  ;;  %v5894_v41 = vmul.f32 %v5886_v22, %v14274_v58 }
0x1645   : > { %v5907_v27 = vadd.f32 %v5899_v33, %v14275_v13  ;;  %v5908_v21 = vadd.f32 %v5900_v15, %v14275_v13  ;;  %v5901_v60 = vadd.f32 %v5893_v6, %v5861_v32  ;;  %v5902_v56 = vadd.f32 %v5894_v41, %v5862_v36 }
0x1647   : > { %v5915_v12 = vadd.f32 3.0, %v5907_v27  ;;  %v5916_v46 = vadd.f32 3.0, %v5908_v21  ;;  %v5909_v51 = vadd.f32 %v5901_v60, %v14276_v62  ;;  %v5910_v61 = vadd.f32 %v5902_v56, %v14276_v62 }
0x1649   : > { %v5917_v49 = vadd.f32 3.0, %v5909_v51  ;;  %v5918_v30 = vadd.f32 3.0, %v5910_v61  ;;  %v5923_v37 = vmax.f32 %v5915_v12, 0.0  ;;  %v5924_v16 = vmax.f32 %v5916_v46, 0.0 }
0x164b   : > { %v5931_v48 = vmin.f32 %v5923_v37, 6.0  ;;  %v5932_v35 = vmin.f32 %v5924_v16, 6.0  ;;  %v5925_v19 = vmax.f32 %v5917_v49, 0.0  ;;  %v5926_v52 = vmax.f32 %v5918_v30, 0.0  ;;  %v14281_v49 = vld [vmem:[#allocation98_spill] sm:$0xff] }
0x164c   : > { %v14283_v16 = vld [vmem:[#allocation78_spill] sm:$0xff] }
0x164d   : > { %v5939_v22 = vmul.f32 %v5931_v48, %v5907_v27  ;;  %v5940_v33 = vmul.f32 %v5932_v35, %v5908_v21  ;;  %v5933_v58 = vmin.f32 %v5925_v19, 6.0  ;;  %v5934_v15 = vmin.f32 %v5926_v52, 6.0  ;;  %v14282_v21 = vld [vmem:[#allocation70_spill] sm:$0xff]  ;;  %v14284_v35 = vld [vmem:[#allocation81_spill] sm:$0xff] }
0x164f   : > { %v12357_v32 = vmul.f32 0.16666667, %v5939_v22  ;;  %v12359_v36 = vmul.f32 0.16666667, %v5940_v33  ;;  %v5941_v6 = vmul.f32 %v5933_v58, %v5909_v51  ;;  %v5942_v41 = vmul.f32 %v5934_v15, %v5910_v61  ;;  %v14285_v33 = vld [vmem:[#allocation86_spill] sm:$0xff] }
0x1650   : > { %v5396_v60 = vpop.permute.xlu0 %5395 }
0x1651   : > { %14277 = vst [vmem:[#allocation34_spill] sm:$0xff] %v12357_v32  ;;  %14278 = vst [vmem:[#allocation104_spill] sm:$0xff] %v12359_v36  ;;  %v5957_v56 = vadd.f32 %v12359_v36, %v12357_v32  ;;  %v12363_v12 = vmul.f32 0.16666667, %v5941_v6  ;;  %v12365_v37 = vmul.f32 0.16666667, %v5942_v41  ;;  %v5413_v27 = vmul.f32 %v5396_v60, %v14281_v49 }
0x1652   : > { %v5401_v46 = vpop.permute.xlu1 %5400  ;;  %v5414_v30 = vmul.f32 %v5396_v60, %v14282_v21  ;;  %v14286_v6 = vld [vmem:[#allocation101_spill] sm:$0xff]  ;;  %v14287_v49 = vld [vmem:[#allocation102_spill] sm:$0xff] }
0x1653   : > { %14279 = vst [vmem:[#allocation105_spill] sm:$0xff] %v12363_v12  ;;  %14280 = vst [vmem:[#allocation106_spill] sm:$0xff] %v12365_v37  ;;  %v5415_v48 = vmul.f32 %v5401_v46, %v14283_v16  ;;  %v5416_v19 = vmul.f32 %v5401_v46, %v14284_v35  ;;  %5958 = vadd.xlane.f32.xlu0 %v5957_v56  ;;  %v5960_v51 = vadd.f32 %v12365_v37, %v12363_v12  ;;  %v14288_v60 = vld [vmem:[#allocation97_spill] sm:$0xff]  ;;  %v14289_v16 = vmov 0.0|0.0  }
0x1654   : > { %v5406_v58 = vpop.permute.xlu0 %5405 }
0x1655   : > { %v5421_v61 = vpack.c.bf16 %v5415_v48, %v5413_v27  ;;  %v5422_v52 = vpack.c.bf16 %v5416_v19, %v5414_v30  ;;  %5961 = vadd.xlane.f32.xlu1 %v5960_v51  ;;  %v5417_v15 = vmul.f32 %v5406_v58, %v14285_v33  ;;  %v5418_v41 = vmul.f32 %v5406_v58, %v14286_v6  ;;  %v7603_v27 = vld [vmem:[%s13193_s10] sm:$0xff]  }
0x1656   : > { %v5411_v22 = vpop.permute.xlu1 %5410  ;;  %v14290_v30 = vmov 0.0   ;;  %v7605_v6 = vld [vmem:[%s13191_s8] sm:$0xff] }
0x1657   : > { %v5419_v36 = vmul.f32 %v5411_v22, %v14287_v49  ;;  %v5420_v21 = vmul.f32 %v5411_v22, %v14288_v60  ;;  %5425 = vmatprep.subr.bf16.mxu1 %v5422_v52 }
0x1658   : > { %5426 = vmatpush1.bf16.msra.mxu1 %v5421_v61 }
0x1659   : > { %v5423_v46 = vpack.c.bf16 %v5419_v36, %v5417_v15  ;;  %v5424_v56 = vpack.c.bf16 %v5420_v21, %v5418_v41  ;;  %v7604_v15 = vld [vmem:[%s13189_s6] sm:$0xff] }
0x165b   : > { %5427 = vmatprep.subr.bf16.mxu1 %v5424_v56  ;;  %v6227_v56 = vld [vmem:[%s7945_s13 + $0xe8] sm:$0xff] }
0x165c   : > { %5428 = vmatpush1.bf16.msra.mxu1 %v5423_v46 }
0x165d   : > { %7459 = vmatprep.subr.bf16.mxu1 %v14289_v16 }
0x165f   : > { %7164 = vmatmul.mubr.msk.bf16.vlgmr.msra.gmra.mrb[52].mxu1 %vm1432_vm10, %v7603_v27  ;;  %v6229_v27 = vld [vmem:[%s7945_s13 + $0xf8] sm:$0xff] }
0x1660   : > { %7393 = vmatprep.mubr.msk.f32.mxu1 %vm7766_vm9, %v14290_v30 }
0x16a0   : > { %v5953_v48 = vpop.xlane.xlu0 %5952 }
0x16a1   : > { %v5963_v19 = vmul.f32 0.00390625, %v5953_v48  ;;  %v7606_v48 = vld [vmem:[%s13190_s7] sm:$0xff] }
0x16a2   : > { %v5956_v35 = vpop.xlane.xlu1 %5955 }
0x16a3   : > { %v5964_v58 = vmul.f32 0.00390625, %v5956_v35 }
0x16a5   : > { %v7460_v51 = vpack.c.bf16 %v5964_v58, %v5963_v19  ;;  %v6226_v58 = vld [vmem:[%s7945_s13 + $0xe0] sm:$0xff] }
0x16a7   : > { %7461 = vmatpush3.bf16.msra.mxu1 %v7460_v51  ;;  %v6228_v51 = vld [vmem:[%s7945_s13 + $0xf0] sm:$0xff] }
0x16a8   : > { %7462 = vmatprep.subr.bf16.mxu1 %v14289_v16 }
0x16e0   : > { %v5959_v36 = vpop.xlane.xlu0 %5958 }
0x16e1   : > { %v5965_v52 = vmul.f32 0.00390625, %v5959_v36 }
0x16e2   : > { %v5962_v61 = vpop.xlane.xlu1 %5961 }
0x16e3   : > { %v5966_v22 = vmul.f32 0.00390625, %v5962_v61  ;;  %v6231_v61 = vpack.c.bf16 %v6229_v27, %v6227_v56  ;;  %v7611_v56 = vld [vmem:[%s13184_s1 + $0x8] sm:$0xff]  }
0x16e5   : > { %v7463_v33 = vpack.c.bf16 %v5966_v22, %v5965_v52  ;;  %v6230_v52 = vpack.c.bf16 %v6228_v51, %v6226_v58  ;;  %v7607_v22 = vld [vmem:[%s13191_s8 + $0x8] sm:$0xff]  ;;  %v14296_v51 = vld [vmem:[#allocation11_spill] sm:$0xff] }
0x16e7   : > { %7464 = vmatpush3.bf16.msra.mxu1 %v7463_v33  ;;  %v7608_v33 = vld [vmem:[%s13191_s8 + $0x10] sm:$0xff] }
0x16ea   : > { %7394 = vmatmul.mubr.msk.f32.vlgmr.msra.gmra.mrb[42].mxu1 %vm1432_vm10, %v7604_v15  ;;  %v7609_v15 = vld [vmem:[%s13191_s8 + $0x18] sm:$0xff] }
0x16eb   : > { %7398 = vmatprep.mubr.msk.f32.mxu1 %vm1507_vm11, %v7605_v6  ;;  %v14295_v6 = vmov 0  }
0x1732   : > { %v12393_v41 = vpop.f32.mrb[52].mxu1 }
0x1733   : > { %14291 = vst [vmem:[#allocation98_spill] sm:$0xff] %v12393_v41  ;;  %v12395_v49 = vpop.f32.mrb[53].mxu1 }
0x1734   : > { %14292 = vst [vmem:[#allocation70_spill] sm:$0xff] %v12395_v49  ;;  %v12397_v60 = vpop.f32.mrb[54].mxu1 }
0x1735   : > { %14293 = vst [vmem:[#allocation78_spill] sm:$0xff] %v12397_v60  ;;  %v12399_v21 = vpop.f32.mrb[55].mxu1 }
0x1736   : > { %14294 = vst [vmem:[#allocation81_spill] sm:$0xff] %v12399_v21 }
0x17bd   : > { %v6033_v46 = vpop.f32.mrb[42].mxu1 }
0x17be   : > { %v6034_v35 = vadd.f32 %v7606_v48, %v6033_v46  ;;  %v7395_v19 = vpop.f32.mrb[43].mxu1  ;;  %v7610_v46 = vld [vmem:[%s13184_s1] sm:$0xff]  }
0x17c0   : > { %v6037_v36 = vmax.f32 %v6034_v35, 0.0 }
0x17c2   : > { %7396 = vmatprep.subr.mxu1 %v6037_v36 }
0x17c3   : > { %7397 = vmatpush3.msra.mxu1 %v6037_v36 }
0x17c4   : > { %7399 = vmatmul.mubr.msk.f32.vlgmr.msra.gmra.mrb[56].mxu1 %vm1507_vm11, %v7607_v22  ;;  %6232 = vmatprep.subr.bf16.mxu1 %v6231_v61 }
0x17c5   : > { %7401 = vmatprep.mubr.msk.f32.mxu1 %vm1507_vm11, %v7608_v33  ;;  %6233 = vmatpush1.bf16.msra.mxu1 %v6230_v52  ;;  %v14297_v33 = vld [vmem:[#allocation13_spill] sm:$0xff] }
0x17c8   : > { %7402 = vmatmul.mubr.msk.f32.gmra.mrb[58].mxu1 %vm1507_vm11, %v7609_v15 }
0x17c9   : > { %6264 = vmatprep.mubr.bf16.mxu1 %v14295_v6 }
0x17cc   : > { %7173 = vmatmul.mubr.msk.bf16.vlgmr.msra.gmra.mrb[60].mxu1 %vm910_vm0, %v7610_v46 }
0x17cd   : > { %6274 = vmatprep.mubr.bf16.mxu1 %v14295_v6 }
0x17d4   : > { %7174 = vmatmul.mubr.msk.bf16.gmra.mrb[64].mxu1 %vm910_vm0, %v7611_v56 }
0x17d5   : > { %6957 = vmatprep.mubr.bf16.mxu1 %v14295_v6 }
0x1897   : > { %v12431_v27 = vpop.f32.mrb[56].mxu1 }
0x1898   : > { %v12433_v48 = vpop.f32.mrb[57].mxu1 }
0x189b   : > { %v12435_v35 = vpop.f32.mrb[58].mxu1 }
0x189c   : > { %v12437_v19 = vpop.f32.mrb[59].mxu1 }
0x189f   : > { %v6266_v58 = vpop.f32.mrb[60].mxu1 }
0x18a0   : > { %v6267_v36 = vadd.f32 %v6266_v58, %v14296_v51  ;;  %v6268_v61 = vpop.f32.mrb[61].mxu1 }
0x18a1   : > { %v6270_v52 = vpop.f32.mrb[62].mxu1 }
0x18a2   : > { %v6285_v22 = vadd.f32 3.0, %v6267_v36  ;;  %v6271_v15 = vadd.f32 %v6270_v52, %v14297_v33  ;;  %v6272_v46 = vpop.f32.mrb[63].mxu1 }
0x18a4   : > { %v6293_v56 = vmax.f32 %v6285_v22, 0.0  ;;  %v6287_v49 = vadd.f32 3.0, %v6271_v15 }
0x18a6   : > { %v6301_v6 = vmin.f32 %v6293_v56, 6.0  ;;  %v6295_v41 = vmax.f32 %v6287_v49, 0.0 }
0x18a7   : > { %v6276_v21 = vpop.f32.mrb[64].mxu1 }
0x18a8   : > { %v6309_v60 = vmul.f32 %v6301_v6, %v6267_v36  ;;  %v6303_v30 = vmin.f32 %v6295_v41, 6.0  ;;  %v12441_v16 = vpop.f32.mrb[65].mxu1  ;;  %v14299_v6 = vld [vmem:[#allocation14_spill] sm:$0xff] }
0x18a9   : > { %v6280_v37 = vpop.f32.mrb[66].mxu1 }
0x18aa   : > { %v12443_v12 = vmul.f32 0.16666667, %v6309_v60  ;;  %v6311_v32 = vmul.f32 %v6303_v30, %v6271_v15  ;;  %v12445_v58 = vpop.f32.mrb[67].mxu1  ;;  %v6269_v30 = vadd.f32 %v6268_v61, %v14296_v51 }
0x18ac   : > { %v12447_v62 = vmul.f32 0.16666667, %v6311_v32  ;;  %6333 = vrot.lane.b32.xlu0 %v12443_v12, %s13787_s14  ;;  %v6273_v32 = vadd.f32 %v6272_v46, %v14297_v33  ;;  %v6286_v41 = vadd.f32 3.0, %v6269_v30  ;;  %v14298_v46 = vld [vmem:[#allocation12_spill] sm:$0xff] }
0x18ad   : > { %v6277_v56 = vadd.f32 %v6276_v21, %v14298_v46 }
0x18ae   : > { %6335 = vrot.lane.b32.xlu1 %v12447_v62, %s13787_s14  ;;  %v6288_v49 = vadd.f32 3.0, %v6273_v32  ;;  %v6294_v60 = vmax.f32 %v6286_v41, 0.0 }
0x18b0   : > { %6373 = vrot.lane.b32.xlu0 %v12443_v12, %s13786_s17  ;;  %v6296_v51 = vmax.f32 %v6288_v49, 0.0  ;;  %v6302_v36 = vmin.f32 %v6294_v60, 6.0 }
0x18b2   : > { %6375 = vrot.lane.b32.xlu1 %v12447_v62, %s13786_s17  ;;  %v6304_v61 = vmin.f32 %v6296_v51, 6.0  ;;  %v6310_v52 = vmul.f32 %v6302_v36, %v6269_v30  ;;  %v6281_v30 = vadd.f32 %v6280_v37, %v14299_v6 }
0x18b4   : > { %6413 = vrot.lane.b32.xlu0 %v12443_v12, %s13788_s20  ;;  %v6312_v22 = vmul.f32 %v6304_v61, %v6273_v32  ;;  %v12481_v33 = vmul.f32 0.16666667, %v6310_v52  ;;  %v6289_v32 = vadd.f32 3.0, %v6277_v56  ;;  %v6291_v41 = vadd.f32 3.0, %v6281_v30 }
0x18b6   : > { %6415 = vrot.lane.b32.xlu1 %v12447_v62, %s13788_s20  ;;  %v12485_v15 = vmul.f32 0.16666667, %v6312_v22  ;;  %v6297_v49 = vmax.f32 %v6289_v32, 0.0  ;;  %v6299_v21 = vmax.f32 %v6291_v41, 0.0  ;;  %v6279_v22 = vadd.f32 %v12441_v16, %v14298_v46 }
0x18b8   : > { %6453 = vrot.lane.b32.xlu0 %v12443_v12, %s13789_s19  ;;  %v6305_v37 = vmin.f32 %v6297_v49, 6.0  ;;  %v6307_v60 = vmin.f32 %v6299_v21, 6.0 }
0x18ba   : > { %6455 = vrot.lane.b32.xlu1 %v12447_v62, %s13789_s19  ;;  %v6313_v51 = vmul.f32 %v6305_v37, %v6277_v56  ;;  %v6315_v36 = vmul.f32 %v6307_v60, %v6281_v30  ;;  %v6283_v56 = vadd.f32 %v12445_v58, %v14299_v6  ;;  %v6290_v30 = vadd.f32 3.0, %v6279_v22  ;;  %v12578_v60 = vld [vmem:[%s13192_s9] sm:$0xff] }
0x18bb   : > { %14301 = vst [vmem:[#allocation101_spill] sm:$0xff] %v12578_v60 }
0x18bc   : > { %6493 = vrot.lane.b32.xlu0 %v12443_v12, %s13790_s18  ;;  %v12519_v61 = vmul.f32 0.16666667, %v6313_v51  ;;  %v12523_v52 = vmul.f32 0.16666667, %v6315_v36  ;;  %v6292_v32 = vadd.f32 3.0, %v6283_v56  ;;  %v6298_v41 = vmax.f32 %v6290_v30, 0.0 }
0x18bd   : > { %v6105_v51 = vadd.f32 %v12578_v60, %v12433_v48  ;;  %v12587_v36 = vld [vmem:[%s13192_s9 + $0x8] sm:$0xff]  ;;  %v12596_v30 = vld [vmem:[%s13192_s9 + $0x10] sm:$0xff] }
0x18be   : > { %6495 = vrot.lane.b32.xlu1 %v12447_v62, %s13790_s18  ;;  %v6300_v16 = vmax.f32 %v6292_v32, 0.0  ;;  %v6306_v58 = vmin.f32 %v6298_v41, 6.0  ;;  %14302 = vst [vmem:[#allocation102_spill] sm:$0xff] %v12587_v36  ;;  %14303 = vst [vmem:[#allocation97_spill] sm:$0xff] %v12596_v30  ;;  %v6115_v48 = vadd.f32 %v12596_v30, %v12437_v19 }
0x18c0   : > { %6533 = vrot.lane.b32.xlu0 %v12443_v12, %s13791_s23  ;;  %v6308_v46 = vmin.f32 %v6300_v16, 6.0  ;;  %v6314_v6 = vmul.f32 %v6306_v58, %v6279_v22  ;;  %v6110_v22 = vadd.f32 %v12587_v36, %v12431_v27  ;;  %v12605_v27 = vld [vmem:[%s13192_s9 + $0x18] sm:$0xff]  ;;  %v6125_v58 = vmul.f32 1.2, %v6115_v48 }
0x18c1   : > { %14304 = vst [vmem:[#allocation11_spill] sm:$0xff] %v12605_v27  ;;  %v6120_v41 = vadd.f32 %v12605_v27, %v12435_v35 }
0x18c2   : > { %6535 = vrot.lane.b32.xlu1 %v12447_v62, %s13791_s23  ;;  %v6316_v49 = vmul.f32 %v6308_v46, %v6283_v56  ;;  %v12559_v21 = vmul.f32 0.16666667, %v6314_v6  ;;  %v6123_v56 = vmul.f32 1.2, %v6105_v51  ;;  %v6124_v32 = vmul.f32 1.2, %v6110_v22 }
0x18c3   : > { %v6126_v6 = vmul.f32 1.2, %v6120_v41  ;;  %v6129_v22 = vadd.f32 3.0, %v6125_v58 }
0x18c4   : > { %6573 = vrot.lane.b32.xlu0 %v12443_v12, %s13792_s27  ;;  %v12563_v37 = vmul.f32 0.16666667, %v6316_v49  ;;  %v6127_v16 = vadd.f32 3.0, %v6123_v56  ;;  %v6128_v46 = vadd.f32 3.0, %v6124_v32 }
0x18c5   : > { %v6130_v27 = vadd.f32 3.0, %v6126_v6  ;;  %v6133_v60 = vmax.f32 %v6129_v22, 0.0 }
0x18c6   : > { %6575 = vrot.lane.b32.xlu1 %v12447_v62, %s13792_s27  ;;  %14300 = vst [vmem:[#allocation86_spill] sm:$0xff] %v12563_v37  ;;  %v6131_v51 = vmax.f32 %v6127_v16, 0.0  ;;  %v6132_v30 = vmax.f32 %v6128_v46, 0.0 }
0x18c7   : > { %v6134_v36 = vmax.f32 %v6130_v27, 0.0  ;;  %v6137_v13 = vmin.f32 %v6133_v60, 6.0 }
0x18c8   : > { %6613 = vrot.lane.b32.xlu0 %v12443_v12, %s13793_s30  ;;  %v6135_v48 = vmin.f32 %v6131_v51, 6.0  ;;  %v6136_v41 = vmin.f32 %v6132_v30, 6.0 }
0x18c9   : > { %v6138_v24 = vmin.f32 %v6134_v36, 6.0  ;;  %v6141_v22 = vmul.f32 0.16666667, %v6137_v13 }
0x18ca   : > { %6615 = vrot.lane.b32.xlu1 %v12447_v62, %s13793_s30  ;;  %v6139_v58 = vmul.f32 0.16666667, %v6135_v48  ;;  %v6140_v6 = vmul.f32 0.16666667, %v6136_v41 }
0x18cb   : > { %v6142_v30 = vmul.f32 0.16666667, %v6138_v24 }
0x18cc   : > { %6341 = vrot.lane.b32.xlu0 %v12481_v33, %s13787_s14 }
0x18ce   : > { %6343 = vrot.lane.b32.xlu1 %v12485_v15, %s13787_s14 }
0x18d0   : > { %6381 = vrot.lane.b32.xlu0 %v12481_v33, %s13786_s17 }
0x18d2   : > { %6383 = vrot.lane.b32.xlu1 %v12485_v15, %s13786_s17 }
0x18d4   : > { %6421 = vrot.lane.b32.xlu0 %v12481_v33, %s13788_s20 }
0x18d6   : > { %6423 = vrot.lane.b32.xlu1 %v12485_v15, %s13788_s20 }
0x18d8   : > { %6461 = vrot.lane.b32.xlu0 %v12481_v33, %s13789_s19 }
0x18da   : > { %6463 = vrot.lane.b32.xlu1 %v12485_v15, %s13789_s19 }
0x18dc   : > { %6501 = vrot.lane.b32.xlu0 %v12481_v33, %s13790_s18 }
0x18de   : > { %6503 = vrot.lane.b32.xlu1 %v12485_v15, %s13790_s18 }
0x18e0   : > { %6541 = vrot.lane.b32.xlu0 %v12481_v33, %s13791_s23 }
0x18e2   : > { %6543 = vrot.lane.b32.xlu1 %v12485_v15, %s13791_s23 }
0x18e4   : > { %6581 = vrot.lane.b32.xlu0 %v12481_v33, %s13792_s27 }
0x18e6   : > { %6583 = vrot.lane.b32.xlu1 %v12485_v15, %s13792_s27 }
0x18e8   : > { %6621 = vrot.lane.b32.xlu0 %v12481_v33, %s13793_s30 }
0x18ea   : > { %6623 = vrot.lane.b32.xlu1 %v12485_v15, %s13793_s30 }
0x18ec   : > { %6337 = vrot.lane.b32.xlu0 %v12519_v61, %s13787_s14 }
0x18ee   : > { %6339 = vrot.lane.b32.xlu1 %v12523_v52, %s13787_s14 }
0x18f0   : > { %6377 = vrot.lane.b32.xlu0 %v12519_v61, %s13786_s17 }
0x18f2   : > { %6379 = vrot.lane.b32.xlu1 %v12523_v52, %s13786_s17 }
0x18f4   : > { %6417 = vrot.lane.b32.xlu0 %v12519_v61, %s13788_s20 }
0x18f6   : > { %6419 = vrot.lane.b32.xlu1 %v12523_v52, %s13788_s20 }
0x18f8   : > { %6457 = vrot.lane.b32.xlu0 %v12519_v61, %s13789_s19 }
0x18fa   : > { %6459 = vrot.lane.b32.xlu1 %v12523_v52, %s13789_s19 }
0x18fc   : > { %6497 = vrot.lane.b32.xlu0 %v12519_v61, %s13790_s18 }
0x18fe   : > { %6499 = vrot.lane.b32.xlu1 %v12523_v52, %s13790_s18 }
0x1900   : > { %6537 = vrot.lane.b32.xlu0 %v12519_v61, %s13791_s23 }
0x1902   : > { %6539 = vrot.lane.b32.xlu1 %v12523_v52, %s13791_s23 }
0x1904   : > { %6577 = vrot.lane.b32.xlu0 %v12519_v61, %s13792_s27 }
0x1906   : > { %6579 = vrot.lane.b32.xlu1 %v12523_v52, %s13792_s27 }
0x1908   : > { %6617 = vrot.lane.b32.xlu0 %v12519_v61, %s13793_s30 }
0x190a   : > { %6619 = vrot.lane.b32.xlu1 %v12523_v52, %s13793_s30 }
0x190c   : > { %6345 = vrot.lane.b32.xlu0 %v12559_v21, %s13787_s14 }
0x190e   : > { %6347 = vrot.lane.b32.xlu1 %v12563_v37, %s13787_s14  ;;  %s7190_s14 = sshll.u32 %s7856_s25, 12 }
0x190f   : > { %s13132_s25 = scalar_lea.hbm %s13195_s12, %s7190_s14 }
0x1910   : > { %6385 = vrot.lane.b32.xlu0 %v12559_v21, %s13786_s17 }
0x1912   : > { %6387 = vrot.lane.b32.xlu1 %v12563_v37, %s13786_s17 }
0x1914   : > { %6425 = vrot.lane.b32.xlu0 %v12559_v21, %s13788_s20 }
0x1916   : > { %6427 = vrot.lane.b32.xlu1 %v12563_v37, %s13788_s20  ;;  %s6977_s20 = scalar_lea.sflag [#allocation4], %s7939_s26 }
0x1918   : > { %6465 = vrot.lane.b32.xlu0 %v12559_v21, %s13789_s19 }
0x191a   : > { %6467 = vrot.lane.b32.xlu1 %v12563_v37, %s13789_s19  ;;  %s7768_s19 = smov [#allocation5]  }
0x191c   : > { %6505 = vrot.lane.b32.xlu0 %v12559_v21, %s13790_s18 }
0x191e   : > { %6507 = vrot.lane.b32.xlu1 %v12563_v37, %s13790_s18  ;;  %v6334_v19 = vpop.permute.xlu0 %6333  ;;  %s7689_s18 = sshll.u32 %s7768_s19, 4  ;;  %s7690_s18 = int_to_ptr.vmem [resolvable:$false] %s7689_s18 }
0x191f   : > { %p7692_p8 = scmp.lt.s32.totalorder %s13136_s0, %s7690_s18 }
0x1920   : > { %v6336_v49 = vpop.permute.xlu1 %6335  ;;  %6545 = vrot.lane.b32.xlu0 %v12559_v21, %s13791_s23 }
0x1922   : > { %6547 = vrot.lane.b32.xlu1 %v12563_v37, %s13791_s23  ;;  %v6374_v35 = vpop.permute.xlu0 %6373  ;;  %s7691_s23 = scalar_lea.vmem %s7690_s18, 8192 }
0x1923   : > { %p7693_p10 = scmp.lt.s32.totalorder %s7691_s23, %s7685_s28 }
0x1924   : > { %v6376_v56 = vpop.permute.xlu1 %6375  ;;  %6585 = vrot.lane.b32.xlu0 %v12559_v21, %s13792_s27 }
0x1925   : > { %p7694_p0 = por %p7693_p10, %p7692_p8 }
0x1926   : > { %6587 = vrot.lane.b32.xlu1 %v12563_v37, %s13792_s27  ;;  %v6414_v32 = vpop.permute.xlu0 %6413 }
0x1927   : > { %p7695_p2 = pnand %p7694_p0, %p7688_p13 }
0x1928   : > { %v6416_v16 = vpop.permute.xlu1 %6415  ;;  %6625 = vrot.lane.b32.xlu0 %v12559_v21, %s13793_s30 }
0x192a   : > { %6627 = vrot.lane.b32.xlu1 %v12563_v37, %s13793_s30  ;;  %v6454_v46 = vpop.permute.xlu0 %6453 }
0x192c   : > { %v6456_v51 = vpop.permute.xlu1 %6455  ;;  %6145 = vperm.xlu0 %7532, %v6139_v58  }
0x192e   : > { %6150 = vperm.xlu1 %7533, %v6140_v6   ;;  %v12625_v18 = vpop.permute.xlu0 %6493 }
0x1930   : > { %v12627_v27 = vpop.permute.xlu1 %6495  ;;  %6155 = vperm.xlu0 %7532, %v6141_v22  }
0x1932   : > { %6160 = vperm.xlu1 %7533, %v6142_v30   ;;  %v12629_v1 = vpop.permute.xlu0 %6533 }
0x1934   : > { %v12631_v60 = vpop.permute.xlu1 %6535 }
0x1936   : > { %v12633_v48 = vpop.permute.xlu0 %6573 }
0x1938   : > { %v12635_v44 = vpop.permute.xlu1 %6575 }
0x193a   : > { %v12637_v36 = vpop.permute.xlu0 %6613 }
0x193c   : > { %v12639_v41 = vpop.permute.xlu1 %6615 }
0x193e   : > { %v6342_v13 = vpop.permute.xlu0 %6341 }
0x193f   : > { %v6349_v24 = vsel %vm1036_vm1, %v6334_v19, %v6342_v13  ;;  %v6353_v22 = vsel %vm1036_vm1, %v6342_v13, %v6334_v19  ;;  %v6326_v19 = vmul.f32 %v12481_v33, %v14307_v57  ;;  %v14308_v13 = vld [vmem:[#allocation63_spill] sm:$0xff] }
0x1940   : > { %v6344_v58 = vpop.permute.xlu1 %6343  ;;  %v6357_v23 = vmul.f32 %v6353_v22, %v14305_v34  ;;  %v6358_v55 = vmul.f32 %v6349_v24, %v14306_v43  ;;  %v6325_v10 = vmul.f32 %v12443_v12, %v14308_v13  ;;  %v14311_v24 = vld [vmem:[#allocation67_spill] sm:$0xff]  ;;  %v14313_v13 = vld [vmem:[#allocation69_spill] sm:$0xff] }
0x1941   : > { %v6350_v38 = vsel %vm1036_vm1, %v6336_v49, %v6344_v58  ;;  %v6354_v0 = vsel %vm1036_vm1, %v6344_v58, %v6336_v49  ;;  %v14310_v58 = vld [vmem:[#allocation66_spill] sm:$0xff] }
0x1942   : > { %v6382_v6 = vpop.permute.xlu0 %6381  ;;  %v6359_v49 = vmul.f32 %v6354_v0, %v14309_v31  ;;  %v6360_v37 = vmul.f32 %v6350_v38, %v14310_v58  ;;  %v6365_v31 = vadd.f32 %v6357_v23, %v6325_v10  ;;  %v6366_v0 = vadd.f32 %v6358_v55, %v6326_v19  ;;  %v14317_v55 = vld [vmem:[#allocation72_spill] sm:$0xff] }
0x1943   : > { %v6389_v4 = vsel %vm1077_vm2, %v6374_v35, %v6382_v6  ;;  %v6393_v47 = vsel %vm1077_vm2, %v6382_v6, %v6374_v35  ;;  %v14312_v35 = vld [vmem:[#allocation68_spill] sm:$0xff]  ;;  %v6328_v38 = vmul.f32 %v12485_v15, %v13815_v63  ;;  %v6327_v58 = vmul.f32 %v12447_v62, %v14313_v13 }
0x1944   : > { %v6384_v30 = vpop.permute.xlu1 %6383  ;;  %v6397_v22 = vmul.f32 %v6393_v47, %v14311_v24  ;;  %v6398_v6 = vmul.f32 %v6389_v4, %v14312_v35  ;;  %v14315_v47 = vld [vmem:[#allocation74_spill] sm:$0xff] }
0x1945   : > { %v6390_v43 = vsel %vm1077_vm2, %v6376_v56, %v6384_v30  ;;  %v6394_v34 = vsel %vm1077_vm2, %v6384_v30, %v6376_v56  ;;  %v14314_v56 = vld [vmem:[#allocation73_spill] sm:$0xff]  ;;  %v6367_v15 = vadd.f32 %v6359_v49, %v6327_v58  ;;  %v6368_v19 = vadd.f32 %v6360_v37, %v6328_v38 }
0x1946   : > { %v6422_v17 = vpop.permute.xlu0 %6421  ;;  %v6399_v30 = vmul.f32 %v6394_v34, %v14314_v56  ;;  %v6400_v24 = vmul.f32 %v6390_v43, %v14315_v47  ;;  %v6405_v43 = vadd.f32 %v6397_v22, %v6365_v31  ;;  %v6406_v34 = vadd.f32 %v6398_v6, %v6366_v0 }
0x1947   : > { %v6429_v57 = vsel %vm1118_vm3, %v6414_v32, %v6422_v17  ;;  %v6433_v12 = vsel %vm1118_vm3, %v6422_v17, %v6414_v32  ;;  %v14316_v32 = vld [vmem:[#allocation71_spill] sm:$0xff] }
0x1948   : > { %v6424_v14 = vpop.permute.xlu1 %6423  ;;  %v6437_v10 = vmul.f32 %v6433_v12, %v14316_v32  ;;  %v6438_v23 = vmul.f32 %v6429_v57, %v14317_v55  ;;  %v6407_v12 = vadd.f32 %v6399_v30, %v6367_v15  ;;  %v6408_v47 = vadd.f32 %v6400_v24, %v6368_v19 }
0x1949   : > { %v6430_v4 = vsel %vm1118_vm3, %v6416_v16, %v6424_v14  ;;  %v6434_v35 = vsel %vm1118_vm3, %v6424_v14, %v6416_v16 }
0x194a   : > { %v6462_v33 = vpop.permute.xlu0 %6461  ;;  %v6439_v56 = vmul.f32 %v6434_v35, %v13889_v53  ;;  %v6440_v14 = vmul.f32 %v6430_v4, %v13822_v54  ;;  %v6445_v49 = vadd.f32 %v6437_v10, %v6405_v43  ;;  %v6446_v22 = vadd.f32 %v6438_v23, %v6406_v34 }
0x194b   : > { %v6469_v63 = vsel %vm1159_vm4, %v6454_v46, %v6462_v33  ;;  %v6473_v62 = vsel %vm1159_vm4, %v6462_v33, %v6454_v46 }
0x194c   : > { %v6464_v17 = vpop.permute.xlu1 %6463  ;;  %v6477_v32 = vmul.f32 %v6473_v62, %v13890_v40  ;;  %v6478_v46 = vmul.f32 %v6469_v63, %v13891_v42  ;;  %v6447_v31 = vadd.f32 %v6439_v56, %v6407_v12  ;;  %v6448_v0 = vadd.f32 %v6440_v14, %v6408_v47 }
0x194d   : > { %v6470_v16 = vsel %vm1159_vm4, %v6456_v51, %v6464_v17  ;;  %v6474_v57 = vsel %vm1159_vm4, %v6464_v17, %v6456_v51 }
0x194e   : > { %v6502_v13 = vpop.permute.xlu0 %6501  ;;  %v6479_v6 = vmul.f32 %v6474_v57, %v13823_v29  ;;  %v6480_v51 = vmul.f32 %v6470_v16, %v13892_v39  ;;  %v6485_v39 = vadd.f32 %v6477_v32, %v6445_v49  ;;  %v14318_v32 = vld [vmem:[#allocation94_spill] sm:$0xff] }
0x194f   : > { %v6509_v53 = vsel %vm1200_vm5, %v12625_v18, %v6502_v13  ;;  %v6513_v54 = vsel %vm1200_vm5, %v6502_v13, %v12625_v18  ;;  %v6486_v18 = vadd.f32 %v6478_v46, %v6446_v22 }
0x1950   : > { %v6504_v37 = vpop.permute.xlu1 %6503  ;;  %v6517_v58 = vmul.f32 %v6509_v53, %v13893_v8  ;;  %v6518_v30 = vmul.f32 %v6513_v54, %v13894_v9  ;;  %v6488_v10 = vadd.f32 %v6480_v51, %v6448_v0  ;;  %v14320_v51 = vld [vmem:[#allocation96_spill] sm:$0xff] }
0x1951   : > { %v6510_v40 = vsel %vm1200_vm5, %v12627_v27, %v6504_v37  ;;  %v6514_v42 = vsel %vm1200_vm5, %v6504_v37, %v12627_v27 }
0x1952   : > { %v6542_v33 = vpop.permute.xlu0 %6541  ;;  %v6519_v27 = vmul.f32 %v6510_v40, %v13895_v28  ;;  %v6520_v4 = vmul.f32 %v6514_v42, %v13826_v26  ;;  %v6526_v62 = vadd.f32 %v6518_v30, %v6486_v18  ;;  %v14321_v42 = vld [vmem:[#allocation37_spill] sm:$0xff] }
0x1953   : > { %v6549_v38 = vsel %vm1241_vm6, %v12629_v1, %v6542_v33  ;;  %v6553_v29 = vsel %vm1241_vm6, %v6542_v33, %v12629_v1  ;;  %v6487_v1 = vadd.f32 %v6479_v6, %v6447_v31 }
0x1954   : > { %v6544_v24 = vpop.permute.xlu1 %6543  ;;  %v6557_v55 = vmul.f32 %v6549_v38, %v13896_v2  ;;  %v6558_v8 = vmul.f32 %v6553_v29, %v13975_v25  ;;  %v6528_v43 = vadd.f32 %v6520_v4, %v6488_v10 }
0x1955   : > { %v6550_v35 = vsel %vm1241_vm6, %v12631_v60, %v6544_v24  ;;  %v6554_v17 = vsel %vm1241_vm6, %v6544_v24, %v12631_v60  ;;  %v6525_v60 = vadd.f32 %v6517_v58, %v6485_v39  ;;  %v6527_v19 = vadd.f32 %v6519_v27, %v6487_v1  ;;  %v14322_v58 = vld [vmem:[#allocation38_spill] sm:$0xff] }
0x1956   : > { %v6582_v9 = vpop.permute.xlu0 %6581  ;;  %v6559_v23 = vmul.f32 %v6550_v35, %v13976_v11  ;;  %v6560_v28 = vmul.f32 %v6554_v17, %v13977_v20  ;;  %v6566_v13 = vadd.f32 %v6558_v8, %v6526_v62 }
0x1957   : > { %v6589_v26 = vsel %vm1282_vm7, %v12633_v48, %v6582_v9  ;;  %v6593_v63 = vsel %vm1282_vm7, %v6582_v9, %v12633_v48  ;;  %v6565_v34 = vadd.f32 %v6557_v55, %v6525_v60 }
0x1958   : > { %v6597_v15 = vmul.f32 %v6589_v26, %v13978_v45  ;;  %v6598_v2 = vmul.f32 %v6593_v63, %v13979_v7  ;;  %v6584_v25 = vpop.permute.xlu1 %6583  ;;  %v6567_v14 = vadd.f32 %v6559_v23, %v6527_v19  ;;  %v6568_v7 = vadd.f32 %v6560_v28, %v6528_v43 }
0x1959   : > { %v6590_v11 = vsel %vm1282_vm7, %v12635_v44, %v6584_v25  ;;  %v6594_v20 = vsel %vm1282_vm7, %v6584_v25, %v12635_v44 }
0x195a   : > { %v6599_v48 = vmul.f32 %v6590_v11, %v14059_v5  ;;  %v6600_v56 = vmul.f32 %v6594_v20, %v14060_v50  ;;  %v6622_v45 = vpop.permute.xlu0 %6621  ;;  %v6605_v12 = vadd.f32 %v6597_v15, %v6565_v34  ;;  %v6606_v47 = vadd.f32 %v6598_v2, %v6566_v13 }
0x195b   : > { %v6629_v16 = vsel %vm1323_vm8, %v12637_v36, %v6622_v45  ;;  %v6633_v57 = vsel %vm1323_vm8, %v6622_v45, %v12637_v36  ;;  %v14319_v36 = vld [vmem:[#allocation95_spill] sm:$0xff] }
0x195c   : > { %v6637_v44 = vmul.f32 %v6629_v16, %v14061_v3  ;;  %v6638_v46 = vmul.f32 %v6633_v57, %v14318_v32  ;;  %v6624_v5 = vpop.permute.xlu1 %6623  ;;  %v6607_v37 = vadd.f32 %v6599_v48, %v6567_v14  ;;  %v6608_v50 = vadd.f32 %v6600_v56, %v6568_v7 }
0x195d   : > { %v6630_v49 = vsel %vm1323_vm8, %v12639_v41, %v6624_v5  ;;  %v6634_v22 = vsel %vm1323_vm8, %v6624_v5, %v12639_v41 }
0x195e   : > { %v6645_v53 = vadd.f32 %v6637_v44, %v6605_v12  ;;  %v6646_v54 = vadd.f32 %v6638_v46, %v6606_v47  ;;  %v6639_v6 = vmul.f32 %v6630_v49, %v14319_v36  ;;  %v6640_v40 = vmul.f32 %v6634_v22, %v14320_v51  ;;  %v6338_v3 = vpop.permute.xlu0 %6337 }
0x1960   : > { %v6653_v33 = vadd.f32 %v6645_v53, %v14321_v42  ;;  %v6654_v31 = vadd.f32 %v6646_v54, %v14321_v42  ;;  %v6647_v0 = vadd.f32 %v6639_v6, %v6607_v37  ;;  %v6648_v38 = vadd.f32 %v6640_v40, %v6608_v50  ;;  %v6340_v29 = vpop.permute.xlu1 %6339  ;;  %v14323_v54 = vld [vmem:[#allocation15_spill] sm:$0xff] }
0x1961   : > { %v14324_v6 = vld [vmem:[#allocation43_spill] sm:$0xff] }
0x1962   : > { %v6661_v39 = vadd.f32 3.0, %v6653_v33  ;;  %v6662_v18 = vadd.f32 3.0, %v6654_v31  ;;  %v6655_v30 = vadd.f32 %v6647_v0, %v14322_v58  ;;  %v6656_v41 = vadd.f32 %v6648_v38, %v14322_v58  ;;  %v6378_v24 = vpop.permute.xlu0 %6377 }
0x1964   : > { %v6663_v27 = vadd.f32 3.0, %v6655_v30  ;;  %v6664_v4 = vadd.f32 3.0, %v6656_v41  ;;  %v6380_v35 = vpop.permute.xlu1 %6379  ;;  %v6669_v17 = vmax.f32 %v6661_v39, 0.0  ;;  %v6670_v1 = vmax.f32 %v6662_v18, 0.0  ;;  %v14327_v39 = vld [vmem:[#allocation44_spill] sm:$0xff]  ;;  %v14328_v18 = vld [vmem:[#allocation45_spill] sm:$0xff] }
0x1966   : > { %v6418_v10 = vpop.permute.xlu0 %6417  ;;  %v6677_v55 = vmin.f32 %v6669_v17, 6.0  ;;  %v6678_v8 = vmin.f32 %v6670_v1, 6.0  ;;  %v6671_v9 = vmax.f32 %v6663_v27, 0.0  ;;  %v6672_v23 = vmax.f32 %v6664_v4, 0.0  ;;  %v14329_v27 = vld [vmem:[#allocation46_spill] sm:$0xff] }
0x1968   : > { %v6420_v28 = vpop.permute.xlu1 %6419  ;;  %v6685_v26 = vmul.f32 %v6677_v55, %v6653_v33  ;;  %v6686_v63 = vmul.f32 %v6678_v8, %v6654_v31  ;;  %v6679_v60 = vmin.f32 %v6671_v9, 6.0  ;;  %v6680_v62 = vmin.f32 %v6672_v23, 6.0  ;;  %v14325_v33 = vld [vmem:[#allocation16_spill] sm:$0xff]  ;;  %v14326_v31 = vld [vmem:[#allocation17_spill] sm:$0xff]  ;;  %v14331_v9 = vld [vmem:[#allocation47_spill] sm:$0xff] }
0x1969   : > { %v6330_v0 = vmul.f32 %v12559_v21, %v14326_v31  ;;  %v6331_v23 = vmul.f32 %v12523_v52, %v14331_v9  ;;  %v14340_v31 = vld [vmem:[#allocation20_spill] sm:$0xff] }
0x196a   : > { %v6458_v15 = vpop.permute.xlu0 %6457  ;;  %v12765_v2 = vmul.f32 0.16666667, %v6685_v26  ;;  %v12767_v25 = vmul.f32 0.16666667, %v6686_v63  ;;  %v6687_v19 = vmul.f32 %v6679_v60, %v6655_v30  ;;  %v6688_v43 = vmul.f32 %v6680_v62, %v6656_v41  ;;  %v14332_v26 = vld [vmem:[#allocation48_spill] sm:$0xff]  ;;  %v14333_v63 = vld [vmem:[#allocation86_spill] sm:$0xff] }
0x196b   : > { %v6332_v60 = vmul.f32 %v14333_v63, %v14332_v26  ;;  %v14345_v63 = vld [vmem:[#allocation27_spill] sm:$0xff] }
0x196c   : > { %v6460_v11 = vpop.permute.xlu1 %6459  ;;  %v6701_v20 = vadd.f32 %v12767_v25, %v12765_v2  ;;  %v12771_v34 = vmul.f32 0.16666667, %v6687_v19  ;;  %v12773_v13 = vmul.f32 0.16666667, %v6688_v43  ;;  %v14335_v19 = vld [vmem:[#allocation50_spill] sm:$0xff] }
0x196e   : > { %v12775_v48 = vpop.permute.xlu0 %6497  ;;  %6702 = vadd.xlane.f32.xlu0 %v6701_v20  ;;  %v6704_v56 = vadd.f32 %v12773_v13, %v12771_v34 }
0x1970   : > { %v12779_v45 = vpop.permute.xlu1 %6499  ;;  %6705 = vadd.xlane.f32.xlu1 %v6704_v56 }
0x1972   : > { %v12781_v14 = vpop.permute.xlu0 %6537 }
0x1974   : > { %v12783_v7 = vpop.permute.xlu1 %6539 }
0x1976   : > { %v12785_v16 = vpop.permute.xlu0 %6577 }
0x1978   : > { %v12787_v57 = vpop.permute.xlu1 %6579 }
0x197a   : > { %v12789_v12 = vpop.permute.xlu0 %6617 }
0x197c   : > { %v12791_v47 = vpop.permute.xlu1 %6619 }
0x197e   : > { %v6346_v44 = vpop.permute.xlu0 %6345 }
0x197f   : > { %v6351_v5 = vsel %vm1036_vm1, %v6338_v3, %v6346_v44  ;;  %v6355_v37 = vsel %vm1036_vm1, %v6346_v44, %v6338_v3  ;;  %v6329_v3 = vmul.f32 %v12519_v61, %v14325_v33  ;;  %v14336_v44 = vld [vmem:[#allocation18_spill] sm:$0xff] }
0x1980   : > { %v6348_v32 = vpop.permute.xlu1 %6347  ;;  %v6361_v36 = vmul.f32 %v6355_v37, %v14323_v54  ;;  %v6362_v51 = vmul.f32 %v6351_v5, %v14324_v6 }
0x1981   : > { %v6352_v49 = vsel %vm1036_vm1, %v6340_v29, %v6348_v32  ;;  %v6356_v22 = vsel %vm1036_vm1, %v6348_v32, %v6340_v29 }
0x1982   : > { %v6386_v46 = vpop.permute.xlu0 %6385  ;;  %v6363_v29 = vmul.f32 %v6356_v22, %v14327_v39  ;;  %v6364_v58 = vmul.f32 %v6352_v49, %v14328_v18  ;;  %v6369_v55 = vadd.f32 %v6361_v36, %v6329_v3  ;;  %v6370_v8 = vadd.f32 %v6362_v51, %v6330_v0  ;;  %v14338_v36 = vld [vmem:[#allocation52_spill] sm:$0xff]  ;;  %v14339_v51 = vld [vmem:[#allocation53_spill] sm:$0xff] }
0x1983   : > { %v6391_v40 = vsel %vm1077_vm2, %v6378_v24, %v6386_v46  ;;  %v6395_v42 = vsel %vm1077_vm2, %v6386_v46, %v6378_v24  ;;  %v14330_v24 = vld [vmem:[#allocation19_spill] sm:$0xff]  ;;  %v14337_v46 = vld [vmem:[#allocation21_spill] sm:$0xff] }
0x1984   : > { %v6388_v50 = vpop.permute.xlu1 %6387  ;;  %v6401_v4 = vmul.f32 %v6395_v42, %v14329_v27  ;;  %v6402_v17 = vmul.f32 %v6391_v40, %v14330_v24  ;;  %v6372_v49 = vadd.f32 %v6364_v58, %v6332_v60 }
0x1985   : > { %v6392_v30 = vsel %vm1077_vm2, %v6380_v35, %v6388_v50  ;;  %v6396_v41 = vsel %vm1077_vm2, %v6388_v50, %v6380_v35  ;;  %v14334_v35 = vld [vmem:[#allocation49_spill] sm:$0xff]  ;;  %v6371_v50 = vadd.f32 %v6363_v29, %v6331_v23  ;;  %v14344_v23 = vld [vmem:[#allocation22_spill] sm:$0xff] }
0x1986   : > { %v6426_v53 = vpop.permute.xlu0 %6425  ;;  %v6403_v62 = vmul.f32 %v6396_v41, %v14334_v35  ;;  %v6404_v43 = vmul.f32 %v6392_v30, %v14335_v19  ;;  %v6409_v22 = vadd.f32 %v6401_v4, %v6369_v55  ;;  %v14342_v41 = vld [vmem:[#allocation54_spill] sm:$0xff]  ;;  %v14347_v19 = vld [vmem:[#allocation57_spill] sm:$0xff] }
0x1987   : > { %v6431_v61 = vsel %vm1118_vm3, %v6418_v10, %v6426_v53  ;;  %v6435_v21 = vsel %vm1118_vm3, %v6426_v53, %v6418_v10  ;;  %v6410_v53 = vadd.f32 %v6402_v17, %v6370_v8 }
0x1988   : > { %v6428_v38 = vpop.permute.xlu1 %6427  ;;  %v6441_v32 = vmul.f32 %v6435_v21, %v14336_v44  ;;  %v6442_v5 = vmul.f32 %v6431_v61, %v14337_v46  ;;  %v6411_v33 = vadd.f32 %v6403_v62, %v6371_v50  ;;  %v6412_v3 = vadd.f32 %v6404_v43, %v6372_v49  ;;  %v14346_v62 = vld [vmem:[#allocation56_spill] sm:$0xff]  ;;  %v14349_v46 = vld [vmem:[#allocation29_spill] sm:$0xff]  ;;  %v14351_v49 = vld [vmem:[#allocation30_spill] sm:$0xff] }
0x1989   : > { %v6432_v20 = vsel %vm1118_vm3, %v6420_v28, %v6428_v38  ;;  %v6436_v56 = vsel %vm1118_vm3, %v6428_v38, %v6420_v28  ;;  %v14348_v44 = vld [vmem:[#allocation24_spill] sm:$0xff] }
0x198a   : > { %v6466_v1 = vpop.permute.xlu0 %6465  ;;  %v6443_v6 = vmul.f32 %v6436_v56, %v14338_v36  ;;  %v6444_v28 = vmul.f32 %v6432_v20, %v14339_v51  ;;  %v6449_v29 = vadd.f32 %v6441_v32, %v6409_v22  ;;  %v6450_v18 = vadd.f32 %v6442_v5, %v6410_v53 }
0x198b   : > { %v6471_v52 = vsel %vm1159_vm4, %v6458_v15, %v6466_v1  ;;  %v6475_v37 = vsel %vm1159_vm4, %v6466_v1, %v6458_v15  ;;  %v14341_v15 = vld [vmem:[#allocation23_spill] sm:$0xff] }
0x198c   : > { %v6468_v10 = vpop.permute.xlu1 %6467  ;;  %v6481_v0 = vmul.f32 %v6475_v37, %v14340_v31  ;;  %v6482_v38 = vmul.f32 %v6471_v52, %v14341_v15  ;;  %v6451_v21 = vadd.f32 %v6443_v6, %v6411_v33  ;;  %v6452_v1 = vadd.f32 %v6444_v28, %v6412_v3  ;;  %v14350_v37 = vld [vmem:[#allocation28_spill] sm:$0xff]  ;;  %v14352_v6 = vld [vmem:[#allocation31_spill] sm:$0xff]  ;;  %v14353_v28 = vld [vmem:[#allocation58_spill] sm:$0xff] }
0x198d   : > { %v6472_v40 = vsel %vm1159_vm4, %v6460_v11, %v6468_v10  ;;  %v6476_v42 = vsel %vm1159_vm4, %v6468_v10, %v6460_v11  ;;  %v14343_v11 = vld [vmem:[#allocation55_spill] sm:$0xff] }
0x198e   : > { %v6506_v54 = vpop.permute.xlu0 %6505  ;;  %v6483_v27 = vmul.f32 %v6476_v42, %v14342_v41  ;;  %v6484_v4 = vmul.f32 %v6472_v40, %v14343_v11  ;;  %v6489_v8 = vadd.f32 %v6481_v0, %v6449_v29  ;;  %v6490_v9 = vadd.f32 %v6482_v38, %v6450_v18  ;;  %v14355_v29 = vld [vmem:[#allocation99_spill] sm:$0xff] }
0x198f   : > { %v6511_v58 = vsel %vm1200_vm5, %v12775_v48, %v6506_v54  ;;  %v6515_v30 = vsel %vm1200_vm5, %v6506_v54, %v12775_v48 }
0x1990   : > { %v6508_v39 = vpop.permute.xlu1 %6507  ;;  %v6521_v26 = vmul.f32 %v6511_v58, %v14344_v23  ;;  %v6522_v60 = vmul.f32 %v6515_v30, %v14345_v63  ;;  %v6492_v10 = vadd.f32 %v6484_v4, %v6452_v1 }
0x1991   : > { %v6512_v24 = vsel %vm1200_vm5, %v12779_v45, %v6508_v39  ;;  %v6516_v17 = vsel %vm1200_vm5, %v6508_v39, %v12779_v45 }
0x1992   : > { %v6546_v61 = vpop.permute.xlu0 %6545  ;;  %v6523_v45 = vmul.f32 %v6512_v24, %v14346_v62  ;;  %v6524_v43 = vmul.f32 %v6516_v17, %v14347_v19  ;;  %v6530_v36 = vadd.f32 %v6522_v60, %v6490_v9  ;;  %v14359_v60 = vld [vmem:[#allocation100_spill] sm:$0xff]  ;;  %v14360_v62 = vld [vmem:[#allocation39_spill] sm:$0xff] }
0x1993   : > { %v6551_v55 = vsel %vm1241_vm6, %v12781_v14, %v6546_v61  ;;  %v6555_v48 = vsel %vm1241_vm6, %v6546_v61, %v12781_v14  ;;  %v6491_v14 = vadd.f32 %v6483_v27, %v6451_v21  ;;  %v14357_v61 = vld [vmem:[#allocation35_spill] sm:$0xff] }
0x1994   : > { %v6548_v35 = vpop.permute.xlu1 %6547  ;;  %v6561_v32 = vmul.f32 %v6551_v55, %v14348_v44  ;;  %v6562_v5 = vmul.f32 %v6555_v48, %v14349_v46  ;;  %v6532_v3 = vadd.f32 %v6524_v43, %v6492_v10  ;;  %v14361_v10 = vld [vmem:[#allocation40_spill] sm:$0xff] }
0x1995   : > { %v6552_v20 = vsel %vm1241_vm6, %v12783_v7, %v6548_v35  ;;  %v6556_v56 = vsel %vm1241_vm6, %v6548_v35, %v12783_v7  ;;  %v6529_v7 = vadd.f32 %v6521_v26, %v6489_v8  ;;  %v6531_v33 = vadd.f32 %v6523_v45, %v6491_v14 }
0x1996   : > { %v6586_v52 = vpop.permute.xlu0 %6585  ;;  %v6563_v50 = vmul.f32 %v6552_v20, %v14350_v37  ;;  %v6564_v22 = vmul.f32 %v6556_v56, %v14351_v49  ;;  %v6570_v38 = vadd.f32 %v6562_v5, %v6530_v36 }
0x1997   : > { %v6591_v53 = vsel %vm1282_vm7, %v12785_v16, %v6586_v52  ;;  %v6595_v54 = vsel %vm1282_vm7, %v6586_v52, %v12785_v16  ;;  %v6569_v15 = vadd.f32 %v6561_v32, %v6529_v7  ;;  %v14354_v16 = vld [vmem:[#allocation33_spill] sm:$0xff] }
0x1998   : > { %v6601_v51 = vmul.f32 %v6591_v53, %v14352_v6  ;;  %v6602_v40 = vmul.f32 %v6595_v54, %v14353_v28  ;;  %v6588_v42 = vpop.permute.xlu1 %6587  ;;  %v6571_v30 = vadd.f32 %v6563_v50, %v6531_v33  ;;  %v6572_v41 = vadd.f32 %v6564_v22, %v6532_v3 }
0x1999   : > { %v6592_v31 = vsel %vm1282_vm7, %v12787_v57, %v6588_v42  ;;  %v6596_v0 = vsel %vm1282_vm7, %v6588_v42, %v12787_v57  ;;  %v14356_v57 = vld [vmem:[#allocation59_spill] sm:$0xff] }
0x199a   : > { %v6603_v39 = vmul.f32 %v6592_v31, %v14354_v16  ;;  %v6604_v18 = vmul.f32 %v6596_v0, %v14355_v29  ;;  %v6626_v58 = vpop.permute.xlu0 %6625  ;;  %v6609_v4 = vadd.f32 %v6601_v51, %v6569_v15  ;;  %v6610_v24 = vadd.f32 %v6602_v40, %v6570_v38  ;;  %v14362_v0 = vld [vmem:[#allocation77_spill] sm:$0xff]  ;;  %v14363_v38 = vld [vmem:[#allocation75_spill] sm:$0xff] }
0x199b   : > { %v6631_v27 = vsel %vm1323_vm8, %v12789_v12, %v6626_v58  ;;  %v6635_v11 = vsel %vm1323_vm8, %v6626_v58, %v12789_v12  ;;  %v14358_v12 = vld [vmem:[#allocation36_spill] sm:$0xff] }
0x199c   : > { %v6641_v17 = vmul.f32 %v6631_v27, %v14356_v57  ;;  %v6642_v21 = vmul.f32 %v6635_v11, %v14357_v61  ;;  %v6628_v1 = vpop.permute.xlu1 %6627  ;;  %v6611_v55 = vadd.f32 %v6603_v39, %v6571_v30  ;;  %v6612_v48 = vadd.f32 %v6604_v18, %v6572_v41  ;;  %v14364_v39 = vld [vmem:[#allocation76_spill] sm:$0xff]  ;;  %v14365_v18 = vld [vmem:[#allocation103_spill] sm:$0xff] }
0x199d   : > { %v6632_v8 = vsel %vm1323_vm8, %v12791_v47, %v6628_v1  ;;  %v6636_v9 = vsel %vm1323_vm8, %v6628_v1, %v12791_v47 }
0x199e   : > { %v6649_v23 = vadd.f32 %v6641_v17, %v6609_v4  ;;  %v6650_v26 = vadd.f32 %v6642_v21, %v6610_v24  ;;  %v6643_v63 = vmul.f32 %v6632_v8, %v14358_v12  ;;  %v6644_v35 = vmul.f32 %v6636_v9, %v14359_v60  ;;  %v14366_v24 = vld [vmem:[#allocation34_spill] sm:$0xff]  ;;  %v14367_v17 = vld [vmem:[#allocation104_spill] sm:$0xff]  ;;  %v14368_v21 = vld [vmem:[#allocation105_spill] sm:$0xff] }
0x199f   : > { %v14371_v12 = vmov 0.0  }
0x19a0   : > { %v6657_v45 = vadd.f32 %v6649_v23, %v14360_v62  ;;  %v6658_v19 = vadd.f32 %v6650_v26, %v14360_v62  ;;  %v6651_v43 = vadd.f32 %v6643_v63, %v6611_v55  ;;  %v6652_v20 = vadd.f32 %v6644_v35, %v6612_v48  ;;  %v14369_v55 = vld [vmem:[#allocation106_spill] sm:$0xff]  ;;  %v12941_v26 = vld [vmem:[%s13193_s10] sm:$0xff]  }
0x19a1   : > { %v14370_v23 = vmov 0.0|0.0  }
0x19a2   : > { %v6665_v56 = vadd.f32 3.0, %v6657_v45  ;;  %v6666_v14 = vadd.f32 3.0, %v6658_v19  ;;  %v6659_v44 = vadd.f32 %v6651_v43, %v14361_v10  ;;  %v6660_v32 = vadd.f32 %v6652_v20, %v14361_v10  ;;  %v7617_v10 = vld [vmem:[%s13189_s6] sm:$0xff] }
0x19a4   : > { %v6667_v59 = vadd.f32 3.0, %v6659_v44  ;;  %v6668_v47 = vadd.f32 3.0, %v6660_v32  ;;  %v6673_v46 = vmax.f32 %v6665_v56, 0.0  ;;  %v6674_v5 = vmax.f32 %v6666_v14, 0.0 }
0x19a6   : > { %v6681_v52 = vmin.f32 %v6673_v46, 6.0  ;;  %v6682_v37 = vmin.f32 %v6674_v5, 6.0  ;;  %v6675_v50 = vmax.f32 %v6667_v59, 0.0  ;;  %v6676_v49 = vmax.f32 %v6668_v47, 0.0 }
0x19a8   : > { %v6689_v22 = vmul.f32 %v6681_v52, %v6657_v45  ;;  %v6690_v53 = vmul.f32 %v6682_v37, %v6658_v19  ;;  %v6683_v54 = vmin.f32 %v6675_v50, 6.0  ;;  %v6684_v7 = vmin.f32 %v6676_v49, 6.0  ;;  %v7619_v52 = vld [vmem:[%s13190_s7] sm:$0xff] }
0x19aa   : > { %v12917_v36 = vmul.f32 0.16666667, %v6689_v22  ;;  %v12919_v6 = vmul.f32 0.16666667, %v6690_v53  ;;  %v6691_v51 = vmul.f32 %v6683_v54, %v6659_v44  ;;  %v6692_v28 = vmul.f32 %v6684_v7, %v6660_v32  ;;  %v7618_v44 = vld [vmem:[%s13191_s8] sm:$0xff]  ;;  %v7620_v22 = vld [vmem:[%s13191_s8 + $0x8] sm:$0xff] }
0x19ab   : > { %v6146_v40 = vpop.permute.xlu0 %6145  ;;  %v7621_v53 = vld [vmem:[%s13191_s8 + $0x10] sm:$0xff]  ;;  %v7622_v54 = vld [vmem:[%s13191_s8 + $0x18] sm:$0xff] }
0x19ac   : > { %v6707_v42 = vadd.f32 %v12919_v6, %v12917_v36  ;;  %v12923_v33 = vmul.f32 0.16666667, %v6691_v51  ;;  %v12925_v31 = vmul.f32 0.16666667, %v6692_v28  ;;  %v6163_v15 = vmul.f32 %v6146_v40, %v14362_v0  ;;  %v14372_v51 = vld [vmem:[#allocation102_spill] sm:$0xff] }
0x19ad   : > { %v6151_v3 = vpop.permute.xlu1 %6150  ;;  %v6164_v16 = vmul.f32 %v6146_v40, %v14363_v38 }
0x19ae   : > { %v6165_v29 = vmul.f32 %v6151_v3, %v14364_v39  ;;  %v6166_v58 = vmul.f32 %v6151_v3, %v14365_v18  ;;  %6708 = vadd.xlane.f32.xlu0 %v6707_v42  ;;  %v6710_v41 = vadd.f32 %v12925_v31, %v12923_v33  ;;  %v14373_v42 = vld [vmem:[#allocation101_spill] sm:$0xff]  ;;  %v14374_v39 = vld [vmem:[#allocation11_spill] sm:$0xff] }
0x19af   : > { %v6156_v30 = vpop.permute.xlu0 %6155 }
0x19b0   : > { %v6171_v27 = vpack.c.bf16 %v6165_v29, %v6163_v15  ;;  %v6172_v11 = vpack.c.bf16 %v6166_v58, %v6164_v16  ;;  %6711 = vadd.xlane.f32.xlu1 %v6710_v41  ;;  %v6167_v57 = vmul.f32 %v6156_v30, %v14366_v24  ;;  %v6168_v61 = vmul.f32 %v6156_v30, %v14367_v17  ;;  %v14375_v30 = vld [vmem:[#allocation97_spill] sm:$0xff] }
0x19b1   : > { %v6161_v4 = vpop.permute.xlu1 %6160 }
0x19b2   : > { %v6169_v1 = vmul.f32 %v6161_v4, %v14368_v21  ;;  %v6170_v48 = vmul.f32 %v6161_v4, %v14369_v55  ;;  %6175 = vmatprep.subr.bf16.mxu0 %v6172_v11 }
0x19b3   : > { %6176 = vmatpush1.bf16.msra.mxu0 %v6171_v27 }
0x19b4   : > { %v6173_v8 = vpack.c.bf16 %v6169_v1, %v6167_v57  ;;  %v6174_v9 = vpack.c.bf16 %v6170_v48, %v6168_v61 }
0x19b6   : > { %6177 = vmatprep.subr.bf16.mxu0 %v6174_v9 }
0x19b7   : > { %6178 = vmatpush1.bf16.msra.mxu0 %v6173_v8 }
0x19b8   : > { %7465 = vmatprep.subr.bf16.mxu0 %v14370_v23 }
0x19ba   : > { %7172 = vmatmul.mubr.msk.bf16.vlgmr.msra.gmra.mrb[64].mxu0 %vm1432_vm10, %v12941_v26 }
0x19bb   : > { %7412 = vmatprep.mubr.msk.f32.mxu0 %vm7766_vm9, %v14371_v12 }
0x19fb   : > { %v6703_v63 = vpop.xlane.xlu0 %6702 }
0x19fc   : > { %v6713_v35 = vmul.f32 0.00390625, %v6703_v63 }
0x19fd   : > { %v6706_v60 = vpop.xlane.xlu1 %6705 }
0x19fe   : > { %v6714_v62 = vmul.f32 0.00390625, %v6706_v60  ;;  %v461_v60 = vld [vmem:[%s13194_s11 + $0x8] sm:$0xff] }
0x1a00   : > { %v7466_v45 = vpack.c.bf16 %v6714_v62, %v6713_v35  ;;  %v460_v35 = vld [vmem:[%s13194_s11] sm:$0xff] }
0x1a02   : > { %7467 = vmatpush3.bf16.msra.mxu0 %v7466_v45 }
0x1a03   : > { %7468 = vmatprep.subr.bf16.mxu0 %v14370_v23 }
0x1a3b   : > { %v6709_v19 = vpop.xlane.xlu0 %6708 }
0x1a3c   : > { %v6715_v20 = vmul.f32 0.00390625, %v6709_v19 }
0x1a3d   : > { %v6712_v43 = vpop.xlane.xlu1 %6711 }
0x1a3e   : > { %v6716_v56 = vmul.f32 0.00390625, %v6712_v43 }
0x1a40   : > { %v7469_v14 = vpack.c.bf16 %v6716_v56, %v6715_v20 }
0x1a42   : > { %7470 = vmatpush3.bf16.msra.mxu0 %v7469_v14 }
0x1a45   : > { %7413 = vmatmul.mubr.msk.f32.vlgmr.msra.gmra.mrb[54].mxu0 %vm1432_vm10, %v7617_v10 }
0x1a46   : > { %7417 = vmatprep.mubr.msk.f32.mxu0 %vm1507_vm11, %v7618_v44 }
0x1a8d   : > { %v12956_v32 = vpop.f32.mrb[64].mxu0 }
0x1a8e   : > { %v12958_v59 = vpop.f32.mrb[65].mxu0 }
0x1a8f   : > { %v12960_v47 = vpop.f32.mrb[66].mxu0 }
0x1a90   : > { %v12962_v46 = vpop.f32.mrb[67].mxu0 }
0x1b18   : > { %v6783_v5 = vpop.f32.mrb[54].mxu0 }
0x1b19   : > { %v6784_v37 = vadd.f32 %v7619_v52, %v6783_v5  ;;  %v7414_v50 = vpop.f32.mrb[55].mxu0 }
0x1b1b   : > { %v6787_v49 = vmax.f32 %v6784_v37, 0.0 }
0x1b1d   : > { %7415 = vmatprep.subr.mxu0 %v6787_v49 }
0x1b1e   : > { %7416 = vmatpush3.msra.mxu0 %v6787_v49  ;;  %v14376_v49 = vld [vmem:[#allocation51_spill] sm:$0xff] }
0x1b1f   : > { %7418 = vmatmul.mubr.msk.f32.vlgmr.msra.gmra.mrb[68].mxu0 %vm1507_vm11, %v7620_v22 }
0x1b20   : > { %7420 = vmatprep.mubr.msk.f32.mxu0 %vm1507_vm11, %v7621_v53 }
0x1b23   : > { %7421 = vmatmul.mubr.msk.f32.gmra.mrb[70].mxu0 %vm1507_vm11, %v7622_v54 }
0x1bf2   : > { %v7419_v7 = vpop.f32.mrb[68].mxu0 }
0x1bf3   : > { %v6860_v28 = vadd.f32 %v14372_v51, %v7419_v7  ;;  %v6854_v40 = vpop.f32.mrb[69].mxu0  ;;  %v14380_v7 = vld [vmem:[#allocation88_spill] sm:$0xff] }
0x1bf4   : > { %v6855_v3 = vadd.f32 %v14373_v42, %v6854_v40  ;;  %v14382_v42 = vld [vmem:[#allocation92_spill] sm:$0xff] }
0x1bf5   : > { %v6874_v0 = vmul.f32 1.2, %v6860_v28  ;;  %v14381_v28 = vld [vmem:[#allocation89_spill] sm:$0xff] }
0x1bf6   : > { %v6873_v15 = vmul.f32 1.2, %v6855_v3  ;;  %v7422_v38 = vpop.f32.mrb[70].mxu0 }
0x1bf7   : > { %v6878_v16 = vadd.f32 3.0, %v6874_v0  ;;  %v6870_v29 = vadd.f32 %v14374_v39, %v7422_v38  ;;  %v6864_v18 = vpop.f32.mrb[71].mxu0  ;;  %v14383_v0 = vld [vmem:[#allocation93_spill] sm:$0xff]  ;;  %v7624_v39 = vld [vmem:[%s7945_s13 + $0x18] sm:$0xff] }
0x1bf8   : > { %v6877_v58 = vadd.f32 3.0, %v6873_v15  ;;  %v6865_v41 = vadd.f32 %v14375_v30, %v6864_v18  ;;  %v7623_v38 = vld [vmem:[%s7945_s13 + $0x10] sm:$0xff]  ;;  %v7626_v30 = vld [vmem:[%s7945_s13 + $0x38] sm:$0xff] }
0x1bf9   : > { %v6882_v27 = vmax.f32 %v6878_v16, 0.0  ;;  %v6876_v11 = vmul.f32 1.2, %v6870_v29  ;;  %v7625_v18 = vld [vmem:[%s7945_s13 + $0x30] sm:$0xff] }
0x1bfa   : > { %v6881_v4 = vmax.f32 %v6877_v58, 0.0  ;;  %v6875_v24 = vmul.f32 1.2, %v6865_v41 }
0x1bfb   : > { %v6886_v57 = vmin.f32 %v6882_v27, 6.0  ;;  %v6880_v17 = vadd.f32 3.0, %v6876_v11  ;;  %v7627_v11 = vld [vmem:[%s7945_s13 + $0x50] sm:$0xff] }
0x1bfc   : > { %v6885_v61 = vmin.f32 %v6881_v4, 6.0  ;;  %v6879_v21 = vadd.f32 3.0, %v6875_v24  ;;  %v7628_v24 = vld [vmem:[%s7945_s13 + $0x58] sm:$0xff] }
0x1bfd   : > { %v6890_v1 = vmul.f32 0.16666667, %v6886_v57  ;;  %v6884_v55 = vmax.f32 %v6880_v17, 0.0  ;;  %v7629_v17 = vld [vmem:[%s7945_s13 + $0x70] sm:$0xff] }
0x1bfe   : > { %v6889_v48 = vmul.f32 0.16666667, %v6885_v61  ;;  %v6883_v8 = vmax.f32 %v6879_v21, 0.0  ;;  %v7630_v21 = vld [vmem:[%s7945_s13 + $0x78] sm:$0xff] }
0x1bff   : > { %v6888_v9 = vmin.f32 %v6884_v55, 6.0  ;;  %6900 = vperm.xlu1 %7533, %v6890_v1   ;;  %v14385_v55 = vld [vmem:[#allocation32_spill] sm:$0xff] }
0x1c00   : > { %v6887_v23 = vmin.f32 %v6883_v8, 6.0  ;;  %6895 = vperm.xlu0 %7532, %v6889_v48   ;;  %v14386_v8 = vld [vmem:[#allocation26_spill] sm:$0xff] }
0x1c01   : > { %v6892_v12 = vmul.f32 0.16666667, %v6888_v9 }
0x1c02   : > { %v6891_v63 = vmul.f32 0.16666667, %v6887_v23  ;;  %v14387_v23 = vld [vmem:[#allocation78_spill] sm:$0xff] }
0x1c03   : > { %6910 = vperm.xlu1 %7533, %v6892_v12  }
0x1c04   : > { %6905 = vperm.xlu0 %7532, %v6891_v63   ;;  %v14388_v63 = vld [vmem:[#allocation81_spill] sm:$0xff] }
0x1c07   : > { %1664 = vperm.xlu1 %7533, %v461_v60  }
0x1c08   : > { %1659 = vperm.xlu0 %7532, %v460_v35  }
0x1c7e   : > { %v6901_v62 = vpop.permute.xlu1 %6900 }
0x1c7f   : > { %v6915_v45 = vmul.f32 %v6901_v62, %v12771_v34  ;;  %v6916_v19 = vmul.f32 %v6901_v62, %v12773_v13  ;;  %v6896_v43 = vpop.permute.xlu0 %6895 }
0x1c80   : > { %v6913_v20 = vmul.f32 %v6896_v43, %v12765_v2  ;;  %v6914_v56 = vmul.f32 %v6896_v43, %v12767_v25  ;;  %v14390_v43 = vld [vmem:[#allocation42_spill] sm:$0xff] }
0x1c82   : > { %v6921_v14 = vpack.c.bf16 %v6915_v45, %v6913_v20  ;;  %v6922_v10 = vpack.c.bf16 %v6916_v19, %v6914_v56  ;;  %v6911_v44 = vpop.permute.xlu1 %6910  ;;  %v14389_v45 = vld [vmem:[#allocation41_spill] sm:$0xff] }
0x1c83   : > { %v6919_v5 = vmul.f32 %v6911_v44, %v12923_v33  ;;  %v6920_v52 = vmul.f32 %v6911_v44, %v12925_v31  ;;  %v6906_v37 = vpop.permute.xlu0 %6905  ;;  %v14377_v31 = vld [vmem:[#allocation60_spill] sm:$0xff]  ;;  %v7631_v56 = vld [vmem:[%s7945_s13 + $0x90] sm:$0xff] }
0x1c84   : > { %v6917_v50 = vmul.f32 %v6906_v37, %v12917_v36  ;;  %v6918_v34 = vmul.f32 %v6906_v37, %v12919_v6  ;;  %6925 = vmatprep.subr.bf16.mxu1 %v6922_v10  ;;  %v14378_v36 = vld [vmem:[#allocation85_spill] sm:$0xff]  ;;  %v14379_v6 = vld [vmem:[#allocation83_spill] sm:$0xff]  ;;  %v7632_v10 = vld [vmem:[%s7945_s13 + $0x98] sm:$0xff] }
0x1c85   : > { %6926 = vmatpush1.bf16.msra.mxu1 %v6921_v14  ;;  %v7635_v37 = vld [vmem:[%s7945_s13 + $0xd0] sm:$0xff] }
0x1c86   : > { %v6923_v13 = vpack.c.bf16 %v6919_v5, %v6917_v50  ;;  %v6924_v2 = vpack.c.bf16 %v6920_v52, %v6918_v34  ;;  %v12997_v25 = vpop.permute.xlu1 %1664  ;;  %v7634_v5 = vld [vmem:[%s7945_s13 + $0xb8] sm:$0xff] }
0x1c87   : > { %v1714_v33 = vadd.f32 %v14376_v49, %v12997_v25  ;;  %v1716_v22 = vadd.f32 %v14377_v31, %v12997_v25  ;;  %v2464_v53 = vadd.f32 %v14378_v36, %v12997_v25  ;;  %v2466_v54 = vadd.f32 %v14379_v6, %v12997_v25  ;;  %v13019_v27 = vpop.permute.xlu0 %1659  ;;  %v7636_v34 = vld [vmem:[%s7945_s13 + $0xd8] sm:$0xff]  ;;  %v7638_v49 = vld [vmem:[%s7945_s13 + $0x8] sm:$0xff]  ;;  %v14391_v31 = vld [vmem:[#allocation79_spill] sm:$0xff] }
0x1c88   : > { %v3214_v51 = vadd.f32 %v14380_v7, %v12997_v25  ;;  %v3216_v40 = vadd.f32 %v14381_v28, %v12997_v25  ;;  %v3964_v3 = vadd.f32 %v14382_v42, %v12997_v25  ;;  %v3966_v15 = vadd.f32 %v14383_v0, %v12997_v25  ;;  %6927 = vmatprep.subr.bf16.mxu1 %v6924_v2  ;;  %v14392_v36 = vld [vmem:[#allocation80_spill] sm:$0xff]  ;;  %v14394_v7 = vld [vmem:[#allocation87_spill] sm:$0xff]  ;;  %v14395_v28 = vld [vmem:[#allocation82_spill] sm:$0xff] }
0x1c89   : > { %v1720_v16 = vadd.f32 %v7623_v38, %v1714_v33  ;;  %v1721_v29 = vadd.f32 %v7624_v39, %v1716_v22  ;;  %v2470_v58 = vadd.f32 %v7625_v18, %v2464_v53  ;;  %v2471_v41 = vadd.f32 %v7626_v30, %v2466_v54  ;;  %6928 = vmatpush1.bf16.msra.mxu1 %v6923_v13  ;;  %v14393_v6 = vld [vmem:[#allocation84_spill] sm:$0xff]  ;;  %v14396_v42 = vld [vmem:[#allocation91_spill] sm:$0xff]  ;;  %v14397_v0 = vld [vmem:[#allocation90_spill] sm:$0xff] }
0x1c8a   : > { %v3220_v4 = vadd.f32 %v7627_v11, %v3214_v51  ;;  %v3221_v57 = vadd.f32 %v7628_v24, %v3216_v40  ;;  %v3970_v61 = vadd.f32 %v7629_v17, %v3964_v3  ;;  %v3971_v1 = vadd.f32 %v7630_v21, %v3966_v15  ;;  %v14398_v38 = vld [vmem:[#allocation25_spill] sm:$0xff]  ;;  %v7639_v39 = vld [vmem:[%s7945_s13 + $0x20] sm:$0xff]  ;;  %v7640_v18 = vld [vmem:[%s7945_s13 + $0x28] sm:$0xff] }
0x1c8b   : > { %1724 = vst [vmem:[%s13027_s4 + $0x10] sm:$0xff] %v1720_v16  ;;  %1725 = vst [vmem:[%s13027_s4 + $0x18] sm:$0xff] %v1721_v29  ;;  %v4714_v48 = vadd.f32 %v14385_v55, %v12997_v25  ;;  %v4716_v9 = vadd.f32 %v14386_v8, %v12997_v25  ;;  %v5464_v12 = vadd.f32 %v14387_v23, %v12997_v25  ;;  %v7641_v30 = vld [vmem:[%s7945_s13 + $0x40] sm:$0xff]  ;;  %v7642_v11 = vld [vmem:[%s7945_s13 + $0x48] sm:$0xff] }
0x1c8c   : > { %2474 = vst [vmem:[%s13027_s4 + $0x30] sm:$0xff] %v2470_v58  ;;  %2475 = vst [vmem:[%s13027_s4 + $0x38] sm:$0xff] %v2471_v41  ;;  %v5466_v60 = vadd.f32 %v14388_v63, %v12997_v25  ;;  %v6214_v35 = vadd.f32 %v12960_v47, %v12997_v25  ;;  %v6216_v62 = vadd.f32 %v12962_v46, %v12997_v25  ;;  %7180 = vmatmul.mubr.msk.bf16.vlgmr.msra.gmra.mrb[68].mxu1 %vm1432_vm10, %v12941_v26  ;;  %v7633_v46 = vld [vmem:[%s7945_s13 + $0xb0] sm:$0xff]  ;;  %v7637_v26 = vld [vmem:[%s7945_s13] sm:$0xff] }
0x1c8d   : > { %3224 = vst [vmem:[%s13027_s4 + $0x50] sm:$0xff] %v3220_v4  ;;  %3225 = vst [vmem:[%s13027_s4 + $0x58] sm:$0xff] %v3221_v57  ;;  %v1710_v19 = vadd.f32 %v14389_v45, %v13019_v27  ;;  %v1712_v20 = vadd.f32 %v14390_v43, %v13019_v27  ;;  %v4720_v14 = vadd.f32 %v7631_v56, %v4714_v48  ;;  %v7643_v24 = vld [vmem:[%s7945_s13 + $0x60] sm:$0xff]  ;;  %v7644_v17 = vld [vmem:[%s7945_s13 + $0x68] sm:$0xff] }
0x1c8e   : > { %3974 = vst [vmem:[%s13027_s4 + $0x70] sm:$0xff] %v3970_v61  ;;  %3975 = vst [vmem:[%s13027_s4 + $0x78] sm:$0xff] %v3971_v1  ;;  %v4721_v47 = vadd.f32 %v7632_v10, %v4716_v9  ;;  %v5470_v44 = vadd.f32 %v7633_v46, %v5464_v12  ;;  %v5471_v52 = vadd.f32 %v7634_v5, %v5466_v60  ;;  %v7645_v21 = vld [vmem:[%s7945_s13 + $0x80] sm:$0xff]  ;;  %v7646_v55 = vld [vmem:[%s7945_s13 + $0x88] sm:$0xff] }
0x1c8f   : > { %v6220_v50 = vadd.f32 %v7635_v37, %v6214_v35  ;;  %v6221_v13 = vadd.f32 %v7636_v34, %v6216_v62  ;;  %v1718_v2 = vadd.f32 %v7637_v26, %v1710_v19  ;;  %v1719_v33 = vadd.f32 %v7638_v49, %v1712_v20  ;;  %4724 = vst [vmem:[%s13027_s4 + $0x90] sm:$0xff] %v4720_v14  ;;  %v14399_v8 = vld [vmem:[#allocation98_spill] sm:$0xff]  ;;  %v7647_v35 = vld [vmem:[%s7945_s13 + $0xa0] sm:$0xff]  ;;  %v7648_v45 = vld [vmem:[%s7945_s13 + $0xa8] sm:$0xff] }
0x1c90   : > { %4725 = vst [vmem:[%s13027_s4 + $0x98] sm:$0xff] %v4721_v47  ;;  %5474 = vst [vmem:[%s13027_s4 + $0xb0] sm:$0xff] %v5470_v44  ;;  %v2460_v22 = vadd.f32 %v14391_v31, %v13019_v27  ;;  %v2462_v53 = vadd.f32 %v14392_v36, %v13019_v27  ;;  %v3210_v54 = vadd.f32 %v14393_v6, %v13019_v27  ;;  %v14400_v23 = vld [vmem:[#allocation70_spill] sm:$0xff]  ;;  %v7649_v43 = vld [vmem:[%s7945_s13 + $0xc0] sm:$0xff] }
0x1c91   : > { %5475 = vst [vmem:[%s13027_s4 + $0xb8] sm:$0xff] %v5471_v52  ;;  %v3212_v51 = vadd.f32 %v14394_v7, %v13019_v27  ;;  %6224 = vst [vmem:[%s13027_s4 + $0xd0] sm:$0xff] %v6220_v50  ;;  %v3960_v40 = vadd.f32 %v14395_v28, %v13019_v27  ;;  %v3962_v3 = vadd.f32 %v14396_v42, %v13019_v27  ;;  %v7650_v56 = vld [vmem:[%s7945_s13 + $0xc8] sm:$0xff]  ;;  %v7651_v44 = vld [vmem:[%s7945_s13 + $0xe0] sm:$0xff] }
0x1c92   : > { %6225 = vst [vmem:[%s13027_s4 + $0xd8] sm:$0xff] %v6221_v13  ;;  %1722 = vst [vmem:[%s13027_s4] sm:$0xff] %v1718_v2  ;;  %v4710_v15 = vadd.f32 %v14397_v0, %v13019_v27  ;;  %v4712_v16 = vadd.f32 %v14398_v38, %v13019_v27  ;;  %v2468_v29 = vadd.f32 %v7639_v39, %v2460_v22  ;;  %v7652_v50 = vld [vmem:[%s7945_s13 + $0xe8] sm:$0xff]  ;;  %v7653_v26 = vld [vmem:[%s7945_s13 + $0xf0] sm:$0xff] }
0x1c93   : > { %1723 = vst [vmem:[%s13027_s4 + $0x8] sm:$0xff] %v1719_v33  ;;  %v2469_v58 = vadd.f32 %v7640_v18, %v2462_v53  ;;  %v3218_v41 = vadd.f32 %v7641_v30, %v3210_v54  ;;  %v3219_v4 = vadd.f32 %v7642_v11, %v3212_v51  ;;  %v3968_v57 = vadd.f32 %v7643_v24, %v3960_v40  ;;  %v7654_v2 = vld [vmem:[%s7945_s13 + $0xf8] sm:$0xff] }
0x1c94   : > { %v3969_v61 = vadd.f32 %v7644_v17, %v3962_v3  ;;  %v4718_v1 = vadd.f32 %v7645_v21, %v4710_v15  ;;  %v4719_v48 = vadd.f32 %v7646_v55, %v4712_v16  ;;  %2472 = vst [vmem:[%s13027_s4 + $0x20] sm:$0xff] %v2468_v29  ;;  %v5460_v9 = vadd.f32 %v14399_v8, %v13019_v27 }
0x1c95   : > { %2473 = vst [vmem:[%s13027_s4 + $0x28] sm:$0xff] %v2469_v58  ;;  %3222 = vst [vmem:[%s13027_s4 + $0x40] sm:$0xff] %v3218_v41  ;;  %v5462_v12 = vadd.f32 %v14400_v23, %v13019_v27  ;;  %v6210_v63 = vadd.f32 %v12956_v32, %v13019_v27  ;;  %v6212_v60 = vadd.f32 %v12958_v59, %v13019_v27 }
0x1c96   : > { %3223 = vst [vmem:[%s13027_s4 + $0x48] sm:$0xff] %v3219_v4  ;;  %3972 = vst [vmem:[%s13027_s4 + $0x60] sm:$0xff] %v3968_v57  ;;  %v5468_v62 = vadd.f32 %v7647_v35, %v5460_v9 }
0x1c97   : > { %3973 = vst [vmem:[%s13027_s4 + $0x68] sm:$0xff] %v3969_v61  ;;  %4722 = vst [vmem:[%s13027_s4 + $0x80] sm:$0xff] %v4718_v1  ;;  %v5469_v19 = vadd.f32 %v7648_v45, %v5462_v12  ;;  %v6218_v20 = vadd.f32 %v7649_v43, %v6210_v63  ;;  %v6219_v32 = vadd.f32 %v7650_v56, %v6212_v60 }
0x1c98   : > { %4723 = vst [vmem:[%s13027_s4 + $0x88] sm:$0xff] %v4719_v48  ;;  %5472 = vst [vmem:[%s13027_s4 + $0xa0] sm:$0xff] %v5468_v62 }
0x1c99   : > { %5473 = vst [vmem:[%s13027_s4 + $0xa8] sm:$0xff] %v5469_v19  ;;  %6222 = vst [vmem:[%s13027_s4 + $0xc0] sm:$0xff] %v6218_v20 }
0x1c9a   : > { %6223 = vst [vmem:[%s13027_s4 + $0xc8] sm:$0xff] %v6219_v32 }
0x1d5f   : > { %v6959_v59 = vpop.f32.mrb[68].mxu1 }
0x1d60   : > { %v6960_v14 = vadd.f32 %v6959_v59, %v13019_v27  ;;  %v6961_v10 = vpop.f32.mrb[69].mxu1 }
0x1d61   : > { %v6962_v47 = vadd.f32 %v6961_v10, %v13019_v27  ;;  %v6963_v46 = vpop.f32.mrb[70].mxu1 }
0x1d62   : > { %v6968_v5 = vadd.f32 %v7651_v44, %v6960_v14  ;;  %v6964_v52 = vadd.f32 %v6963_v46, %v12997_v25  ;;  %v6965_v37 = vpop.f32.mrb[71].mxu1 }
0x1d63   : > { %v6969_v34 = vadd.f32 %v7652_v50, %v6962_v47  ;;  %v6966_v13 = vadd.f32 %v6965_v37, %v12997_v25 }
0x1d64   : > { %6972 = vst [vmem:[%s13027_s4 + $0xe0] sm:$0xff] %v6968_v5  ;;  %v6970_v27 = vadd.f32 %v7653_v26, %v6964_v52 }
0x1d65   : > { %6973 = vst [vmem:[%s13027_s4 + $0xe8] sm:$0xff] %v6969_v34  ;;  %v6971_v49 = vadd.f32 %v7654_v2, %v6966_v13 }
0x1d66   : > { %6974 = vst [vmem:[%s13027_s4 + $0xf0] sm:$0xff] %v6970_v27 }
0x1d67   : > { %6975 = vst [vmem:[%s13027_s4 + $0xf8] sm:$0xff] %v6971_v49 }
0x1d68   : > { %7698 = shalt.err (!%p7695_p2)
}
0x1d69   : > { %s7699_s13 = scalar_lea.hbm %s13132_s25, 4096  ;;  %s7703_s3 = scalar_lea.hbm %s13195_s12, 8192 }
0x1d6a   : > { %p7700_p4 = scmp.ne.s32.totalorder %s13132_s25, %s7699_s13  ;;  %p7704_p9 = scmp.lt.u32.totalorder %s13132_s25, %s13195_s12 }
0x1d6b   : > { %p7705_p1 = scmp.lt.u32.totalorder %s7703_s3, %s7699_s13  ;;  %p7707_p6 = scmp.lt.u32.totalorder %s7699_s13, %s13132_s25 }
0x1d6c   : > { %p7701_p5 = pnand %p7700_p4, %p14401_p11 }
0x1d6d   : > { %p7706_p3 = por %p7705_p1, %p7704_p9 }
0x1d6e   : > { %p7702_p7 = pneg %p7701_p5 }
0x1d6f   : > { %p7708_p12 = por %p7707_p6, %p7706_p3 }
0x1d71   : > { %p7709_p13 = pnand %p7708_p12, %p7702_p7 }
0x1d73   : > { %7712 = shalt.err (!%p7709_p13)
}
0x1d74   : > { %s7769_s2 = smov 256  }
0x1d75   : > { %7473 = dma.vmem_to_hbm [thread:$0]  (%p14401_p11), %s13136_s0, 4096, %s13132_s25, %s6977_s20, %s7769_s2, %s7769_s2, %s13786_s17  }
0x1d76 PF: > { %s7006_s29 = sand.u32 1, %s7739_s21   ;;  %p14402_p8 = scmp.ne.s32.totalorder %s13592_s16, 0 }
0x1d77   : > { %p14403_p10 = scmp.ge.s32.totalorder %s7751_s24, 2  ;;  %s7007_s28 = scalar_lea.sflag [#allocation4], %s7006_s29 }
0x1d79   : > { %p7480_p0 = pnand %p14403_p10, %p14402_p8 }
0x1d7b   : > { %7734 = dma.done.wait (!%p7480_p0), %s7007_s28, 4096  }
0x1d7c   : > { %7736 = vsyncadd (!%p7480_p0), %s7007_s28, 4294963200  ;;  %s14404_s24 = sld [smem:[#allocation9_spill]]  ;;  %s14405_s15 = sld [smem:[#allocation8_spill]] }
0x1d7d   : > { %s14406_s23 = sld [smem:[#allocation10_spill]]  ;;  %s14407_s21 = smov %s7743_s22 }
0x1d82   : > { %p25_p2 = scmp.ge.s32.totalorder %s14404_s24, 4   ;;  %s14408_s22 = smov %s14405_s15 }
0x1d84   :  { %27 = sbr.rel (!%p25_p2) target bundleno = 10 (0xa), region = 129 }
0x1d8b   :  { %7012 = vsyncpa [#allocation3], 1 }
0x1d8c   :  { %7014 = vsyncpa [#allocation3 + $0x1], 1 }
0x1d8d   :  { %7015 = vsyncpa [#allocation4], 1 }
0x1d8e   :  { %7017 = vsyncpa [#allocation4 + $0x1], 1 }

</bundles_post_ra>
